<compile_context>
chip_gen: v7x
topology: tpu7x:2x2x1
jax: 0.10.0
libtpu: 0.0.40
codegen_flags: <defaults>
</compile_context>

<pallas_src>
import numpy as np
import jax
import jax.numpy as jnp
from jax.experimental import pallas as pl
from jax.experimental.pallas import tpu as pltpu

NB = 8        # images per grid step
LANE = 128    # lane-dense width for all channel / feature dims


def _round_up(x, m):
    return (x + m - 1) // m * m


# --------------------------------- kernel ----------------------------------- #

def _lenet_kernel(x_ref, w1t_ref, b1_ref, w2t_ref, b2_ref,
                  wf1_ref, bf1_ref, wf2_ref, bf2_ref, wf3_ref, bf3_ref,
                  o_ref, lhs1_ref, lhs2_ref, fcin_ref):
    """Whole LeNet forward for one batch tile of NB images (all in VMEM).

    x_ref:  (NB, 4, 8, 32) bf16, x_ref[n, r, a, iw] = image[n, 4a + r, iw]
    w1t:    (8, 256, 128)  bf16 conv1 Toeplitz weights, index 2*(2e+di)+dj
    w2t:    (4, 768, 128)  bf16 conv2 Toeplitz weights, index 2*di+dj
    wf1/2/3: fc weights (K, 128) bf16;  b*: (1, 128) f32 biases
    o_ref:  (NB, 128) f32 logits (10 real lanes)
    """
    f32, bf16 = jnp.float32, jnp.bfloat16

    # -- conv1 LHS: row n*8+ih holds input rows 4*ih .. 4*ih+7 (8 blocks of 32)
    lhs1_ref[...] = jnp.zeros_like(lhs1_ref)
    for n in range(NB):
        for s in range(8):
            lhs1_ref[n * 8:n * 8 + 7, s * 32:(s + 1) * 32] = \
                x_ref[n, s & 3, (s >> 2):(s >> 2) + 7, :]
    lhs1 = lhs1_ref[...]

    # -- conv1 + bias + ReLU + 2x2 maxpool; pooled row parity e via weight set.
    #    Output rows (n, i_half), lanes j*8 + c  (j: pooled col, c: channel).
    b1 = b1_ref[...]
    pooled1 = []
    for e in range(2):
        zs = [jnp.dot(lhs1, w1t_ref[2 * (2 * e + di) + dj],
                      preferred_element_type=f32)
              for di in range(2) for dj in range(2)]
        z = jnp.maximum(jnp.maximum(zs[0], zs[1]), jnp.maximum(zs[2], zs[3]))
        pooled1.append(jnp.maximum(z + b1, 0.0).astype(bf16))      # (NB*8, 128)

    # -- conv2 LHS: row n*8+i2 holds pooled1 rows 2*i2 .. 2*i2+5 (6 blocks of 128)
    lhs2_ref[...] = jnp.zeros_like(lhs2_ref)
    for n in range(NB):
        for t in range(6):
            lhs2_ref[n * 8:n * 8 + 5, t * 128:(t + 1) * 128] = \
                pooled1[t & 1][n * 8 + (t >> 1):n * 8 + (t >> 1) + 5, :]
    lhs2 = lhs2_ref[...]

    # -- conv2 + bias + ReLU + 2x2 maxpool.  Lanes j2*16 + c2.
    z2s = [jnp.dot(lhs2, w2t_ref[2 * di + dj], preferred_element_type=f32)
           for di in range(2) for dj in range(2)]
    z2 = jnp.maximum(jnp.maximum(z2s[0], z2s[1]), jnp.maximum(z2s[2], z2s[3]))
    pooled2 = jnp.maximum(z2 + b2_ref[...], 0.0).astype(bf16)       # (NB*8, 128)

    # -- flatten: fcin[n, i2*128 + lane] = pooled2[n*8 + i2, lane]
    for n in range(NB):
        for i2 in range(5):
            fcin_ref[n:n + 1, i2 * 128:(i2 + 1) * 128] = \
                pooled2[n * 8 + i2:n * 8 + i2 + 1, :]
    fcin = fcin_ref[...]

    # -- fc1 -> ReLU -> fc2 -> ReLU -> fc3 (bf16 MXU operands, f32 epilogue)
    h = jnp.dot(fcin, wf1_ref[...], preferred_element_type=f32) + bf1_ref[...]
    h = jnp.maximum(h, 0.0).astype(bf16)
    h = jnp.dot(h, wf2_ref[...], preferred_element_type=f32) + bf2_ref[...]
    h = jnp.maximum(h, 0.0).astype(bf16)
    y = jnp.dot(h, wf3_ref[...], preferred_element_type=f32) + bf3_ref[...]
    o_ref[...] = y


# --------------------------------- wrapper ---------------------------------- #

def net_forward(prepped, x_nchw):
    """x_nchw: (N, 1, 32, 32) float32 -> logits (N, 10) float32."""
    N = x_nchw.shape[0]
    # mod-4 row split of the raw input (same bytes, just reordered):
    # xs[n, r, a, iw] = x[n, 0, 4*a + r, iw]
    xs = x_nchw.reshape(N, 8, 4, 32).transpose(0, 2, 1, 3).astype(jnp.bfloat16)
    n_pad = max(_round_up(N, NB), 2 * NB)        # >= 2 grid steps (v7x megacore)
    if n_pad != N:
        xs = jnp.pad(xs, ((0, n_pad - N), (0, 0), (0, 0), (0, 0)))

    out = pl.pallas_call(
        _lenet_kernel,
        out_shape=jax.ShapeDtypeStruct((n_pad, LANE), jnp.float32),
        grid=(n_pad // NB,),
        in_specs=[
            pl.BlockSpec((NB, 4, 8, 32), lambda i: (i, 0, 0, 0)),
            pl.BlockSpec((8, 256, LANE), lambda i: (0, 0, 0)),
            pl.BlockSpec((1, LANE), lambda i: (0, 0)),
            pl.BlockSpec((4, 768, LANE), lambda i: (0, 0, 0)),
            pl.BlockSpec((1, LANE), lambda i: (0, 0)),
            pl.BlockSpec((640, LANE), lambda i: (0, 0)),
            pl.BlockSpec((1, LANE), lambda i: (0, 0)),
            pl.BlockSpec((LANE, LANE), lambda i: (0, 0)),
            pl.BlockSpec((1, LANE), lambda i: (0, 0)),
            pl.BlockSpec((LANE, LANE), lambda i: (0, 0)),
            pl.BlockSpec((1, LANE), lambda i: (0, 0)),
        ],
        out_specs=pl.BlockSpec((NB, LANE), lambda i: (i, 0)),
        scratch_shapes=[
            pltpu.VMEM((NB * 8, 256), jnp.bfloat16),     # conv1 LHS
            pltpu.VMEM((NB * 8, 768), jnp.bfloat16),     # conv2 LHS
            pltpu.VMEM((NB, 640), jnp.bfloat16),         # fc1 input
        ],
        compiler_params=pltpu.CompilerParams(
            dimension_semantics=("parallel",),
            vmem_limit_bytes=32 * 1024 * 1024,
        ),
    )(xs, prepped["w1t"], prepped["b1"], prepped["w2t"], prepped["b2"],
      prepped["wf1"], prepped["bf1"], prepped["wf2"], prepped["bf2"],
      prepped["wf3"], prepped["bf3"])
    return out[:N, :10]


# -------------------------- params & one-time prep -------------------------- #

def init_params(key):
    ks = jax.random.split(key, 10)

    def rnd(k, shape, scale):
        return jax.random.normal(k, shape, jnp.float32) * scale

    return {
        "conv1_w": rnd(ks[0], (6, 1, 5, 5), 0.2),     # nn.Conv2d(1, 6, 5)
        "conv1_b": rnd(ks[1], (6,), 0.1),
        "conv2_w": rnd(ks[2], (16, 6, 5, 5), 0.08),   # nn.Conv2d(6, 16, 5)
        "conv2_b": rnd(ks[3], (16,), 0.1),
        "fc1_w": rnd(ks[4], (120, 400), 0.05),        # nn.Linear(400, 120)
        "fc1_b": rnd(ks[5], (120,), 0.1),
        "fc2_w": rnd(ks[6], (84, 120), 0.09),         # nn.Linear(120, 84)
        "fc2_b": rnd(ks[7], (84,), 0.1),
        "fc3_w": rnd(ks[8], (10, 84), 0.1),           # nn.Linear(84, 10)
        "fc3_b": rnd(ks[9], (10,), 0.1),
    }


def prepare_params(p):
    """One-time host-side weight re-layout (call OUTSIDE jit).

    Builds Toeplitz-style conv matrices that fold the kernel taps, the input
    column offsets and the pooling-corner offsets into the GEMM weights, plus
    lane-padded fc weights that consume the kernel's internal layouts directly.
    """
    w1 = np.asarray(p["conv1_w"], np.float32)    # (6, 1, 5, 5)
    w2 = np.asarray(p["conv2_w"], np.float32)    # (16, 6, 5, 5)
    f1 = np.asarray(p["fc1_w"], np.float32)      # (120, 400)
    f2 = np.asarray(p["fc2_w"], np.float32)      # (84, 120)
    f3 = np.asarray(p["fc3_w"], np.float32)      # (10, 84)

    # conv1: index 2*o + dj with o = 2e + di (e: pooled-row parity, di/dj: corner)
    # rows s*32 + iw (s = o + kh, iw = 2j + dj + kw), cols j*8 + c
    w1t = np.zeros((8, 256, LANE), np.float32)
    for o in range(4):
        for dj in range(2):
            for kh in range(5):
                s = o + kh
                for kw in range(5):
                    for j in range(14):
                        iw = 2 * j + dj + kw
                        w1t[2 * o + dj, s * 32 + iw, j * 8:j * 8 + 6] = w1[:, 0, kh, kw]
    b1r = np.zeros((1, LANE), np.float32)
    for j in range(14):
        b1r[0, j * 8:j * 8 + 6] = np.asarray(p["conv1_b"])

    # conv2: index 2*di + dj; rows t*128 + j*8 + ci (t = di + kh, j = 2j2+dj+kw),
    # cols j2*16 + c2
    w2t = np.zeros((4, 768, LANE), np.float32)
    for di in range(2):
        for dj in range(2):
            for kh in range(5):
                t = di + kh
                for kw in range(5):
                    for j2 in range(5):
                        j = 2 * j2 + dj + kw
                        w2t[2 * di + dj,
                            t * 128 + j * 8:t * 128 + j * 8 + 6,
                            j2 * 16:j2 * 16 + 16] = w2[:, :, kh, kw].T
    b2r = np.zeros((1, LANE), np.float32)
    for j2 in range(5):
        b2r[0, j2 * 16:j2 * 16 + 16] = np.asarray(p["conv2_b"])

    # fc1: rows i2*128 + j2*16 + c2 (the kernel's pooled2 lane layout), K = 640
    wf1 = np.zeros((640, LANE), np.float32)
    f1r = f1.reshape(120, 16, 5, 5)              # (f, c2, i2, j2)
    for i2 in range(5):
        for j2 in range(5):
            wf1[i2 * 128 + j2 * 16:i2 * 128 + j2 * 16 + 16, :120] = f1r[:, :, i2, j2].T
    bf1 = np.zeros((1, LANE), np.float32); bf1[0, :120] = np.asarray(p["fc1_b"])
    wf2 = np.zeros((LANE, LANE), np.float32); wf2[:120, :84] = f2.T
    bf2 = np.zeros((1, LANE), np.float32); bf2[0, :84] = np.asarray(p["fc2_b"])
    wf3 = np.zeros((LANE, LANE), np.float32); wf3[:84, :10] = f3.T
    bf3 = np.zeros((1, LANE), np.float32); bf3[0, :10] = np.asarray(p["fc3_b"])

    bf16 = jnp.bfloat16
    return {
        "w1t": jnp.asarray(w1t, bf16), "b1": jnp.asarray(b1r),
        "w2t": jnp.asarray(w2t, bf16), "b2": jnp.asarray(b2r),
        "wf1": jnp.asarray(wf1, bf16), "bf1": jnp.asarray(bf1),
        "wf2": jnp.asarray(wf2, bf16), "bf2": jnp.asarray(bf2),
        "wf3": jnp.asarray(wf3, bf16), "bf3": jnp.asarray(bf3),
    }


# ------------------------- plain-JAX reference check ------------------------ #

def ref_forward(params, x_nchw):
    dn = ("NCHW", "OIHW", "NCHW")
    y = jax.lax.conv_general_dilated(x_nchw, params["conv1_w"], (1, 1), "VALID",
                                     dimension_numbers=dn)
    y = jnp.maximum(y + params["conv1_b"][None, :, None, None], 0.0)
    y = jax.lax.reduce_window(y, -jnp.inf, jax.lax.max, (1, 1, 2, 2), (1, 1, 2, 2), "VALID")
    y = jax.lax.conv_general_dilated(y, params["conv2_w"], (1, 1), "VALID",
                                     dimension_numbers=dn)
    y = jnp.maximum(y + params["conv2_b"][None, :, None, None], 0.0)
    y = jax.lax.reduce_window(y, -jnp.inf, jax.lax.max, (1, 1, 2, 2), (1, 1, 2, 2), "VALID")
    y = y.reshape(y.shape[0], -1)
    y = jnp.maximum(y @ params["fc1_w"].T + params["fc1_b"], 0.0)
    y = jnp.maximum(y @ params["fc2_w"].T + params["fc2_b"], 0.0)
    return y @ params["fc3_w"].T + params["fc3_b"]


if __name__ == "__main__":
    key = jax.random.PRNGKey(0)
    pkey, xkey = jax.random.split(key)
    params = init_params(pkey)
    prepped = prepare_params(params)             # one-time weight re-layout
    # LeNet geometry needs 32x32 input so fc1 sees 16*5*5 = 400 features.
    x = jax.random.normal(xkey, (2, 1, 32, 32), jnp.float32)

    out = jax.block_until_ready(jax.jit(net_forward)(prepped, x))
    assert out.shape == (2, 10) and out.dtype == jnp.float32

    ref = jax.block_until_ready(ref_forward(params, x))
    # bf16 MXU operands vs f32 reference -> loose but bug-catching tolerance.
    assert jnp.allclose(out, ref, atol=1e-1, rtol=1e-1), "mismatch vs reference"

    print("KERNEL_OK")
</pallas_src>

<mosaic_0001>
module attributes {stable_mosaic.version = 11 : i64} {
  func.func @_lenet_kernel(%arg0: i32, %arg1: memref<8x4x8x32xbf16, #tpu.memory_space<vmem>>, %arg2: memref<8x256x128xbf16, #tpu.memory_space<vmem>>, %arg3: memref<1x128xf32, #tpu.memory_space<vmem>>, %arg4: memref<4x768x128xbf16, #tpu.memory_space<vmem>>, %arg5: memref<1x128xf32, #tpu.memory_space<vmem>>, %arg6: memref<640x128xbf16, #tpu.memory_space<vmem>>, %arg7: memref<1x128xf32, #tpu.memory_space<vmem>>, %arg8: memref<128x128xbf16, #tpu.memory_space<vmem>>, %arg9: memref<1x128xf32, #tpu.memory_space<vmem>>, %arg10: memref<128x128xbf16, #tpu.memory_space<vmem>>, %arg11: memref<1x128xf32, #tpu.memory_space<vmem>>, %arg12: memref<8x128xf32, #tpu.memory_space<vmem>>, %arg13: memref<64x256xbf16, #tpu.memory_space<vmem>>, %arg14: memref<64x768xbf16, #tpu.memory_space<vmem>>, %arg15: memref<8x640xbf16, #tpu.memory_space<vmem>>) attributes {dimension_semantics = [#tpu.dimension_semantics<parallel>], iteration_bounds = array<i64: 2>, scalar_prefetch = 0 : i64, scratch_operands = 3 : i64, tpu.core_type = #tpu.core_type<tc>, window_params = [{transform_indices = @transform_0, window_bounds = array<i64: 8, 4, 8, 32>}, {pipeline_mode = #tpu.pipeline_mode<synchronous>, transform_indices = @transform_1, window_bounds = array<i64: 8, 256, 128>}, {pipeline_mode = #tpu.pipeline_mode<synchronous>, transform_indices = @transform_2, window_bounds = array<i64: 1, 128>}, {pipeline_mode = #tpu.pipeline_mode<synchronous>, transform_indices = @transform_3, window_bounds = array<i64: 4, 768, 128>}, {pipeline_mode = #tpu.pipeline_mode<synchronous>, transform_indices = @transform_4, window_bounds = array<i64: 1, 128>}, {pipeline_mode = #tpu.pipeline_mode<synchronous>, transform_indices = @transform_5, window_bounds = array<i64: 640, 128>}, {pipeline_mode = #tpu.pipeline_mode<synchronous>, transform_indices = @transform_6, window_bounds = array<i64: 1, 128>}, {pipeline_mode = #tpu.pipeline_mode<synchronous>, transform_indices = @transform_7, window_bounds = array<i64: 128, 128>}, {pipeline_mode = #tpu.pipeline_mode<synchronous>, transform_indices = @transform_8, window_bounds = array<i64: 1, 128>}, {pipeline_mode = #tpu.pipeline_mode<synchronous>, transform_indices = @transform_9, window_bounds = array<i64: 128, 128>}, {pipeline_mode = #tpu.pipeline_mode<synchronous>, transform_indices = @transform_10, window_bounds = array<i64: 1, 128>}, {transform_indices = @transform_11, window_bounds = array<i64: 8, 128>}]} {
    %cst = arith.constant 0.000000e+00 : bf16
    %0 = vector.broadcast %cst : bf16 to vector<64x256xbf16>
    %c0 = arith.constant 0 : index
    %c0_0 = arith.constant 0 : index
    %1 = vector.load %arg13[%c0, %c0_0] : memref<64x256xbf16, #tpu.memory_space<vmem>>, vector<64x256xbf16>
    tpu.vector_store %arg13[%c0, %c0_0], %0 {strides = array<i32>} : memref<64x256xbf16, #tpu.memory_space<vmem>>, vector<64x256xbf16>,
    %c0_1 = arith.constant 0 : index
    %c0_2 = arith.constant 0 : index
    %c0_3 = arith.constant 0 : index
    %c0_4 = arith.constant 0 : index
    %2 = vector.load %arg1[%c0_1, %c0_2, %c0_3, %c0_4] : memref<8x4x8x32xbf16, #tpu.memory_space<vmem>>, vector<1x1x7x32xbf16>
    %3 = vector.shape_cast %2 : vector<1x1x7x32xbf16> to vector<7x32xbf16>
    %c0_5 = arith.constant 0 : index
    %c0_6 = arith.constant 0 : index
    %4 = vector.load %arg13[%c0_5, %c0_6] : memref<64x256xbf16, #tpu.memory_space<vmem>>, vector<7x32xbf16>
    tpu.vector_store %arg13[%c0_5, %c0_6], %3 {strides = array<i32>} : memref<64x256xbf16, #tpu.memory_space<vmem>>, vector<7x32xbf16>,
    %c0_7 = arith.constant 0 : index
    %c1 = arith.constant 1 : index
    %c0_8 = arith.constant 0 : index
    %c0_9 = arith.constant 0 : index
    %5 = vector.load %arg1[%c0_7, %c1, %c0_8, %c0_9] : memref<8x4x8x32xbf16, #tpu.memory_space<vmem>>, vector<1x1x7x32xbf16>
    %6 = vector.shape_cast %5 : vector<1x1x7x32xbf16> to vector<7x32xbf16>
    %c0_10 = arith.constant 0 : index
    %c32 = arith.constant 32 : index
    %7 = vector.load %arg13[%c0_10, %c32] : memref<64x256xbf16, #tpu.memory_space<vmem>>, vector<7x32xbf16>
    tpu.vector_store %arg13[%c0_10, %c32], %6 {strides = array<i32>} : memref<64x256xbf16, #tpu.memory_space<vmem>>, vector<7x32xbf16>,
    %c0_11 = arith.constant 0 : index
    %c2 = arith.constant 2 : index
    %c0_12 = arith.constant 0 : index
    %c0_13 = arith.constant 0 : index
    %8 = vector.load %arg1[%c0_11, %c2, %c0_12, %c0_13] : memref<8x4x8x32xbf16, #tpu.memory_space<vmem>>, vector<1x1x7x32xbf16>
    %9 = vector.shape_cast %8 : vector<1x1x7x32xbf16> to vector<7x32xbf16>
    %c0_14 = arith.constant 0 : index
    %c64 = arith.constant 64 : index
    %10 = vector.load %arg13[%c0_14, %c64] : memref<64x256xbf16, #tpu.memory_space<vmem>>, vector<7x32xbf16>
    tpu.vector_store %arg13[%c0_14, %c64], %9 {strides = array<i32>} : memref<64x256xbf16, #tpu.memory_space<vmem>>, vector<7x32xbf16>,
    %c0_15 = arith.constant 0 : index
    %c3 = arith.constant 3 : index
    %c0_16 = arith.constant 0 : index
    %c0_17 = arith.constant 0 : index
    %11 = vector.load %arg1[%c0_15, %c3, %c0_16, %c0_17] : memref<8x4x8x32xbf16, #tpu.memory_space<vmem>>, vector<1x1x7x32xbf16>
    %12 = vector.shape_cast %11 : vector<1x1x7x32xbf16> to vector<7x32xbf16>
    %c0_18 = arith.constant 0 : index
    %c96 = arith.constant 96 : index
    %13 = vector.load %arg13[%c0_18, %c96] : memref<64x256xbf16, #tpu.memory_space<vmem>>, vector<7x32xbf16>
    tpu.vector_store %arg13[%c0_18, %c96], %12 {strides = array<i32>} : memref<64x256xbf16, #tpu.memory_space<vmem>>, vector<7x32xbf16>,
    %c0_19 = arith.constant 0 : index
    %c0_20 = arith.constant 0 : index
    %c1_21 = arith.constant 1 : index
    %c0_22 = arith.constant 0 : index
    %14 = vector.load %arg1[%c0_19, %c0_20, %c1_21, %c0_22] : memref<8x4x8x32xbf16, #tpu.memory_space<vmem>>, vector<1x1x7x32xbf16>
    %15 = vector.shape_cast %14 : vector<1x1x7x32xbf16> to vector<7x32xbf16>
    %c0_23 = arith.constant 0 : index
    %c128 = arith.constant 128 : index
    %16 = vector.load %arg13[%c0_23, %c128] : memref<64x256xbf16, #tpu.memory_space<vmem>>, vector<7x32xbf16>
    tpu.vector_store %arg13[%c0_23, %c128], %15 {strides = array<i32>} : memref<64x256xbf16, #tpu.memory_space<vmem>>, vector<7x32xbf16>,
    %c0_24 = arith.constant 0 : index
    %c1_25 = arith.constant 1 : index
    %c1_26 = arith.constant 1 : index
    %c0_27 = arith.constant 0 : index
    %17 = vector.load %arg1[%c0_24, %c1_25, %c1_26, %c0_27] : memref<8x4x8x32xbf16, #tpu.memory_space<vmem>>, vector<1x1x7x32xbf16>
    %18 = vector.shape_cast %17 : vector<1x1x7x32xbf16> to vector<7x32xbf16>
    %c0_28 = arith.constant 0 : index
    %c160 = arith.constant 160 : index
    %19 = vector.load %arg13[%c0_28, %c160] : memref<64x256xbf16, #tpu.memory_space<vmem>>, vector<7x32xbf16>
    tpu.vector_store %arg13[%c0_28, %c160], %18 {strides = array<i32>} : memref<64x256xbf16, #tpu.memory_space<vmem>>, vector<7x32xbf16>,
    %c0_29 = arith.constant 0 : index
    %c2_30 = arith.constant 2 : index
    %c1_31 = arith.constant 1 : index
    %c0_32 = arith.constant 0 : index
    %20 = vector.load %arg1[%c0_29, %c2_30, %c1_31, %c0_32] : memref<8x4x8x32xbf16, #tpu.memory_space<vmem>>, vector<1x1x7x32xbf16>
    %21 = vector.shape_cast %20 : vector<1x1x7x32xbf16> to vector<7x32xbf16>
    %c0_33 = arith.constant 0 : index
    %c192 = arith.constant 192 : index
    %22 = vector.load %arg13[%c0_33, %c192] : memref<64x256xbf16, #tpu.memory_space<vmem>>, vector<7x32xbf16>
    tpu.vector_store %arg13[%c0_33, %c192], %21 {strides = array<i32>} : memref<64x256xbf16, #tpu.memory_space<vmem>>, vector<7x32xbf16>,
    %c0_34 = arith.constant 0 : index
    %c3_35 = arith.constant 3 : index
    %c1_36 = arith.constant 1 : index
    %c0_37 = arith.constant 0 : index
    %23 = vector.load %arg1[%c0_34, %c3_35, %c1_36, %c0_37] : memref<8x4x8x32xbf16, #tpu.memory_space<vmem>>, vector<1x1x7x32xbf16>
    %24 = vector.shape_cast %23 : vector<1x1x7x32xbf16> to vector<7x32xbf16>
    %c0_38 = arith.constant 0 : index
    %c224 = arith.constant 224 : index
    %25 = vector.load %arg13[%c0_38, %c224] : memref<64x256xbf16, #tpu.memory_space<vmem>>, vector<7x32xbf16>
    tpu.vector_store %arg13[%c0_38, %c224], %24 {strides = array<i32>} : memref<64x256xbf16, #tpu.memory_space<vmem>>, vector<7x32xbf16>,
    %c1_39 = arith.constant 1 : index
    %c0_40 = arith.constant 0 : index
    %c0_41 = arith.constant 0 : index
    %c0_42 = arith.constant 0 : index
    %26 = vector.load %arg1[%c1_39, %c0_40, %c0_41, %c0_42] : memref<8x4x8x32xbf16, #tpu.memory_space<vmem>>, vector<1x1x7x32xbf16>
    %27 = vector.shape_cast %26 : vector<1x1x7x32xbf16> to vector<7x32xbf16>
    %c8 = arith.constant 8 : index
    %c0_43 = arith.constant 0 : index
    %28 = vector.load %arg13[%c8, %c0_43] : memref<64x256xbf16, #tpu.memory_space<vmem>>, vector<7x32xbf16>
    tpu.vector_store %arg13[%c8, %c0_43], %27 {strides = array<i32>} : memref<64x256xbf16, #tpu.memory_space<vmem>>, vector<7x32xbf16>,
    %c1_44 = arith.constant 1 : index
    %c1_45 = arith.constant 1 : index
    %c0_46 = arith.constant 0 : index
    %c0_47 = arith.constant 0 : index
    %29 = vector.load %arg1[%c1_44, %c1_45, %c0_46, %c0_47] : memref<8x4x8x32xbf16, #tpu.memory_space<vmem>>, vector<1x1x7x32xbf16>
    %30 = vector.shape_cast %29 : vector<1x1x7x32xbf16> to vector<7x32xbf16>
    %c8_48 = arith.constant 8 : index
    %c32_49 = arith.constant 32 : index
    %31 = vector.load %arg13[%c8_48, %c32_49] : memref<64x256xbf16, #tpu.memory_space<vmem>>, vector<7x32xbf16>
    tpu.vector_store %arg13[%c8_48, %c32_49], %30 {strides = array<i32>} : memref<64x256xbf16, #tpu.memory_space<vmem>>, vector<7x32xbf16>,
    %c1_50 = arith.constant 1 : index
    %c2_51 = arith.constant 2 : index
    %c0_52 = arith.constant 0 : index
    %c0_53 = arith.constant 0 : index
    %32 = vector.load %arg1[%c1_50, %c2_51, %c0_52, %c0_53] : memref<8x4x8x32xbf16, #tpu.memory_space<vmem>>, vector<1x1x7x32xbf16>
    %33 = vector.shape_cast %32 : vector<1x1x7x32xbf16> to vector<7x32xbf16>
    %c8_54 = arith.constant 8 : index
    %c64_55 = arith.constant 64 : index
    %34 = vector.load %arg13[%c8_54, %c64_55] : memref<64x256xbf16, #tpu.memory_space<vmem>>, vector<7x32xbf16>
    tpu.vector_store %arg13[%c8_54, %c64_55], %33 {strides = array<i32>} : memref<64x256xbf16, #tpu.memory_space<vmem>>, vector<7x32xbf16>,
    %c1_56 = arith.constant 1 : index
    %c3_57 = arith.constant 3 : index
    %c0_58 = arith.constant 0 : index
    %c0_59 = arith.constant 0 : index
    %35 = vector.load %arg1[%c1_56, %c3_57, %c0_58, %c0_59] : memref<8x4x8x32xbf16, #tpu.memory_space<vmem>>, vector<1x1x7x32xbf16>
    %36 = vector.shape_cast %35 : vector<1x1x7x32xbf16> to vector<7x32xbf16>
    %c8_60 = arith.constant 8 : index
    %c96_61 = arith.constant 96 : index
    %37 = vector.load %arg13[%c8_60, %c96_61] : memref<64x256xbf16, #tpu.memory_space<vmem>>, vector<7x32xbf16>
    tpu.vector_store %arg13[%c8_60, %c96_61], %36 {strides = array<i32>} : memref<64x256xbf16, #tpu.memory_space<vmem>>, vector<7x32xbf16>,
    %c1_62 = arith.constant 1 : index
    %c0_63 = arith.constant 0 : index
    %c1_64 = arith.constant 1 : index
    %c0_65 = arith.constant 0 : index
    %38 = vector.load %arg1[%c1_62, %c0_63, %c1_64, %c0_65] : memref<8x4x8x32xbf16, #tpu.memory_space<vmem>>, vector<1x1x7x32xbf16>
    %39 = vector.shape_cast %38 : vector<1x1x7x32xbf16> to vector<7x32xbf16>
    %c8_66 = arith.constant 8 : index
    %c128_67 = arith.constant 128 : index
    %40 = vector.load %arg13[%c8_66, %c128_67] : memref<64x256xbf16, #tpu.memory_space<vmem>>, vector<7x32xbf16>
    tpu.vector_store %arg13[%c8_66, %c128_67], %39 {strides = array<i32>} : memref<64x256xbf16, #tpu.memory_space<vmem>>, vector<7x32xbf16>,
    %c1_68 = arith.constant 1 : index
    %c1_69 = arith.constant 1 : index
    %c1_70 = arith.constant 1 : index
    %c0_71 = arith.constant 0 : index
    %41 = vector.load %arg1[%c1_68, %c1_69, %c1_70, %c0_71] : memref<8x4x8x32xbf16, #tpu.memory_space<vmem>>, vector<1x1x7x32xbf16>
    %42 = vector.shape_cast %41 : vector<1x1x7x32xbf16> to vector<7x32xbf16>
    %c8_72 = arith.constant 8 : index
    %c160_73 = arith.constant 160 : index
    %43 = vector.load %arg13[%c8_72, %c160_73] : memref<64x256xbf16, #tpu.memory_space<vmem>>, vector<7x32xbf16>
    tpu.vector_store %arg13[%c8_72, %c160_73], %42 {strides = array<i32>} : memref<64x256xbf16, #tpu.memory_space<vmem>>, vector<7x32xbf16>,
    %c1_74 = arith.constant 1 : index
    %c2_75 = arith.constant 2 : index
    %c1_76 = arith.constant 1 : index
    %c0_77 = arith.constant 0 : index
    %44 = vector.load %arg1[%c1_74, %c2_75, %c1_76, %c0_77] : memref<8x4x8x32xbf16, #tpu.memory_space<vmem>>, vector<1x1x7x32xbf16>
    %45 = vector.shape_cast %44 : vector<1x1x7x32xbf16> to vector<7x32xbf16>
    %c8_78 = arith.constant 8 : index
    %c192_79 = arith.constant 192 : index
    %46 = vector.load %arg13[%c8_78, %c192_79] : memref<64x256xbf16, #tpu.memory_space<vmem>>, vector<7x32xbf16>
    tpu.vector_store %arg13[%c8_78, %c192_79], %45 {strides = array<i32>} : memref<64x256xbf16, #tpu.memory_space<vmem>>, vector<7x32xbf16>,
    %c1_80 = arith.constant 1 : index
    %c3_81 = arith.constant 3 : index
    %c1_82 = arith.constant 1 : index
    %c0_83 = arith.constant 0 : index
    %47 = vector.load %arg1[%c1_80, %c3_81, %c1_82, %c0_83] : memref<8x4x8x32xbf16, #tpu.memory_space<vmem>>, vector<1x1x7x32xbf16>
    %48 = vector.shape_cast %47 : vector<1x1x7x32xbf16> to vector<7x32xbf16>
    %c8_84 = arith.constant 8 : index
    %c224_85 = arith.constant 224 : index
    %49 = vector.load %arg13[%c8_84, %c224_85] : memref<64x256xbf16, #tpu.memory_space<vmem>>, vector<7x32xbf16>
    tpu.vector_store %arg13[%c8_84, %c224_85], %48 {strides = array<i32>} : memref<64x256xbf16, #tpu.memory_space<vmem>>, vector<7x32xbf16>,
    %c2_86 = arith.constant 2 : index
    %c0_87 = arith.constant 0 : index
    %c0_88 = arith.constant 0 : index
    %c0_89 = arith.constant 0 : index
    %50 = vector.load %arg1[%c2_86, %c0_87, %c0_88, %c0_89] : memref<8x4x8x32xbf16, #tpu.memory_space<vmem>>, vector<1x1x7x32xbf16>
    %51 = vector.shape_cast %50 : vector<1x1x7x32xbf16> to vector<7x32xbf16>
    %c16 = arith.constant 16 : index
    %c0_90 = arith.constant 0 : index
    %52 = vector.load %arg13[%c16, %c0_90] : memref<64x256xbf16, #tpu.memory_space<vmem>>, vector<7x32xbf16>
    tpu.vector_store %arg13[%c16, %c0_90], %51 {strides = array<i32>} : memref<64x256xbf16, #tpu.memory_space<vmem>>, vector<7x32xbf16>,
    %c2_91 = arith.constant 2 : index
    %c1_92 = arith.constant 1 : index
    %c0_93 = arith.constant 0 : index
    %c0_94 = arith.constant 0 : index
    %53 = vector.load %arg1[%c2_91, %c1_92, %c0_93, %c0_94] : memref<8x4x8x32xbf16, #tpu.memory_space<vmem>>, vector<1x1x7x32xbf16>
    %54 = vector.shape_cast %53 : vector<1x1x7x32xbf16> to vector<7x32xbf16>
    %c16_95 = arith.constant 16 : index
    %c32_96 = arith.constant 32 : index
    %55 = vector.load %arg13[%c16_95, %c32_96] : memref<64x256xbf16, #tpu.memory_space<vmem>>, vector<7x32xbf16>
    tpu.vector_store %arg13[%c16_95, %c32_96], %54 {strides = array<i32>} : memref<64x256xbf16, #tpu.memory_space<vmem>>, vector<7x32xbf16>,
    %c2_97 = arith.constant 2 : index
    %c2_98 = arith.constant 2 : index
    %c0_99 = arith.constant 0 : index
    %c0_100 = arith.constant 0 : index
    %56 = vector.load %arg1[%c2_97, %c2_98, %c0_99, %c0_100] : memref<8x4x8x32xbf16, #tpu.memory_space<vmem>>, vector<1x1x7x32xbf16>
    %57 = vector.shape_cast %56 : vector<1x1x7x32xbf16> to vector<7x32xbf16>
    %c16_101 = arith.constant 16 : index
    %c64_102 = arith.constant 64 : index
    %58 = vector.load %arg13[%c16_101, %c64_102] : memref<64x256xbf16, #tpu.memory_space<vmem>>, vector<7x32xbf16>
    tpu.vector_store %arg13[%c16_101, %c64_102], %57 {strides = array<i32>} : memref<64x256xbf16, #tpu.memory_space<vmem>>, vector<7x32xbf16>,
    %c2_103 = arith.constant 2 : index
    %c3_104 = arith.constant 3 : index
    %c0_105 = arith.constant 0 : index
    %c0_106 = arith.constant 0 : index
    %59 = vector.load %arg1[%c2_103, %c3_104, %c0_105, %c0_106] : memref<8x4x8x32xbf16, #tpu.memory_space<vmem>>, vector<1x1x7x32xbf16>
    %60 = vector.shape_cast %59 : vector<1x1x7x32xbf16> to vector<7x32xbf16>
    %c16_107 = arith.constant 16 : index
    %c96_108 = arith.constant 96 : index
    %61 = vector.load %arg13[%c16_107, %c96_108] : memref<64x256xbf16, #tpu.memory_space<vmem>>, vector<7x32xbf16>
    tpu.vector_store %arg13[%c16_107, %c96_108], %60 {strides = array<i32>} : memref<64x256xbf16, #tpu.memory_space<vmem>>, vector<7x32xbf16>,
    %c2_109 = arith.constant 2 : index
    %c0_110 = arith.constant 0 : index
    %c1_111 = arith.constant 1 : index
    %c0_112 = arith.constant 0 : index
    %62 = vector.load %arg1[%c2_109, %c0_110, %c1_111, %c0_112] : memref<8x4x8x32xbf16, #tpu.memory_space<vmem>>, vector<1x1x7x32xbf16>
    %63 = vector.shape_cast %62 : vector<1x1x7x32xbf16> to vector<7x32xbf16>
    %c16_113 = arith.constant 16 : index
    %c128_114 = arith.constant 128 : index
    %64 = vector.load %arg13[%c16_113, %c128_114] : memref<64x256xbf16, #tpu.memory_space<vmem>>, vector<7x32xbf16>
    tpu.vector_store %arg13[%c16_113, %c128_114], %63 {strides = array<i32>} : memref<64x256xbf16, #tpu.memory_space<vmem>>, vector<7x32xbf16>,
    %c2_115 = arith.constant 2 : index
    %c1_116 = arith.constant 1 : index
    %c1_117 = arith.constant 1 : index
    %c0_118 = arith.constant 0 : index
    %65 = vector.load %arg1[%c2_115, %c1_116, %c1_117, %c0_118] : memref<8x4x8x32xbf16, #tpu.memory_space<vmem>>, vector<1x1x7x32xbf16>
    %66 = vector.shape_cast %65 : vector<1x1x7x32xbf16> to vector<7x32xbf16>
    %c16_119 = arith.constant 16 : index
    %c160_120 = arith.constant 160 : index
    %67 = vector.load %arg13[%c16_119, %c160_120] : memref<64x256xbf16, #tpu.memory_space<vmem>>, vector<7x32xbf16>
    tpu.vector_store %arg13[%c16_119, %c160_120], %66 {strides = array<i32>} : memref<64x256xbf16, #tpu.memory_space<vmem>>, vector<7x32xbf16>,
    %c2_121 = arith.constant 2 : index
    %c2_122 = arith.constant 2 : index
    %c1_123 = arith.constant 1 : index
    %c0_124 = arith.constant 0 : index
    %68 = vector.load %arg1[%c2_121, %c2_122, %c1_123, %c0_124] : memref<8x4x8x32xbf16, #tpu.memory_space<vmem>>, vector<1x1x7x32xbf16>
    %69 = vector.shape_cast %68 : vector<1x1x7x32xbf16> to vector<7x32xbf16>
    %c16_125 = arith.constant 16 : index
    %c192_126 = arith.constant 192 : index
    %70 = vector.load %arg13[%c16_125, %c192_126] : memref<64x256xbf16, #tpu.memory_space<vmem>>, vector<7x32xbf16>
    tpu.vector_store %arg13[%c16_125, %c192_126], %69 {strides = array<i32>} : memref<64x256xbf16, #tpu.memory_space<vmem>>, vector<7x32xbf16>,
    %c2_127 = arith.constant 2 : index
    %c3_128 = arith.constant 3 : index
    %c1_129 = arith.constant 1 : index
    %c0_130 = arith.constant 0 : index
    %71 = vector.load %arg1[%c2_127, %c3_128, %c1_129, %c0_130] : memref<8x4x8x32xbf16, #tpu.memory_space<vmem>>, vector<1x1x7x32xbf16>
    %72 = vector.shape_cast %71 : vector<1x1x7x32xbf16> to vector<7x32xbf16>
    %c16_131 = arith.constant 16 : index
    %c224_132 = arith.constant 224 : index
    %73 = vector.load %arg13[%c16_131, %c224_132] : memref<64x256xbf16, #tpu.memory_space<vmem>>, vector<7x32xbf16>
    tpu.vector_store %arg13[%c16_131, %c224_132], %72 {strides = array<i32>} : memref<64x256xbf16, #tpu.memory_space<vmem>>, vector<7x32xbf16>,
    %c3_133 = arith.constant 3 : index
    %c0_134 = arith.constant 0 : index
    %c0_135 = arith.constant 0 : index
    %c0_136 = arith.constant 0 : index
    %74 = vector.load %arg1[%c3_133, %c0_134, %c0_135, %c0_136] : memref<8x4x8x32xbf16, #tpu.memory_space<vmem>>, vector<1x1x7x32xbf16>
    %75 = vector.shape_cast %74 : vector<1x1x7x32xbf16> to vector<7x32xbf16>
    %c24 = arith.constant 24 : index
    %c0_137 = arith.constant 0 : index
    %76 = vector.load %arg13[%c24, %c0_137] : memref<64x256xbf16, #tpu.memory_space<vmem>>, vector<7x32xbf16>
    tpu.vector_store %arg13[%c24, %c0_137], %75 {strides = array<i32>} : memref<64x256xbf16, #tpu.memory_space<vmem>>, vector<7x32xbf16>,
    %c3_138 = arith.constant 3 : index
    %c1_139 = arith.constant 1 : index
    %c0_140 = arith.constant 0 : index
    %c0_141 = arith.constant 0 : index
    %77 = vector.load %arg1[%c3_138, %c1_139, %c0_140, %c0_141] : memref<8x4x8x32xbf16, #tpu.memory_space<vmem>>, vector<1x1x7x32xbf16>
    %78 = vector.shape_cast %77 : vector<1x1x7x32xbf16> to vector<7x32xbf16>
    %c24_142 = arith.constant 24 : index
    %c32_143 = arith.constant 32 : index
    %79 = vector.load %arg13[%c24_142, %c32_143] : memref<64x256xbf16, #tpu.memory_space<vmem>>, vector<7x32xbf16>
    tpu.vector_store %arg13[%c24_142, %c32_143], %78 {strides = array<i32>} : memref<64x256xbf16, #tpu.memory_space<vmem>>, vector<7x32xbf16>,
    %c3_144 = arith.constant 3 : index
    %c2_145 = arith.constant 2 : index
    %c0_146 = arith.constant 0 : index
    %c0_147 = arith.constant 0 : index
    %80 = vector.load %arg1[%c3_144, %c2_145, %c0_146, %c0_147] : memref<8x4x8x32xbf16, #tpu.memory_space<vmem>>, vector<1x1x7x32xbf16>
    %81 = vector.shape_cast %80 : vector<1x1x7x32xbf16> to vector<7x32xbf16>
    %c24_148 = arith.constant 24 : index
    %c64_149 = arith.constant 64 : index
    %82 = vector.load %arg13[%c24_148, %c64_149] : memref<64x256xbf16, #tpu.memory_space<vmem>>, vector<7x32xbf16>
    tpu.vector_store %arg13[%c24_148, %c64_149], %81 {strides = array<i32>} : memref<64x256xbf16, #tpu.memory_space<vmem>>, vector<7x32xbf16>,
    %c3_150 = arith.constant 3 : index
    %c3_151 = arith.constant 3 : index
    %c0_152 = arith.constant 0 : index
    %c0_153 = arith.constant 0 : index
    %83 = vector.load %arg1[%c3_150, %c3_151, %c0_152, %c0_153] : memref<8x4x8x32xbf16, #tpu.memory_space<vmem>>, vector<1x1x7x32xbf16>
    %84 = vector.shape_cast %83 : vector<1x1x7x32xbf16> to vector<7x32xbf16>
    %c24_154 = arith.constant 24 : index
    %c96_155 = arith.constant 96 : index
    %85 = vector.load %arg13[%c24_154, %c96_155] : memref<64x256xbf16, #tpu.memory_space<vmem>>, vector<7x32xbf16>
    tpu.vector_store %arg13[%c24_154, %c96_155], %84 {strides = array<i32>} : memref<64x256xbf16, #tpu.memory_space<vmem>>, vector<7x32xbf16>,
    %c3_156 = arith.constant 3 : index
    %c0_157 = arith.constant 0 : index
    %c1_158 = arith.constant 1 : index
    %c0_159 = arith.constant 0 : index
    %86 = vector.load %arg1[%c3_156, %c0_157, %c1_158, %c0_159] : memref<8x4x8x32xbf16, #tpu.memory_space<vmem>>, vector<1x1x7x32xbf16>
    %87 = vector.shape_cast %86 : vector<1x1x7x32xbf16> to vector<7x32xbf16>
    %c24_160 = arith.constant 24 : index
    %c128_161 = arith.constant 128 : index
    %88 = vector.load %arg13[%c24_160, %c128_161] : memref<64x256xbf16, #tpu.memory_space<vmem>>, vector<7x32xbf16>
    tpu.vector_store %arg13[%c24_160, %c128_161], %87 {strides = array<i32>} : memref<64x256xbf16, #tpu.memory_space<vmem>>, vector<7x32xbf16>,
    %c3_162 = arith.constant 3 : index
    %c1_163 = arith.constant 1 : index
    %c1_164 = arith.constant 1 : index
    %c0_165 = arith.constant 0 : index
    %89 = vector.load %arg1[%c3_162, %c1_163, %c1_164, %c0_165] : memref<8x4x8x32xbf16, #tpu.memory_space<vmem>>, vector<1x1x7x32xbf16>
    %90 = vector.shape_cast %89 : vector<1x1x7x32xbf16> to vector<7x32xbf16>
    %c24_166 = arith.constant 24 : index
    %c160_167 = arith.constant 160 : index
    %91 = vector.load %arg13[%c24_166, %c160_167] : memref<64x256xbf16, #tpu.memory_space<vmem>>, vector<7x32xbf16>
    tpu.vector_store %arg13[%c24_166, %c160_167], %90 {strides = array<i32>} : memref<64x256xbf16, #tpu.memory_space<vmem>>, vector<7x32xbf16>,
    %c3_168 = arith.constant 3 : index
    %c2_169 = arith.constant 2 : index
    %c1_170 = arith.constant 1 : index
    %c0_171 = arith.constant 0 : index
    %92 = vector.load %arg1[%c3_168, %c2_169, %c1_170, %c0_171] : memref<8x4x8x32xbf16, #tpu.memory_space<vmem>>, vector<1x1x7x32xbf16>
    %93 = vector.shape_cast %92 : vector<1x1x7x32xbf16> to vector<7x32xbf16>
    %c24_172 = arith.constant 24 : index
    %c192_173 = arith.constant 192 : index
    %94 = vector.load %arg13[%c24_172, %c192_173] : memref<64x256xbf16, #tpu.memory_space<vmem>>, vector<7x32xbf16>
    tpu.vector_store %arg13[%c24_172, %c192_173], %93 {strides = array<i32>} : memref<64x256xbf16, #tpu.memory_space<vmem>>, vector<7x32xbf16>,
    %c3_174 = arith.constant 3 : index
    %c3_175 = arith.constant 3 : index
    %c1_176 = arith.constant 1 : index
    %c0_177 = arith.constant 0 : index
    %95 = vector.load %arg1[%c3_174, %c3_175, %c1_176, %c0_177] : memref<8x4x8x32xbf16, #tpu.memory_space<vmem>>, vector<1x1x7x32xbf16>
    %96 = vector.shape_cast %95 : vector<1x1x7x32xbf16> to vector<7x32xbf16>
    %c24_178 = arith.constant 24 : index
    %c224_179 = arith.constant 224 : index
    %97 = vector.load %arg13[%c24_178, %c224_179] : memref<64x256xbf16, #tpu.memory_space<vmem>>, vector<7x32xbf16>
    tpu.vector_store %arg13[%c24_178, %c224_179], %96 {strides = array<i32>} : memref<64x256xbf16, #tpu.memory_space<vmem>>, vector<7x32xbf16>,
    %c4 = arith.constant 4 : index
    %c0_180 = arith.constant 0 : index
    %c0_181 = arith.constant 0 : index
    %c0_182 = arith.constant 0 : index
    %98 = vector.load %arg1[%c4, %c0_180, %c0_181, %c0_182] : memref<8x4x8x32xbf16, #tpu.memory_space<vmem>>, vector<1x1x7x32xbf16>
    %99 = vector.shape_cast %98 : vector<1x1x7x32xbf16> to vector<7x32xbf16>
    %c32_183 = arith.constant 32 : index
    %c0_184 = arith.constant 0 : index
    %100 = vector.load %arg13[%c32_183, %c0_184] : memref<64x256xbf16, #tpu.memory_space<vmem>>, vector<7x32xbf16>
    tpu.vector_store %arg13[%c32_183, %c0_184], %99 {strides = array<i32>} : memref<64x256xbf16, #tpu.memory_space<vmem>>, vector<7x32xbf16>,
    %c4_185 = arith.constant 4 : index
    %c1_186 = arith.constant 1 : index
    %c0_187 = arith.constant 0 : index
    %c0_188 = arith.constant 0 : index
    %101 = vector.load %arg1[%c4_185, %c1_186, %c0_187, %c0_188] : memref<8x4x8x32xbf16, #tpu.memory_space<vmem>>, vector<1x1x7x32xbf16>
    %102 = vector.shape_cast %101 : vector<1x1x7x32xbf16> to vector<7x32xbf16>
    %c32_189 = arith.constant 32 : index
    %c32_190 = arith.constant 32 : index
    %103 = vector.load %arg13[%c32_189, %c32_190] : memref<64x256xbf16, #tpu.memory_space<vmem>>, vector<7x32xbf16>
    tpu.vector_store %arg13[%c32_189, %c32_190], %102 {strides = array<i32>} : memref<64x256xbf16, #tpu.memory_space<vmem>>, vector<7x32xbf16>,
    %c4_191 = arith.constant 4 : index
    %c2_192 = arith.constant 2 : index
    %c0_193 = arith.constant 0 : index
    %c0_194 = arith.constant 0 : index
    %104 = vector.load %arg1[%c4_191, %c2_192, %c0_193, %c0_194] : memref<8x4x8x32xbf16, #tpu.memory_space<vmem>>, vector<1x1x7x32xbf16>
    %105 = vector.shape_cast %104 : vector<1x1x7x32xbf16> to vector<7x32xbf16>
    %c32_195 = arith.constant 32 : index
    %c64_196 = arith.constant 64 : index
    %106 = vector.load %arg13[%c32_195, %c64_196] : memref<64x256xbf16, #tpu.memory_space<vmem>>, vector<7x32xbf16>
    tpu.vector_store %arg13[%c32_195, %c64_196], %105 {strides = array<i32>} : memref<64x256xbf16, #tpu.memory_space<vmem>>, vector<7x32xbf16>,
    %c4_197 = arith.constant 4 : index
    %c3_198 = arith.constant 3 : index
    %c0_199 = arith.constant 0 : index
    %c0_200 = arith.constant 0 : index
    %107 = vector.load %arg1[%c4_197, %c3_198, %c0_199, %c0_200] : memref<8x4x8x32xbf16, #tpu.memory_space<vmem>>, vector<1x1x7x32xbf16>
    %108 = vector.shape_cast %107 : vector<1x1x7x32xbf16> to vector<7x32xbf16>
    %c32_201 = arith.constant 32 : index
    %c96_202 = arith.constant 96 : index
    %109 = vector.load %arg13[%c32_201, %c96_202] : memref<64x256xbf16, #tpu.memory_space<vmem>>, vector<7x32xbf16>
    tpu.vector_store %arg13[%c32_201, %c96_202], %108 {strides = array<i32>} : memref<64x256xbf16, #tpu.memory_space<vmem>>, vector<7x32xbf16>,
    %c4_203 = arith.constant 4 : index
    %c0_204 = arith.constant 0 : index
    %c1_205 = arith.constant 1 : index
    %c0_206 = arith.constant 0 : index
    %110 = vector.load %arg1[%c4_203, %c0_204, %c1_205, %c0_206] : memref<8x4x8x32xbf16, #tpu.memory_space<vmem>>, vector<1x1x7x32xbf16>
    %111 = vector.shape_cast %110 : vector<1x1x7x32xbf16> to vector<7x32xbf16>
    %c32_207 = arith.constant 32 : index
    %c128_208 = arith.constant 128 : index
    %112 = vector.load %arg13[%c32_207, %c128_208] : memref<64x256xbf16, #tpu.memory_space<vmem>>, vector<7x32xbf16>
    tpu.vector_store %arg13[%c32_207, %c128_208], %111 {strides = array<i32>} : memref<64x256xbf16, #tpu.memory_space<vmem>>, vector<7x32xbf16>,
    %c4_209 = arith.constant 4 : index
    %c1_210 = arith.constant 1 : index
    %c1_211 = arith.constant 1 : index
    %c0_212 = arith.constant 0 : index
    %113 = vector.load %arg1[%c4_209, %c1_210, %c1_211, %c0_212] : memref<8x4x8x32xbf16, #tpu.memory_space<vmem>>, vector<1x1x7x32xbf16>
    %114 = vector.shape_cast %113 : vector<1x1x7x32xbf16> to vector<7x32xbf16>
    %c32_213 = arith.constant 32 : index
    %c160_214 = arith.constant 160 : index
    %115 = vector.load %arg13[%c32_213, %c160_214] : memref<64x256xbf16, #tpu.memory_space<vmem>>, vector<7x32xbf16>
    tpu.vector_store %arg13[%c32_213, %c160_214], %114 {strides = array<i32>} : memref<64x256xbf16, #tpu.memory_space<vmem>>, vector<7x32xbf16>,
    %c4_215 = arith.constant 4 : index
    %c2_216 = arith.constant 2 : index
    %c1_217 = arith.constant 1 : index
    %c0_218 = arith.constant 0 : index
    %116 = vector.load %arg1[%c4_215, %c2_216, %c1_217, %c0_218] : memref<8x4x8x32xbf16, #tpu.memory_space<vmem>>, vector<1x1x7x32xbf16>
    %117 = vector.shape_cast %116 : vector<1x1x7x32xbf16> to vector<7x32xbf16>
    %c32_219 = arith.constant 32 : index
    %c192_220 = arith.constant 192 : index
    %118 = vector.load %arg13[%c32_219, %c192_220] : memref<64x256xbf16, #tpu.memory_space<vmem>>, vector<7x32xbf16>
    tpu.vector_store %arg13[%c32_219, %c192_220], %117 {strides = array<i32>} : memref<64x256xbf16, #tpu.memory_space<vmem>>, vector<7x32xbf16>,
    %c4_221 = arith.constant 4 : index
    %c3_222 = arith.constant 3 : index
    %c1_223 = arith.constant 1 : index
    %c0_224 = arith.constant 0 : index
    %119 = vector.load %arg1[%c4_221, %c3_222, %c1_223, %c0_224] : memref<8x4x8x32xbf16, #tpu.memory_space<vmem>>, vector<1x1x7x32xbf16>
    %120 = vector.shape_cast %119 : vector<1x1x7x32xbf16> to vector<7x32xbf16>
    %c32_225 = arith.constant 32 : index
    %c224_226 = arith.constant 224 : index
    %121 = vector.load %arg13[%c32_225, %c224_226] : memref<64x256xbf16, #tpu.memory_space<vmem>>, vector<7x32xbf16>
    tpu.vector_store %arg13[%c32_225, %c224_226], %120 {strides = array<i32>} : memref<64x256xbf16, #tpu.memory_space<vmem>>, vector<7x32xbf16>,
    %c5 = arith.constant 5 : index
    %c0_227 = arith.constant 0 : index
    %c0_228 = arith.constant 0 : index
    %c0_229 = arith.constant 0 : index
    %122 = vector.load %arg1[%c5, %c0_227, %c0_228, %c0_229] : memref<8x4x8x32xbf16, #tpu.memory_space<vmem>>, vector<1x1x7x32xbf16>
    %123 = vector.shape_cast %122 : vector<1x1x7x32xbf16> to vector<7x32xbf16>
    %c40 = arith.constant 40 : index
    %c0_230 = arith.constant 0 : index
    %124 = vector.load %arg13[%c40, %c0_230] : memref<64x256xbf16, #tpu.memory_space<vmem>>, vector<7x32xbf16>
    tpu.vector_store %arg13[%c40, %c0_230], %123 {strides = array<i32>} : memref<64x256xbf16, #tpu.memory_space<vmem>>, vector<7x32xbf16>,
    %c5_231 = arith.constant 5 : index
    %c1_232 = arith.constant 1 : index
    %c0_233 = arith.constant 0 : index
    %c0_234 = arith.constant 0 : index
    %125 = vector.load %arg1[%c5_231, %c1_232, %c0_233, %c0_234] : memref<8x4x8x32xbf16, #tpu.memory_space<vmem>>, vector<1x1x7x32xbf16>
    %126 = vector.shape_cast %125 : vector<1x1x7x32xbf16> to vector<7x32xbf16>
    %c40_235 = arith.constant 40 : index
    %c32_236 = arith.constant 32 : index
    %127 = vector.load %arg13[%c40_235, %c32_236] : memref<64x256xbf16, #tpu.memory_space<vmem>>, vector<7x32xbf16>
    tpu.vector_store %arg13[%c40_235, %c32_236], %126 {strides = array<i32>} : memref<64x256xbf16, #tpu.memory_space<vmem>>, vector<7x32xbf16>,
    %c5_237 = arith.constant 5 : index
    %c2_238 = arith.constant 2 : index
    %c0_239 = arith.constant 0 : index
    %c0_240 = arith.constant 0 : index
    %128 = vector.load %arg1[%c5_237, %c2_238, %c0_239, %c0_240] : memref<8x4x8x32xbf16, #tpu.memory_space<vmem>>, vector<1x1x7x32xbf16>
    %129 = vector.shape_cast %128 : vector<1x1x7x32xbf16> to vector<7x32xbf16>
    %c40_241 = arith.constant 40 : index
    %c64_242 = arith.constant 64 : index
    %130 = vector.load %arg13[%c40_241, %c64_242] : memref<64x256xbf16, #tpu.memory_space<vmem>>, vector<7x32xbf16>
    tpu.vector_store %arg13[%c40_241, %c64_242], %129 {strides = array<i32>} : memref<64x256xbf16, #tpu.memory_space<vmem>>, vector<7x32xbf16>,
    %c5_243 = arith.constant 5 : index
    %c3_244 = arith.constant 3 : index
    %c0_245 = arith.constant 0 : index
    %c0_246 = arith.constant 0 : index
    %131 = vector.load %arg1[%c5_243, %c3_244, %c0_245, %c0_246] : memref<8x4x8x32xbf16, #tpu.memory_space<vmem>>, vector<1x1x7x32xbf16>
    %132 = vector.shape_cast %131 : vector<1x1x7x32xbf16> to vector<7x32xbf16>
    %c40_247 = arith.constant 40 : index
    %c96_248 = arith.constant 96 : index
    %133 = vector.load %arg13[%c40_247, %c96_248] : memref<64x256xbf16, #tpu.memory_space<vmem>>, vector<7x32xbf16>
    tpu.vector_store %arg13[%c40_247, %c96_248], %132 {strides = array<i32>} : memref<64x256xbf16, #tpu.memory_space<vmem>>, vector<7x32xbf16>,
    %c5_249 = arith.constant 5 : index
    %c0_250 = arith.constant 0 : index
    %c1_251 = arith.constant 1 : index
    %c0_252 = arith.constant 0 : index
    %134 = vector.load %arg1[%c5_249, %c0_250, %c1_251, %c0_252] : memref<8x4x8x32xbf16, #tpu.memory_space<vmem>>, vector<1x1x7x32xbf16>
    %135 = vector.shape_cast %134 : vector<1x1x7x32xbf16> to vector<7x32xbf16>
    %c40_253 = arith.constant 40 : index
    %c128_254 = arith.constant 128 : index
    %136 = vector.load %arg13[%c40_253, %c128_254] : memref<64x256xbf16, #tpu.memory_space<vmem>>, vector<7x32xbf16>
    tpu.vector_store %arg13[%c40_253, %c128_254], %135 {strides = array<i32>} : memref<64x256xbf16, #tpu.memory_space<vmem>>, vector<7x32xbf16>,
    %c5_255 = arith.constant 5 : index
    %c1_256 = arith.constant 1 : index
    %c1_257 = arith.constant 1 : index
    %c0_258 = arith.constant 0 : index
    %137 = vector.load %arg1[%c5_255, %c1_256, %c1_257, %c0_258] : memref<8x4x8x32xbf16, #tpu.memory_space<vmem>>, vector<1x1x7x32xbf16>
    %138 = vector.shape_cast %137 : vector<1x1x7x32xbf16> to vector<7x32xbf16>
    %c40_259 = arith.constant 40 : index
    %c160_260 = arith.constant 160 : index
    %139 = vector.load %arg13[%c40_259, %c160_260] : memref<64x256xbf16, #tpu.memory_space<vmem>>, vector<7x32xbf16>
    tpu.vector_store %arg13[%c40_259, %c160_260], %138 {strides = array<i32>} : memref<64x256xbf16, #tpu.memory_space<vmem>>, vector<7x32xbf16>,
    %c5_261 = arith.constant 5 : index
    %c2_262 = arith.constant 2 : index
    %c1_263 = arith.constant 1 : index
    %c0_264 = arith.constant 0 : index
    %140 = vector.load %arg1[%c5_261, %c2_262, %c1_263, %c0_264] : memref<8x4x8x32xbf16, #tpu.memory_space<vmem>>, vector<1x1x7x32xbf16>
    %141 = vector.shape_cast %140 : vector<1x1x7x32xbf16> to vector<7x32xbf16>
    %c40_265 = arith.constant 40 : index
    %c192_266 = arith.constant 192 : index
    %142 = vector.load %arg13[%c40_265, %c192_266] : memref<64x256xbf16, #tpu.memory_space<vmem>>, vector<7x32xbf16>
    tpu.vector_store %arg13[%c40_265, %c192_266], %141 {strides = array<i32>} : memref<64x256xbf16, #tpu.memory_space<vmem>>, vector<7x32xbf16>,
    %c5_267 = arith.constant 5 : index
    %c3_268 = arith.constant 3 : index
    %c1_269 = arith.constant 1 : index
    %c0_270 = arith.constant 0 : index
    %143 = vector.load %arg1[%c5_267, %c3_268, %c1_269, %c0_270] : memref<8x4x8x32xbf16, #tpu.memory_space<vmem>>, vector<1x1x7x32xbf16>
    %144 = vector.shape_cast %143 : vector<1x1x7x32xbf16> to vector<7x32xbf16>
    %c40_271 = arith.constant 40 : index
    %c224_272 = arith.constant 224 : index
    %145 = vector.load %arg13[%c40_271, %c224_272] : memref<64x256xbf16, #tpu.memory_space<vmem>>, vector<7x32xbf16>
    tpu.vector_store %arg13[%c40_271, %c224_272], %144 {strides = array<i32>} : memref<64x256xbf16, #tpu.memory_space<vmem>>, vector<7x32xbf16>,
    %c6 = arith.constant 6 : index
    %c0_273 = arith.constant 0 : index
    %c0_274 = arith.constant 0 : index
    %c0_275 = arith.constant 0 : index
    %146 = vector.load %arg1[%c6, %c0_273, %c0_274, %c0_275] : memref<8x4x8x32xbf16, #tpu.memory_space<vmem>>, vector<1x1x7x32xbf16>
    %147 = vector.shape_cast %146 : vector<1x1x7x32xbf16> to vector<7x32xbf16>
    %c48 = arith.constant 48 : index
    %c0_276 = arith.constant 0 : index
    %148 = vector.load %arg13[%c48, %c0_276] : memref<64x256xbf16, #tpu.memory_space<vmem>>, vector<7x32xbf16>
    tpu.vector_store %arg13[%c48, %c0_276], %147 {strides = array<i32>} : memref<64x256xbf16, #tpu.memory_space<vmem>>, vector<7x32xbf16>,
    %c6_277 = arith.constant 6 : index
    %c1_278 = arith.constant 1 : index
    %c0_279 = arith.constant 0 : index
    %c0_280 = arith.constant 0 : index
    %149 = vector.load %arg1[%c6_277, %c1_278, %c0_279, %c0_280] : memref<8x4x8x32xbf16, #tpu.memory_space<vmem>>, vector<1x1x7x32xbf16>
    %150 = vector.shape_cast %149 : vector<1x1x7x32xbf16> to vector<7x32xbf16>
    %c48_281 = arith.constant 48 : index
    %c32_282 = arith.constant 32 : index
    %151 = vector.load %arg13[%c48_281, %c32_282] : memref<64x256xbf16, #tpu.memory_space<vmem>>, vector<7x32xbf16>
    tpu.vector_store %arg13[%c48_281, %c32_282], %150 {strides = array<i32>} : memref<64x256xbf16, #tpu.memory_space<vmem>>, vector<7x32xbf16>,
    %c6_283 = arith.constant 6 : index
    %c2_284 = arith.constant 2 : index
    %c0_285 = arith.constant 0 : index
    %c0_286 = arith.constant 0 : index
    %152 = vector.load %arg1[%c6_283, %c2_284, %c0_285, %c0_286] : memref<8x4x8x32xbf16, #tpu.memory_space<vmem>>, vector<1x1x7x32xbf16>
    %153 = vector.shape_cast %152 : vector<1x1x7x32xbf16> to vector<7x32xbf16>
    %c48_287 = arith.constant 48 : index
    %c64_288 = arith.constant 64 : index
    %154 = vector.load %arg13[%c48_287, %c64_288] : memref<64x256xbf16, #tpu.memory_space<vmem>>, vector<7x32xbf16>
    tpu.vector_store %arg13[%c48_287, %c64_288], %153 {strides = array<i32>} : memref<64x256xbf16, #tpu.memory_space<vmem>>, vector<7x32xbf16>,
    %c6_289 = arith.constant 6 : index
    %c3_290 = arith.constant 3 : index
    %c0_291 = arith.constant 0 : index
    %c0_292 = arith.constant 0 : index
    %155 = vector.load %arg1[%c6_289, %c3_290, %c0_291, %c0_292] : memref<8x4x8x32xbf16, #tpu.memory_space<vmem>>, vector<1x1x7x32xbf16>
    %156 = vector.shape_cast %155 : vector<1x1x7x32xbf16> to vector<7x32xbf16>
    %c48_293 = arith.constant 48 : index
    %c96_294 = arith.constant 96 : index
    %157 = vector.load %arg13[%c48_293, %c96_294] : memref<64x256xbf16, #tpu.memory_space<vmem>>, vector<7x32xbf16>
    tpu.vector_store %arg13[%c48_293, %c96_294], %156 {strides = array<i32>} : memref<64x256xbf16, #tpu.memory_space<vmem>>, vector<7x32xbf16>,
    %c6_295 = arith.constant 6 : index
    %c0_296 = arith.constant 0 : index
    %c1_297 = arith.constant 1 : index
    %c0_298 = arith.constant 0 : index
    %158 = vector.load %arg1[%c6_295, %c0_296, %c1_297, %c0_298] : memref<8x4x8x32xbf16, #tpu.memory_space<vmem>>, vector<1x1x7x32xbf16>
    %159 = vector.shape_cast %158 : vector<1x1x7x32xbf16> to vector<7x32xbf16>
    %c48_299 = arith.constant 48 : index
    %c128_300 = arith.constant 128 : index
    %160 = vector.load %arg13[%c48_299, %c128_300] : memref<64x256xbf16, #tpu.memory_space<vmem>>, vector<7x32xbf16>
    tpu.vector_store %arg13[%c48_299, %c128_300], %159 {strides = array<i32>} : memref<64x256xbf16, #tpu.memory_space<vmem>>, vector<7x32xbf16>,
    %c6_301 = arith.constant 6 : index
    %c1_302 = arith.constant 1 : index
    %c1_303 = arith.constant 1 : index
    %c0_304 = arith.constant 0 : index
    %161 = vector.load %arg1[%c6_301, %c1_302, %c1_303, %c0_304] : memref<8x4x8x32xbf16, #tpu.memory_space<vmem>>, vector<1x1x7x32xbf16>
    %162 = vector.shape_cast %161 : vector<1x1x7x32xbf16> to vector<7x32xbf16>
    %c48_305 = arith.constant 48 : index
    %c160_306 = arith.constant 160 : index
    %163 = vector.load %arg13[%c48_305, %c160_306] : memref<64x256xbf16, #tpu.memory_space<vmem>>, vector<7x32xbf16>
    tpu.vector_store %arg13[%c48_305, %c160_306], %162 {strides = array<i32>} : memref<64x256xbf16, #tpu.memory_space<vmem>>, vector<7x32xbf16>,
    %c6_307 = arith.constant 6 : index
    %c2_308 = arith.constant 2 : index
    %c1_309 = arith.constant 1 : index
    %c0_310 = arith.constant 0 : index
    %164 = vector.load %arg1[%c6_307, %c2_308, %c1_309, %c0_310] : memref<8x4x8x32xbf16, #tpu.memory_space<vmem>>, vector<1x1x7x32xbf16>
    %165 = vector.shape_cast %164 : vector<1x1x7x32xbf16> to vector<7x32xbf16>
    %c48_311 = arith.constant 48 : index
    %c192_312 = arith.constant 192 : index
    %166 = vector.load %arg13[%c48_311, %c192_312] : memref<64x256xbf16, #tpu.memory_space<vmem>>, vector<7x32xbf16>
    tpu.vector_store %arg13[%c48_311, %c192_312], %165 {strides = array<i32>} : memref<64x256xbf16, #tpu.memory_space<vmem>>, vector<7x32xbf16>,
    %c6_313 = arith.constant 6 : index
    %c3_314 = arith.constant 3 : index
    %c1_315 = arith.constant 1 : index
    %c0_316 = arith.constant 0 : index
    %167 = vector.load %arg1[%c6_313, %c3_314, %c1_315, %c0_316] : memref<8x4x8x32xbf16, #tpu.memory_space<vmem>>, vector<1x1x7x32xbf16>
    %168 = vector.shape_cast %167 : vector<1x1x7x32xbf16> to vector<7x32xbf16>
    %c48_317 = arith.constant 48 : index
    %c224_318 = arith.constant 224 : index
    %169 = vector.load %arg13[%c48_317, %c224_318] : memref<64x256xbf16, #tpu.memory_space<vmem>>, vector<7x32xbf16>
    tpu.vector_store %arg13[%c48_317, %c224_318], %168 {strides = array<i32>} : memref<64x256xbf16, #tpu.memory_space<vmem>>, vector<7x32xbf16>,
    %c7 = arith.constant 7 : index
    %c0_319 = arith.constant 0 : index
    %c0_320 = arith.constant 0 : index
    %c0_321 = arith.constant 0 : index
    %170 = vector.load %arg1[%c7, %c0_319, %c0_320, %c0_321] : memref<8x4x8x32xbf16, #tpu.memory_space<vmem>>, vector<1x1x7x32xbf16>
    %171 = vector.shape_cast %170 : vector<1x1x7x32xbf16> to vector<7x32xbf16>
    %c56 = arith.constant 56 : index
    %c0_322 = arith.constant 0 : index
    %172 = vector.load %arg13[%c56, %c0_322] : memref<64x256xbf16, #tpu.memory_space<vmem>>, vector<7x32xbf16>
    tpu.vector_store %arg13[%c56, %c0_322], %171 {strides = array<i32>} : memref<64x256xbf16, #tpu.memory_space<vmem>>, vector<7x32xbf16>,
    %c7_323 = arith.constant 7 : index
    %c1_324 = arith.constant 1 : index
    %c0_325 = arith.constant 0 : index
    %c0_326 = arith.constant 0 : index
    %173 = vector.load %arg1[%c7_323, %c1_324, %c0_325, %c0_326] : memref<8x4x8x32xbf16, #tpu.memory_space<vmem>>, vector<1x1x7x32xbf16>
    %174 = vector.shape_cast %173 : vector<1x1x7x32xbf16> to vector<7x32xbf16>
    %c56_327 = arith.constant 56 : index
    %c32_328 = arith.constant 32 : index
    %175 = vector.load %arg13[%c56_327, %c32_328] : memref<64x256xbf16, #tpu.memory_space<vmem>>, vector<7x32xbf16>
    tpu.vector_store %arg13[%c56_327, %c32_328], %174 {strides = array<i32>} : memref<64x256xbf16, #tpu.memory_space<vmem>>, vector<7x32xbf16>,
    %c7_329 = arith.constant 7 : index
    %c2_330 = arith.constant 2 : index
    %c0_331 = arith.constant 0 : index
    %c0_332 = arith.constant 0 : index
    %176 = vector.load %arg1[%c7_329, %c2_330, %c0_331, %c0_332] : memref<8x4x8x32xbf16, #tpu.memory_space<vmem>>, vector<1x1x7x32xbf16>
    %177 = vector.shape_cast %176 : vector<1x1x7x32xbf16> to vector<7x32xbf16>
    %c56_333 = arith.constant 56 : index
    %c64_334 = arith.constant 64 : index
    %178 = vector.load %arg13[%c56_333, %c64_334] : memref<64x256xbf16, #tpu.memory_space<vmem>>, vector<7x32xbf16>
    tpu.vector_store %arg13[%c56_333, %c64_334], %177 {strides = array<i32>} : memref<64x256xbf16, #tpu.memory_space<vmem>>, vector<7x32xbf16>,
    %c7_335 = arith.constant 7 : index
    %c3_336 = arith.constant 3 : index
    %c0_337 = arith.constant 0 : index
    %c0_338 = arith.constant 0 : index
    %179 = vector.load %arg1[%c7_335, %c3_336, %c0_337, %c0_338] : memref<8x4x8x32xbf16, #tpu.memory_space<vmem>>, vector<1x1x7x32xbf16>
    %180 = vector.shape_cast %179 : vector<1x1x7x32xbf16> to vector<7x32xbf16>
    %c56_339 = arith.constant 56 : index
    %c96_340 = arith.constant 96 : index
    %181 = vector.load %arg13[%c56_339, %c96_340] : memref<64x256xbf16, #tpu.memory_space<vmem>>, vector<7x32xbf16>
    tpu.vector_store %arg13[%c56_339, %c96_340], %180 {strides = array<i32>} : memref<64x256xbf16, #tpu.memory_space<vmem>>, vector<7x32xbf16>,
    %c7_341 = arith.constant 7 : index
    %c0_342 = arith.constant 0 : index
    %c1_343 = arith.constant 1 : index
    %c0_344 = arith.constant 0 : index
    %182 = vector.load %arg1[%c7_341, %c0_342, %c1_343, %c0_344] : memref<8x4x8x32xbf16, #tpu.memory_space<vmem>>, vector<1x1x7x32xbf16>
    %183 = vector.shape_cast %182 : vector<1x1x7x32xbf16> to vector<7x32xbf16>
    %c56_345 = arith.constant 56 : index
    %c128_346 = arith.constant 128 : index
    %184 = vector.load %arg13[%c56_345, %c128_346] : memref<64x256xbf16, #tpu.memory_space<vmem>>, vector<7x32xbf16>
    tpu.vector_store %arg13[%c56_345, %c128_346], %183 {strides = array<i32>} : memref<64x256xbf16, #tpu.memory_space<vmem>>, vector<7x32xbf16>,
    %c7_347 = arith.constant 7 : index
    %c1_348 = arith.constant 1 : index
    %c1_349 = arith.constant 1 : index
    %c0_350 = arith.constant 0 : index
    %185 = vector.load %arg1[%c7_347, %c1_348, %c1_349, %c0_350] : memref<8x4x8x32xbf16, #tpu.memory_space<vmem>>, vector<1x1x7x32xbf16>
    %186 = vector.shape_cast %185 : vector<1x1x7x32xbf16> to vector<7x32xbf16>
    %c56_351 = arith.constant 56 : index
    %c160_352 = arith.constant 160 : index
    %187 = vector.load %arg13[%c56_351, %c160_352] : memref<64x256xbf16, #tpu.memory_space<vmem>>, vector<7x32xbf16>
    tpu.vector_store %arg13[%c56_351, %c160_352], %186 {strides = array<i32>} : memref<64x256xbf16, #tpu.memory_space<vmem>>, vector<7x32xbf16>,
    %c7_353 = arith.constant 7 : index
    %c2_354 = arith.constant 2 : index
    %c1_355 = arith.constant 1 : index
    %c0_356 = arith.constant 0 : index
    %188 = vector.load %arg1[%c7_353, %c2_354, %c1_355, %c0_356] : memref<8x4x8x32xbf16, #tpu.memory_space<vmem>>, vector<1x1x7x32xbf16>
    %189 = vector.shape_cast %188 : vector<1x1x7x32xbf16> to vector<7x32xbf16>
    %c56_357 = arith.constant 56 : index
    %c192_358 = arith.constant 192 : index
    %190 = vector.load %arg13[%c56_357, %c192_358] : memref<64x256xbf16, #tpu.memory_space<vmem>>, vector<7x32xbf16>
    tpu.vector_store %arg13[%c56_357, %c192_358], %189 {strides = array<i32>} : memref<64x256xbf16, #tpu.memory_space<vmem>>, vector<7x32xbf16>,
    %c7_359 = arith.constant 7 : index
    %c3_360 = arith.constant 3 : index
    %c1_361 = arith.constant 1 : index
    %c0_362 = arith.constant 0 : index
    %191 = vector.load %arg1[%c7_359, %c3_360, %c1_361, %c0_362] : memref<8x4x8x32xbf16, #tpu.memory_space<vmem>>, vector<1x1x7x32xbf16>
    %192 = vector.shape_cast %191 : vector<1x1x7x32xbf16> to vector<7x32xbf16>
    %c56_363 = arith.constant 56 : index
    %c224_364 = arith.constant 224 : index
    %193 = vector.load %arg13[%c56_363, %c224_364] : memref<64x256xbf16, #tpu.memory_space<vmem>>, vector<7x32xbf16>
    tpu.vector_store %arg13[%c56_363, %c224_364], %192 {strides = array<i32>} : memref<64x256xbf16, #tpu.memory_space<vmem>>, vector<7x32xbf16>,
    %c0_365 = arith.constant 0 : index
    %c0_366 = arith.constant 0 : index
    %194 = vector.load %arg13[%c0_365, %c0_366] : memref<64x256xbf16, #tpu.memory_space<vmem>>, vector<64x256xbf16>
    %c0_367 = arith.constant 0 : index
    %c0_368 = arith.constant 0 : index
    %195 = vector.load %arg3[%c0_367, %c0_368] : memref<1x128xf32, #tpu.memory_space<vmem>>, vector<1x128xf32>
    %c0_369 = arith.constant 0 : index
    %c0_370 = arith.constant 0 : index
    %c0_371 = arith.constant 0 : index
    %196 = vector.load %arg2[%c0_369, %c0_370, %c0_371] : memref<8x256x128xbf16, #tpu.memory_space<vmem>>, vector<1x256x128xbf16>
    %197 = vector.shape_cast %196 : vector<1x256x128xbf16> to vector<256x128xbf16>
    %cst_372 = arith.constant dense<0.000000e+00> : vector<64x128xf32>
    %198 = tpu.matmul %194, %197, %cst_372 {dimension_numbers = #tpu.dot_dimension_numbers<[1], [0], [0], [1], [0, 0, 1, 1], [], []>} : vector<64x256xbf16>, vector<256x128xbf16>, vector<64x128xf32> -> vector<64x128xf32>
    %c1_373 = arith.constant 1 : index
    %c0_374 = arith.constant 0 : index
    %c0_375 = arith.constant 0 : index
    %199 = vector.load %arg2[%c1_373, %c0_374, %c0_375] : memref<8x256x128xbf16, #tpu.memory_space<vmem>>, vector<1x256x128xbf16>
    %200 = vector.shape_cast %199 : vector<1x256x128xbf16> to vector<256x128xbf16>
    %cst_376 = arith.constant dense<0.000000e+00> : vector<64x128xf32>
    %201 = tpu.matmul %194, %200, %cst_376 {dimension_numbers = #tpu.dot_dimension_numbers<[1], [0], [0], [1], [0, 0, 1, 1], [], []>} : vector<64x256xbf16>, vector<256x128xbf16>, vector<64x128xf32> -> vector<64x128xf32>
    %c2_377 = arith.constant 2 : index
    %c0_378 = arith.constant 0 : index
    %c0_379 = arith.constant 0 : index
    %202 = vector.load %arg2[%c2_377, %c0_378, %c0_379] : memref<8x256x128xbf16, #tpu.memory_space<vmem>>, vector<1x256x128xbf16>
    %203 = vector.shape_cast %202 : vector<1x256x128xbf16> to vector<256x128xbf16>
    %cst_380 = arith.constant dense<0.000000e+00> : vector<64x128xf32>
    %204 = tpu.matmul %194, %203, %cst_380 {dimension_numbers = #tpu.dot_dimension_numbers<[1], [0], [0], [1], [0, 0, 1, 1], [], []>} : vector<64x256xbf16>, vector<256x128xbf16>, vector<64x128xf32> -> vector<64x128xf32>
    %c3_381 = arith.constant 3 : index
    %c0_382 = arith.constant 0 : index
    %c0_383 = arith.constant 0 : index
    %205 = vector.load %arg2[%c3_381, %c0_382, %c0_383] : memref<8x256x128xbf16, #tpu.memory_space<vmem>>, vector<1x256x128xbf16>
    %206 = vector.shape_cast %205 : vector<1x256x128xbf16> to vector<256x128xbf16>
    %cst_384 = arith.constant dense<0.000000e+00> : vector<64x128xf32>
    %207 = tpu.matmul %194, %206, %cst_384 {dimension_numbers = #tpu.dot_dimension_numbers<[1], [0], [0], [1], [0, 0, 1, 1], [], []>} : vector<64x256xbf16>, vector<256x128xbf16>, vector<64x128xf32> -> vector<64x128xf32>
    %208 = arith.maximumf %198, %201 : vector<64x128xf32>
    %209 = arith.maximumf %204, %207 : vector<64x128xf32>
    %210 = arith.maximumf %208, %209 : vector<64x128xf32>
    %211 = vector.broadcast %195 : vector<1x128xf32> to vector<64x128xf32>
    %212 = arith.addf %210, %211 : vector<64x128xf32>
    %cst_385 = arith.constant 0.000000e+00 : f32
    %213 = vector.broadcast %cst_385 : f32 to vector<64x128xf32>
    %214 = arith.maximumf %212, %213 : vector<64x128xf32>
    %215 = arith.truncf %214 : vector<64x128xf32> to vector<64x128xbf16>
    %c4_386 = arith.constant 4 : index
    %c0_387 = arith.constant 0 : index
    %c0_388 = arith.constant 0 : index
    %216 = vector.load %arg2[%c4_386, %c0_387, %c0_388] : memref<8x256x128xbf16, #tpu.memory_space<vmem>>, vector<1x256x128xbf16>
    %217 = vector.shape_cast %216 : vector<1x256x128xbf16> to vector<256x128xbf16>
    %cst_389 = arith.constant dense<0.000000e+00> : vector<64x128xf32>
    %218 = tpu.matmul %194, %217, %cst_389 {dimension_numbers = #tpu.dot_dimension_numbers<[1], [0], [0], [1], [0, 0, 1, 1], [], []>} : vector<64x256xbf16>, vector<256x128xbf16>, vector<64x128xf32> -> vector<64x128xf32>
    %c5_390 = arith.constant 5 : index
    %c0_391 = arith.constant 0 : index
    %c0_392 = arith.constant 0 : index
    %219 = vector.load %arg2[%c5_390, %c0_391, %c0_392] : memref<8x256x128xbf16, #tpu.memory_space<vmem>>, vector<1x256x128xbf16>
    %220 = vector.shape_cast %219 : vector<1x256x128xbf16> to vector<256x128xbf16>
    %cst_393 = arith.constant dense<0.000000e+00> : vector<64x128xf32>
    %221 = tpu.matmul %194, %220, %cst_393 {dimension_numbers = #tpu.dot_dimension_numbers<[1], [0], [0], [1], [0, 0, 1, 1], [], []>} : vector<64x256xbf16>, vector<256x128xbf16>, vector<64x128xf32> -> vector<64x128xf32>
    %c6_394 = arith.constant 6 : index
    %c0_395 = arith.constant 0 : index
    %c0_396 = arith.constant 0 : index
    %222 = vector.load %arg2[%c6_394, %c0_395, %c0_396] : memref<8x256x128xbf16, #tpu.memory_space<vmem>>, vector<1x256x128xbf16>
    %223 = vector.shape_cast %222 : vector<1x256x128xbf16> to vector<256x128xbf16>
    %cst_397 = arith.constant dense<0.000000e+00> : vector<64x128xf32>
    %224 = tpu.matmul %194, %223, %cst_397 {dimension_numbers = #tpu.dot_dimension_numbers<[1], [0], [0], [1], [0, 0, 1, 1], [], []>} : vector<64x256xbf16>, vector<256x128xbf16>, vector<64x128xf32> -> vector<64x128xf32>
    %c7_398 = arith.constant 7 : index
    %c0_399 = arith.constant 0 : index
    %c0_400 = arith.constant 0 : index
    %225 = vector.load %arg2[%c7_398, %c0_399, %c0_400] : memref<8x256x128xbf16, #tpu.memory_space<vmem>>, vector<1x256x128xbf16>
    %226 = vector.shape_cast %225 : vector<1x256x128xbf16> to vector<256x128xbf16>
    %cst_401 = arith.constant dense<0.000000e+00> : vector<64x128xf32>
    %227 = tpu.matmul %194, %226, %cst_401 {dimension_numbers = #tpu.dot_dimension_numbers<[1], [0], [0], [1], [0, 0, 1, 1], [], []>} : vector<64x256xbf16>, vector<256x128xbf16>, vector<64x128xf32> -> vector<64x128xf32>
    %228 = arith.maximumf %218, %221 : vector<64x128xf32>
    %229 = arith.maximumf %224, %227 : vector<64x128xf32>
    %230 = arith.maximumf %228, %229 : vector<64x128xf32>
    %231 = vector.broadcast %195 : vector<1x128xf32> to vector<64x128xf32>
    %232 = arith.addf %230, %231 : vector<64x128xf32>
    %cst_402 = arith.constant 0.000000e+00 : f32
    %233 = vector.broadcast %cst_402 : f32 to vector<64x128xf32>
    %234 = arith.maximumf %232, %233 : vector<64x128xf32>
    %235 = arith.truncf %234 : vector<64x128xf32> to vector<64x128xbf16>
    %cst_403 = arith.constant 0.000000e+00 : bf16
    %236 = vector.broadcast %cst_403 : bf16 to vector<64x768xbf16>
    %c0_404 = arith.constant 0 : index
    %c0_405 = arith.constant 0 : index
    %237 = vector.load %arg14[%c0_404, %c0_405] : memref<64x768xbf16, #tpu.memory_space<vmem>>, vector<64x768xbf16>
    tpu.vector_store %arg14[%c0_404, %c0_405], %236 {strides = array<i32>} : memref<64x768xbf16, #tpu.memory_space<vmem>>, vector<64x768xbf16>,
    %238 = vector.extract_strided_slice %215 {offsets = [0, 0], sizes = [5, 128], strides = [1, 1]} : vector<64x128xbf16> to vector<5x128xbf16>
    %c0_406 = arith.constant 0 : index
    %c0_407 = arith.constant 0 : index
    %239 = vector.load %arg14[%c0_406, %c0_407] : memref<64x768xbf16, #tpu.memory_space<vmem>>, vector<5x128xbf16>
    tpu.vector_store %arg14[%c0_406, %c0_407], %238 {strides = array<i32>} : memref<64x768xbf16, #tpu.memory_space<vmem>>, vector<5x128xbf16>,
    %240 = vector.extract_strided_slice %235 {offsets = [0, 0], sizes = [5, 128], strides = [1, 1]} : vector<64x128xbf16> to vector<5x128xbf16>
    %c0_408 = arith.constant 0 : index
    %c128_409 = arith.constant 128 : index
    %241 = vector.load %arg14[%c0_408, %c128_409] : memref<64x768xbf16, #tpu.memory_space<vmem>>, vector<5x128xbf16>
    tpu.vector_store %arg14[%c0_408, %c128_409], %240 {strides = array<i32>} : memref<64x768xbf16, #tpu.memory_space<vmem>>, vector<5x128xbf16>,
    %242 = vector.extract_strided_slice %215 {offsets = [1, 0], sizes = [5, 128], strides = [1, 1]} : vector<64x128xbf16> to vector<5x128xbf16>
    %c0_410 = arith.constant 0 : index
    %c256 = arith.constant 256 : index
    %243 = vector.load %arg14[%c0_410, %c256] : memref<64x768xbf16, #tpu.memory_space<vmem>>, vector<5x128xbf16>
    tpu.vector_store %arg14[%c0_410, %c256], %242 {strides = array<i32>} : memref<64x768xbf16, #tpu.memory_space<vmem>>, vector<5x128xbf16>,
    %244 = vector.extract_strided_slice %235 {offsets = [1, 0], sizes = [5, 128], strides = [1, 1]} : vector<64x128xbf16> to vector<5x128xbf16>
    %c0_411 = arith.constant 0 : index
    %c384 = arith.constant 384 : index
    %245 = vector.load %arg14[%c0_411, %c384] : memref<64x768xbf16, #tpu.memory_space<vmem>>, vector<5x128xbf16>
    tpu.vector_store %arg14[%c0_411, %c384], %244 {strides = array<i32>} : memref<64x768xbf16, #tpu.memory_space<vmem>>, vector<5x128xbf16>,
    %246 = vector.extract_strided_slice %215 {offsets = [2, 0], sizes = [5, 128], strides = [1, 1]} : vector<64x128xbf16> to vector<5x128xbf16>
    %c0_412 = arith.constant 0 : index
    %c512 = arith.constant 512 : index
    %247 = vector.load %arg14[%c0_412, %c512] : memref<64x768xbf16, #tpu.memory_space<vmem>>, vector<5x128xbf16>
    tpu.vector_store %arg14[%c0_412, %c512], %246 {strides = array<i32>} : memref<64x768xbf16, #tpu.memory_space<vmem>>, vector<5x128xbf16>,
    %248 = vector.extract_strided_slice %235 {offsets = [2, 0], sizes = [5, 128], strides = [1, 1]} : vector<64x128xbf16> to vector<5x128xbf16>
    %c0_413 = arith.constant 0 : index
    %c640 = arith.constant 640 : index
    %249 = vector.load %arg14[%c0_413, %c640] : memref<64x768xbf16, #tpu.memory_space<vmem>>, vector<5x128xbf16>
    tpu.vector_store %arg14[%c0_413, %c640], %248 {strides = array<i32>} : memref<64x768xbf16, #tpu.memory_space<vmem>>, vector<5x128xbf16>,
    %250 = vector.extract_strided_slice %215 {offsets = [8, 0], sizes = [5, 128], strides = [1, 1]} : vector<64x128xbf16> to vector<5x128xbf16>
    %c8_414 = arith.constant 8 : index
    %c0_415 = arith.constant 0 : index
    %251 = vector.load %arg14[%c8_414, %c0_415] : memref<64x768xbf16, #tpu.memory_space<vmem>>, vector<5x128xbf16>
    tpu.vector_store %arg14[%c8_414, %c0_415], %250 {strides = array<i32>} : memref<64x768xbf16, #tpu.memory_space<vmem>>, vector<5x128xbf16>,
    %252 = vector.extract_strided_slice %235 {offsets = [8, 0], sizes = [5, 128], strides = [1, 1]} : vector<64x128xbf16> to vector<5x128xbf16>
    %c8_416 = arith.constant 8 : index
    %c128_417 = arith.constant 128 : index
    %253 = vector.load %arg14[%c8_416, %c128_417] : memref<64x768xbf16, #tpu.memory_space<vmem>>, vector<5x128xbf16>
    tpu.vector_store %arg14[%c8_416, %c128_417], %252 {strides = array<i32>} : memref<64x768xbf16, #tpu.memory_space<vmem>>, vector<5x128xbf16>,
    %254 = vector.extract_strided_slice %215 {offsets = [9, 0], sizes = [5, 128], strides = [1, 1]} : vector<64x128xbf16> to vector<5x128xbf16>
    %c8_418 = arith.constant 8 : index
    %c256_419 = arith.constant 256 : index
    %255 = vector.load %arg14[%c8_418, %c256_419] : memref<64x768xbf16, #tpu.memory_space<vmem>>, vector<5x128xbf16>
    tpu.vector_store %arg14[%c8_418, %c256_419], %254 {strides = array<i32>} : memref<64x768xbf16, #tpu.memory_space<vmem>>, vector<5x128xbf16>,
    %256 = vector.extract_strided_slice %235 {offsets = [9, 0], sizes = [5, 128], strides = [1, 1]} : vector<64x128xbf16> to vector<5x128xbf16>
    %c8_420 = arith.constant 8 : index
    %c384_421 = arith.constant 384 : index
    %257 = vector.load %arg14[%c8_420, %c384_421] : memref<64x768xbf16, #tpu.memory_space<vmem>>, vector<5x128xbf16>
    tpu.vector_store %arg14[%c8_420, %c384_421], %256 {strides = array<i32>} : memref<64x768xbf16, #tpu.memory_space<vmem>>, vector<5x128xbf16>,
    %258 = vector.extract_strided_slice %215 {offsets = [10, 0], sizes = [5, 128], strides = [1, 1]} : vector<64x128xbf16> to vector<5x128xbf16>
    %c8_422 = arith.constant 8 : index
    %c512_423 = arith.constant 512 : index
    %259 = vector.load %arg14[%c8_422, %c512_423] : memref<64x768xbf16, #tpu.memory_space<vmem>>, vector<5x128xbf16>
    tpu.vector_store %arg14[%c8_422, %c512_423], %258 {strides = array<i32>} : memref<64x768xbf16, #tpu.memory_space<vmem>>, vector<5x128xbf16>,
    %260 = vector.extract_strided_slice %235 {offsets = [10, 0], sizes = [5, 128], strides = [1, 1]} : vector<64x128xbf16> to vector<5x128xbf16>
    %c8_424 = arith.constant 8 : index
    %c640_425 = arith.constant 640 : index
    %261 = vector.load %arg14[%c8_424, %c640_425] : memref<64x768xbf16, #tpu.memory_space<vmem>>, vector<5x128xbf16>
    tpu.vector_store %arg14[%c8_424, %c640_425], %260 {strides = array<i32>} : memref<64x768xbf16, #tpu.memory_space<vmem>>, vector<5x128xbf16>,
    %262 = vector.extract_strided_slice %215 {offsets = [16, 0], sizes = [5, 128], strides = [1, 1]} : vector<64x128xbf16> to vector<5x128xbf16>
    %c16_426 = arith.constant 16 : index
    %c0_427 = arith.constant 0 : index
    %263 = vector.load %arg14[%c16_426, %c0_427] : memref<64x768xbf16, #tpu.memory_space<vmem>>, vector<5x128xbf16>
    tpu.vector_store %arg14[%c16_426, %c0_427], %262 {strides = array<i32>} : memref<64x768xbf16, #tpu.memory_space<vmem>>, vector<5x128xbf16>,
    %264 = vector.extract_strided_slice %235 {offsets = [16, 0], sizes = [5, 128], strides = [1, 1]} : vector<64x128xbf16> to vector<5x128xbf16>
    %c16_428 = arith.constant 16 : index
    %c128_429 = arith.constant 128 : index
    %265 = vector.load %arg14[%c16_428, %c128_429] : memref<64x768xbf16, #tpu.memory_space<vmem>>, vector<5x128xbf16>
    tpu.vector_store %arg14[%c16_428, %c128_429], %264 {strides = array<i32>} : memref<64x768xbf16, #tpu.memory_space<vmem>>, vector<5x128xbf16>,
    %266 = vector.extract_strided_slice %215 {offsets = [17, 0], sizes = [5, 128], strides = [1, 1]} : vector<64x128xbf16> to vector<5x128xbf16>
    %c16_430 = arith.constant 16 : index
    %c256_431 = arith.constant 256 : index
    %267 = vector.load %arg14[%c16_430, %c256_431] : memref<64x768xbf16, #tpu.memory_space<vmem>>, vector<5x128xbf16>
    tpu.vector_store %arg14[%c16_430, %c256_431], %266 {strides = array<i32>} : memref<64x768xbf16, #tpu.memory_space<vmem>>, vector<5x128xbf16>,
    %268 = vector.extract_strided_slice %235 {offsets = [17, 0], sizes = [5, 128], strides = [1, 1]} : vector<64x128xbf16> to vector<5x128xbf16>
    %c16_432 = arith.constant 16 : index
    %c384_433 = arith.constant 384 : index
    %269 = vector.load %arg14[%c16_432, %c384_433] : memref<64x768xbf16, #tpu.memory_space<vmem>>, vector<5x128xbf16>
    tpu.vector_store %arg14[%c16_432, %c384_433], %268 {strides = array<i32>} : memref<64x768xbf16, #tpu.memory_space<vmem>>, vector<5x128xbf16>,
    %270 = vector.extract_strided_slice %215 {offsets = [18, 0], sizes = [5, 128], strides = [1, 1]} : vector<64x128xbf16> to vector<5x128xbf16>
    %c16_434 = arith.constant 16 : index
    %c512_435 = arith.constant 512 : index
    %271 = vector.load %arg14[%c16_434, %c512_435] : memref<64x768xbf16, #tpu.memory_space<vmem>>, vector<5x128xbf16>
    tpu.vector_store %arg14[%c16_434, %c512_435], %270 {strides = array<i32>} : memref<64x768xbf16, #tpu.memory_space<vmem>>, vector<5x128xbf16>,
    %272 = vector.extract_strided_slice %235 {offsets = [18, 0], sizes = [5, 128], strides = [1, 1]} : vector<64x128xbf16> to vector<5x128xbf16>
    %c16_436 = arith.constant 16 : index
    %c640_437 = arith.constant 640 : index
    %273 = vector.load %arg14[%c16_436, %c640_437] : memref<64x768xbf16, #tpu.memory_space<vmem>>, vector<5x128xbf16>
    tpu.vector_store %arg14[%c16_436, %c640_437], %272 {strides = array<i32>} : memref<64x768xbf16, #tpu.memory_space<vmem>>, vector<5x128xbf16>,
    %274 = vector.extract_strided_slice %215 {offsets = [24, 0], sizes = [5, 128], strides = [1, 1]} : vector<64x128xbf16> to vector<5x128xbf16>
    %c24_438 = arith.constant 24 : index
    %c0_439 = arith.constant 0 : index
    %275 = vector.load %arg14[%c24_438, %c0_439] : memref<64x768xbf16, #tpu.memory_space<vmem>>, vector<5x128xbf16>
    tpu.vector_store %arg14[%c24_438, %c0_439], %274 {strides = array<i32>} : memref<64x768xbf16, #tpu.memory_space<vmem>>, vector<5x128xbf16>,
    %276 = vector.extract_strided_slice %235 {offsets = [24, 0], sizes = [5, 128], strides = [1, 1]} : vector<64x128xbf16> to vector<5x128xbf16>
    %c24_440 = arith.constant 24 : index
    %c128_441 = arith.constant 128 : index
    %277 = vector.load %arg14[%c24_440, %c128_441] : memref<64x768xbf16, #tpu.memory_space<vmem>>, vector<5x128xbf16>
    tpu.vector_store %arg14[%c24_440, %c128_441], %276 {strides = array<i32>} : memref<64x768xbf16, #tpu.memory_space<vmem>>, vector<5x128xbf16>,
    %278 = vector.extract_strided_slice %215 {offsets = [25, 0], sizes = [5, 128], strides = [1, 1]} : vector<64x128xbf16> to vector<5x128xbf16>
    %c24_442 = arith.constant 24 : index
    %c256_443 = arith.constant 256 : index
    %279 = vector.load %arg14[%c24_442, %c256_443] : memref<64x768xbf16, #tpu.memory_space<vmem>>, vector<5x128xbf16>
    tpu.vector_store %arg14[%c24_442, %c256_443], %278 {strides = array<i32>} : memref<64x768xbf16, #tpu.memory_space<vmem>>, vector<5x128xbf16>,
    %280 = vector.extract_strided_slice %235 {offsets = [25, 0], sizes = [5, 128], strides = [1, 1]} : vector<64x128xbf16> to vector<5x128xbf16>
    %c24_444 = arith.constant 24 : index
    %c384_445 = arith.constant 384 : index
    %281 = vector.load %arg14[%c24_444, %c384_445] : memref<64x768xbf16, #tpu.memory_space<vmem>>, vector<5x128xbf16>
    tpu.vector_store %arg14[%c24_444, %c384_445], %280 {strides = array<i32>} : memref<64x768xbf16, #tpu.memory_space<vmem>>, vector<5x128xbf16>,
    %282 = vector.extract_strided_slice %215 {offsets = [26, 0], sizes = [5, 128], strides = [1, 1]} : vector<64x128xbf16> to vector<5x128xbf16>
    %c24_446 = arith.constant 24 : index
    %c512_447 = arith.constant 512 : index
    %283 = vector.load %arg14[%c24_446, %c512_447] : memref<64x768xbf16, #tpu.memory_space<vmem>>, vector<5x128xbf16>
    tpu.vector_store %arg14[%c24_446, %c512_447], %282 {strides = array<i32>} : memref<64x768xbf16, #tpu.memory_space<vmem>>, vector<5x128xbf16>,
    %284 = vector.extract_strided_slice %235 {offsets = [26, 0], sizes = [5, 128], strides = [1, 1]} : vector<64x128xbf16> to vector<5x128xbf16>
    %c24_448 = arith.constant 24 : index
    %c640_449 = arith.constant 640 : index
    %285 = vector.load %arg14[%c24_448, %c640_449] : memref<64x768xbf16, #tpu.memory_space<vmem>>, vector<5x128xbf16>
    tpu.vector_store %arg14[%c24_448, %c640_449], %284 {strides = array<i32>} : memref<64x768xbf16, #tpu.memory_space<vmem>>, vector<5x128xbf16>,
    %286 = vector.extract_strided_slice %215 {offsets = [32, 0], sizes = [5, 128], strides = [1, 1]} : vector<64x128xbf16> to vector<5x128xbf16>
    %c32_450 = arith.constant 32 : index
    %c0_451 = arith.constant 0 : index
    %287 = vector.load %arg14[%c32_450, %c0_451] : memref<64x768xbf16, #tpu.memory_space<vmem>>, vector<5x128xbf16>
    tpu.vector_store %arg14[%c32_450, %c0_451], %286 {strides = array<i32>} : memref<64x768xbf16, #tpu.memory_space<vmem>>, vector<5x128xbf16>,
    %288 = vector.extract_strided_slice %235 {offsets = [32, 0], sizes = [5, 128], strides = [1, 1]} : vector<64x128xbf16> to vector<5x128xbf16>
    %c32_452 = arith.constant 32 : index
    %c128_453 = arith.constant 128 : index
    %289 = vector.load %arg14[%c32_452, %c128_453] : memref<64x768xbf16, #tpu.memory_space<vmem>>, vector<5x128xbf16>
    tpu.vector_store %arg14[%c32_452, %c128_453], %288 {strides = array<i32>} : memref<64x768xbf16, #tpu.memory_space<vmem>>, vector<5x128xbf16>,
    %290 = vector.extract_strided_slice %215 {offsets = [33, 0], sizes = [5, 128], strides = [1, 1]} : vector<64x128xbf16> to vector<5x128xbf16>
    %c32_454 = arith.constant 32 : index
    %c256_455 = arith.constant 256 : index
    %291 = vector.load %arg14[%c32_454, %c256_455] : memref<64x768xbf16, #tpu.memory_space<vmem>>, vector<5x128xbf16>
    tpu.vector_store %arg14[%c32_454, %c256_455], %290 {strides = array<i32>} : memref<64x768xbf16, #tpu.memory_space<vmem>>, vector<5x128xbf16>,
    %292 = vector.extract_strided_slice %235 {offsets = [33, 0], sizes = [5, 128], strides = [1, 1]} : vector<64x128xbf16> to vector<5x128xbf16>
    %c32_456 = arith.constant 32 : index
    %c384_457 = arith.constant 384 : index
    %293 = vector.load %arg14[%c32_456, %c384_457] : memref<64x768xbf16, #tpu.memory_space<vmem>>, vector<5x128xbf16>
    tpu.vector_store %arg14[%c32_456, %c384_457], %292 {strides = array<i32>} : memref<64x768xbf16, #tpu.memory_space<vmem>>, vector<5x128xbf16>,
    %294 = vector.extract_strided_slice %215 {offsets = [34, 0], sizes = [5, 128], strides = [1, 1]} : vector<64x128xbf16> to vector<5x128xbf16>
    %c32_458 = arith.constant 32 : index
    %c512_459 = arith.constant 512 : index
    %295 = vector.load %arg14[%c32_458, %c512_459] : memref<64x768xbf16, #tpu.memory_space<vmem>>, vector<5x128xbf16>
    tpu.vector_store %arg14[%c32_458, %c512_459], %294 {strides = array<i32>} : memref<64x768xbf16, #tpu.memory_space<vmem>>, vector<5x128xbf16>,
    %296 = vector.extract_strided_slice %235 {offsets = [34, 0], sizes = [5, 128], strides = [1, 1]} : vector<64x128xbf16> to vector<5x128xbf16>
    %c32_460 = arith.constant 32 : index
    %c640_461 = arith.constant 640 : index
    %297 = vector.load %arg14[%c32_460, %c640_461] : memref<64x768xbf16, #tpu.memory_space<vmem>>, vector<5x128xbf16>
    tpu.vector_store %arg14[%c32_460, %c640_461], %296 {strides = array<i32>} : memref<64x768xbf16, #tpu.memory_space<vmem>>, vector<5x128xbf16>,
    %298 = vector.extract_strided_slice %215 {offsets = [40, 0], sizes = [5, 128], strides = [1, 1]} : vector<64x128xbf16> to vector<5x128xbf16>
    %c40_462 = arith.constant 40 : index
    %c0_463 = arith.constant 0 : index
    %299 = vector.load %arg14[%c40_462, %c0_463] : memref<64x768xbf16, #tpu.memory_space<vmem>>, vector<5x128xbf16>
    tpu.vector_store %arg14[%c40_462, %c0_463], %298 {strides = array<i32>} : memref<64x768xbf16, #tpu.memory_space<vmem>>, vector<5x128xbf16>,
    %300 = vector.extract_strided_slice %235 {offsets = [40, 0], sizes = [5, 128], strides = [1, 1]} : vector<64x128xbf16> to vector<5x128xbf16>
    %c40_464 = arith.constant 40 : index
    %c128_465 = arith.constant 128 : index
    %301 = vector.load %arg14[%c40_464, %c128_465] : memref<64x768xbf16, #tpu.memory_space<vmem>>, vector<5x128xbf16>
    tpu.vector_store %arg14[%c40_464, %c128_465], %300 {strides = array<i32>} : memref<64x768xbf16, #tpu.memory_space<vmem>>, vector<5x128xbf16>,
    %302 = vector.extract_strided_slice %215 {offsets = [41, 0], sizes = [5, 128], strides = [1, 1]} : vector<64x128xbf16> to vector<5x128xbf16>
    %c40_466 = arith.constant 40 : index
    %c256_467 = arith.constant 256 : index
    %303 = vector.load %arg14[%c40_466, %c256_467] : memref<64x768xbf16, #tpu.memory_space<vmem>>, vector<5x128xbf16>
    tpu.vector_store %arg14[%c40_466, %c256_467], %302 {strides = array<i32>} : memref<64x768xbf16, #tpu.memory_space<vmem>>, vector<5x128xbf16>,
    %304 = vector.extract_strided_slice %235 {offsets = [41, 0], sizes = [5, 128], strides = [1, 1]} : vector<64x128xbf16> to vector<5x128xbf16>
    %c40_468 = arith.constant 40 : index
    %c384_469 = arith.constant 384 : index
    %305 = vector.load %arg14[%c40_468, %c384_469] : memref<64x768xbf16, #tpu.memory_space<vmem>>, vector<5x128xbf16>
    tpu.vector_store %arg14[%c40_468, %c384_469], %304 {strides = array<i32>} : memref<64x768xbf16, #tpu.memory_space<vmem>>, vector<5x128xbf16>,
    %306 = vector.extract_strided_slice %215 {offsets = [42, 0], sizes = [5, 128], strides = [1, 1]} : vector<64x128xbf16> to vector<5x128xbf16>
    %c40_470 = arith.constant 40 : index
    %c512_471 = arith.constant 512 : index
    %307 = vector.load %arg14[%c40_470, %c512_471] : memref<64x768xbf16, #tpu.memory_space<vmem>>, vector<5x128xbf16>
    tpu.vector_store %arg14[%c40_470, %c512_471], %306 {strides = array<i32>} : memref<64x768xbf16, #tpu.memory_space<vmem>>, vector<5x128xbf16>,
    %308 = vector.extract_strided_slice %235 {offsets = [42, 0], sizes = [5, 128], strides = [1, 1]} : vector<64x128xbf16> to vector<5x128xbf16>
    %c40_472 = arith.constant 40 : index
    %c640_473 = arith.constant 640 : index
    %309 = vector.load %arg14[%c40_472, %c640_473] : memref<64x768xbf16, #tpu.memory_space<vmem>>, vector<5x128xbf16>
    tpu.vector_store %arg14[%c40_472, %c640_473], %308 {strides = array<i32>} : memref<64x768xbf16, #tpu.memory_space<vmem>>, vector<5x128xbf16>,
    %310 = vector.extract_strided_slice %215 {offsets = [48, 0], sizes = [5, 128], strides = [1, 1]} : vector<64x128xbf16> to vector<5x128xbf16>
    %c48_474 = arith.constant 48 : index
    %c0_475 = arith.constant 0 : index
    %311 = vector.load %arg14[%c48_474, %c0_475] : memref<64x768xbf16, #tpu.memory_space<vmem>>, vector<5x128xbf16>
    tpu.vector_store %arg14[%c48_474, %c0_475], %310 {strides = array<i32>} : memref<64x768xbf16, #tpu.memory_space<vmem>>, vector<5x128xbf16>,
    %312 = vector.extract_strided_slice %235 {offsets = [48, 0], sizes = [5, 128], strides = [1, 1]} : vector<64x128xbf16> to vector<5x128xbf16>
    %c48_476 = arith.constant 48 : index
    %c128_477 = arith.constant 128 : index
    %313 = vector.load %arg14[%c48_476, %c128_477] : memref<64x768xbf16, #tpu.memory_space<vmem>>, vector<5x128xbf16>
    tpu.vector_store %arg14[%c48_476, %c128_477], %312 {strides = array<i32>} : memref<64x768xbf16, #tpu.memory_space<vmem>>, vector<5x128xbf16>,
    %314 = vector.extract_strided_slice %215 {offsets = [49, 0], sizes = [5, 128], strides = [1, 1]} : vector<64x128xbf16> to vector<5x128xbf16>
    %c48_478 = arith.constant 48 : index
    %c256_479 = arith.constant 256 : index
    %315 = vector.load %arg14[%c48_478, %c256_479] : memref<64x768xbf16, #tpu.memory_space<vmem>>, vector<5x128xbf16>
    tpu.vector_store %arg14[%c48_478, %c256_479], %314 {strides = array<i32>} : memref<64x768xbf16, #tpu.memory_space<vmem>>, vector<5x128xbf16>,
    %316 = vector.extract_strided_slice %235 {offsets = [49, 0], sizes = [5, 128], strides = [1, 1]} : vector<64x128xbf16> to vector<5x128xbf16>
    %c48_480 = arith.constant 48 : index
    %c384_481 = arith.constant 384 : index
    %317 = vector.load %arg14[%c48_480, %c384_481] : memref<64x768xbf16, #tpu.memory_space<vmem>>, vector<5x128xbf16>
    tpu.vector_store %arg14[%c48_480, %c384_481], %316 {strides = array<i32>} : memref<64x768xbf16, #tpu.memory_space<vmem>>, vector<5x128xbf16>,
    %318 = vector.extract_strided_slice %215 {offsets = [50, 0], sizes = [5, 128], strides = [1, 1]} : vector<64x128xbf16> to vector<5x128xbf16>
    %c48_482 = arith.constant 48 : index
    %c512_483 = arith.constant 512 : index
    %319 = vector.load %arg14[%c48_482, %c512_483] : memref<64x768xbf16, #tpu.memory_space<vmem>>, vector<5x128xbf16>
    tpu.vector_store %arg14[%c48_482, %c512_483], %318 {strides = array<i32>} : memref<64x768xbf16, #tpu.memory_space<vmem>>, vector<5x128xbf16>,
    %320 = vector.extract_strided_slice %235 {offsets = [50, 0], sizes = [5, 128], strides = [1, 1]} : vector<64x128xbf16> to vector<5x128xbf16>
    %c48_484 = arith.constant 48 : index
    %c640_485 = arith.constant 640 : index
    %321 = vector.load %arg14[%c48_484, %c640_485] : memref<64x768xbf16, #tpu.memory_space<vmem>>, vector<5x128xbf16>
    tpu.vector_store %arg14[%c48_484, %c640_485], %320 {strides = array<i32>} : memref<64x768xbf16, #tpu.memory_space<vmem>>, vector<5x128xbf16>,
    %322 = vector.extract_strided_slice %215 {offsets = [56, 0], sizes = [5, 128], strides = [1, 1]} : vector<64x128xbf16> to vector<5x128xbf16>
    %c56_486 = arith.constant 56 : index
    %c0_487 = arith.constant 0 : index
    %323 = vector.load %arg14[%c56_486, %c0_487] : memref<64x768xbf16, #tpu.memory_space<vmem>>, vector<5x128xbf16>
    tpu.vector_store %arg14[%c56_486, %c0_487], %322 {strides = array<i32>} : memref<64x768xbf16, #tpu.memory_space<vmem>>, vector<5x128xbf16>,
    %324 = vector.extract_strided_slice %235 {offsets = [56, 0], sizes = [5, 128], strides = [1, 1]} : vector<64x128xbf16> to vector<5x128xbf16>
    %c56_488 = arith.constant 56 : index
    %c128_489 = arith.constant 128 : index
    %325 = vector.load %arg14[%c56_488, %c128_489] : memref<64x768xbf16, #tpu.memory_space<vmem>>, vector<5x128xbf16>
    tpu.vector_store %arg14[%c56_488, %c128_489], %324 {strides = array<i32>} : memref<64x768xbf16, #tpu.memory_space<vmem>>, vector<5x128xbf16>,
    %326 = vector.extract_strided_slice %215 {offsets = [57, 0], sizes = [5, 128], strides = [1, 1]} : vector<64x128xbf16> to vector<5x128xbf16>
    %c56_490 = arith.constant 56 : index
    %c256_491 = arith.constant 256 : index
    %327 = vector.load %arg14[%c56_490, %c256_491] : memref<64x768xbf16, #tpu.memory_space<vmem>>, vector<5x128xbf16>
    tpu.vector_store %arg14[%c56_490, %c256_491], %326 {strides = array<i32>} : memref<64x768xbf16, #tpu.memory_space<vmem>>, vector<5x128xbf16>,
    %328 = vector.extract_strided_slice %235 {offsets = [57, 0], sizes = [5, 128], strides = [1, 1]} : vector<64x128xbf16> to vector<5x128xbf16>
    %c56_492 = arith.constant 56 : index
    %c384_493 = arith.constant 384 : index
    %329 = vector.load %arg14[%c56_492, %c384_493] : memref<64x768xbf16, #tpu.memory_space<vmem>>, vector<5x128xbf16>
    tpu.vector_store %arg14[%c56_492, %c384_493], %328 {strides = array<i32>} : memref<64x768xbf16, #tpu.memory_space<vmem>>, vector<5x128xbf16>,
    %330 = vector.extract_strided_slice %215 {offsets = [58, 0], sizes = [5, 128], strides = [1, 1]} : vector<64x128xbf16> to vector<5x128xbf16>
    %c56_494 = arith.constant 56 : index
    %c512_495 = arith.constant 512 : index
    %331 = vector.load %arg14[%c56_494, %c512_495] : memref<64x768xbf16, #tpu.memory_space<vmem>>, vector<5x128xbf16>
    tpu.vector_store %arg14[%c56_494, %c512_495], %330 {strides = array<i32>} : memref<64x768xbf16, #tpu.memory_space<vmem>>, vector<5x128xbf16>,
    %332 = vector.extract_strided_slice %235 {offsets = [58, 0], sizes = [5, 128], strides = [1, 1]} : vector<64x128xbf16> to vector<5x128xbf16>
    %c56_496 = arith.constant 56 : index
    %c640_497 = arith.constant 640 : index
    %333 = vector.load %arg14[%c56_496, %c640_497] : memref<64x768xbf16, #tpu.memory_space<vmem>>, vector<5x128xbf16>
    tpu.vector_store %arg14[%c56_496, %c640_497], %332 {strides = array<i32>} : memref<64x768xbf16, #tpu.memory_space<vmem>>, vector<5x128xbf16>,
    %c0_498 = arith.constant 0 : index
    %c0_499 = arith.constant 0 : index
    %334 = vector.load %arg14[%c0_498, %c0_499] : memref<64x768xbf16, #tpu.memory_space<vmem>>, vector<64x768xbf16>
    %c0_500 = arith.constant 0 : index
    %c0_501 = arith.constant 0 : index
    %c0_502 = arith.constant 0 : index
    %335 = vector.load %arg4[%c0_500, %c0_501, %c0_502] : memref<4x768x128xbf16, #tpu.memory_space<vmem>>, vector<1x768x128xbf16>
    %336 = vector.shape_cast %335 : vector<1x768x128xbf16> to vector<768x128xbf16>
    %cst_503 = arith.constant dense<0.000000e+00> : vector<64x128xf32>
    %337 = tpu.matmul %334, %336, %cst_503 {dimension_numbers = #tpu.dot_dimension_numbers<[1], [0], [0], [1], [0, 0, 1, 1], [], []>} : vector<64x768xbf16>, vector<768x128xbf16>, vector<64x128xf32> -> vector<64x128xf32>
    %c1_504 = arith.constant 1 : index
    %c0_505 = arith.constant 0 : index
    %c0_506 = arith.constant 0 : index
    %338 = vector.load %arg4[%c1_504, %c0_505, %c0_506] : memref<4x768x128xbf16, #tpu.memory_space<vmem>>, vector<1x768x128xbf16>
    %339 = vector.shape_cast %338 : vector<1x768x128xbf16> to vector<768x128xbf16>
    %cst_507 = arith.constant dense<0.000000e+00> : vector<64x128xf32>
    %340 = tpu.matmul %334, %339, %cst_507 {dimension_numbers = #tpu.dot_dimension_numbers<[1], [0], [0], [1], [0, 0, 1, 1], [], []>} : vector<64x768xbf16>, vector<768x128xbf16>, vector<64x128xf32> -> vector<64x128xf32>
    %c2_508 = arith.constant 2 : index
    %c0_509 = arith.constant 0 : index
    %c0_510 = arith.constant 0 : index
    %341 = vector.load %arg4[%c2_508, %c0_509, %c0_510] : memref<4x768x128xbf16, #tpu.memory_space<vmem>>, vector<1x768x128xbf16>
    %342 = vector.shape_cast %341 : vector<1x768x128xbf16> to vector<768x128xbf16>
    %cst_511 = arith.constant dense<0.000000e+00> : vector<64x128xf32>
    %343 = tpu.matmul %334, %342, %cst_511 {dimension_numbers = #tpu.dot_dimension_numbers<[1], [0], [0], [1], [0, 0, 1, 1], [], []>} : vector<64x768xbf16>, vector<768x128xbf16>, vector<64x128xf32> -> vector<64x128xf32>
    %c3_512 = arith.constant 3 : index
    %c0_513 = arith.constant 0 : index
    %c0_514 = arith.constant 0 : index
    %344 = vector.load %arg4[%c3_512, %c0_513, %c0_514] : memref<4x768x128xbf16, #tpu.memory_space<vmem>>, vector<1x768x128xbf16>
    %345 = vector.shape_cast %344 : vector<1x768x128xbf16> to vector<768x128xbf16>
    %cst_515 = arith.constant dense<0.000000e+00> : vector<64x128xf32>
    %346 = tpu.matmul %334, %345, %cst_515 {dimension_numbers = #tpu.dot_dimension_numbers<[1], [0], [0], [1], [0, 0, 1, 1], [], []>} : vector<64x768xbf16>, vector<768x128xbf16>, vector<64x128xf32> -> vector<64x128xf32>
    %347 = arith.maximumf %337, %340 : vector<64x128xf32>
    %348 = arith.maximumf %343, %346 : vector<64x128xf32>
    %349 = arith.maximumf %347, %348 : vector<64x128xf32>
    %c0_516 = arith.constant 0 : index
    %c0_517 = arith.constant 0 : index
    %350 = vector.load %arg5[%c0_516, %c0_517] : memref<1x128xf32, #tpu.memory_space<vmem>>, vector<1x128xf32>
    %351 = vector.broadcast %350 : vector<1x128xf32> to vector<64x128xf32>
    %352 = arith.addf %349, %351 : vector<64x128xf32>
    %cst_518 = arith.constant 0.000000e+00 : f32
    %353 = vector.broadcast %cst_518 : f32 to vector<64x128xf32>
    %354 = arith.maximumf %352, %353 : vector<64x128xf32>
    %355 = arith.truncf %354 : vector<64x128xf32> to vector<64x128xbf16>
    %356 = vector.extract_strided_slice %355 {offsets = [0, 0], sizes = [1, 128], strides = [1, 1]} : vector<64x128xbf16> to vector<1x128xbf16>
    %c0_519 = arith.constant 0 : index
    %c0_520 = arith.constant 0 : index
    %357 = vector.load %arg15[%c0_519, %c0_520] : memref<8x640xbf16, #tpu.memory_space<vmem>>, vector<1x128xbf16>
    tpu.vector_store %arg15[%c0_519, %c0_520], %356 {strides = array<i32>} : memref<8x640xbf16, #tpu.memory_space<vmem>>, vector<1x128xbf16>,
    %358 = vector.extract_strided_slice %355 {offsets = [1, 0], sizes = [1, 128], strides = [1, 1]} : vector<64x128xbf16> to vector<1x128xbf16>
    %c0_521 = arith.constant 0 : index
    %c128_522 = arith.constant 128 : index
    %359 = vector.load %arg15[%c0_521, %c128_522] : memref<8x640xbf16, #tpu.memory_space<vmem>>, vector<1x128xbf16>
    tpu.vector_store %arg15[%c0_521, %c128_522], %358 {strides = array<i32>} : memref<8x640xbf16, #tpu.memory_space<vmem>>, vector<1x128xbf16>,
    %360 = vector.extract_strided_slice %355 {offsets = [2, 0], sizes = [1, 128], strides = [1, 1]} : vector<64x128xbf16> to vector<1x128xbf16>
    %c0_523 = arith.constant 0 : index
    %c256_524 = arith.constant 256 : index
    %361 = vector.load %arg15[%c0_523, %c256_524] : memref<8x640xbf16, #tpu.memory_space<vmem>>, vector<1x128xbf16>
    tpu.vector_store %arg15[%c0_523, %c256_524], %360 {strides = array<i32>} : memref<8x640xbf16, #tpu.memory_space<vmem>>, vector<1x128xbf16>,
    %362 = vector.extract_strided_slice %355 {offsets = [3, 0], sizes = [1, 128], strides = [1, 1]} : vector<64x128xbf16> to vector<1x128xbf16>
    %c0_525 = arith.constant 0 : index
    %c384_526 = arith.constant 384 : index
    %363 = vector.load %arg15[%c0_525, %c384_526] : memref<8x640xbf16, #tpu.memory_space<vmem>>, vector<1x128xbf16>
    tpu.vector_store %arg15[%c0_525, %c384_526], %362 {strides = array<i32>} : memref<8x640xbf16, #tpu.memory_space<vmem>>, vector<1x128xbf16>,
    %364 = vector.extract_strided_slice %355 {offsets = [4, 0], sizes = [1, 128], strides = [1, 1]} : vector<64x128xbf16> to vector<1x128xbf16>
    %c0_527 = arith.constant 0 : index
    %c512_528 = arith.constant 512 : index
    %365 = vector.load %arg15[%c0_527, %c512_528] : memref<8x640xbf16, #tpu.memory_space<vmem>>, vector<1x128xbf16>
    tpu.vector_store %arg15[%c0_527, %c512_528], %364 {strides = array<i32>} : memref<8x640xbf16, #tpu.memory_space<vmem>>, vector<1x128xbf16>,
    %366 = vector.extract_strided_slice %355 {offsets = [8, 0], sizes = [1, 128], strides = [1, 1]} : vector<64x128xbf16> to vector<1x128xbf16>
    %c1_529 = arith.constant 1 : index
    %c0_530 = arith.constant 0 : index
    %367 = vector.load %arg15[%c1_529, %c0_530] : memref<8x640xbf16, #tpu.memory_space<vmem>>, vector<1x128xbf16>
    tpu.vector_store %arg15[%c1_529, %c0_530], %366 {strides = array<i32>} : memref<8x640xbf16, #tpu.memory_space<vmem>>, vector<1x128xbf16>,
    %368 = vector.extract_strided_slice %355 {offsets = [9, 0], sizes = [1, 128], strides = [1, 1]} : vector<64x128xbf16> to vector<1x128xbf16>
    %c1_531 = arith.constant 1 : index
    %c128_532 = arith.constant 128 : index
    %369 = vector.load %arg15[%c1_531, %c128_532] : memref<8x640xbf16, #tpu.memory_space<vmem>>, vector<1x128xbf16>
    tpu.vector_store %arg15[%c1_531, %c128_532], %368 {strides = array<i32>} : memref<8x640xbf16, #tpu.memory_space<vmem>>, vector<1x128xbf16>,
    %370 = vector.extract_strided_slice %355 {offsets = [10, 0], sizes = [1, 128], strides = [1, 1]} : vector<64x128xbf16> to vector<1x128xbf16>
    %c1_533 = arith.constant 1 : index
    %c256_534 = arith.constant 256 : index
    %371 = vector.load %arg15[%c1_533, %c256_534] : memref<8x640xbf16, #tpu.memory_space<vmem>>, vector<1x128xbf16>
    tpu.vector_store %arg15[%c1_533, %c256_534], %370 {strides = array<i32>} : memref<8x640xbf16, #tpu.memory_space<vmem>>, vector<1x128xbf16>,
    %372 = vector.extract_strided_slice %355 {offsets = [11, 0], sizes = [1, 128], strides = [1, 1]} : vector<64x128xbf16> to vector<1x128xbf16>
    %c1_535 = arith.constant 1 : index
    %c384_536 = arith.constant 384 : index
    %373 = vector.load %arg15[%c1_535, %c384_536] : memref<8x640xbf16, #tpu.memory_space<vmem>>, vector<1x128xbf16>
    tpu.vector_store %arg15[%c1_535, %c384_536], %372 {strides = array<i32>} : memref<8x640xbf16, #tpu.memory_space<vmem>>, vector<1x128xbf16>,
    %374 = vector.extract_strided_slice %355 {offsets = [12, 0], sizes = [1, 128], strides = [1, 1]} : vector<64x128xbf16> to vector<1x128xbf16>
    %c1_537 = arith.constant 1 : index
    %c512_538 = arith.constant 512 : index
    %375 = vector.load %arg15[%c1_537, %c512_538] : memref<8x640xbf16, #tpu.memory_space<vmem>>, vector<1x128xbf16>
    tpu.vector_store %arg15[%c1_537, %c512_538], %374 {strides = array<i32>} : memref<8x640xbf16, #tpu.memory_space<vmem>>, vector<1x128xbf16>,
    %376 = vector.extract_strided_slice %355 {offsets = [16, 0], sizes = [1, 128], strides = [1, 1]} : vector<64x128xbf16> to vector<1x128xbf16>
    %c2_539 = arith.constant 2 : index
    %c0_540 = arith.constant 0 : index
    %377 = vector.load %arg15[%c2_539, %c0_540] : memref<8x640xbf16, #tpu.memory_space<vmem>>, vector<1x128xbf16>
    tpu.vector_store %arg15[%c2_539, %c0_540], %376 {strides = array<i32>} : memref<8x640xbf16, #tpu.memory_space<vmem>>, vector<1x128xbf16>,
    %378 = vector.extract_strided_slice %355 {offsets = [17, 0], sizes = [1, 128], strides = [1, 1]} : vector<64x128xbf16> to vector<1x128xbf16>
    %c2_541 = arith.constant 2 : index
    %c128_542 = arith.constant 128 : index
    %379 = vector.load %arg15[%c2_541, %c128_542] : memref<8x640xbf16, #tpu.memory_space<vmem>>, vector<1x128xbf16>
    tpu.vector_store %arg15[%c2_541, %c128_542], %378 {strides = array<i32>} : memref<8x640xbf16, #tpu.memory_space<vmem>>, vector<1x128xbf16>,
    %380 = vector.extract_strided_slice %355 {offsets = [18, 0], sizes = [1, 128], strides = [1, 1]} : vector<64x128xbf16> to vector<1x128xbf16>
    %c2_543 = arith.constant 2 : index
    %c256_544 = arith.constant 256 : index
    %381 = vector.load %arg15[%c2_543, %c256_544] : memref<8x640xbf16, #tpu.memory_space<vmem>>, vector<1x128xbf16>
    tpu.vector_store %arg15[%c2_543, %c256_544], %380 {strides = array<i32>} : memref<8x640xbf16, #tpu.memory_space<vmem>>, vector<1x128xbf16>,
    %382 = vector.extract_strided_slice %355 {offsets = [19, 0], sizes = [1, 128], strides = [1, 1]} : vector<64x128xbf16> to vector<1x128xbf16>
    %c2_545 = arith.constant 2 : index
    %c384_546 = arith.constant 384 : index
    %383 = vector.load %arg15[%c2_545, %c384_546] : memref<8x640xbf16, #tpu.memory_space<vmem>>, vector<1x128xbf16>
    tpu.vector_store %arg15[%c2_545, %c384_546], %382 {strides = array<i32>} : memref<8x640xbf16, #tpu.memory_space<vmem>>, vector<1x128xbf16>,
    %384 = vector.extract_strided_slice %355 {offsets = [20, 0], sizes = [1, 128], strides = [1, 1]} : vector<64x128xbf16> to vector<1x128xbf16>
    %c2_547 = arith.constant 2 : index
    %c512_548 = arith.constant 512 : index
    %385 = vector.load %arg15[%c2_547, %c512_548] : memref<8x640xbf16, #tpu.memory_space<vmem>>, vector<1x128xbf16>
    tpu.vector_store %arg15[%c2_547, %c512_548], %384 {strides = array<i32>} : memref<8x640xbf16, #tpu.memory_space<vmem>>, vector<1x128xbf16>,
    %386 = vector.extract_strided_slice %355 {offsets = [24, 0], sizes = [1, 128], strides = [1, 1]} : vector<64x128xbf16> to vector<1x128xbf16>
    %c3_549 = arith.constant 3 : index
    %c0_550 = arith.constant 0 : index
    %387 = vector.load %arg15[%c3_549, %c0_550] : memref<8x640xbf16, #tpu.memory_space<vmem>>, vector<1x128xbf16>
    tpu.vector_store %arg15[%c3_549, %c0_550], %386 {strides = array<i32>} : memref<8x640xbf16, #tpu.memory_space<vmem>>, vector<1x128xbf16>,
    %388 = vector.extract_strided_slice %355 {offsets = [25, 0], sizes = [1, 128], strides = [1, 1]} : vector<64x128xbf16> to vector<1x128xbf16>
    %c3_551 = arith.constant 3 : index
    %c128_552 = arith.constant 128 : index
    %389 = vector.load %arg15[%c3_551, %c128_552] : memref<8x640xbf16, #tpu.memory_space<vmem>>, vector<1x128xbf16>
    tpu.vector_store %arg15[%c3_551, %c128_552], %388 {strides = array<i32>} : memref<8x640xbf16, #tpu.memory_space<vmem>>, vector<1x128xbf16>,
    %390 = vector.extract_strided_slice %355 {offsets = [26, 0], sizes = [1, 128], strides = [1, 1]} : vector<64x128xbf16> to vector<1x128xbf16>
    %c3_553 = arith.constant 3 : index
    %c256_554 = arith.constant 256 : index
    %391 = vector.load %arg15[%c3_553, %c256_554] : memref<8x640xbf16, #tpu.memory_space<vmem>>, vector<1x128xbf16>
    tpu.vector_store %arg15[%c3_553, %c256_554], %390 {strides = array<i32>} : memref<8x640xbf16, #tpu.memory_space<vmem>>, vector<1x128xbf16>,
    %392 = vector.extract_strided_slice %355 {offsets = [27, 0], sizes = [1, 128], strides = [1, 1]} : vector<64x128xbf16> to vector<1x128xbf16>
    %c3_555 = arith.constant 3 : index
    %c384_556 = arith.constant 384 : index
    %393 = vector.load %arg15[%c3_555, %c384_556] : memref<8x640xbf16, #tpu.memory_space<vmem>>, vector<1x128xbf16>
    tpu.vector_store %arg15[%c3_555, %c384_556], %392 {strides = array<i32>} : memref<8x640xbf16, #tpu.memory_space<vmem>>, vector<1x128xbf16>,
    %394 = vector.extract_strided_slice %355 {offsets = [28, 0], sizes = [1, 128], strides = [1, 1]} : vector<64x128xbf16> to vector<1x128xbf16>
    %c3_557 = arith.constant 3 : index
    %c512_558 = arith.constant 512 : index
    %395 = vector.load %arg15[%c3_557, %c512_558] : memref<8x640xbf16, #tpu.memory_space<vmem>>, vector<1x128xbf16>
    tpu.vector_store %arg15[%c3_557, %c512_558], %394 {strides = array<i32>} : memref<8x640xbf16, #tpu.memory_space<vmem>>, vector<1x128xbf16>,
    %396 = vector.extract_strided_slice %355 {offsets = [32, 0], sizes = [1, 128], strides = [1, 1]} : vector<64x128xbf16> to vector<1x128xbf16>
    %c4_559 = arith.constant 4 : index
    %c0_560 = arith.constant 0 : index
    %397 = vector.load %arg15[%c4_559, %c0_560] : memref<8x640xbf16, #tpu.memory_space<vmem>>, vector<1x128xbf16>
    tpu.vector_store %arg15[%c4_559, %c0_560], %396 {strides = array<i32>} : memref<8x640xbf16, #tpu.memory_space<vmem>>, vector<1x128xbf16>,
    %398 = vector.extract_strided_slice %355 {offsets = [33, 0], sizes = [1, 128], strides = [1, 1]} : vector<64x128xbf16> to vector<1x128xbf16>
    %c4_561 = arith.constant 4 : index
    %c128_562 = arith.constant 128 : index
    %399 = vector.load %arg15[%c4_561, %c128_562] : memref<8x640xbf16, #tpu.memory_space<vmem>>, vector<1x128xbf16>
    tpu.vector_store %arg15[%c4_561, %c128_562], %398 {strides = array<i32>} : memref<8x640xbf16, #tpu.memory_space<vmem>>, vector<1x128xbf16>,
    %400 = vector.extract_strided_slice %355 {offsets = [34, 0], sizes = [1, 128], strides = [1, 1]} : vector<64x128xbf16> to vector<1x128xbf16>
    %c4_563 = arith.constant 4 : index
    %c256_564 = arith.constant 256 : index
    %401 = vector.load %arg15[%c4_563, %c256_564] : memref<8x640xbf16, #tpu.memory_space<vmem>>, vector<1x128xbf16>
    tpu.vector_store %arg15[%c4_563, %c256_564], %400 {strides = array<i32>} : memref<8x640xbf16, #tpu.memory_space<vmem>>, vector<1x128xbf16>,
    %402 = vector.extract_strided_slice %355 {offsets = [35, 0], sizes = [1, 128], strides = [1, 1]} : vector<64x128xbf16> to vector<1x128xbf16>
    %c4_565 = arith.constant 4 : index
    %c384_566 = arith.constant 384 : index
    %403 = vector.load %arg15[%c4_565, %c384_566] : memref<8x640xbf16, #tpu.memory_space<vmem>>, vector<1x128xbf16>
    tpu.vector_store %arg15[%c4_565, %c384_566], %402 {strides = array<i32>} : memref<8x640xbf16, #tpu.memory_space<vmem>>, vector<1x128xbf16>,
    %404 = vector.extract_strided_slice %355 {offsets = [36, 0], sizes = [1, 128], strides = [1, 1]} : vector<64x128xbf16> to vector<1x128xbf16>
    %c4_567 = arith.constant 4 : index
    %c512_568 = arith.constant 512 : index
    %405 = vector.load %arg15[%c4_567, %c512_568] : memref<8x640xbf16, #tpu.memory_space<vmem>>, vector<1x128xbf16>
    tpu.vector_store %arg15[%c4_567, %c512_568], %404 {strides = array<i32>} : memref<8x640xbf16, #tpu.memory_space<vmem>>, vector<1x128xbf16>,
    %406 = vector.extract_strided_slice %355 {offsets = [40, 0], sizes = [1, 128], strides = [1, 1]} : vector<64x128xbf16> to vector<1x128xbf16>
    %c5_569 = arith.constant 5 : index
    %c0_570 = arith.constant 0 : index
    %407 = vector.load %arg15[%c5_569, %c0_570] : memref<8x640xbf16, #tpu.memory_space<vmem>>, vector<1x128xbf16>
    tpu.vector_store %arg15[%c5_569, %c0_570], %406 {strides = array<i32>} : memref<8x640xbf16, #tpu.memory_space<vmem>>, vector<1x128xbf16>,
    %408 = vector.extract_strided_slice %355 {offsets = [41, 0], sizes = [1, 128], strides = [1, 1]} : vector<64x128xbf16> to vector<1x128xbf16>
    %c5_571 = arith.constant 5 : index
    %c128_572 = arith.constant 128 : index
    %409 = vector.load %arg15[%c5_571, %c128_572] : memref<8x640xbf16, #tpu.memory_space<vmem>>, vector<1x128xbf16>
    tpu.vector_store %arg15[%c5_571, %c128_572], %408 {strides = array<i32>} : memref<8x640xbf16, #tpu.memory_space<vmem>>, vector<1x128xbf16>,
    %410 = vector.extract_strided_slice %355 {offsets = [42, 0], sizes = [1, 128], strides = [1, 1]} : vector<64x128xbf16> to vector<1x128xbf16>
    %c5_573 = arith.constant 5 : index
    %c256_574 = arith.constant 256 : index
    %411 = vector.load %arg15[%c5_573, %c256_574] : memref<8x640xbf16, #tpu.memory_space<vmem>>, vector<1x128xbf16>
    tpu.vector_store %arg15[%c5_573, %c256_574], %410 {strides = array<i32>} : memref<8x640xbf16, #tpu.memory_space<vmem>>, vector<1x128xbf16>,
    %412 = vector.extract_strided_slice %355 {offsets = [43, 0], sizes = [1, 128], strides = [1, 1]} : vector<64x128xbf16> to vector<1x128xbf16>
    %c5_575 = arith.constant 5 : index
    %c384_576 = arith.constant 384 : index
    %413 = vector.load %arg15[%c5_575, %c384_576] : memref<8x640xbf16, #tpu.memory_space<vmem>>, vector<1x128xbf16>
    tpu.vector_store %arg15[%c5_575, %c384_576], %412 {strides = array<i32>} : memref<8x640xbf16, #tpu.memory_space<vmem>>, vector<1x128xbf16>,
    %414 = vector.extract_strided_slice %355 {offsets = [44, 0], sizes = [1, 128], strides = [1, 1]} : vector<64x128xbf16> to vector<1x128xbf16>
    %c5_577 = arith.constant 5 : index
    %c512_578 = arith.constant 512 : index
    %415 = vector.load %arg15[%c5_577, %c512_578] : memref<8x640xbf16, #tpu.memory_space<vmem>>, vector<1x128xbf16>
    tpu.vector_store %arg15[%c5_577, %c512_578], %414 {strides = array<i32>} : memref<8x640xbf16, #tpu.memory_space<vmem>>, vector<1x128xbf16>,
    %416 = vector.extract_strided_slice %355 {offsets = [48, 0], sizes = [1, 128], strides = [1, 1]} : vector<64x128xbf16> to vector<1x128xbf16>
    %c6_579 = arith.constant 6 : index
    %c0_580 = arith.constant 0 : index
    %417 = vector.load %arg15[%c6_579, %c0_580] : memref<8x640xbf16, #tpu.memory_space<vmem>>, vector<1x128xbf16>
    tpu.vector_store %arg15[%c6_579, %c0_580], %416 {strides = array<i32>} : memref<8x640xbf16, #tpu.memory_space<vmem>>, vector<1x128xbf16>,
    %418 = vector.extract_strided_slice %355 {offsets = [49, 0], sizes = [1, 128], strides = [1, 1]} : vector<64x128xbf16> to vector<1x128xbf16>
    %c6_581 = arith.constant 6 : index
    %c128_582 = arith.constant 128 : index
    %419 = vector.load %arg15[%c6_581, %c128_582] : memref<8x640xbf16, #tpu.memory_space<vmem>>, vector<1x128xbf16>
    tpu.vector_store %arg15[%c6_581, %c128_582], %418 {strides = array<i32>} : memref<8x640xbf16, #tpu.memory_space<vmem>>, vector<1x128xbf16>,
    %420 = vector.extract_strided_slice %355 {offsets = [50, 0], sizes = [1, 128], strides = [1, 1]} : vector<64x128xbf16> to vector<1x128xbf16>
    %c6_583 = arith.constant 6 : index
    %c256_584 = arith.constant 256 : index
    %421 = vector.load %arg15[%c6_583, %c256_584] : memref<8x640xbf16, #tpu.memory_space<vmem>>, vector<1x128xbf16>
    tpu.vector_store %arg15[%c6_583, %c256_584], %420 {strides = array<i32>} : memref<8x640xbf16, #tpu.memory_space<vmem>>, vector<1x128xbf16>,
    %422 = vector.extract_strided_slice %355 {offsets = [51, 0], sizes = [1, 128], strides = [1, 1]} : vector<64x128xbf16> to vector<1x128xbf16>
    %c6_585 = arith.constant 6 : index
    %c384_586 = arith.constant 384 : index
    %423 = vector.load %arg15[%c6_585, %c384_586] : memref<8x640xbf16, #tpu.memory_space<vmem>>, vector<1x128xbf16>
    tpu.vector_store %arg15[%c6_585, %c384_586], %422 {strides = array<i32>} : memref<8x640xbf16, #tpu.memory_space<vmem>>, vector<1x128xbf16>,
    %424 = vector.extract_strided_slice %355 {offsets = [52, 0], sizes = [1, 128], strides = [1, 1]} : vector<64x128xbf16> to vector<1x128xbf16>
    %c6_587 = arith.constant 6 : index
    %c512_588 = arith.constant 512 : index
    %425 = vector.load %arg15[%c6_587, %c512_588] : memref<8x640xbf16, #tpu.memory_space<vmem>>, vector<1x128xbf16>
    tpu.vector_store %arg15[%c6_587, %c512_588], %424 {strides = array<i32>} : memref<8x640xbf16, #tpu.memory_space<vmem>>, vector<1x128xbf16>,
    %426 = vector.extract_strided_slice %355 {offsets = [56, 0], sizes = [1, 128], strides = [1, 1]} : vector<64x128xbf16> to vector<1x128xbf16>
    %c7_589 = arith.constant 7 : index
    %c0_590 = arith.constant 0 : index
    %427 = vector.load %arg15[%c7_589, %c0_590] : memref<8x640xbf16, #tpu.memory_space<vmem>>, vector<1x128xbf16>
    tpu.vector_store %arg15[%c7_589, %c0_590], %426 {strides = array<i32>} : memref<8x640xbf16, #tpu.memory_space<vmem>>, vector<1x128xbf16>,
    %428 = vector.extract_strided_slice %355 {offsets = [57, 0], sizes = [1, 128], strides = [1, 1]} : vector<64x128xbf16> to vector<1x128xbf16>
    %c7_591 = arith.constant 7 : index
    %c128_592 = arith.constant 128 : index
    %429 = vector.load %arg15[%c7_591, %c128_592] : memref<8x640xbf16, #tpu.memory_space<vmem>>, vector<1x128xbf16>
    tpu.vector_store %arg15[%c7_591, %c128_592], %428 {strides = array<i32>} : memref<8x640xbf16, #tpu.memory_space<vmem>>, vector<1x128xbf16>,
    %430 = vector.extract_strided_slice %355 {offsets = [58, 0], sizes = [1, 128], strides = [1, 1]} : vector<64x128xbf16> to vector<1x128xbf16>
    %c7_593 = arith.constant 7 : index
    %c256_594 = arith.constant 256 : index
    %431 = vector.load %arg15[%c7_593, %c256_594] : memref<8x640xbf16, #tpu.memory_space<vmem>>, vector<1x128xbf16>
    tpu.vector_store %arg15[%c7_593, %c256_594], %430 {strides = array<i32>} : memref<8x640xbf16, #tpu.memory_space<vmem>>, vector<1x128xbf16>,
    %432 = vector.extract_strided_slice %355 {offsets = [59, 0], sizes = [1, 128], strides = [1, 1]} : vector<64x128xbf16> to vector<1x128xbf16>
    %c7_595 = arith.constant 7 : index
    %c384_596 = arith.constant 384 : index
    %433 = vector.load %arg15[%c7_595, %c384_596] : memref<8x640xbf16, #tpu.memory_space<vmem>>, vector<1x128xbf16>
    tpu.vector_store %arg15[%c7_595, %c384_596], %432 {strides = array<i32>} : memref<8x640xbf16, #tpu.memory_space<vmem>>, vector<1x128xbf16>,
    %434 = vector.extract_strided_slice %355 {offsets = [60, 0], sizes = [1, 128], strides = [1, 1]} : vector<64x128xbf16> to vector<1x128xbf16>
    %c7_597 = arith.constant 7 : index
    %c512_598 = arith.constant 512 : index
    %435 = vector.load %arg15[%c7_597, %c512_598] : memref<8x640xbf16, #tpu.memory_space<vmem>>, vector<1x128xbf16>
    tpu.vector_store %arg15[%c7_597, %c512_598], %434 {strides = array<i32>} : memref<8x640xbf16, #tpu.memory_space<vmem>>, vector<1x128xbf16>,
    %c0_599 = arith.constant 0 : index
    %c0_600 = arith.constant 0 : index
    %436 = vector.load %arg15[%c0_599, %c0_600] : memref<8x640xbf16, #tpu.memory_space<vmem>>, vector<8x640xbf16>
    %c0_601 = arith.constant 0 : index
    %c0_602 = arith.constant 0 : index
    %437 = vector.load %arg6[%c0_601, %c0_602] : memref<640x128xbf16, #tpu.memory_space<vmem>>, vector<640x128xbf16>
    %cst_603 = arith.constant dense<0.000000e+00> : vector<8x128xf32>
    %438 = tpu.matmul %436, %437, %cst_603 {dimension_numbers = #tpu.dot_dimension_numbers<[1], [0], [0], [1], [0, 0, 1, 1], [], []>} : vector<8x640xbf16>, vector<640x128xbf16>, vector<8x128xf32> -> vector<8x128xf32>
    %c0_604 = arith.constant 0 : index
    %c0_605 = arith.constant 0 : index
    %439 = vector.load %arg7[%c0_604, %c0_605] : memref<1x128xf32, #tpu.memory_space<vmem>>, vector<1x128xf32>
    %440 = vector.broadcast %439 : vector<1x128xf32> to vector<8x128xf32>
    %441 = arith.addf %438, %440 : vector<8x128xf32>
    %cst_606 = arith.constant 0.000000e+00 : f32
    %442 = vector.broadcast %cst_606 : f32 to vector<8x128xf32>
    %443 = arith.maximumf %441, %442 : vector<8x128xf32>
    %444 = arith.truncf %443 : vector<8x128xf32> to vector<8x128xbf16>
    %c0_607 = arith.constant 0 : index
    %c0_608 = arith.constant 0 : index
    %445 = vector.load %arg8[%c0_607, %c0_608] : memref<128x128xbf16, #tpu.memory_space<vmem>>, vector<128x128xbf16>
    %cst_609 = arith.constant dense<0.000000e+00> : vector<8x128xf32>
    %446 = tpu.matmul %444, %445, %cst_609 {dimension_numbers = #tpu.dot_dimension_numbers<[1], [0], [0], [1], [0, 0, 1, 1], [], []>} : vector<8x128xbf16>, vector<128x128xbf16>, vector<8x128xf32> -> vector<8x128xf32>
    %c0_610 = arith.constant 0 : index
    %c0_611 = arith.constant 0 : index
    %447 = vector.load %arg9[%c0_610, %c0_611] : memref<1x128xf32, #tpu.memory_space<vmem>>, vector<1x128xf32>
    %448 = vector.broadcast %447 : vector<1x128xf32> to vector<8x128xf32>
    %449 = arith.addf %446, %448 : vector<8x128xf32>
    %cst_612 = arith.constant 0.000000e+00 : f32
    %450 = vector.broadcast %cst_612 : f32 to vector<8x128xf32>
    %451 = arith.maximumf %449, %450 : vector<8x128xf32>
    %452 = arith.truncf %451 : vector<8x128xf32> to vector<8x128xbf16>
    %c0_613 = arith.constant 0 : index
    %c0_614 = arith.constant 0 : index
    %453 = vector.load %arg10[%c0_613, %c0_614] : memref<128x128xbf16, #tpu.memory_space<vmem>>, vector<128x128xbf16>
    %cst_615 = arith.constant dense<0.000000e+00> : vector<8x128xf32>
    %454 = tpu.matmul %452, %453, %cst_615 {dimension_numbers = #tpu.dot_dimension_numbers<[1], [0], [0], [1], [0, 0, 1, 1], [], []>} : vector<8x128xbf16>, vector<128x128xbf16>, vector<8x128xf32> -> vector<8x128xf32>
    %c0_616 = arith.constant 0 : index
    %c0_617 = arith.constant 0 : index
    %455 = vector.load %arg11[%c0_616, %c0_617] : memref<1x128xf32, #tpu.memory_space<vmem>>, vector<1x128xf32>
    %456 = vector.broadcast %455 : vector<1x128xf32> to vector<8x128xf32>
    %457 = arith.addf %454, %456 : vector<8x128xf32>
    %c0_618 = arith.constant 0 : index
    %c0_619 = arith.constant 0 : index
    %458 = vector.load %arg12[%c0_618, %c0_619] : memref<8x128xf32, #tpu.memory_space<vmem>>, vector<8x128xf32>
    tpu.vector_store %arg12[%c0_618, %c0_619], %457 {strides = array<i32>} : memref<8x128xf32, #tpu.memory_space<vmem>>, vector<8x128xf32>,
    return
  }
  func.func @transform_0(%arg0: i32) -> (i32, i32, i32, i32) {
    %c0_i32 = arith.constant 0 : i32
    %c0_i32_0 = arith.constant 0 : i32
    %c0_i32_1 = arith.constant 0 : i32
    %c0_i32_2 = arith.constant 0 : i32
    return %arg0, %c0_i32, %c0_i32_0, %c0_i32_1 : i32, i32, i32, i32
  }
  func.func @transform_1(%arg0: i32) -> (i32, i32, i32) {
    %c0_i32 = arith.constant 0 : i32
    %c0_i32_0 = arith.constant 0 : i32
    %c0_i32_1 = arith.constant 0 : i32
    %c0_i32_2 = arith.constant 0 : i32
    return %c0_i32, %c0_i32_0, %c0_i32_1 : i32, i32, i32
  }
  func.func @transform_2(%arg0: i32) -> (i32, i32) {
    %c0_i32 = arith.constant 0 : i32
    %c0_i32_0 = arith.constant 0 : i32
    %c0_i32_1 = arith.constant 0 : i32
    return %c0_i32, %c0_i32_0 : i32, i32
  }
  func.func @transform_3(%arg0: i32) -> (i32, i32, i32) {
    %c0_i32 = arith.constant 0 : i32
    %c0_i32_0 = arith.constant 0 : i32
    %c0_i32_1 = arith.constant 0 : i32
    %c0_i32_2 = arith.constant 0 : i32
    return %c0_i32, %c0_i32_0, %c0_i32_1 : i32, i32, i32
  }
  func.func @transform_4(%arg0: i32) -> (i32, i32) {
    %c0_i32 = arith.constant 0 : i32
    %c0_i32_0 = arith.constant 0 : i32
    %c0_i32_1 = arith.constant 0 : i32
    return %c0_i32, %c0_i32_0 : i32, i32
  }
  func.func @transform_5(%arg0: i32) -> (i32, i32) {
    %c0_i32 = arith.constant 0 : i32
    %c0_i32_0 = arith.constant 0 : i32
    %c0_i32_1 = arith.constant 0 : i32
    return %c0_i32, %c0_i32_0 : i32, i32
  }
  func.func @transform_6(%arg0: i32) -> (i32, i32) {
    %c0_i32 = arith.constant 0 : i32
    %c0_i32_0 = arith.constant 0 : i32
    %c0_i32_1 = arith.constant 0 : i32
    return %c0_i32, %c0_i32_0 : i32, i32
  }
  func.func @transform_7(%arg0: i32) -> (i32, i32) {
    %c0_i32 = arith.constant 0 : i32
    %c0_i32_0 = arith.constant 0 : i32
    %c0_i32_1 = arith.constant 0 : i32
    return %c0_i32, %c0_i32_0 : i32, i32
  }
  func.func @transform_8(%arg0: i32) -> (i32, i32) {
    %c0_i32 = arith.constant 0 : i32
    %c0_i32_0 = arith.constant 0 : i32
    %c0_i32_1 = arith.constant 0 : i32
    return %c0_i32, %c0_i32_0 : i32, i32
  }
  func.func @transform_9(%arg0: i32) -> (i32, i32) {
    %c0_i32 = arith.constant 0 : i32
    %c0_i32_0 = arith.constant 0 : i32
    %c0_i32_1 = arith.constant 0 : i32
    return %c0_i32, %c0_i32_0 : i32, i32
  }
  func.func @transform_10(%arg0: i32) -> (i32, i32) {
    %c0_i32 = arith.constant 0 : i32
    %c0_i32_0 = arith.constant 0 : i32
    %c0_i32_1 = arith.constant 0 : i32
    return %c0_i32, %c0_i32_0 : i32, i32
  }
  func.func @transform_11(%arg0: i32) -> (i32, i32) {
    %c0_i32 = arith.constant 0 : i32
    %c0_i32_0 = arith.constant 0 : i32
    return %arg0, %c0_i32 : i32, i32
  }
}

</mosaic_0001>

<bundles_post_ra>
// kernel: net_forward.1
= control target key start
LH: loop header
LB: loop body
LE: loop exit
PB: predicated region body
PF: predicated region fallthrough
CT: control target
= control target key end

     0   :  { %16 = vsyncpa [#allocation6], 0  ;;  %s10152_s0 = inlined_call_operand.vmem [shape: bf16[16,4,8,32], index: 0, kind: input, shape index: {}]   ;;  %s10153_s1 = inlined_call_operand.hbm [shape: bf16[8,256,128], index: 1, kind: input, shape index: {}]   ;;  %s10154_s2 = inlined_call_operand.vmem [shape: f32[1,128], index: 2, kind: input, shape index: {}]   ;;  %s10155_s3 = inlined_call_operand.hbm [shape: bf16[4,768,128], index: 3, kind: input, shape index: {}]   ;;  %s10156_s4 = inlined_call_operand.vmem [shape: f32[1,128], index: 4, kind: input, shape index: {}]   ;;  %s10157_s5 = inlined_call_operand.vmem [shape: bf16[640,128], index: 5, kind: input, shape index: {}]   ;;  %s10158_s6 = inlined_call_operand.vmem [shape: f32[1,128], index: 6, kind: input, shape index: {}]   ;;  %s10159_s7 = inlined_call_operand.vmem [shape: bf16[128,128], index: 7, kind: input, shape index: {}]   ;;  %s10160_s8 = inlined_call_operand.vmem [shape: f32[1,128], index: 8, kind: input, shape index: {}]   ;;  %s10161_s9 = inlined_call_operand.vmem [shape: bf16[128,128], index: 9, kind: input, shape index: {}]   ;;  %s10162_s10 = inlined_call_operand.vmem [shape: f32[1,128], index: 10, kind: input, shape index: {}]   ;;  %s10163_s11 = inlined_call_operand.vmem [shape: f32[16,128], index: 11, kind: output, shape index: {}]  }
   0x1   :  { %17 = vsyncpa [#allocation8], 0  ;;  %s8756_s17 = smov 0  }
   0x2 LB: > { %s8762_s18 = sadd.s32 4294967295, %s8684_s17   ;;  %p6653_p0 = scmp.ge.s32.totalorder %s8684_s17, 1  ;;  %s8684_s17 = sphi %s8756_s17, %s23_s17  }
   0x3   : > { %p290_p1 = scmp.lt.s32.totalorder %s8684_s17, 3  ;;  %s8686_s19 = smov [#allocation5]  }
   0x4   : > { %s302_s20 = sshll.u32 %s8686_s19, 4  ;;  %p10164_p3 = scmp.eq.s32.totalorder %s8762_s18, 0  ;;  %s303_s20 = int_to_ptr.vmem [resolvable:$true] %s302_s20 }
   0x5   : > { %p8766_p2 = pnand %p6653_p0, %p290_p1  ;;  %s8687_s22 = smov [#allocation7]  }
   0x6   : > { %s318_s23 = sshll.u32 %s8687_s22, 4  ;;  %s8614_s27 = scalar_lea.hbm %s10153_s1, 16384  ;;  %s8779_s23 = int_to_ptr.vmem [resolvable:$true] %s318_s23 }
   0x7   : > { %s10166_s21 = scalar_select %p8766_p2, 1, 0 }
   0x8   : > { %p8140_p4 = pneg %p8766_p2  ;;  %p8615_p6 = scmp.ne.s32.totalorder %s10153_s1, %s8614_s27 }
   0x9   : > { %p8621_p10 = scmp.lt.u32.totalorder %s8614_s27, %s10153_s1 }
   0xa   : > { %p8775_p5 = pnand %p10164_p3, %p8140_p4 }
   0xc   : > { %p8616_p7 = pneg %p8775_p5 }
   0xe   : > { %p8617_p8 = pnand %p8616_p7, %p8615_p6 }
  0x10   : > { %p8618_p9 = pneg %p8617_p8 }
  0x12   : > { %p8623_p11 = pnand %p8621_p10, %p8618_p9 }
  0x14   : > { %8626 = shalt.err (!%p8623_p11)
}
  0x15   : > { %s8627_s13 = scalar_lea.vmem %s303_s20, 16384  ;;  %p8635_p1 = scmp.lt.s32.totalorder %s303_s20, %s303_s20 }
  0x16   : > { %p8628_p12 = scmp.ne.s32.totalorder %s303_s20, %s8627_s13  ;;  %p8636_p4 = scmp.lt.s32.totalorder %s8627_s13, %s8627_s13 }
  0x18   : > { %p8630_p13 = pnand %p8628_p12, %p8616_p7  ;;  %p8637_p3 = por %p8636_p4, %p8635_p1 }
  0x1a   : > { %p8631_p0 = pneg %p8630_p13 }
  0x1c   : > { %p8638_p2 = pnand %p8637_p3, %p8631_p0 }
  0x1e   : > { %8641 = shalt.err (!%p8638_p2)
}
  0x1f   : > { %s8688_s14 = smov 64   ;;  %s8689_s15 = smov 4  }
  0x20   : > { %8143 = dma.hbm_to_vmem [thread:$0]  (!%p8775_p5), %s10153_s1, 16384, %s303_s20, [#allocation6], %s8688_s14, %s8688_s14, %s8689_s15  }
  0x21   : > { %s8642_s26 = scalar_lea.hbm %s10155_s3, 24576 }
  0x22   : > { %p8643_p6 = scmp.ne.s32.totalorder %s10155_s3, %s8642_s26  ;;  %p8649_p8 = scmp.lt.u32.totalorder %s8642_s26, %s10155_s3 }
  0x24   : > { %p8645_p2 = pnand %p8643_p6, %p8616_p7 }
  0x26   : > { %p8646_p3 = pneg %p8645_p2 }
  0x28   : > { %p8651_p9 = pnand %p8649_p8, %p8646_p3 }
  0x2a   : > { %8654 = shalt.err (!%p8651_p9)
}
  0x2b   : > { %s8655_s20 = scalar_lea.vmem %s8779_s23, 24576  ;;  %p8663_p13 = scmp.lt.s32.totalorder %s8779_s23, %s8779_s23 }
  0x2c   : > { %p8656_p10 = scmp.ne.s32.totalorder %s8779_s23, %s8655_s20  ;;  %p8664_p0 = scmp.lt.s32.totalorder %s8655_s20, %s8655_s20 }
  0x2e   : > { %p8658_p11 = pnand %p8656_p10, %p8616_p7  ;;  %p8665_p1 = por %p8664_p0, %p8663_p13 }
  0x30   : > { %p8659_p12 = pneg %p8658_p11 }
  0x32   : > { %p8666_p4 = pnand %p8665_p1, %p8659_p12 }
  0x34   : > { %8669 = shalt.err (!%p8666_p4)
}
  0x35   : > { %8146 = dma.hbm_to_vmem [thread:$0]  (!%p8775_p5), %s10155_s3, 24576, %s8779_s23, [#allocation8], %s8688_s14, %s8688_s14, %s8689_s15  }
  0x36   : > { %p10168_p6 = scmp.ne.s32.totalorder %s10166_s21, 0 }
  0x37   : > { %p10169_p2 = scmp.eq.s32.totalorder (!%p10168_p6), %s8762_s18, 0 }
  0x38   : > { %365 = sbr.rel (%p10168_p6) target bundleno = 1734 (0x6c6), region = 64 }
  0x3f   : > { %8675 = dma.done.wait (%p10169_p2), [#allocation6], 16384   ;;  %p10170_p7 = pmov %p10169_p2 }
  0x40   : > { %p10171_p3 = pmov %p10169_p2 }
  0x41   : > { %8677 = vsyncadd (%p10170_p7), [#allocation6], 4294950912 }
  0x42   : > { %8679 = dma.done.wait (%p10171_p3), [#allocation8], 24576   ;;  %p10172_p8 = pmov %p10169_p2 }
  0x43   : > { %s6660_s24 = sshll.u32 %s8762_s18, 3  ;;  %v8690_v0 = vmov 0   ;;  %s8691_s19 = smov 32   ;;  %v8223_v46 = vld [vmem:[#allocation5 + $0x40] sm:$0xff]   ;;  %vm431_vm0 = vsmask.f32 3328 }
  0x44   : > { %8681 = vsyncadd (%p10172_p8), [#allocation8], 4294942720  ;;  %p8841_p5 = scmp.lt.s32.totalorder %s6660_s24, 15  ;;  %421 = vst [vmem:[#allocation2] sm:$0xff] %v8690_v0  ;;  %s8692_s22 = smov 64   ;;  %v8224_v51 = vld [vmem:[#allocation5 + $0xc0] sm:$0xff]   ;;  %7201 = vmatprep.subr.bf16.mxu0 %v8223_v46 }
  0x45   : > { %422 = vst [vmem:[#allocation2 + $0x8] sm:$0xff] %v8690_v0  ;;  %423 = vst [vmem:[#allocation2 + $0x10] sm:$0xff] %v8690_v0  ;;  %7241 = vmatprep.subr.bf16.mxu1 %v8224_v51  ;;  %v8226_v60 = vld [vmem:[#allocation5] sm:$0xff]   ;;  %s8693_s25 = smov 96   ;;  %vm430_vm1 = vcmask 257024   ;;  %vm547_vm4 = vcmask 261124  }
  0x46   : > { %424 = vst [vmem:[#allocation2 + $0x18] sm:$0xff] %v8690_v0  ;;  %425 = vst [vmem:[#allocation2 + $0x20] sm:$0xff] %v8690_v0  ;;  %s10211_s24 = smov (!%p8841_p5, %s6660_s24), 15  ;;  %7202 = vmatpush3.bf16.msra.mxu0 %v8226_v60  ;;  %vm548_vm2 = vsmask.f32 7424  ;;  %vm444_vm6 = vcmask 519424  }
  0x47   : > { %426 = vst [vmem:[#allocation2 + $0x28] sm:$0xff] %v8690_v0  ;;  %427 = vst [vmem:[#allocation2 + $0x30] sm:$0xff] %v8690_v0  ;;  %s7192_s21 = sshll.u32 %s10211_s24, 4  ;;  %vm561_vm8 = vcmask 523524   ;;  %vm574_vm10 = vcmask 785924   ;;  %vm457_vm11 = vcmask 781824  }
  0x48   : > { %428 = vst [vmem:[#allocation2 + $0x38] sm:$0xff] %v8690_v0  ;;  %2964 = vst [vmem:[#allocation3] sm:$0xff] %v8690_v0  ;;  %s8852_s16 = scalar_lea.vmem %s10152_s0, %s7192_s21  ;;  %vm587_vm14 = vcmask 1048324   ;;  %p416_p9 = scmp.lt.s32.totalorder %s8762_s18, 1 }
  0x49   : > { %2965 = vst [vmem:[#allocation3 + $0x8] sm:$0xff] %v8690_v0  ;;  %2966 = vst [vmem:[#allocation3 + $0x10] sm:$0xff] %v8690_v0  ;;  %v8169_v1 = vld [vmem:[%s8852_s16 + $0x4] ss:$0 sps:$4 sm:$0xff]   ;;  %v8171_v3 = vld [vmem:[%s8852_s16 + $0x14] ss:$0 sps:$4 sm:$0xff]  }
  0x4a   : > { %2967 = vst [vmem:[#allocation3 + $0x18] sm:$0xff] %v8690_v0  ;;  %2968 = vst [vmem:[#allocation3 + $0x20] sm:$0xff] %v8690_v0  ;;  %v8170_v2 = vld [vmem:[%s8852_s16 + $0x24] ss:$0 sps:$4 sm:$0xff]   ;;  %441 = vrot.lane.b32.xlu1 %v8169_v1, %s8691_s19  ;;  %v8174_v5 = vld [vmem:[%s8852_s16 + $0x14] ss:$0 sps:$4 sm:$0xff]  }
  0x4b   : > { %2969 = vst [vmem:[#allocation3 + $0x28] sm:$0xff] %v8690_v0  ;;  %2970 = vst [vmem:[#allocation3 + $0x30] sm:$0xff] %v8690_v0  ;;  %v8172_v4 = vld [vmem:[%s8852_s16 + $0x4] ss:$0 sps:$4 sm:$0xff]   ;;  %672 = vrot.lane.b32.xlu0 %v8170_v2, %s8691_s19  ;;  %v8173_v8 = vld [vmem:[%s8852_s16 + $0x34] ss:$0 sps:$4 sm:$0xff]  }
  0x4c   : > { %2971 = vst [vmem:[#allocation3 + $0x38] sm:$0xff] %v8690_v0  ;;  %2972 = vst [vmem:[#allocation3 + $0x40] sm:$0xff] %v8690_v0  ;;  %v495_v6 = vshrl.u32 %v8172_v4, 16  ;;  %v497_v7 = vshll.u32 %v8172_v4, 16  ;;  %v8175_v9 = vld [vmem:[%s8852_s16 + $0x34] ss:$0 sps:$4 sm:$0xff]  }
  0x4d   : > { %2973 = vst [vmem:[#allocation3 + $0x48] sm:$0xff] %v8690_v0  ;;  %2974 = vst [vmem:[#allocation3 + $0x50] sm:$0xff] %v8690_v0  ;;  %v613_v10 = vshrl.u32 %v8174_v5, 16  ;;  %v616_v11 = vshll.u32 %v8174_v5, 16  ;;  %v8176_v12 = vld [vmem:[%s8852_s16 + $0x24] ss:$0 sps:$4 sm:$0xff]  }
  0x4e   : > { %2975 = vst [vmem:[#allocation3 + $0x58] sm:$0xff] %v8690_v0  ;;  %2976 = vst [vmem:[#allocation3 + $0x60] sm:$0xff] %v8690_v0  ;;  %558 = vrot.lane.b32.xlu1 %v8171_v3, %s8691_s19  ;;  %v499_v13 = vrot.slane %v497_v7, 1  ;;  %v829_v14 = vshrl.u32 %v8175_v9, 16  ;;  %v832_v15 = vshll.u32 %v8175_v9, 16  ;;  %v722_v18 = vshll.u32 %v8176_v12, 16 }
  0x4f   : > { %2977 = vst [vmem:[#allocation3 + $0x68] sm:$0xff] %v8690_v0  ;;  %2978 = vst [vmem:[#allocation3 + $0x70] sm:$0xff] %v8690_v0  ;;  %v615_v16 = vrot.slane %v613_v10, 4  ;;  %v618_v17 = vrot.slane %v616_v11, 5  ;;  %v8177_v19 = vld [vmem:[%s8852_s16 + $0x18] ss:$0 sps:$4 sm:$0xff]  }
  0x50   : > { %2979 = vst [vmem:[#allocation3 + $0x78] sm:$0xff] %v8690_v0  ;;  %2980 = vst [vmem:[#allocation3 + $0x80] sm:$0xff] %v8690_v0  ;;  %v500_v20 = vor.u32 %v499_v13, %v495_v6  ;;  %v831_v21 = vrot.slane %v829_v14, 4  ;;  %v834_v22 = vrot.slane %v832_v15, 5  ;;  %v8178_v23 = vld [vmem:[%s8852_s16 + $0x8] ss:$0 sps:$4 sm:$0xff]  }
  0x51   : > { %2981 = vst [vmem:[#allocation3 + $0x88] sm:$0xff] %v8690_v0  ;;  %2982 = vst [vmem:[#allocation3 + $0x90] sm:$0xff] %v8690_v0  ;;  %v720_v24 = vshrl.u32 %v8176_v12, 16  ;;  %v724_v25 = vrot.slane %v722_v18, 1  ;;  %v631_v26 = vshrl.u32 %v8177_v19, 16  ;;  %v634_v27 = vshll.u32 %v8177_v19, 16 }
  0x52   : > { %2983 = vst [vmem:[#allocation3 + $0x98] sm:$0xff] %v8690_v0  ;;  %2984 = vst [vmem:[#allocation3 + $0xa0] sm:$0xff] %v8690_v0  ;;  %501 = vrot.lane.b32.xlu0 %v500_v20, %s8691_s19  ;;  %780 = vrot.lane.b32.xlu1 %v8173_v8, %s8691_s19  ;;  %v619_v28 = vor.u32 %v618_v17, %v615_v16  ;;  %v835_v29 = vor.u32 %v834_v22, %v831_v21  ;;  %v514_v30 = vshll.u32 %v8178_v23, 16  ;;  %v8181_v34 = vld [vmem:[%s8852_s16 + $0x54] ss:$0 sps:$4 sm:$0xff]   ;;  %v8229_v10 = vld [vmem:[#allocation5 + $0x48] sm:$0xff]  }
  0x53   : > { %2985 = vst [vmem:[#allocation3 + $0xa8] sm:$0xff] %v8690_v0  ;;  %2986 = vst [vmem:[#allocation3 + $0xb0] sm:$0xff] %v8690_v0  ;;  %v633_v31 = vrot.slane %v631_v26, 4  ;;  %v636_v32 = vrot.slane %v634_v27, 5  ;;  %v512_v33 = vshrl.u32 %v8178_v23, 16  ;;  %v725_v35 = vor.u32 %v724_v25, %v720_v24  ;;  %v8227_v5 = vld [vmem:[#allocation5 + $0x80] sm:$0xff]   ;;  %7203 = vmatprep.subr.bf16.mxu0 %v8229_v10 }
  0x54   : > { %2987 = vst [vmem:[#allocation3 + $0xb8] sm:$0xff] %v8690_v0  ;;  %v8182_v36 = vld [vmem:[%s8852_s16 + $0x44] ss:$0 sps:$4 sm:$0xff]   ;;  %v8183_v37 = vld [vmem:[%s8852_s16 + $0x38] ss:$0 sps:$4 sm:$0xff]   ;;  %v516_v39 = vrot.slane %v514_v30, 1  ;;  %7242 = vmatpush3.bf16.msra.mxu1 %v8227_v5  ;;  %vm8918_vm3 = vmand %vm430_vm1, %vm431_vm0 }
  0x55   : > { %v637_v38 = vor.u32 %v636_v32, %v633_v31  ;;  %v1045_v40 = vshrl.u32 %v8181_v34, 16  ;;  %v1048_v41 = vshll.u32 %v8181_v34, 16  ;;  %v8179_v42 = vld [vmem:[%s8852_s16 + $0x18] ss:$0 sps:$4 sm:$0xff]   ;;  %v8184_v43 = vld [vmem:[%s8852_s16 + $0x28] ss:$0 sps:$4 sm:$0xff]   ;;  %vm8934_vm5 = vmand %vm547_vm4, %vm548_vm2 }
  0x56   : > { %620 = vrot.lane.b32.xlu0 %v619_v28, %s8691_s19  ;;  %836 = vrot.lane.b32.xlu1 %v835_v29, %s8691_s19  ;;  %v938_v44 = vshll.u32 %v8182_v36, 16  ;;  %v847_v45 = vshrl.u32 %v8183_v37, 16  ;;  %v517_v47 = vor.u32 %v516_v39, %v512_v33  ;;  %v850_v50 = vshll.u32 %v8183_v37, 16  ;;  %v8180_v52 = vld [vmem:[%s8852_s16 + $0x8] ss:$0 sps:$4 sm:$0xff]   ;;  %v8230_v19 = vld [vmem:[#allocation5 + $0xc8] sm:$0xff]   ;;  %vm9051_vm7 = vmand %vm444_vm6, %vm431_vm0 }
  0x57   : > { %v1047_v48 = vrot.slane %v1045_v40, 4  ;;  %v1050_v49 = vrot.slane %v1048_v41, 5  ;;  %v936_v53 = vshrl.u32 %v8182_v36, 16  ;;  %v739_v55 = vshll.u32 %v8184_v43, 16  ;;  %v8187_v59 = vld [vmem:[%s8852_s16 + $0x1c] ss:$0 sps:$4 sm:$0xff]   ;;  %7243 = vmatprep.subr.bf16.mxu1 %v8230_v19  ;;  %vm9058_vm9 = vmand %vm561_vm8, %vm548_vm2 }
  0x58   : > { %v940_v54 = vrot.slane %v938_v44, 1  ;;  %v849_v57 = vrot.slane %v847_v45, 4  ;;  %v852_v58 = vrot.slane %v850_v50, 5  ;;  %v737_v61 = vshrl.u32 %v8184_v43, 16  ;;  %v8188_v3 = vld [vmem:[%s8852_s16 + $0xc] ss:$0 sps:$4 sm:$0xff]   ;;  %vm9077_vm12 = vmand %vm574_vm10, %vm548_vm2 }
  0x59   : > { %v1051_v56 = vor.u32 %v1050_v49, %v1047_v48  ;;  %v741_v62 = vrot.slane %v739_v55, 1  ;;  %v649_v1 = vshrl.u32 %v8187_v59, 16  ;;  %v652_v2 = vshll.u32 %v8187_v59, 16  ;;  %v8185_v4 = vld [vmem:[%s8852_s16 + $0x54] ss:$0 sps:$4 sm:$0xff]   ;;  %v8231_v30 = vld [vmem:[#allocation5 + $0x8] sm:$0xff]   ;;  %vm9082_vm13 = vmand %vm457_vm11, %vm431_vm0 }
  0x5a   : > { %726 = vrot.lane.b32.xlu0 %v725_v35, %s8691_s19  ;;  %638 = vrot.lane.b32.xlu1 %v637_v38, %s8692_s22  ;;  %v941_v63 = vor.u32 %v940_v54, %v936_v53  ;;  %v853_v0 = vor.u32 %v852_v58, %v849_v57  ;;  %v531_v9 = vshll.u32 %v8188_v3, 16  ;;  %v8193_v11 = vld [vmem:[%s8852_s16 + $0x74] ss:$0 sps:$4 sm:$0xff]   ;;  %v8186_v12 = vld [vmem:[%s8852_s16 + $0x44] ss:$0 sps:$4 sm:$0xff]   ;;  %v529_v14 = vshrl.u32 %v8188_v3, 16  ;;  %vm9105_vm15 = vmand %vm587_vm14, %vm548_vm2 }
  0x5b   : > { %v742_v6 = vor.u32 %v741_v62, %v737_v61  ;;  %v651_v7 = vrot.slane %v649_v1, 4  ;;  %v654_v8 = vrot.slane %v652_v2, 5  ;;  %v8189_v16 = vld [vmem:[%s8852_s16 + $0x38] ss:$0 sps:$4 sm:$0xff]   ;;  %v1261_v17 = vshrl.u32 %v8193_v11, 16  ;;  %7204 = vmatpush3.bf16.msra.mxu0 %v8231_v30  ;;  %v8232_v39 = vld [vmem:[#allocation5 + $0x88] sm:$0xff]  }
  0x5c   : > { %v533_v15 = vrot.slane %v531_v9, 1  ;;  %v8894_v18 = vld [vmem:[%s8852_s16 + $0x64] ss:$0 sps:$4 sm:$0xff]   ;;  %v8195_v20 = vld [vmem:[%s8852_s16 + $0x58] ss:$0 sps:$4 sm:$0xff]   ;;  %v1264_v22 = vshll.u32 %v8193_v11, 16  ;;  %7244 = vmatpush3.bf16.msra.mxu1 %v8232_v39 }
  0x5d   : > { %v655_v13 = vor.u32 %v654_v8, %v651_v7  ;;  %v8900_v23 = vld [vmem:[%s8852_s16 + $0x48] ss:$0 sps:$4 sm:$0xff]   ;;  %v8199_v24 = vld [vmem:[%s8852_s16 + $0x3c] ss:$0 sps:$4 sm:$0xff]   ;;  %v8904_v25 = vld [vmem:[%s8852_s16 + $0x2c] ss:$0 sps:$4 sm:$0xff]  }
  0x5e   : > { %518 = vrot.lane.b32.xlu0 %v517_v47, %s8692_s22  ;;  %571 = vrot.lane.b32.xlu1 %v8179_v42, %s8692_s22  ;;  %v534_v21 = vor.u32 %v533_v15, %v529_v14  ;;  %v8190_v26 = vld [vmem:[%s8852_s16 + $0x28] ss:$0 sps:$4 sm:$0xff]   ;;  %v1154_v27 = vshll.u32 %v8894_v18, 16  ;;  %v8191_v28 = vld [vmem:[%s8852_s16 + $0x1c] ss:$0 sps:$4 sm:$0xff]   ;;  %v1263_v29 = vrot.slane %v1261_v17, 4 }
  0x5f   : > { %v1266_v31 = vrot.slane %v1264_v22, 5  ;;  %v1063_v32 = vshrl.u32 %v8195_v20, 16  ;;  %v1066_v33 = vshll.u32 %v8195_v20, 16  ;;  %v955_v34 = vshll.u32 %v8900_v23, 16  ;;  %v433_v38 = vld [vmem:[#allocation2] sm:$0xf] }
  0x60   : > { %v865_v35 = vshrl.u32 %v8199_v24, 16  ;;  %v868_v36 = vshll.u32 %v8199_v24, 16  ;;  %v756_v37 = vshll.u32 %v8904_v25, 16  ;;  %v8192_v40 = vld [vmem:[%s8852_s16 + $0xc] ss:$0 sps:$4 sm:$0xff]   ;;  %v1152_v41 = vshrl.u32 %v8894_v18, 16 }
  0x61   : > { %v1156_v42 = vrot.slane %v1154_v27, 1  ;;  %v953_v43 = vshrl.u32 %v8900_v23, 16  ;;  %v8205_v45 = vld [vmem:[%s8852_s16 + $0x78] ss:$0 sps:$4 sm:$0xff]   ;;  %v1267_v46 = vor.u32 %v1266_v31, %v1263_v29  ;;  %v1065_v47 = vrot.slane %v1063_v32, 4  ;;  %v8234_v20 = vld [vmem:[#allocation5 + $0xd0] sm:$0xff]  }
  0x62   : > { %454 = vrot.lane.b32.xlu0 %v8180_v52, %s8692_s22  ;;  %1052 = vrot.lane.b32.xlu1 %v1051_v56, %s8691_s19  ;;  %v1068_v48 = vrot.slane %v1066_v33, 5  ;;  %v957_v49 = vrot.slane %v955_v34, 1  ;;  %v8925_v50 = vrot.slane %v865_v35, 4  ;;  %v8927_v51 = vrot.slane %v868_v36, 5  ;;  %v429_v54 = vld [vmem:[%s8852_s16] sm:$0xf] }
  0x63   : > { %v754_v52 = vshrl.u32 %v8904_v25, 16  ;;  %v8930_v53 = vrot.slane %v756_v37, 1  ;;  %v8939_v56 = vld [vmem:[%s8852_s16 + $0x68] ss:$0 sps:$4 sm:$0xff]   ;;  %v434_v57 = vsel %vm8918_vm3, %v429_v54, %v433_v38  ;;  %v6693_v58 = vld [vmem:[%s8852_s16 + $0x20] sm:$0xf]  ;;  %7245 = vmatprep.subr.bf16.mxu1 %v8234_v20 }
  0x64   : > { %v664_v59 = vld [vmem:[#allocation2 + $0x10] sm:$0xf]  ;;  %v1279_v60 = vshrl.u32 %v8205_v45, 16  ;;  %435 = vst [vmem:[#allocation2] sm:$0xf] %v434_v57  ;;  %v1069_v1 = vor.u32 %v1068_v48, %v1065_v47  ;;  %v1169_v5 = vshrl.u32 %v8939_v56, 16  ;;  %v871_v37 = vor.u32 %v8927_v51, %v8925_v50 }
  0x65   : > { %v665_v61 = vsel %vm8918_vm3, %v6693_v58, %v664_v59  ;;  %v8217_v62 = vld [vmem:[%s8852_s16 + $0x10] ss:$0 sps:$4 sm:$0xff]   ;;  %v550_v2 = vld [vmem:[#allocation2] sm:$0xf0]  ;;  %v8218_v3 = vld [vmem:[%s8852_s16] ss:$0 sps:$4 sm:$0xff]   ;;  %v759_v57 = vor.u32 %v8930_v53, %v754_v52 }
  0x66   : > { %942 = vrot.lane.b32.xlu0 %v941_v63, %s8691_s19  ;;  %854 = vrot.lane.b32.xlu1 %v853_v0, %s8692_s22  ;;  %v8233_v63 = vld [vmem:[#allocation5 + $0x50] sm:$0xff]   ;;  %v1157_v0 = vor.u32 %v1156_v42, %v1152_v41  ;;  %666 = vst [vmem:[#allocation2 + $0x10] sm:$0xf] %v665_v61  ;;  %v8219_v7 = vld [vmem:[%s8852_s16 + $0x30] ss:$0 sps:$4 sm:$0xff]   ;;  %v480_v9 = vshrl.u32 %v8218_v3, 16 }
  0x67   : > { %7205 = vmatprep.subr.bf16.mxu0 %v8233_v63  ;;  %v8197_v8 = vld [vmem:[%s8852_s16 + $0x74] ss:$0 sps:$4 sm:$0xff]   ;;  %v482_v10 = vshll.u32 %v8218_v3, 16  ;;  %v8220_v15 = vld [vmem:[%s8852_s16 + $0x10] ss:$0 sps:$4 sm:$0xff]   ;;  %vm470_vm1 = vcmask 1044224  }
  0x68   : > { %v772_v11 = vld [vmem:[#allocation2 + $0x10] sm:$0xf0]  ;;  %v487_v18 = vld [vmem:[#allocation2 + $0x8] sm:$0xf]  ;;  %v8221_v19 = vld [vmem:[%s8852_s16 + $0x30] ss:$0 sps:$4 sm:$0xff]  }
  0x69   : > { %v773_v14 = vsel %vm8934_vm5, %v8219_v7, %v772_v11  ;;  %v484_v17 = vrot.slane %v482_v10, 1  ;;  %v597_v22 = vshrl.u32 %v8220_v15, 16  ;;  %v600_v23 = vshll.u32 %v8220_v15, 16  ;;  %v8222_v24 = vld [vmem:[%s8852_s16 + $0x20] ss:$0 sps:$4 sm:$0xff]   ;;  %vm9114_vm2 = vmand %vm470_vm1, %vm431_vm0  ;;  %s10213_s18 = smov (!%p416_p9, %s8762_s18), 1 }
  0x6a   : > { %743 = vrot.lane.b32.xlu0 %v742_v6, %s8692_s22  ;;  %996 = vrot.lane.b32.xlu1 %v8185_v4, %s8691_s19  ;;  %v1282_v4 = vshll.u32 %v8205_v45, 16  ;;  %v551_v6 = vsel %vm8934_vm5, %v8217_v62, %v550_v2  ;;  %774 = vst [vmem:[#allocation2 + $0x10] sm:$0xf0] %v773_v14  ;;  %v605_v29 = vld [vmem:[#allocation2 + $0x8] sm:$0xf0]  ;;  %v813_v30 = vshrl.u32 %v8221_v19, 16 }
  0x6b   : > { %552 = vst [vmem:[#allocation2] sm:$0xf0] %v551_v6  ;;  %v816_v31 = vshll.u32 %v8221_v19, 16  ;;  %v599_v32 = vrot.slane %v597_v22, 4  ;;  %v602_v33 = vrot.slane %v600_v23, 5  ;;  %v705_v35 = vshrl.u32 %v8222_v24, 16 }
  0x6c   : > { %v8969_v27 = vrot.slane %v1282_v4, 5  ;;  %v821_v34 = vld [vmem:[#allocation2 + $0x18] sm:$0xf0]  ;;  %v707_v36 = vshll.u32 %v8222_v24, 16  ;;  %v815_v39 = vrot.slane %v813_v30, 4  ;;  %v8236_v45 = vld [vmem:[#allocation5 + $0x10] sm:$0xff]  }
  0x6d   : > { %v603_v41 = vor.u32 %v602_v33, %v599_v32  ;;  %v8225_v47 = vld [vmem:[%s8852_s16 + $0x50] ss:$0 sps:$4 sm:$0xff]   ;;  %v8201_v48 = vld [vmem:[%s8852_s16 + $0x58] ss:$0 sps:$4 sm:$0xff]   ;;  %7206 = vmatpush3.bf16.msra.mxu0 %v8236_v45  ;;  %v8208_v61 = vld [vmem:[%s8852_s16 + $0x4c] ss:$0 sps:$4 sm:$0xff]  }
  0x6e   : > { %888 = vrot.lane.b32.xlu0 %v8186_v12, %s8691_s19  ;;  %656 = vrot.lane.b32.xlu1 %v655_v13, %s8693_s25  ;;  %v8955_v12 = vrot.slane %v1279_v60, 4  ;;  %v1171_v13 = vshll.u32 %v8939_v56, 16  ;;  %v709_v42 = vrot.slane %v707_v36, 1  ;;  %v1029_v59 = vshrl.u32 %v8225_v47, 16  ;;  %v8228_v63 = vld [vmem:[%s8852_s16 + $0x40] ss:$0 sps:$4 sm:$0xff]  }
  0x6f   : > { %v606_v51 = vsel %vm8934_vm5, %v603_v41, %v605_v29  ;;  %v1032_v60 = vshll.u32 %v8225_v47, 16  ;;  %v1037_v3 = vld [vmem:[#allocation2 + $0x28] sm:$0xf0]  ;;  %v921_v52 = vshrl.u32 %v8228_v63, 16  ;;  %v923_v53 = vshll.u32 %v8228_v63, 16  ;;  %v8244_v45 = vld [vmem:[#allocation5 + $0x20] sm:$0xff]  }
  0x70   : > { %v710_v54 = vor.u32 %v709_v42, %v705_v35  ;;  %607 = vst [vmem:[#allocation2 + $0x8] sm:$0xf0] %v606_v51  ;;  %v1031_v2 = vrot.slane %v1029_v59, 4  ;;  %v928_v6 = vld [vmem:[#allocation2 + $0x28] sm:$0xf]  ;;  %v1173_v11 = vrot.slane %v1171_v13, 1 }
  0x71   : > { %v1034_v25 = vrot.slane %v1032_v60, 5  ;;  %v925_v7 = vrot.slane %v923_v53, 1  ;;  %v972_v14 = vshll.u32 %v8208_v61, 16  ;;  %v8235_v19 = vld [vmem:[%s8852_s16 + $0x50] ss:$0 sps:$4 sm:$0xff]   ;;  %v970_v20 = vshrl.u32 %v8208_v61, 16 }
  0x72   : > { %535 = vrot.lane.b32.xlu0 %v534_v21, %s8693_s25  ;;  %791 = vrot.lane.b32.xlu1 %v8189_v16, %s8692_s22  ;;  %v958_v16 = vor.u32 %v957_v49, %v953_v43  ;;  %v8965_v21 = vld [vmem:[%s8852_s16 + $0x5c] ss:$0 sps:$4 sm:$0xff]   ;;  %v712_v43 = vld [vmem:[#allocation2 + $0x18] sm:$0xf]  ;;  %v988_v13 = vld [vmem:[#allocation2 + $0x20] sm:$0xf0] }
  0x73   : > { %v1081_v49 = vshrl.u32 %v8965_v21, 16  ;;  %v1084_v50 = vshll.u32 %v8965_v21, 16  ;;  %v713_v62 = vsel %vm8918_vm3, %v710_v54, %v712_v43  ;;  %v1035_v4 = vor.u32 %v1034_v25, %v1031_v2  ;;  %v8213_v22 = vld [vmem:[%s8852_s16 + $0x7c] ss:$0 sps:$4 sm:$0xff]   ;;  %v6724_v24 = vld [vmem:[%s8852_s16 + $0x40] sm:$0xf] }
  0x74   : > { %714 = vst [vmem:[#allocation2 + $0x18] sm:$0xf] %v713_v62  ;;  %v926_v15 = vor.u32 %v925_v7, %v921_v52  ;;  %v989_v23 = vsel %vm8934_vm5, %v8235_v19, %v988_v13  ;;  %v8238_v30 = vld [vmem:[#allocation5 + $0x58] sm:$0xff]   ;;  %v8209_v32 = vld [vmem:[%s8852_s16 + $0x78] ss:$0 sps:$4 sm:$0xff]   ;;  %v1300_v35 = vshll.u32 %v8213_v22, 16 }
  0x75   : > { %v1038_v10 = vsel %vm8934_vm5, %v1035_v4, %v1037_v3  ;;  %990 = vst [vmem:[#allocation2 + $0x20] sm:$0xf0] %v989_v23  ;;  %v8214_v33 = vld [vmem:[%s8852_s16 + $0x6c] ss:$0 sps:$4 sm:$0xff]   ;;  %7207 = vmatprep.subr.bf16.mxu0 %v8238_v30  ;;  %v8250_v59 = vld [vmem:[#allocation5 + $0x70] sm:$0xff]   ;;  %s6663_s27 = sshll.u32 %s10213_s18, 3 }
  0x76   : > { %683 = vrot.lane.b32.xlu0 %v8190_v26, %s8692_s22  ;;  %584 = vrot.lane.b32.xlu1 %v8191_v28, %s8693_s25  ;;  %v8198_v26 = vld [vmem:[%s8852_s16 + $0x64] ss:$0 sps:$4 sm:$0xff]   ;;  %v485_v28 = vor.u32 %v484_v17, %v480_v9  ;;  %v8204_v9 = vld [vmem:[%s8852_s16 + $0x2c] ss:$0 sps:$4 sm:$0xff]   ;;  %1039 = vst [vmem:[#allocation2 + $0x28] sm:$0xf0] %v1038_v10  ;;  %v929_v21 = vsel %vm8918_vm3, %v926_v15, %v928_v6  ;;  %s419_s12 = scalar_lea.vmem %s10163_s11, %s6663_s27 }
  0x77   : > { %v1083_v17 = vrot.slane %v1081_v49, 4  ;;  %930 = vst [vmem:[#allocation2 + $0x28] sm:$0xf] %v929_v21  ;;  %v8241_v36 = vld [vmem:[#allocation5 + $0x98] sm:$0xff]   ;;  %v1302_v42 = vrot.slane %v1300_v35, 5  ;;  %v1188_v43 = vshll.u32 %v8214_v33, 16 }
  0x78   : > { %v488_v38 = vsel %vm8918_vm3, %v485_v28, %v487_v18  ;;  %v1086_v18 = vrot.slane %v1084_v50, 5  ;;  %v974_v28 = vrot.slane %v972_v14, 1  ;;  %v8212_v47 = vld [vmem:[%s8852_s16 + $0x4c] ss:$0 sps:$4 sm:$0xff]   ;;  %v1186_v49 = vshrl.u32 %v8214_v33, 16  ;;  %v8247_v50 = vld [vmem:[#allocation5 + $0xe8] sm:$0xff]  }
  0x79   : > { %489 = vst [vmem:[#allocation2 + $0x8] sm:$0xf] %v488_v38  ;;  %v8210_v38 = vld [vmem:[%s8852_s16 + $0x68] ss:$0 sps:$4 sm:$0xff]   ;;  %v1190_v54 = vrot.slane %v1188_v43, 1  ;;  %v8256_v52 = vld [vmem:[#allocation5 + $0x78] sm:$0xff]  }
  0x7a   : > { %467 = vrot.lane.b32.xlu0 %v8192_v40, %s8693_s25  ;;  %1268 = vrot.lane.b32.xlu1 %v1267_v46, %s8691_s19  ;;  %v818_v40 = vrot.slane %v816_v31, 5  ;;  %v8239_v31 = vld [vmem:[#allocation5 + $0xd8] sm:$0xff]   ;;  %v975_v56 = vor.u32 %v974_v28, %v970_v20  ;;  %v8251_v60 = vld [vmem:[#allocation5 + $0xf0] sm:$0xff]   ;;  %v8215_v62 = vld [vmem:[%s8852_s16 + $0x7c] ss:$0 sps:$4 sm:$0xff]  }
  0x7b   : > { %v1191_v61 = vor.u32 %v1190_v54, %v1186_v49  ;;  %v8252_v63 = vld [vmem:[%s8852_s16 + $0x70] ss:$0 sps:$4 sm:$0xff]   ;;  %v8254_v3 = vld [vmem:[#allocation5 + $0xb0] sm:$0xff]   ;;  %v1253_v53 = vld [vmem:[#allocation2 + $0x38] sm:$0xf0] }
  0x7c   : > { %v819_v46 = vor.u32 %v818_v40, %v815_v39  ;;  %v8211_v39 = vld [vmem:[%s8852_s16 + $0x5c] ss:$0 sps:$4 sm:$0xff]   ;;  %v8243_v40 = vld [vmem:[#allocation5 + $0xe0] sm:$0xff]   ;;  %v1245_v2 = vshrl.u32 %v8252_v63, 16  ;;  %v1248_v25 = vshll.u32 %v8252_v63, 16  ;;  %v8257_v14 = vld [vmem:[#allocation5 + $0xf8] sm:$0xff]  }
  0x7d   : > { %v8255_v4 = vld [vmem:[%s8852_s16 + $0x60] ss:$0 sps:$4 sm:$0xff]   ;;  %v8260_v19 = vld [vmem:[%s8852_s16 + $0x70] ss:$0 sps:$4 sm:$0xff]   ;;  %v1204_v21 = vld [vmem:[#allocation2 + $0x30] sm:$0xf0] }
  0x7e   : > { %1158 = vrot.lane.b32.xlu0 %v1157_v0, %s8691_s19  ;;  %1070 = vrot.lane.b32.xlu1 %v1069_v1, %s8692_s22  ;;  %v822_v58 = vsel %vm8934_vm5, %v819_v46, %v821_v34  ;;  %v8202_v0 = vld [vmem:[%s8852_s16 + $0x48] ss:$0 sps:$4 sm:$0xff]   ;;  %v8203_v1 = vld [vmem:[%s8852_s16 + $0x3c] ss:$0 sps:$4 sm:$0xff]   ;;  %v8240_v34 = vld [vmem:[#allocation5 + $0x18] sm:$0xff]   ;;  %v1247_v6 = vrot.slane %v1245_v2, 4  ;;  %v1205_v23 = vsel %vm8934_vm5, %v8260_v19, %v1204_v21 }
  0x7f   : > { %823 = vst [vmem:[#allocation2 + $0x18] sm:$0xf0] %v822_v58  ;;  %7208 = vmatpush3.bf16.msra.mxu0 %v8240_v34  ;;  %v8245_v46 = vld [vmem:[#allocation5 + $0xa0] sm:$0xff]   ;;  %v8249_v58 = vld [vmem:[#allocation5 + $0xa8] sm:$0xff]   ;;  %v1250_v7 = vrot.slane %v1248_v25, 5 }
  0x80   : > { %v6755_v13 = vld [vmem:[%s8852_s16 + $0x60] sm:$0xf]  ;;  %1206 = vst [vmem:[#allocation2 + $0x30] sm:$0xf0] %v1205_v23  ;;  %v563_v34 = vld [vmem:[#allocation2] sm:$0xf0] }
  0x81   : > { %v1251_v10 = vor.u32 %v1250_v7, %v1247_v6  ;;  %v446_v55 = vld [vmem:[#allocation2] sm:$0xf]  ;;  %v783_v35 = vld [vmem:[#allocation2 + $0x10] sm:$0xf0]  ;;  %v1055_v2 = vld [vmem:[#allocation2 + $0x28] sm:$0xf0] }
  0x82   : > { %959 = vrot.lane.b32.xlu0 %v958_v16, %s8692_s22  ;;  %1212 = vrot.lane.b32.xlu1 %v8197_v8, %s8691_s19  ;;  %v8237_v8 = vld [vmem:[#allocation5 + $0x90] sm:$0xff]   ;;  %v1285_v16 = vor.u32 %v8969_v27, %v8955_v12  ;;  %v1174_v12 = vor.u32 %v1173_v11, %v1169_v5  ;;  %v1087_v27 = vor.u32 %v1086_v18, %v1083_v17  ;;  %v1297_v5 = vshrl.u32 %v8213_v22, 16  ;;  %v1144_v11 = vld [vmem:[#allocation2 + $0x38] sm:$0xf]  ;;  %v8259_v18 = vld [vmem:[#allocation5 + $0xb8] sm:$0xff]  }
  0x83   : > { %7246 = vmatpush3.bf16.msra.mxu1 %v8237_v8  ;;  %v1137_v8 = vshrl.u32 %v8255_v4, 16  ;;  %v1254_v17 = vsel %vm8934_vm5, %v1251_v10, %v1253_v53  ;;  %v1096_v22 = vld [vmem:[#allocation2 + $0x30] sm:$0xf]  ;;  %v945_v6 = vld [vmem:[#allocation2 + $0x28] sm:$0xf]  ;;  %vm3031_vm5 = vcmask 1046532  }
  0x84   : > { %7247 = vmatprep.subr.bf16.mxu1 %v8239_v31  ;;  %v1299_v41 = vrot.slane %v1297_v5, 4  ;;  %1255 = vst [vmem:[#allocation2 + $0x38] sm:$0xf0] %v1254_v17  ;;  %vm2989_vm4 = vsmask.f32 2304 }
  0x85   : > { %vm3032_vm6 = vsmask.f32 6400  ;;  %vm5621_vm10 = vsmask.f32 256  ;;  %vm5695_vm14 = vsmask.f32 1280 }
  0x86   : > { %1104 = vrot.lane.b32.xlu0 %v8198_v26, %s8691_s19  ;;  %872 = vrot.lane.b32.xlu1 %v871_v37, %s8693_s25  ;;  %v880_v26 = vld [vmem:[#allocation2 + $0x20] sm:$0xf]  ;;  %v8242_v37 = vld [vmem:[#allocation5 + $0x60] sm:$0xff]   ;;  %v1303_v51 = vor.u32 %v1302_v42, %v1299_v41  ;;  %v623_v41 = vld [vmem:[#allocation2 + $0x8] sm:$0xf0] }
  0x87   : > { %v881_v29 = vsel %vm8918_vm3, %v6724_v24, %v880_v26  ;;  %7248 = vmatpush3.bf16.msra.mxu1 %v8241_v36  ;;  %7209 = vmatprep.subr.bf16.mxu0 %v8242_v37  ;;  %v1097_v24 = vsel %vm8918_vm3, %v6755_v13, %v1096_v22  ;;  %v8261_v26 = vld [vmem:[#allocation5 + $0x140] sm:$0xff]   ;;  %v504_v36 = vld [vmem:[#allocation2 + $0x8] sm:$0xf]  ;;  %v839_v42 = vld [vmem:[#allocation2 + $0x18] sm:$0xf0] }
  0x88   : > { %882 = vst [vmem:[#allocation2 + $0x20] sm:$0xf] %v881_v29  ;;  %7249 = vmatprep.subr.bf16.mxu1 %v8243_v40  ;;  %7210 = vmatpush3.bf16.msra.mxu0 %v8244_v45  ;;  %1098 = vst [vmem:[#allocation2 + $0x30] sm:$0xf] %v1097_v24  ;;  %v675_v29 = vld [vmem:[#allocation2 + $0x10] sm:$0xf] }
  0x89   : > { %vm9315_vm8 = vmand %vm3031_vm5, %vm3032_vm6 }
  0x8a   : > { %760 = vrot.lane.b32.xlu0 %v759_v57, %s8693_s25  ;;  %1007 = vrot.lane.b32.xlu1 %v8201_v48, %s8692_s22  ;;  %v8246_v48 = vld [vmem:[#allocation5 + $0x68] sm:$0xff]  }
  0x8b   : > { %7250 = vmatpush3.bf16.msra.mxu1 %v8245_v46  ;;  %v8248_v57 = vld [vmem:[#allocation5 + $0x28] sm:$0xff]   ;;  %7211 = vmatprep.subr.bf16.mxu0 %v8246_v48  ;;  %v729_v48 = vld [vmem:[#allocation2 + $0x18] sm:$0xf] }
  0x8c   : > { %7251 = vmatprep.subr.bf16.mxu1 %v8247_v50  ;;  %7212 = vmatpush3.bf16.msra.mxu0 %v8248_v57 }
  0x8d   : > { %7213 = vmatprep.subr.bf16.mxu0 %v8250_v59 }
  0x8e   : > { %899 = vrot.lane.b32.xlu0 %v8202_v0, %s8692_s22  ;;  %802 = vrot.lane.b32.xlu1 %v8203_v1, %s8693_s25  ;;  %v8253_v0 = vld [vmem:[#allocation5 + $0x30] sm:$0xff]   ;;  %v8216_v1 = vld [vmem:[%s8852_s16 + $0x6c] ss:$0 sps:$4 sm:$0xff]  }
  0x8f   : > { %7252 = vmatpush3.bf16.msra.mxu1 %v8249_v58  ;;  %v891_v21 = vld [vmem:[#allocation2 + $0x20] sm:$0xf] }
  0x90   : > { %7253 = vmatprep.subr.bf16.mxu1 %v8251_v60  ;;  %7214 = vmatpush3.bf16.msra.mxu0 %v8253_v0 }
  0x91   : > { %7215 = vmatprep.subr.bf16.mxu0 %v8256_v52 }
  0x92   : > { %694 = vrot.lane.b32.xlu0 %v8204_v9, %s8693_s25  ;;  %1286 = vrot.lane.b32.xlu1 %v1285_v16, %s8692_s22  ;;  %v1139_v9 = vshll.u32 %v8255_v4, 16  ;;  %v8258_v16 = vld [vmem:[#allocation5 + $0x38] sm:$0xff]  }
  0x93   : > { %7254 = vmatpush3.bf16.msra.mxu1 %v8254_v3 }
  0x94   : > { %v1141_v15 = vrot.slane %v1139_v9, 1  ;;  %7255 = vmatprep.subr.bf16.mxu1 %v8257_v14  ;;  %7216 = vmatpush3.bf16.msra.mxu0 %v8258_v16  ;;  %v999_v14 = vld [vmem:[#allocation2 + $0x20] sm:$0xf0] }
  0x95   : > { %7281 = vmatprep.subr.bf16.mxu0 %v8261_v26 }
  0x96   : > { %1175 = vrot.lane.b32.xlu0 %v1174_v12, %s8692_s22  ;;  %1088 = vrot.lane.b32.xlu1 %v1087_v27, %s8693_s25  ;;  %v1142_v20 = vor.u32 %v1141_v15, %v1137_v8  ;;  %v8262_v27 = vld [vmem:[#allocation5 + $0x1c0] sm:$0xff]  }
  0x97   : > { %7256 = vmatpush3.bf16.msra.mxu1 %v8259_v18 }
  0x98   : > { %v1145_v12 = vsel %vm8918_vm3, %v1142_v20, %v1144_v11  ;;  %7321 = vmatprep.subr.bf16.mxu1 %v8262_v27  ;;  %vm2988_vm3 = vcmask 1042432  }
  0x99   : > { %1146 = vst [vmem:[#allocation2 + $0x38] sm:$0xf] %v1145_v12  ;;  %v8295_v12 = vld [vmem:[#allocation5 + $0x200] sm:$0xff]  }
  0x9a   : > { %976 = vrot.lane.b32.xlu0 %v975_v56, %s8693_s25  ;;  %1223 = vrot.lane.b32.xlu1 %v8209_v32, %s8692_s22 }
  0x9e   : > { %1115 = vrot.lane.b32.xlu0 %v8210_v38, %s8692_s22  ;;  %1018 = vrot.lane.b32.xlu1 %v8211_v39, %s8693_s25 }
  0xa2   : > { %910 = vrot.lane.b32.xlu0 %v8212_v47, %s8693_s25  ;;  %1304 = vrot.lane.b32.xlu1 %v1303_v51, %s8693_s25 }
  0xa6   : > { %1192 = vrot.lane.b32.xlu0 %v1191_v61, %s8693_s25  ;;  %1234 = vrot.lane.b32.xlu1 %v8215_v62, %s8693_s25 }
  0xaa   : > { %1126 = vrot.lane.b32.xlu0 %v8216_v1, %s8693_s25 }
  0xbc   : > { %v442_v30 = vpop.permute.xlu1 %441 }
  0xbd   : > { %v447_v44 = vsel %vm9051_vm7, %v442_v30, %v446_v55  ;;  %v673_v31 = vpop.permute.xlu0 %672 }
  0xbe   : > { %448 = vst [vmem:[#allocation2] sm:$0xf] %v447_v44  ;;  %v676_v33 = vsel %vm9051_vm7, %v673_v31, %v675_v29 }
  0xbf   : > { %677 = vst [vmem:[#allocation2 + $0x10] sm:$0xf] %v676_v33 }
  0xc0   : > { %v559_v56 = vpop.permute.xlu1 %558 }
  0xc1   : > { %v564_v5 = vsel %vm9058_vm9, %v559_v56, %v563_v34 }
  0xc2   : > { %565 = vst [vmem:[#allocation2] sm:$0xf0] %v564_v5 }
  0xc4   : > { %v502_v37 = vpop.permute.xlu0 %501  ;;  %v781_v38 = vpop.permute.xlu1 %780 }
  0xc5   : > { %v505_v39 = vsel %vm9051_vm7, %v502_v37, %v504_v36  ;;  %v784_v40 = vsel %vm9058_vm9, %v781_v38, %v783_v35  ;;  %v459_v3 = vld [vmem:[#allocation2] sm:$0xf]  ;;  %v1271_v37 = vld [vmem:[#allocation2 + $0x38] sm:$0xf0] }
  0xc6   : > { %506 = vst [vmem:[#allocation2 + $0x8] sm:$0xf] %v505_v39  ;;  %785 = vst [vmem:[#allocation2 + $0x10] sm:$0xf0] %v784_v40  ;;  %v686_v33 = vld [vmem:[#allocation2 + $0x10] sm:$0xf] }
  0xc8   : > { %v621_v43 = vpop.permute.xlu0 %620  ;;  %v837_v45 = vpop.permute.xlu1 %836 }
  0xc9   : > { %v624_v46 = vsel %vm9058_vm9, %v621_v43, %v623_v41  ;;  %v840_v47 = vsel %vm9058_vm9, %v837_v45, %v839_v42  ;;  %v576_v58 = vld [vmem:[#allocation2] sm:$0xf0]  ;;  %v1161_v45 = vld [vmem:[#allocation2 + $0x38] sm:$0xf] }
  0xca   : > { %625 = vst [vmem:[#allocation2 + $0x8] sm:$0xf0] %v624_v46  ;;  %841 = vst [vmem:[#allocation2 + $0x18] sm:$0xf0] %v840_v47 }
  0xcc   : > { %v727_v49 = vpop.permute.xlu0 %726  ;;  %v639_v50 = vpop.permute.xlu1 %638 }
  0xcd   : > { %v730_v51 = vsel %vm9051_vm7, %v727_v49, %v729_v48  ;;  %v521_v60 = vld [vmem:[#allocation2 + $0x8] sm:$0xf]  ;;  %v794_v27 = vld [vmem:[#allocation2 + $0x10] sm:$0xf0] }
  0xce   : > { %731 = vst [vmem:[#allocation2 + $0x18] sm:$0xf] %v730_v51  ;;  %v8263_v51 = vld [vmem:[#allocation5 + $0x100] sm:$0xff]  }
  0xd0   : > { %v519_v59 = vpop.permute.xlu0 %518  ;;  %v572_v61 = vpop.permute.xlu1 %571 }
  0xd1   : > { %v641_v62 = vld [vmem:[#allocation2 + $0x8] sm:$0xf0]  ;;  %v522_v63 = vsel %vm9082_vm13, %v519_v59, %v521_v60  ;;  %v577_v0 = vsel %vm9077_vm12, %v572_v61, %v576_v58  ;;  %v857_v9 = vld [vmem:[#allocation2 + $0x18] sm:$0xf0]  ;;  %v8264_v58 = vld [vmem:[#allocation5 + $0x180] sm:$0xff]  }
  0xd2   : > { %v642_v1 = vsel %vm9077_vm12, %v639_v50, %v641_v62  ;;  %523 = vst [vmem:[#allocation2 + $0x8] sm:$0xf] %v522_v63  ;;  %578 = vst [vmem:[#allocation2] sm:$0xf0] %v577_v0  ;;  %v1215_v59 = vld [vmem:[#allocation2 + $0x30] sm:$0xf0] }
  0xd3   : > { %643 = vst [vmem:[#allocation2 + $0x8] sm:$0xf0] %v642_v1  ;;  %v8265_v60 = vld [vmem:[#allocation5 + $0x148] sm:$0xff]  }
  0xd4   : > { %v455_v25 = vpop.permute.xlu0 %454  ;;  %v1053_v52 = vpop.permute.xlu1 %1052  ;;  %v8266_v61 = vld [vmem:[#allocation5 + $0x1c8] sm:$0xff]  }
  0xd5   : > { %v460_v53 = vsel %vm9082_vm13, %v455_v25, %v459_v3  ;;  %v1056_v4 = vsel %vm9058_vm9, %v1053_v52, %v1055_v2  ;;  %v746_v16 = vld [vmem:[#allocation2 + $0x18] sm:$0xf]  ;;  %v1107_v3 = vld [vmem:[#allocation2 + $0x30] sm:$0xf]  ;;  %v8267_v52 = vld [vmem:[#allocation5 + $0x108] sm:$0xff]  }
  0xd6   : > { %461 = vst [vmem:[#allocation2] sm:$0xf] %v460_v53  ;;  %1057 = vst [vmem:[#allocation2 + $0x28] sm:$0xf0] %v1056_v4  ;;  %v8268_v53 = vld [vmem:[#allocation5 + $0x188] sm:$0xff]   ;;  %v8269_v4 = vld [vmem:[#allocation5 + $0x150] sm:$0xff]  }
  0xd8   : > { %v943_v7 = vpop.permute.xlu0 %942  ;;  %v855_v8 = vpop.permute.xlu1 %854 }
  0xd9   : > { %v946_v10 = vsel %vm9051_vm7, %v943_v7, %v945_v6  ;;  %v858_v11 = vsel %vm9077_vm12, %v855_v8, %v857_v9  ;;  %v538_v29 = vld [vmem:[#allocation2 + $0x8] sm:$0xf]  ;;  %v589_v5 = vld [vmem:[#allocation2] sm:$0xf0] }
  0xda   : > { %947 = vst [vmem:[#allocation2 + $0x28] sm:$0xf] %v946_v10  ;;  %859 = vst [vmem:[#allocation2 + $0x18] sm:$0xf0] %v858_v11  ;;  %v659_v23 = vld [vmem:[#allocation2 + $0x8] sm:$0xf0] }
  0xdb   : > { %v8270_v6 = vld [vmem:[#allocation5 + $0x1d0] sm:$0xff]  }
  0xdc   : > { %v744_v15 = vpop.permute.xlu0 %743  ;;  %v997_v17 = vpop.permute.xlu1 %996  ;;  %v8271_v11 = vld [vmem:[#allocation5 + $0x110] sm:$0xff]  }
  0xdd   : > { %v747_v18 = vsel %vm9082_vm13, %v744_v15, %v746_v16  ;;  %v1000_v19 = vsel %vm9058_vm9, %v997_v17, %v999_v14  ;;  %v472_v39 = vld [vmem:[#allocation2] sm:$0xf]  ;;  %v1073_v48 = vld [vmem:[#allocation2 + $0x28] sm:$0xf0]  ;;  %v8272_v14 = vld [vmem:[#allocation5 + $0x190] sm:$0xff]  }
  0xde   : > { %748 = vst [vmem:[#allocation2 + $0x18] sm:$0xf] %v747_v18  ;;  %1001 = vst [vmem:[#allocation2 + $0x20] sm:$0xf0] %v1000_v19  ;;  %v8273_v15 = vld [vmem:[#allocation5 + $0x158] sm:$0xff]  }
  0xdf   : > { %v8274_v16 = vld [vmem:[#allocation5 + $0x1d8] sm:$0xff]  }
  0xe0   : > { %v889_v13 = vpop.permute.xlu0 %888  ;;  %v657_v22 = vpop.permute.xlu1 %656 }
  0xe1   : > { %v892_v24 = vsel %vm9051_vm7, %v889_v13, %v891_v21  ;;  %v660_v26 = vsel %vm9105_vm15, %v657_v22, %v659_v23  ;;  %v962_v63 = vld [vmem:[#allocation2 + $0x28] sm:$0xf]  ;;  %v875_v9 = vld [vmem:[#allocation2 + $0x18] sm:$0xf0]  ;;  %v8275_v22 = vld [vmem:[#allocation5 + $0x118] sm:$0xff]  }
  0xe2   : > { %893 = vst [vmem:[#allocation2 + $0x20] sm:$0xf] %v892_v24  ;;  %661 = vst [vmem:[#allocation2 + $0x8] sm:$0xf0] %v660_v26  ;;  %v8276_v23 = vld [vmem:[#allocation5 + $0x198] sm:$0xff]   ;;  %v8277_v24 = vld [vmem:[#allocation5 + $0x160] sm:$0xff]  }
  0xe3   : > { %v8278_v26 = vld [vmem:[#allocation5 + $0x1e0] sm:$0xff]  }
  0xe4   : > { %v536_v55 = vpop.permute.xlu0 %535  ;;  %v792_v30 = vpop.permute.xlu1 %791 }
  0xe5   : > { %v539_v44 = vsel %vm9114_vm2, %v536_v55, %v538_v29  ;;  %v795_v31 = vsel %vm9077_vm12, %v792_v30, %v794_v27  ;;  %v763_v17 = vld [vmem:[#allocation2 + $0x18] sm:$0xf]  ;;  %v1010_v21 = vld [vmem:[#allocation2 + $0x20] sm:$0xf0] }
  0xe6   : > { %540 = vst [vmem:[#allocation2 + $0x8] sm:$0xf] %v539_v44  ;;  %796 = vst [vmem:[#allocation2 + $0x10] sm:$0xf0] %v795_v31 }
  0xe8   : > { %v684_v34 = vpop.permute.xlu0 %683  ;;  %v585_v56 = vpop.permute.xlu1 %584 }
  0xe9   : > { %v687_v35 = vsel %vm9082_vm13, %v684_v34, %v686_v33  ;;  %v590_v36 = vsel %vm9105_vm15, %v585_v56, %v589_v5  ;;  %v902_v27 = vld [vmem:[#allocation2 + $0x20] sm:$0xf]  ;;  %v8279_v33 = vld [vmem:[#allocation5 + $0x120] sm:$0xff]  }
  0xea   : > { %688 = vst [vmem:[#allocation2 + $0x10] sm:$0xf] %v687_v35  ;;  %591 = vst [vmem:[#allocation2] sm:$0xf0] %v590_v36  ;;  %v8280_v34 = vld [vmem:[#allocation5 + $0x1a0] sm:$0xff]   ;;  %v8281_v56 = vld [vmem:[#allocation5 + $0x168] sm:$0xff]  }
  0xeb   : > { %v8282_v5 = vld [vmem:[#allocation5 + $0x1e8] sm:$0xff]  }
  0xec   : > { %v468_v38 = vpop.permute.xlu0 %467  ;;  %v1269_v40 = vpop.permute.xlu1 %1268 }
  0xed   : > { %v473_v41 = vsel %vm9114_vm2, %v468_v38, %v472_v39  ;;  %v1272_v42 = vsel %vm9058_vm9, %v1269_v40, %v1271_v37  ;;  %v9130_v43 = vld [vmem:[#allocation2 + $0x8] sm:$0xff]  ;;  %v805_v30 = vld [vmem:[#allocation2 + $0x10] sm:$0xf0] }
  0xee   : > { %474 = vst [vmem:[#allocation2] sm:$0xf] %v473_v41  ;;  %1273 = vst [vmem:[#allocation2 + $0x38] sm:$0xf0] %v1272_v42  ;;  %1479 = vmatprep.mubr.bf16.mxu0 %v9130_v43  ;;  %1673 = vmatprep.mubr.bf16.mxu1 %v9130_v43  ;;  %v8283_v42 = vld [vmem:[#allocation5 + $0x128] sm:$0xff]  }
  0xf0   : > { %v1159_v46 = vpop.permute.xlu0 %1158  ;;  %v1071_v47 = vpop.permute.xlu1 %1070 }
  0xf1   : > { %v1162_v49 = vsel %vm9051_vm7, %v1159_v46, %v1161_v45  ;;  %v1074_v50 = vsel %vm9077_vm12, %v1071_v47, %v1073_v48  ;;  %v697_v35 = vld [vmem:[#allocation2 + $0x10] sm:$0xf]  ;;  %v8284_v45 = vld [vmem:[#allocation5 + $0x1a8] sm:$0xff]   ;;  %v8285_v46 = vld [vmem:[#allocation5 + $0x170] sm:$0xff]  }
  0xf2   : > { %1163 = vst [vmem:[#allocation2 + $0x38] sm:$0xf] %v1162_v49  ;;  %1075 = vst [vmem:[#allocation2 + $0x28] sm:$0xf0] %v1074_v50  ;;  %v8286_v47 = vld [vmem:[#allocation5 + $0x1f0] sm:$0xff]  }
  0xf4   : > { %v960_v62 = vpop.permute.xlu0 %959  ;;  %v1213_v0 = vpop.permute.xlu1 %1212 }
  0xf5   : > { %v963_v1 = vsel %vm9082_vm13, %v960_v62, %v962_v63  ;;  %v1216_v2 = vsel %vm9058_vm9, %v1213_v0, %v1215_v59  ;;  %v9142_v25 = vld [vmem:[#allocation2] sm:$0xff]  ;;  %v1289_v38 = vld [vmem:[#allocation2 + $0x38] sm:$0xf0]  ;;  %v8289_v62 = vld [vmem:[#allocation5 + $0x178] sm:$0xff]   ;;  %vm5620_vm9 = vcmask 1040384  }
  0xf6   : > { %964 = vst [vmem:[#allocation2 + $0x28] sm:$0xf] %v963_v1  ;;  %1217 = vst [vmem:[#allocation2 + $0x30] sm:$0xf0] %v1216_v2  ;;  %1480 = vmatmul.mubr.bf16.vlgmr.msra.gmra.mrb[0].mxu0 %v9142_v25  ;;  %1674 = vmatmul.mubr.bf16.vlgmr.msra.gmra.mrb[0].mxu1 %v9142_v25  ;;  %v8290_v63 = vld [vmem:[#allocation5 + $0x1f8] sm:$0xff]  }
  0xf7   : > { %7282 = vmatpush3.bf16.msra.mxu0 %v8263_v51  ;;  %7322 = vmatpush3.bf16.msra.mxu1 %v8264_v58  ;;  %vm9863_vm11 = vmand %vm5620_vm9, %vm5621_vm10 }
  0xf8   : > { %v1105_v7 = vpop.permute.xlu0 %1104  ;;  %v873_v8 = vpop.permute.xlu1 %872  ;;  %7283 = vmatprep.subr.bf16.mxu0 %v8265_v60  ;;  %7323 = vmatprep.subr.bf16.mxu1 %v8266_v61  ;;  %v8287_v60 = vld [vmem:[#allocation5 + $0x130] sm:$0xff]  }
  0xf9   : > { %v1108_v32 = vsel %vm9051_vm7, %v1105_v7, %v1107_v3  ;;  %v876_v10 = vsel %vm9105_vm15, %v873_v8, %v875_v9  ;;  %v1178_v48 = vld [vmem:[#allocation2 + $0x38] sm:$0xf]  ;;  %v1091_v51 = vld [vmem:[#allocation2 + $0x28] sm:$0xf0]  ;;  %v8288_v61 = vld [vmem:[#allocation5 + $0x1b0] sm:$0xff]  }
  0xfa   : > { %1109 = vst [vmem:[#allocation2 + $0x30] sm:$0xf] %v1108_v32  ;;  %877 = vst [vmem:[#allocation2 + $0x18] sm:$0xf0] %v876_v10  ;;  %v8292_v7 = vld [vmem:[#allocation5 + $0x1b8] sm:$0xff]   ;;  %v8293_v8 = vld [vmem:[#allocation5 + $0x240] sm:$0xff]  }
  0xfb   : > { %7284 = vmatpush3.bf16.msra.mxu0 %v8267_v52  ;;  %7324 = vmatpush3.bf16.msra.mxu1 %v8268_v53  ;;  %v8294_v9 = vld [vmem:[#allocation5 + $0x2c0] sm:$0xff]   ;;  %vm9311_vm7 = vmand %vm2988_vm3, %vm2989_vm4  ;;  %vm5759_vm3 = vcmask 1042434  }
  0xfc   : > { %v761_v18 = vpop.permute.xlu0 %760  ;;  %v1008_v19 = vpop.permute.xlu1 %1007  ;;  %7285 = vmatprep.subr.bf16.mxu0 %v8269_v4  ;;  %7325 = vmatprep.subr.bf16.mxu1 %v8270_v6  ;;  %v8291_v6 = vld [vmem:[#allocation5 + $0x138] sm:$0xff]   ;;  %vm9953_vm6 = vmand %vm5759_vm3, %vm2989_vm4  ;;  %vm5792_vm4 = vsmask.f32 7946 }
  0xfd   : > { %v764_v28 = vsel %vm9114_vm2, %v761_v18, %v763_v17  ;;  %v1011_v13 = vsel %vm9077_vm12, %v1008_v19, %v1010_v21  ;;  %v979_v0 = vld [vmem:[#allocation2 + $0x28] sm:$0xf]  ;;  %v1226_v3 = vld [vmem:[#allocation2 + $0x30] sm:$0xf0] }
  0xfe   : > { %765 = vst [vmem:[#allocation2 + $0x18] sm:$0xf] %v764_v28  ;;  %1012 = vst [vmem:[#allocation2 + $0x20] sm:$0xf0] %v1011_v13 }
  0xff   : > { %7286 = vmatpush3.bf16.msra.mxu0 %v8271_v11  ;;  %7326 = vmatpush3.bf16.msra.mxu1 %v8272_v14 }
 0x100   : > { %v900_v55 = vpop.permute.xlu0 %899  ;;  %v803_v29 = vpop.permute.xlu1 %802  ;;  %7287 = vmatprep.subr.bf16.mxu0 %v8273_v15  ;;  %7327 = vmatprep.subr.bf16.mxu1 %v8274_v16 }
 0x101   : > { %v903_v44 = vsel %vm9082_vm13, %v900_v55, %v902_v27  ;;  %v806_v31 = vsel %vm9105_vm15, %v803_v29, %v805_v30  ;;  %v1118_v32 = vld [vmem:[#allocation2 + $0x30] sm:$0xf] }
 0x102   : > { %904 = vst [vmem:[#allocation2 + $0x20] sm:$0xf] %v903_v44  ;;  %807 = vst [vmem:[#allocation2 + $0x10] sm:$0xf0] %v806_v31 }
 0x103   : > { %7288 = vmatpush3.bf16.msra.mxu0 %v8275_v22  ;;  %7328 = vmatpush3.bf16.msra.mxu1 %v8276_v23 }
 0x104   : > { %v695_v36 = vpop.permute.xlu0 %694  ;;  %v1287_v37 = vpop.permute.xlu1 %1286  ;;  %7289 = vmatprep.subr.bf16.mxu0 %v8277_v24  ;;  %7329 = vmatprep.subr.bf16.mxu1 %v8278_v26 }
 0x105   : > { %v698_v39 = vsel %vm9114_vm2, %v695_v36, %v697_v35  ;;  %v1290_v40 = vsel %vm9077_vm12, %v1287_v37, %v1289_v38  ;;  %v9162_v41 = vld [vmem:[#allocation2 + $0x18] sm:$0xff]  ;;  %v1021_v14 = vld [vmem:[#allocation2 + $0x20] sm:$0xf0] }
 0x106   : > { %699 = vst [vmem:[#allocation2 + $0x10] sm:$0xf] %v698_v39  ;;  %1291 = vst [vmem:[#allocation2 + $0x38] sm:$0xf0] %v1290_v40  ;;  %1487 = vmatprep.mubr.bf16.mxu0 %v9162_v41  ;;  %1681 = vmatprep.mubr.bf16.mxu1 %v9162_v41  ;;  %v8300_v35 = vld [vmem:[#allocation5 + $0x288] sm:$0xff]   ;;  %v8301_v36 = vld [vmem:[#allocation5 + $0x250] sm:$0xff]  }
 0x107   : > { %7290 = vmatpush3.bf16.msra.mxu0 %v8279_v33  ;;  %7330 = vmatpush3.bf16.msra.mxu1 %v8280_v34  ;;  %v8296_v33 = vld [vmem:[#allocation5 + $0x280] sm:$0xff]   ;;  %v8297_v34 = vld [vmem:[#allocation5 + $0x248] sm:$0xff]   ;;  %v8302_v37 = vld [vmem:[#allocation5 + $0x2d0] sm:$0xff]  }
 0x108   : > { %v1176_v49 = vpop.permute.xlu0 %1175  ;;  %v1089_v50 = vpop.permute.xlu1 %1088  ;;  %7291 = vmatprep.subr.bf16.mxu0 %v8281_v56  ;;  %7331 = vmatprep.subr.bf16.mxu1 %v8282_v5  ;;  %v8298_v56 = vld [vmem:[#allocation5 + $0x2c8] sm:$0xff]   ;;  %v8303_v38 = vld [vmem:[#allocation5 + $0x210] sm:$0xff]   ;;  %v8305_v40 = vld [vmem:[#allocation5 + $0x258] sm:$0xff]  }
 0x109   : > { %v1179_v58 = vsel %vm9082_vm13, %v1176_v49, %v1178_v48  ;;  %v1092_v59 = vsel %vm9105_vm15, %v1089_v50, %v1091_v51  ;;  %v913_v16 = vld [vmem:[#allocation2 + $0x20] sm:$0xf]  ;;  %v8304_v39 = vld [vmem:[#allocation5 + $0x290] sm:$0xff]   ;;  %v8310_v48 = vld [vmem:[#allocation5 + $0x2e0] sm:$0xff]  }
 0x10a   : > { %1180 = vst [vmem:[#allocation2 + $0x38] sm:$0xf] %v1179_v58  ;;  %1093 = vst [vmem:[#allocation2 + $0x28] sm:$0xf0] %v1092_v59  ;;  %v8299_v5 = vld [vmem:[#allocation5 + $0x208] sm:$0xff]   ;;  %v8311_v49 = vld [vmem:[#allocation5 + $0x220] sm:$0xff]  }
 0x10b   : > { %7292 = vmatpush3.bf16.msra.mxu0 %v8283_v42  ;;  %7332 = vmatpush3.bf16.msra.mxu1 %v8284_v45  ;;  %v8306_v42 = vld [vmem:[#allocation5 + $0x2d8] sm:$0xff]   ;;  %v8312_v50 = vld [vmem:[#allocation5 + $0x2a0] sm:$0xff]   ;;  %v8313_v51 = vld [vmem:[#allocation5 + $0x268] sm:$0xff]  }
 0x10c   : > { %v977_v1 = vpop.permute.xlu0 %976  ;;  %v1224_v2 = vpop.permute.xlu1 %1223  ;;  %7293 = vmatprep.subr.bf16.mxu0 %v8285_v46  ;;  %7333 = vmatprep.subr.bf16.mxu1 %v8286_v47  ;;  %v8307_v45 = vld [vmem:[#allocation5 + $0x218] sm:$0xff]   ;;  %v8309_v47 = vld [vmem:[#allocation5 + $0x260] sm:$0xff]   ;;  %v8314_v58 = vld [vmem:[#allocation5 + $0x2e8] sm:$0xff]  }
 0x10d   : > { %v980_v52 = vsel %vm9114_vm2, %v977_v1, %v979_v0  ;;  %v1227_v53 = vsel %vm9077_vm12, %v1224_v2, %v1226_v3  ;;  %v9174_v4 = vld [vmem:[#allocation2 + $0x10] sm:$0xff]  ;;  %v1307_v19 = vld [vmem:[#allocation2 + $0x38] sm:$0xf0]  ;;  %v8320_v0 = vld [vmem:[#allocation5 + $0x2b0] sm:$0xff]   ;;  %vm5662_vm12 = vsmask.f32 7938 }
 0x10e   : > { %981 = vst [vmem:[#allocation2 + $0x28] sm:$0xf] %v980_v52  ;;  %1228 = vst [vmem:[#allocation2 + $0x30] sm:$0xf0] %v1227_v53  ;;  %1488 = vmatmul.mubr.bf16.gmra.mrb[4].mxu0 %v9174_v4  ;;  %1682 = vmatmul.mubr.bf16.gmra.mrb[4].mxu1 %v9174_v4  ;;  %v8308_v46 = vld [vmem:[#allocation5 + $0x298] sm:$0xff]   ;;  %v8315_v59 = vld [vmem:[#allocation5 + $0x228] sm:$0xff]  }
 0x10f   : > { %7294 = vmatpush3.bf16.msra.mxu0 %v8287_v60  ;;  %7334 = vmatpush3.bf16.msra.mxu1 %v8288_v61  ;;  %v8316_v60 = vld [vmem:[#allocation5 + $0x2a8] sm:$0xff]   ;;  %v8317_v61 = vld [vmem:[#allocation5 + $0x270] sm:$0xff]   ;;  %v8321_v1 = vld [vmem:[#allocation5 + $0x278] sm:$0xff]  }
 0x110   : > { %v1116_v10 = vpop.permute.xlu0 %1115  ;;  %v1019_v11 = vpop.permute.xlu1 %1018  ;;  %7295 = vmatprep.subr.bf16.mxu0 %v8289_v62  ;;  %7335 = vmatprep.subr.bf16.mxu1 %v8290_v63  ;;  %v8318_v62 = vld [vmem:[#allocation5 + $0x2f0] sm:$0xff]   ;;  %v8322_v2 = vld [vmem:[#allocation5 + $0x2f8] sm:$0xff]   ;;  %v8325_v53 = vld [vmem:[#allocation5 + $0x340] sm:$0xff]  }
 0x111   : > { %v1119_v54 = vsel %vm9082_vm13, %v1116_v10, %v1118_v32  ;;  %v1022_v15 = vsel %vm9105_vm15, %v1019_v11, %v1021_v14  ;;  %v1195_v13 = vld [vmem:[#allocation2 + $0x38] sm:$0xf]  ;;  %v8319_v63 = vld [vmem:[#allocation5 + $0x230] sm:$0xff]   ;;  %v8323_v3 = vld [vmem:[#allocation5 + $0x238] sm:$0xff]   ;;  %vm5694_vm13 = vcmask 1041409  }
 0x112   : > { %1120 = vst [vmem:[#allocation2 + $0x30] sm:$0xf] %v1119_v54  ;;  %1023 = vst [vmem:[#allocation2 + $0x20] sm:$0xf0] %v1022_v15  ;;  %v8324_v52 = vld [vmem:[#allocation5 + $0x2b8] sm:$0xff]   ;;  %v8330_v32 = vld [vmem:[#allocation5 + $0x3c8] sm:$0xff]  }
 0x113   : > { %7296 = vmatpush3.bf16.msra.mxu0 %v8291_v6  ;;  %7336 = vmatpush3.bf16.msra.mxu1 %v8292_v7  ;;  %v8326_v6 = vld [vmem:[#allocation5 + $0x3c0] sm:$0xff]   ;;  %v8331_v10 = vld [vmem:[#allocation5 + $0x308] sm:$0xff]   ;;  %v8333_v14 = vld [vmem:[#allocation5 + $0x350] sm:$0xff]  }
 0x114   : > { %v911_v17 = vpop.permute.xlu0 %910  ;;  %v1305_v18 = vpop.permute.xlu1 %1304  ;;  %7361 = vmatprep.subr.bf16.mxu0 %v8293_v8  ;;  %7401 = vmatprep.subr.bf16.mxu1 %v8294_v9  ;;  %v8327_v7 = vld [vmem:[#allocation5 + $0x300] sm:$0xff]   ;;  %v8329_v9 = vld [vmem:[#allocation5 + $0x348] sm:$0xff]   ;;  %v8334_v54 = vld [vmem:[#allocation5 + $0x3d0] sm:$0xff]  }
 0x115   : > { %v914_v21 = vsel %vm9114_vm2, %v911_v17, %v913_v16  ;;  %v1308_v57 = vsel %vm9105_vm15, %v1305_v18, %v1307_v19  ;;  %v9186_v28 = vld [vmem:[#allocation2 + $0x28] sm:$0xff]  ;;  %v1237_v24 = vld [vmem:[#allocation2 + $0x30] sm:$0xf0]  ;;  %v8332_v11 = vld [vmem:[#allocation5 + $0x388] sm:$0xff]  }
 0x116   : > { %915 = vst [vmem:[#allocation2 + $0x20] sm:$0xf] %v914_v21  ;;  %1309 = vst [vmem:[#allocation2 + $0x38] sm:$0xf0] %v1308_v57  ;;  %1495 = vmatprep.mubr.bf16.mxu0 %v9186_v28  ;;  %1689 = vmatprep.mubr.bf16.mxu1 %v9186_v28  ;;  %v8328_v8 = vld [vmem:[#allocation5 + $0x380] sm:$0xff]   ;;  %v8336_v15 = vld [vmem:[#allocation5 + $0x390] sm:$0xff]  }
 0x117   : > { %v8337_v16 = vld [vmem:[#allocation5 + $0x358] sm:$0xff]   ;;  %v8341_v19 = vld [vmem:[#allocation5 + $0x360] sm:$0xff]   ;;  %vm9896_vm1 = vmand %vm5620_vm9, %vm5662_vm12 }
 0x118   : > { %v1193_v22 = vpop.permute.xlu0 %1192  ;;  %v1235_v23 = vpop.permute.xlu1 %1234  ;;  %v8338_v17 = vld [vmem:[#allocation5 + $0x3d8] sm:$0xff]   ;;  %v8342_v21 = vld [vmem:[#allocation5 + $0x3e0] sm:$0xff]  }
 0x119   : > { %v1196_v26 = vsel %vm9114_vm2, %v1193_v22, %v1195_v13  ;;  %v1238_v27 = vsel %vm9105_vm15, %v1235_v23, %v1237_v24  ;;  %v1129_v55 = vld [vmem:[#allocation2 + $0x30] sm:$0xf]  ;;  %v8344_v57 = vld [vmem:[#allocation5 + $0x3a0] sm:$0xff]   ;;  %v8345_v13 = vld [vmem:[#allocation5 + $0x368] sm:$0xff]   ;;  %vm5730_vm15 = vsmask.f32 7942 }
 0x11a   : > { %1197 = vst [vmem:[#allocation2 + $0x38] sm:$0xf] %v1196_v26  ;;  %1239 = vst [vmem:[#allocation2 + $0x30] sm:$0xf0] %v1238_v27  ;;  %v8339_v18 = vld [vmem:[#allocation5 + $0x318] sm:$0xff]   ;;  %v8346_v22 = vld [vmem:[#allocation5 + $0x3e8] sm:$0xff]  }
 0x11b   : > { %v8347_v23 = vld [vmem:[#allocation5 + $0x328] sm:$0xff]   ;;  %v8349_v24 = vld [vmem:[#allocation5 + $0x370] sm:$0xff]   ;;  %vm9947_vm5 = vmand %vm5694_vm13, %vm5730_vm15 }
 0x11c   : > { %v1127_v29 = vpop.permute.xlu0 %1126  ;;  %v8350_v26 = vld [vmem:[#allocation5 + $0x3f0] sm:$0xff]  }
 0x11d   : > { %v1130_v30 = vsel %vm9114_vm2, %v1127_v29, %v1129_v55  ;;  %v9196_v44 = vld [vmem:[#allocation2 + $0x20] sm:$0xff]  ;;  %v8353_v29 = vld [vmem:[#allocation5 + $0x378] sm:$0xff]   ;;  %vm9905_vm2 = vmand %vm5694_vm13, %vm5695_vm14 }
 0x11e   : > { %1131 = vst [vmem:[#allocation2 + $0x30] sm:$0xf] %v1130_v30  ;;  %1496 = vmatmul.mubr.bf16.gmra.mrb[8].mxu0 %v9196_v44  ;;  %1690 = vmatmul.mubr.bf16.gmra.mrb[8].mxu1 %v9196_v44  ;;  %v8351_v27 = vld [vmem:[#allocation5 + $0x330] sm:$0xff]   ;;  %v8354_v30 = vld [vmem:[#allocation5 + $0x3f8] sm:$0xff]  }
 0x11f   : > { %v8352_v55 = vld [vmem:[#allocation5 + $0x3b0] sm:$0xff]  }
 0x121   : > { %v9200_v31 = vld [vmem:[#allocation2 + $0x38] sm:$0xff] }
 0x122   : > { %1503 = vmatprep.mubr.bf16.mxu0 %v9200_v31  ;;  %1697 = vmatprep.mubr.bf16.mxu1 %v9200_v31 }
 0x125   : > { %v9204_v20 = vld [vmem:[#allocation2 + $0x30] sm:$0xff] }
 0x126   : > { %1504 = vmatmul.mubr.bf16.gmra.mrb[12].mxu0 %v9204_v20  ;;  %1698 = vmatmul.mubr.bf16.gmra.mrb[12].mxu1 %v9204_v20 }
 0x127   : > { %1867 = vmatprep.mubr.bf16.mxu0 %v9130_v43  ;;  %2061 = vmatprep.mubr.bf16.mxu1 %v9130_v43 }
 0x12e   : > { %1868 = vmatmul.mubr.bf16.vlgmr.msra.gmra.mrb[16].mxu0 %v9142_v25  ;;  %2062 = vmatmul.mubr.bf16.vlgmr.msra.gmra.mrb[16].mxu1 %v9142_v25 }
 0x12f   : > { %7362 = vmatpush3.bf16.msra.mxu0 %v8295_v12  ;;  %7402 = vmatpush3.bf16.msra.mxu1 %v8296_v33  ;;  %v8355_v12 = vld [vmem:[#allocation5 + $0x338] sm:$0xff]  }
 0x130   : > { %1875 = vmatprep.mubr.bf16.mxu0 %v9162_v41  ;;  %2069 = vmatprep.mubr.bf16.mxu1 %v9162_v41  ;;  %v8356_v33 = vld [vmem:[#allocation5 + $0x3b8] sm:$0xff]  }
 0x131   : > { %7363 = vmatprep.subr.bf16.mxu0 %v8297_v34  ;;  %7403 = vmatprep.subr.bf16.mxu1 %v8298_v56  ;;  %v8610_v34 = vld [vmem:[#allocation2 + $0x8] sm:$0xff]  ;;  %v8611_v56 = vld [vmem:[#allocation2] sm:$0xff] }
 0x133   : > { %7364 = vmatpush3.bf16.msra.mxu0 %v8299_v5  ;;  %7404 = vmatpush3.bf16.msra.mxu1 %v8300_v35  ;;  %v8612_v5 = vld [vmem:[#allocation2 + $0x18] sm:$0xff]  ;;  %v8613_v35 = vld [vmem:[#allocation2 + $0x10] sm:$0xff] }
 0x134   : > { %7365 = vmatprep.subr.bf16.mxu0 %v8301_v36  ;;  %7405 = vmatprep.subr.bf16.mxu1 %v8302_v37  ;;  %v8357_v36 = vld [vmem:[#allocation7 + $0x40] sm:$0xff]  }
 0x135   : > { %v8358_v37 = vld [vmem:[#allocation7] sm:$0xff]  }
 0x136   : > { %1876 = vmatmul.mubr.bf16.gmra.mrb[20].mxu0 %v9174_v4  ;;  %2070 = vmatmul.mubr.bf16.gmra.mrb[20].mxu1 %v9174_v4 }
 0x137   : > { %7366 = vmatpush3.bf16.msra.mxu0 %v8303_v38  ;;  %7406 = vmatpush3.bf16.msra.mxu1 %v8304_v39  ;;  %v8359_v38 = vld [vmem:[#allocation7 + $0x48] sm:$0xff]  }
 0x138   : > { %1883 = vmatprep.mubr.bf16.mxu0 %v9186_v28  ;;  %2077 = vmatprep.mubr.bf16.mxu1 %v9186_v28  ;;  %v8360_v39 = vld [vmem:[#allocation7 + $0x8] sm:$0xff]  }
 0x139   : > { %7367 = vmatprep.subr.bf16.mxu0 %v8305_v40  ;;  %7407 = vmatprep.subr.bf16.mxu1 %v8306_v42  ;;  %v8361_v40 = vld [vmem:[#allocation7 + $0xc0] sm:$0xff]   ;;  %v8364_v42 = vld [vmem:[#allocation7 + $0x10] sm:$0xff]  }
 0x13b   : > { %7368 = vmatpush3.bf16.msra.mxu0 %v8307_v45  ;;  %7408 = vmatpush3.bf16.msra.mxu1 %v8308_v46  ;;  %v8366_v45 = vld [vmem:[#allocation7 + $0x88] sm:$0xff]   ;;  %v8368_v46 = vld [vmem:[#allocation7 + $0x18] sm:$0xff]  }
 0x13c   : > { %7369 = vmatprep.subr.bf16.mxu0 %v8309_v47  ;;  %7409 = vmatprep.subr.bf16.mxu1 %v8310_v48 }
 0x13e   : > { %1884 = vmatmul.mubr.bf16.gmra.mrb[24].mxu0 %v9196_v44  ;;  %2078 = vmatmul.mubr.bf16.gmra.mrb[24].mxu1 %v9196_v44 }
 0x13f   : > { %7370 = vmatpush3.bf16.msra.mxu0 %v8311_v49  ;;  %7410 = vmatpush3.bf16.msra.mxu1 %v8312_v50  ;;  %v8369_v49 = vld [vmem:[#allocation7 + $0xd0] sm:$0xff]  }
 0x140   : > { %1891 = vmatprep.mubr.bf16.mxu0 %v9200_v31  ;;  %2085 = vmatprep.mubr.bf16.mxu1 %v9200_v31 }
 0x141   : > { %7371 = vmatprep.subr.bf16.mxu0 %v8313_v51  ;;  %7411 = vmatprep.subr.bf16.mxu1 %v8314_v58  ;;  %v8370_v58 = vld [vmem:[#allocation7 + $0x90] sm:$0xff]  }
 0x143   : > { %7372 = vmatpush3.bf16.msra.mxu0 %v8315_v59  ;;  %7412 = vmatpush3.bf16.msra.mxu1 %v8316_v60 }
 0x144   : > { %7373 = vmatprep.subr.bf16.mxu0 %v8317_v61  ;;  %7413 = vmatprep.subr.bf16.mxu1 %v8318_v62 }
 0x146   : > { %1892 = vmatmul.mubr.bf16.gmra.mrb[28].mxu0 %v9204_v20  ;;  %2086 = vmatmul.mubr.bf16.gmra.mrb[28].mxu1 %v9204_v20 }
 0x147   : > { %7374 = vmatpush3.bf16.msra.mxu0 %v8319_v63  ;;  %7414 = vmatpush3.bf16.msra.mxu1 %v8320_v0  ;;  %v8371_v63 = vld [vmem:[#allocation7 + $0x60] sm:$0xff]  }
 0x148   : > { %2305 = vmatprep.mubr.bf16.mxu0 %v9130_v43  ;;  %2499 = vmatprep.mubr.bf16.mxu1 %v9130_v43  ;;  %v8335_v43 = vld [vmem:[#allocation5 + $0x310] sm:$0xff]  }
 0x149   : > { %7375 = vmatprep.subr.bf16.mxu0 %v8321_v1  ;;  %7415 = vmatprep.subr.bf16.mxu1 %v8322_v2  ;;  %v8372_v2 = vld [vmem:[#allocation7 + $0x20] sm:$0xff]  }
 0x14b   : > { %7376 = vmatpush3.bf16.msra.mxu0 %v8323_v3  ;;  %7416 = vmatpush3.bf16.msra.mxu1 %v8324_v52 }
 0x14c   : > { %7441 = vmatprep.subr.bf16.mxu0 %v8325_v53  ;;  %7481 = vmatprep.subr.bf16.mxu1 %v8326_v6  ;;  %v8373_v6 = vld [vmem:[#allocation7 + $0xd8] sm:$0xff]  }
 0x14e   : > { %2306 = vmatmul.mubr.bf16.vlgmr.msra.gmra.mrb[32].mxu0 %v9142_v25  ;;  %2500 = vmatmul.mubr.bf16.vlgmr.msra.gmra.mrb[32].mxu1 %v9142_v25  ;;  %v8340_v25 = vld [vmem:[#allocation5 + $0x398] sm:$0xff]  }
 0x14f   : > { %7442 = vmatpush3.bf16.msra.mxu0 %v8327_v7  ;;  %7482 = vmatpush3.bf16.msra.mxu1 %v8328_v8  ;;  %v8374_v7 = vld [vmem:[#allocation7 + $0x98] sm:$0xff]  }
 0x150   : > { %2313 = vmatprep.mubr.bf16.mxu0 %v9162_v41  ;;  %2507 = vmatprep.mubr.bf16.mxu1 %v9162_v41  ;;  %v8343_v41 = vld [vmem:[#allocation5 + $0x320] sm:$0xff]  }
 0x151   : > { %7443 = vmatprep.subr.bf16.mxu0 %v8329_v9  ;;  %7483 = vmatprep.subr.bf16.mxu1 %v8330_v32  ;;  %v8375_v9 = vld [vmem:[#allocation7 + $0x68] sm:$0xff]  }
 0x152   : > { %v8376_v32 = vld [vmem:[#allocation7 + $0x28] sm:$0xff]  }
 0x153   : > { %7444 = vmatpush3.bf16.msra.mxu0 %v8331_v10  ;;  %7484 = vmatpush3.bf16.msra.mxu1 %v8332_v11  ;;  %v8377_v10 = vld [vmem:[#allocation7 + $0xe0] sm:$0xff]  }
 0x154   : > { %7445 = vmatprep.subr.bf16.mxu0 %v8333_v14  ;;  %7485 = vmatprep.subr.bf16.mxu1 %v8334_v54  ;;  %v8378_v11 = vld [vmem:[#allocation7 + $0xa0] sm:$0xff]   ;;  %v8379_v14 = vld [vmem:[#allocation7 + $0x70] sm:$0xff]  }
 0x155   : > { %v8380_v54 = vld [vmem:[#allocation7 + $0x30] sm:$0xff]  }
 0x156   : > { %2314 = vmatmul.mubr.bf16.gmra.mrb[36].mxu0 %v9174_v4  ;;  %2508 = vmatmul.mubr.bf16.gmra.mrb[36].mxu1 %v9174_v4  ;;  %v8348_v4 = vld [vmem:[#allocation5 + $0x3a8] sm:$0xff]  }
 0x157   : > { %7446 = vmatpush3.bf16.msra.mxu0 %v8335_v43  ;;  %7486 = vmatpush3.bf16.msra.mxu1 %v8336_v15  ;;  %v8381_v43 = vld [vmem:[#allocation7 + $0xe8] sm:$0xff]  }
 0x158   : > { %2321 = vmatprep.mubr.bf16.mxu0 %v9186_v28  ;;  %2515 = vmatprep.mubr.bf16.mxu1 %v9186_v28  ;;  %v8382_v15 = vld [vmem:[#allocation7 + $0xa8] sm:$0xff]  }
 0x159   : > { %7447 = vmatprep.subr.bf16.mxu0 %v8337_v16  ;;  %7487 = vmatprep.subr.bf16.mxu1 %v8338_v17  ;;  %v8383_v16 = vld [vmem:[#allocation7 + $0x78] sm:$0xff]  }
 0x15a   : > { %v8384_v17 = vld [vmem:[#allocation7 + $0x38] sm:$0xff]  }
 0x15b   : > { %7448 = vmatpush3.bf16.msra.mxu0 %v8339_v18  ;;  %7488 = vmatpush3.bf16.msra.mxu1 %v8340_v25  ;;  %v8385_v18 = vld [vmem:[#allocation7 + $0xf0] sm:$0xff]  }
 0x15c   : > { %7449 = vmatprep.subr.bf16.mxu0 %v8341_v19  ;;  %7489 = vmatprep.subr.bf16.mxu1 %v8342_v21  ;;  %v8386_v25 = vld [vmem:[#allocation7 + $0xb0] sm:$0xff]   ;;  %v8387_v19 = vld [vmem:[#allocation7 + $0x140] sm:$0xff]   ;;  %v8388_v21 = vld [vmem:[#allocation7 + $0xf8] sm:$0xff]  }
 0x15e   : > { %2322 = vmatmul.mubr.bf16.gmra.mrb[40].mxu0 %v9196_v44  ;;  %2516 = vmatmul.mubr.bf16.gmra.mrb[40].mxu1 %v9196_v44 }
 0x15f   : > { %7450 = vmatpush3.bf16.msra.mxu0 %v8343_v41  ;;  %7490 = vmatpush3.bf16.msra.mxu1 %v8344_v57  ;;  %v8390_v41 = vld [vmem:[#allocation7 + $0xb8] sm:$0xff]  }
 0x160   : > { %2329 = vmatprep.mubr.bf16.mxu0 %v9200_v31  ;;  %2523 = vmatprep.mubr.bf16.mxu1 %v9200_v31 }
 0x161   : > { %7451 = vmatprep.subr.bf16.mxu0 %v8345_v13  ;;  %7491 = vmatprep.subr.bf16.mxu1 %v8346_v22  ;;  %v8393_v22 = vld [vmem:[#allocation7 + $0x1c0] sm:$0xff]  }
 0x163   : > { %7452 = vmatpush3.bf16.msra.mxu0 %v8347_v23  ;;  %7492 = vmatpush3.bf16.msra.mxu1 %v8348_v4 }
 0x164   : > { %7453 = vmatprep.subr.bf16.mxu0 %v8349_v24  ;;  %7493 = vmatprep.subr.bf16.mxu1 %v8350_v26 }
 0x166   : > { %2330 = vmatmul.mubr.bf16.gmra.mrb[44].mxu0 %v9204_v20  ;;  %2524 = vmatmul.mubr.bf16.gmra.mrb[44].mxu1 %v9204_v20 }
 0x167   : > { %7454 = vmatpush3.bf16.msra.mxu0 %v8351_v27  ;;  %7494 = vmatpush3.bf16.msra.mxu1 %v8352_v55 }
 0x168   : > { %2693 = vmatprep.mubr.bf16.mxu0 %v8610_v34  ;;  %2887 = vmatprep.mubr.bf16.mxu1 %v8610_v34 }
 0x169   : > { %7455 = vmatprep.subr.bf16.mxu0 %v8353_v29  ;;  %7495 = vmatprep.subr.bf16.mxu1 %v8354_v30 }
 0x16b   : > { %7456 = vmatpush3.bf16.msra.mxu0 %v8355_v12  ;;  %7496 = vmatpush3.bf16.msra.mxu1 %v8356_v33 }
 0x16c   : > { %7521 = vmatprep.subr.bf16.mxu0 %v8357_v36  ;;  %7561 = vmatprep.subr.bf16.mxu1 %v8361_v40 }
 0x16e   : > { %2694 = vmatmul.mubr.bf16.vlgmr.msra.gmra.mrb[48].mxu0 %v8611_v56  ;;  %2888 = vmatmul.mubr.bf16.vlgmr.msra.gmra.mrb[48].mxu1 %v8611_v56 }
 0x16f   : > { %2701 = vmatprep.mubr.bf16.mxu0 %v8612_v5  ;;  %2895 = vmatprep.mubr.bf16.mxu1 %v8612_v5 }
 0x170   : > { %7522 = vmatpush3.bf16.msra.mxu0 %v8358_v37 }
 0x171   : > { %7523 = vmatprep.subr.bf16.mxu0 %v8359_v38 }
 0x174   : > { %7524 = vmatpush3.bf16.msra.mxu0 %v8360_v39 }
 0x176   : > { %2702 = vmatmul.mubr.bf16.gmra.mrb[52].mxu0 %v8613_v35  ;;  %2896 = vmatmul.mubr.bf16.gmra.mrb[52].mxu1 %v8613_v35 }
 0x177   : > { %2709 = vmatprep.mubr.bf16.mxu0 %v9186_v28  ;;  %2903 = vmatprep.mubr.bf16.mxu1 %v9186_v28  ;;  %v8362_v28 = vld [vmem:[#allocation7 + $0x80] sm:$0xff]  }
 0x178   : > { %7562 = vmatpush3.bf16.msra.mxu1 %v8362_v28 }
 0x17e   : > { %2710 = vmatmul.mubr.bf16.gmra.mrb[56].mxu0 %v9196_v44  ;;  %2904 = vmatmul.mubr.bf16.gmra.mrb[56].mxu1 %v9196_v44  ;;  %v8363_v44 = vld [vmem:[#allocation7 + $0x50] sm:$0xff]  }
 0x17f   : > { %2717 = vmatprep.mubr.bf16.mxu0 %v9200_v31  ;;  %2911 = vmatprep.mubr.bf16.mxu1 %v9200_v31  ;;  %v8365_v31 = vld [vmem:[#allocation7 + $0xc8] sm:$0xff]  }
 0x180   : > { %7525 = vmatprep.subr.bf16.mxu0 %v8363_v44  ;;  %7563 = vmatprep.subr.bf16.mxu1 %v8365_v31 }
 0x181   : > { %7526 = vmatpush3.bf16.msra.mxu0 %v8364_v42  ;;  %7564 = vmatpush3.bf16.msra.mxu1 %v8366_v45 }
 0x182   : > { %7565 = vmatprep.subr.bf16.mxu1 %v8369_v49 }
 0x185   : > { %7566 = vmatpush3.bf16.msra.mxu1 %v8370_v58 }
 0x186   : > { %2718 = vmatmul.mubr.bf16.gmra.mrb[60].mxu0 %v9204_v20  ;;  %2912 = vmatmul.mubr.bf16.gmra.mrb[60].mxu1 %v9204_v20  ;;  %v8367_v20 = vld [vmem:[#allocation7 + $0x58] sm:$0xff]  }
 0x187   : > { %7527 = vmatprep.subr.bf16.mxu0 %v8367_v20  ;;  %7567 = vmatprep.subr.bf16.mxu1 %v8373_v6 }
 0x188   : > { %7528 = vmatpush3.bf16.msra.mxu0 %v8368_v46 }
 0x189   : > { %7529 = vmatprep.subr.bf16.mxu0 %v8371_v63  ;;  %7568 = vmatpush3.bf16.msra.mxu1 %v8374_v7 }
 0x18a   : > { %7569 = vmatprep.subr.bf16.mxu1 %v8377_v10 }
 0x18c   : > { %7530 = vmatpush3.bf16.msra.mxu0 %v8372_v2 }
 0x18d   : > { %7531 = vmatprep.subr.bf16.mxu0 %v8375_v9  ;;  %7570 = vmatpush3.bf16.msra.mxu1 %v8378_v11 }
 0x18e   : > { %7571 = vmatprep.subr.bf16.mxu1 %v8381_v43 }
 0x190   : > { %7532 = vmatpush3.bf16.msra.mxu0 %v8376_v32 }
 0x191   : > { %7533 = vmatprep.subr.bf16.mxu0 %v8379_v14  ;;  %7572 = vmatpush3.bf16.msra.mxu1 %v8382_v15 }
 0x192   : > { %7573 = vmatprep.subr.bf16.mxu1 %v8385_v18 }
 0x194   : > { %7534 = vmatpush3.bf16.msra.mxu0 %v8380_v54 }
 0x195   : > { %7535 = vmatprep.subr.bf16.mxu0 %v8383_v16  ;;  %7574 = vmatpush3.bf16.msra.mxu1 %v8386_v25 }
 0x196   : > { %7575 = vmatprep.subr.bf16.mxu1 %v8388_v21  ;;  %v9299_v21 = vld [vmem:[%s10154_s2] ss:$0 sm:$0xff] }
 0x198   : > { %7536 = vmatpush3.bf16.msra.mxu0 %v8384_v17 }
 0x199   : > { %7601 = vmatprep.subr.bf16.mxu0 %v8387_v19  ;;  %7576 = vmatpush3.bf16.msra.mxu1 %v8390_v41 }
 0x19a   : > { %7641 = vmatprep.subr.bf16.mxu1 %v8393_v22 }
 0x1c9   : > { %v7217_v47 = vpop.f32.mrb[0].mxu0  ;;  %v7257_v48 = vpop.f32.mrb[0].mxu1 }
 0x1ca   : > { %v7218_v50 = vpop.f32.mrb[1].mxu0  ;;  %v7258_v51 = vpop.f32.mrb[1].mxu1 }
 0x1cb   : > { %v9248_v59 = vadd.f32 %v7218_v50, %v7217_v47  ;;  %v9250_v60 = vadd.f32 %v7258_v51, %v7257_v48  ;;  %v7220_v61 = vpop.f32.mrb[2].mxu0  ;;  %v7260_v62 = vpop.f32.mrb[2].mxu1 }
 0x1cc   : > { %v7221_v0 = vpop.f32.mrb[3].mxu0  ;;  %v7261_v1 = vpop.f32.mrb[3].mxu1 }
 0x1cd   : > { %v2094_v3 = vmax.f32 %v9248_v59, %v9250_v60  ;;  %v9254_v52 = vadd.f32 %v7221_v0, %v7220_v61  ;;  %v9256_v53 = vadd.f32 %v7261_v1, %v7260_v62 }
 0x1cf   : > { %v2095_v8 = vmax.f32 %v9254_v52, %v9256_v53 }
 0x1e1   : > { %v7223_v57 = vpop.f32.mrb[4].mxu0  ;;  %v7263_v13 = vpop.f32.mrb[4].mxu1 }
 0x1e2   : > { %v7224_v23 = vpop.f32.mrb[5].mxu0  ;;  %v7264_v4 = vpop.f32.mrb[5].mxu1 }
 0x1e3   : > { %v9260_v24 = vadd.f32 %v7224_v23, %v7223_v57  ;;  %v9262_v26 = vadd.f32 %v7264_v4, %v7263_v13  ;;  %v7226_v27 = vpop.f32.mrb[6].mxu0  ;;  %v7266_v55 = vpop.f32.mrb[6].mxu1 }
 0x1e4   : > { %v7227_v29 = vpop.f32.mrb[7].mxu0  ;;  %v7267_v30 = vpop.f32.mrb[7].mxu1 }
 0x1e5   : > { %v2096_v12 = vmax.f32 %v9260_v24, %v9262_v26  ;;  %v9266_v33 = vadd.f32 %v7227_v29, %v7226_v27  ;;  %v9268_v34 = vadd.f32 %v7267_v30, %v7266_v55 }
 0x1e7   : > { %v2097_v56 = vmax.f32 %v9266_v33, %v9268_v34 }
 0x1f1   : > { %v7229_v5 = vpop.f32.mrb[8].mxu0  ;;  %v7269_v35 = vpop.f32.mrb[8].mxu1 }
 0x1f2   : > { %v7230_v36 = vpop.f32.mrb[9].mxu0  ;;  %v7270_v37 = vpop.f32.mrb[9].mxu1 }
 0x1f3   : > { %v9272_v38 = vadd.f32 %v7230_v36, %v7229_v5  ;;  %v9274_v39 = vadd.f32 %v7270_v37, %v7269_v35  ;;  %v7232_v40 = vpop.f32.mrb[10].mxu0  ;;  %v7272_v28 = vpop.f32.mrb[10].mxu1 }
 0x1f4   : > { %v7233_v44 = vpop.f32.mrb[11].mxu0  ;;  %v7273_v42 = vpop.f32.mrb[11].mxu1 }
 0x1f5   : > { %v2098_v31 = vmax.f32 %v9272_v38, %v9274_v39  ;;  %v9278_v45 = vadd.f32 %v7233_v44, %v7232_v40  ;;  %v9280_v20 = vadd.f32 %v7273_v42, %v7272_v28  ;;  %v2991_v28 = vld [vmem:[#allocation3] sm:$0x7] }
 0x1f6   : > { %v8414_v40 = vld [vmem:[#allocation7 + $0x1a8] sm:$0xff]  }
 0x1f7   : > { %v2099_v46 = vmax.f32 %v9278_v45, %v9280_v20 }
 0x1f9   : > { %v7235_v47 = vpop.f32.mrb[12].mxu0  ;;  %v7275_v48 = vpop.f32.mrb[12].mxu1 }
 0x1fa   : > { %v7236_v49 = vpop.f32.mrb[13].mxu0  ;;  %v7276_v50 = vpop.f32.mrb[13].mxu1 }
 0x1fb   : > { %v9284_v51 = vadd.f32 %v7236_v49, %v7235_v47  ;;  %v9286_v58 = vadd.f32 %v7276_v50, %v7275_v48  ;;  %v7238_v61 = vpop.f32.mrb[14].mxu0  ;;  %v7278_v62 = vpop.f32.mrb[14].mxu1  ;;  %v3034_v47 = vld [vmem:[#allocation3] sm:$0x70]  ;;  %v3022_v50 = vld [vmem:[#allocation3 + $0x20] sm:$0x7] }
 0x1fc   : > { %v7239_v63 = vpop.f32.mrb[15].mxu0  ;;  %v7279_v0 = vpop.f32.mrb[15].mxu1 }
 0x1fd   : > { %v2100_v1 = vmax.f32 %v9284_v51, %v9286_v58  ;;  %v9290_v2 = vadd.f32 %v7239_v63, %v7238_v61  ;;  %v9292_v6 = vadd.f32 %v7279_v0, %v7278_v62  ;;  %v3046_v61 = vld [vmem:[#allocation3 + $0x20] sm:$0x70] }
 0x1ff   : > { %v2101_v7 = vmax.f32 %v9290_v2, %v9292_v6 }
 0x201   : > { %v7297_v9 = vpop.f32.mrb[16].mxu0  ;;  %v7337_v32 = vpop.f32.mrb[16].mxu1 }
 0x202   : > { %v7298_v10 = vpop.f32.mrb[17].mxu0  ;;  %v7338_v11 = vpop.f32.mrb[17].mxu1 }
 0x203   : > { %v7299_v14 = vadd.f32 %v7298_v10, %v7297_v9  ;;  %v7339_v54 = vadd.f32 %v7338_v11, %v7337_v32  ;;  %v7300_v43 = vpop.f32.mrb[18].mxu0  ;;  %v7340_v15 = vpop.f32.mrb[18].mxu1 }
 0x204   : > { %v7301_v16 = vpop.f32.mrb[19].mxu0  ;;  %v7341_v17 = vpop.f32.mrb[19].mxu1 }
 0x205   : > { %v2102_v18 = vmax.f32 %v7299_v14, %v7339_v54  ;;  %v7302_v25 = vadd.f32 %v7301_v16, %v7300_v43  ;;  %v7342_v19 = vadd.f32 %v7341_v17, %v7340_v15 }
 0x207   : > { %v2110_v41 = vmax.f32 %v2094_v3, %v2102_v18  ;;  %v2103_v57 = vmax.f32 %v7302_v25, %v7342_v19  ;;  %v3005_v25 = vld [vmem:[#allocation3 + $0x10] sm:$0x7]  ;;  %v3040_v19 = vld [vmem:[#allocation3 + $0x10] sm:$0x70] }
 0x209   : > { %v2124_v13 = vadd.f32 %v9299_v21, %v2110_v41  ;;  %v2111_v22 = vmax.f32 %v2095_v8, %v2103_v57  ;;  %v7303_v23 = vpop.f32.mrb[20].mxu0  ;;  %v7343_v4 = vpop.f32.mrb[20].mxu1 }
 0x20a   : > { %v7304_v27 = vpop.f32.mrb[21].mxu0  ;;  %v7344_v55 = vpop.f32.mrb[21].mxu1 }
 0x20b   : > { %v2125_v29 = vadd.f32 %v9299_v21, %v2111_v22  ;;  %v7305_v30 = vadd.f32 %v7304_v27, %v7303_v23  ;;  %v7345_v5 = vadd.f32 %v7344_v55, %v7343_v4  ;;  %v7306_v35 = vpop.f32.mrb[22].mxu0  ;;  %v7346_v59 = vpop.f32.mrb[22].mxu1  ;;  %v2132_v60 = vmax.f32 %v2124_v13, 0.0 }
 0x20c   : > { %v7307_v3 = vpop.f32.mrb[23].mxu0  ;;  %v7347_v36 = vpop.f32.mrb[23].mxu1 }
 0x20d   : > { %v2133_v37 = vmax.f32 %v2125_v29, 0.0  ;;  %v2104_v52 = vmax.f32 %v7305_v30, %v7345_v5  ;;  %v7308_v53 = vadd.f32 %v7307_v3, %v7306_v35  ;;  %v7348_v8 = vadd.f32 %v7347_v36, %v7346_v59  ;;  %v3052_v30 = vld [vmem:[#allocation3 + $0x30] sm:$0x7]  ;;  %v3092_v59 = vld [vmem:[#allocation3 + $0x30] sm:$0x70] }
 0x20e   : > { %v3083_v3 = vld [vmem:[#allocation3 + $0x50] sm:$0x7]  ;;  %v3104_v36 = vld [vmem:[#allocation3 + $0x50] sm:$0x70] }
 0x20f   : > { %v2140_v44 = vpack.c.bf16 %v2133_v37, %v2132_v60  ;;  %v2112_v48 = vmax.f32 %v2096_v12, %v2104_v52  ;;  %v2105_v49 = vmax.f32 %v7308_v53, %v7348_v8 }
 0x211   : > { %v2992_v62 = vsel %vm9311_vm7, %v2140_v44, %v2991_v28  ;;  %v3000_v63 = vshll.u32 %v2140_v44, 16  ;;  %v3020_v0 = vrot.slane %v2140_v44, 1  ;;  %v7309_v9 = vpop.f32.mrb[24].mxu0  ;;  %v7349_v32 = vpop.f32.mrb[24].mxu1  ;;  %v2998_v10 = vshrl.u32 %v2140_v44, 16 }
 0x212   : > { %2993 = vst [vmem:[#allocation3] sm:$0x7] %v2992_v62  ;;  %v3035_v11 = vsel %vm9315_vm8, %v2140_v44, %v3034_v47  ;;  %v2126_v14 = vadd.f32 %v9299_v21, %v2112_v48  ;;  %v2113_v24 = vmax.f32 %v2097_v56, %v2105_v49  ;;  %v7310_v26 = vpop.f32.mrb[25].mxu0  ;;  %v7350_v12 = vpop.f32.mrb[25].mxu1 }
 0x213   : > { %v3002_v54 = vrot.slane %v3000_v63, 1  ;;  %v3023_v43 = vsel %vm9311_vm7, %v3020_v0, %v3022_v50  ;;  %3036 = vst [vmem:[#allocation3] sm:$0x70] %v3035_v11  ;;  %v3047_v15 = vsel %vm9315_vm8, %v3020_v0, %v3046_v61  ;;  %v7311_v16 = vadd.f32 %v7310_v26, %v7309_v9  ;;  %v7312_v17 = vpop.f32.mrb[26].mxu0  ;;  %v7352_v18 = vpop.f32.mrb[26].mxu1 }
 0x214   : > { %3024 = vst [vmem:[#allocation3 + $0x20] sm:$0x7] %v3023_v43  ;;  %3048 = vst [vmem:[#allocation3 + $0x20] sm:$0x70] %v3047_v15  ;;  %v2127_v33 = vadd.f32 %v9299_v21, %v2113_v24  ;;  %v7351_v34 = vadd.f32 %v7350_v12, %v7349_v32  ;;  %v7313_v56 = vpop.f32.mrb[27].mxu0  ;;  %v7353_v41 = vpop.f32.mrb[27].mxu1 }
 0x215   : > { %v3003_v57 = vor.u32 %v3002_v54, %v2998_v10  ;;  %v7314_v13 = vadd.f32 %v7313_v56, %v7312_v17  ;;  %v7354_v22 = vadd.f32 %v7353_v41, %v7352_v18  ;;  %v2134_v23 = vmax.f32 %v2126_v14, 0.0  ;;  %v3066_v32 = vld [vmem:[#allocation3 + $0x40] sm:$0x7]  ;;  %v3098_v10 = vld [vmem:[#allocation3 + $0x40] sm:$0x70] }
 0x216   : > { %v2135_v4 = vmax.f32 %v2127_v33, 0.0  ;;  %v2106_v27 = vmax.f32 %v7311_v16, %v7351_v34  ;;  %v3110_v54 = vld [vmem:[#allocation3 + $0x60] sm:$0x7]  ;;  %v3150_v16 = vld [vmem:[#allocation3 + $0x60] sm:$0x70] }
 0x217   : > { %v3006_v55 = vsel %vm9311_vm7, %v3003_v57, %v3005_v25  ;;  %v3041_v29 = vsel %vm9315_vm8, %v3003_v57, %v3040_v19  ;;  %v2107_v5 = vmax.f32 %v7314_v13, %v7354_v22  ;;  %v3141_v19 = vld [vmem:[#allocation3 + $0x80] sm:$0x7]  ;;  %v3162_v33 = vld [vmem:[#allocation3 + $0x80] sm:$0x70] }
 0x218   : > { %3007 = vst [vmem:[#allocation3 + $0x10] sm:$0x7] %v3006_v55  ;;  %3042 = vst [vmem:[#allocation3 + $0x10] sm:$0x70] %v3041_v29  ;;  %v2141_v35 = vpack.c.bf16 %v2135_v4, %v2134_v23  ;;  %v2114_v60 = vmax.f32 %v2098_v31, %v2106_v27 }
 0x219   : > { %v2115_v37 = vmax.f32 %v2099_v46, %v2107_v5  ;;  %v7315_v52 = vpop.f32.mrb[28].mxu0  ;;  %v7355_v53 = vpop.f32.mrb[28].mxu1 }
 0x21a   : > { %v3053_v8 = vsel %vm9311_vm7, %v2141_v35, %v3052_v30  ;;  %v3059_v28 = vshrl.u32 %v2141_v35, 16  ;;  %v3061_v44 = vshll.u32 %v2141_v35, 16  ;;  %v3081_v47 = vrot.slane %v2141_v35, 1  ;;  %v7316_v48 = vpop.f32.mrb[29].mxu0  ;;  %v7356_v49 = vpop.f32.mrb[29].mxu1 }
 0x21b   : > { %3054 = vst [vmem:[#allocation3 + $0x30] sm:$0x7] %v3053_v8  ;;  %v3093_v38 = vsel %vm9315_vm8, %v2141_v35, %v3092_v59  ;;  %v2128_v39 = vadd.f32 %v9299_v21, %v2114_v60  ;;  %v2129_v31 = vadd.f32 %v9299_v21, %v2115_v37  ;;  %v7317_v45 = vadd.f32 %v7316_v48, %v7315_v52  ;;  %v7318_v20 = vpop.f32.mrb[30].mxu0  ;;  %v7358_v46 = vpop.f32.mrb[30].mxu1  ;;  %v3124_v60 = vld [vmem:[#allocation3 + $0x70] sm:$0x7] }
 0x21c   : > { %v3063_v50 = vrot.slane %v3061_v44, 1  ;;  %v3084_v61 = vsel %vm9311_vm7, %v3081_v47, %v3083_v3  ;;  %3094 = vst [vmem:[#allocation3 + $0x30] sm:$0x70] %v3093_v38  ;;  %v3105_v62 = vsel %vm9315_vm8, %v3081_v47, %v3104_v36  ;;  %v7357_v63 = vadd.f32 %v7356_v49, %v7355_v53  ;;  %v7319_v0 = vpop.f32.mrb[31].mxu0  ;;  %v7359_v9 = vpop.f32.mrb[31].mxu1 }
 0x21d   : > { %3085 = vst [vmem:[#allocation3 + $0x50] sm:$0x7] %v3084_v61  ;;  %3106 = vst [vmem:[#allocation3 + $0x50] sm:$0x70] %v3105_v62  ;;  %v2136_v11 = vmax.f32 %v2128_v39, 0.0  ;;  %v2137_v14 = vmax.f32 %v2129_v31, 0.0  ;;  %v7320_v24 = vadd.f32 %v7319_v0, %v7318_v20  ;;  %v7360_v26 = vadd.f32 %v7359_v9, %v7358_v46 }
 0x21e   : > { %v3064_v12 = vor.u32 %v3063_v50, %v3059_v28  ;;  %v2108_v43 = vmax.f32 %v7317_v45, %v7357_v63  ;;  %v3156_v3 = vld [vmem:[#allocation3 + $0x70] sm:$0x70]  ;;  %v3168_v49 = vld [vmem:[#allocation3 + $0x90] sm:$0x7] }
 0x21f   : > { %v2142_v15 = vpack.c.bf16 %v2137_v14, %v2136_v11  ;;  %v2109_v17 = vmax.f32 %v7320_v24, %v7360_v26  ;;  %v3208_v31 = vld [vmem:[#allocation3 + $0x90] sm:$0x70]  ;;  %v3199_v45 = vld [vmem:[#allocation3 + $0xb0] sm:$0x7] }
 0x220   : > { %v3067_v18 = vsel %vm9311_vm7, %v3064_v12, %v3066_v32  ;;  %v3099_v25 = vsel %vm9315_vm8, %v3064_v12, %v3098_v10  ;;  %v2116_v34 = vmax.f32 %v2100_v1, %v2108_v43  ;;  %v3220_v20 = vld [vmem:[#allocation3 + $0xb0] sm:$0x70] }
 0x221   : > { %3068 = vst [vmem:[#allocation3 + $0x40] sm:$0x7] %v3067_v18  ;;  %3100 = vst [vmem:[#allocation3 + $0x40] sm:$0x70] %v3099_v25  ;;  %v3111_v56 = vsel %vm9311_vm7, %v2142_v15, %v3110_v54  ;;  %v3119_v41 = vshll.u32 %v2142_v15, 16  ;;  %v3139_v57 = vrot.slane %v2142_v15, 1  ;;  %v3151_v4 = vsel %vm9315_vm8, %v2142_v15, %v3150_v16 }
 0x222   : > { %v7377_v13 = vpop.f32.mrb[32].mxu0  ;;  %v7417_v22 = vpop.f32.mrb[32].mxu1  ;;  %3112 = vst [vmem:[#allocation3 + $0x60] sm:$0x7] %v3111_v56  ;;  %v3117_v23 = vshrl.u32 %v2142_v15, 16  ;;  %v2130_v27 = vadd.f32 %v9299_v21, %v2116_v34  ;;  %v2117_v51 = vmax.f32 %v2101_v7, %v2109_v17 }
 0x223   : > { %v7378_v58 = vpop.f32.mrb[33].mxu0  ;;  %v7418_v1 = vpop.f32.mrb[33].mxu1  ;;  %v3121_v55 = vrot.slane %v3119_v41, 1  ;;  %v3142_v29 = vsel %vm9311_vm7, %v3139_v57, %v3141_v19  ;;  %3152 = vst [vmem:[#allocation3 + $0x60] sm:$0x70] %v3151_v4  ;;  %v3163_v30 = vsel %vm9315_vm8, %v3139_v57, %v3162_v33 }
 0x224   : > { %v9374_v5 = vadd.f32 %v7378_v58, %v7377_v13  ;;  %v7380_v35 = vpop.f32.mrb[34].mxu0  ;;  %v7420_v59 = vpop.f32.mrb[34].mxu1  ;;  %3143 = vst [vmem:[#allocation3 + $0x80] sm:$0x7] %v3142_v29  ;;  %3164 = vst [vmem:[#allocation3 + $0x80] sm:$0x70] %v3163_v30  ;;  %v2131_v2 = vadd.f32 %v9299_v21, %v2117_v51  ;;  %v9377_v6 = vadd.f32 %v7418_v1, %v7417_v22 }
 0x225   : > { %v7381_v7 = vpop.f32.mrb[35].mxu0  ;;  %v7421_v36 = vpop.f32.mrb[35].mxu1  ;;  %v3122_v37 = vor.u32 %v3121_v55, %v3117_v23  ;;  %v2138_v8 = vmax.f32 %v2130_v27, 0.0  ;;  %v3182_v17 = vld [vmem:[#allocation3 + $0xa0] sm:$0x7] }
 0x226   : > { %v9379_v52 = vadd.f32 %v7381_v7, %v7380_v35  ;;  %v9381_v53 = vadd.f32 %v7421_v36, %v7420_v59  ;;  %v2139_v28 = vmax.f32 %v2131_v2, 0.0  ;;  %v2920_v44 = vmax.f32 %v9374_v5, %v9377_v6  ;;  %v3214_v18 = vld [vmem:[#allocation3 + $0xa0] sm:$0x70] }
 0x227   : > { %v3125_v47 = vsel %vm9311_vm7, %v3122_v37, %v3124_v60  ;;  %v3157_v48 = vsel %vm9315_vm8, %v3122_v37, %v3156_v3 }
 0x228   : > { %v2921_v38 = vmax.f32 %v9379_v52, %v9381_v53  ;;  %3126 = vst [vmem:[#allocation3 + $0x70] sm:$0x7] %v3125_v47  ;;  %3158 = vst [vmem:[#allocation3 + $0x70] sm:$0x70] %v3157_v48  ;;  %v2143_v39 = vpack.c.bf16 %v2139_v28, %v2138_v8  ;;  %v3037_v53 = vld [vmem:[#allocation3 + $0x8] sm:$0x70] }
 0x229   : > { %v7383_v46 = vpop.f32.mrb[36].mxu0  ;;  %v7423_v50 = vpop.f32.mrb[36].mxu1 }
 0x22a   : > { %v3169_v61 = vsel %vm9311_vm7, %v2143_v39, %v3168_v49  ;;  %v3177_v62 = vshll.u32 %v2143_v39, 16  ;;  %v3197_v63 = vrot.slane %v2143_v39, 1  ;;  %v7384_v0 = vpop.f32.mrb[37].mxu0  ;;  %v7424_v9 = vpop.f32.mrb[37].mxu1  ;;  %v3209_v32 = vsel %vm9315_vm8, %v2143_v39, %v3208_v31 }
 0x22b   : > { %3170 = vst [vmem:[#allocation3 + $0x90] sm:$0x7] %v3169_v61  ;;  %v9395_v10 = vadd.f32 %v7384_v0, %v7383_v46  ;;  %v9397_v11 = vadd.f32 %v7424_v9, %v7423_v50  ;;  %v7386_v14 = vpop.f32.mrb[38].mxu0  ;;  %v7426_v24 = vpop.f32.mrb[38].mxu1  ;;  %v3175_v26 = vshrl.u32 %v2143_v39, 16 }
 0x22c   : > { %v3179_v12 = vrot.slane %v3177_v62, 1  ;;  %v3200_v54 = vsel %vm9311_vm7, %v3197_v63, %v3199_v45  ;;  %3210 = vst [vmem:[#allocation3 + $0x90] sm:$0x70] %v3209_v32  ;;  %v3221_v43 = vsel %vm9315_vm8, %v3197_v63, %v3220_v20  ;;  %v7387_v15 = vpop.f32.mrb[39].mxu0  ;;  %v7427_v16 = vpop.f32.mrb[39].mxu1 }
 0x22d   : > { %3201 = vst [vmem:[#allocation3 + $0xb0] sm:$0x7] %v3200_v54  ;;  %3222 = vst [vmem:[#allocation3 + $0xb0] sm:$0x70] %v3221_v43  ;;  %v2922_v25 = vmax.f32 %v9395_v10, %v9397_v11  ;;  %v9405_v19 = vadd.f32 %v7387_v15, %v7386_v14  ;;  %v9407_v33 = vadd.f32 %v7427_v16, %v7426_v24 }
 0x22e   : > { %v3180_v34 = vor.u32 %v3179_v12, %v3175_v26 }
 0x22f   : > { %v2923_v56 = vmax.f32 %v9405_v19, %v9407_v33 }
 0x230   : > { %v3183_v41 = vsel %vm9311_vm7, %v3180_v34, %v3182_v17  ;;  %v3215_v57 = vsel %vm9315_vm8, %v3180_v34, %v3214_v18 }
 0x231   : > { %3184 = vst [vmem:[#allocation3 + $0xa0] sm:$0x7] %v3183_v41  ;;  %3216 = vst [vmem:[#allocation3 + $0xa0] sm:$0x70] %v3215_v57  ;;  %v7389_v13 = vpop.f32.mrb[40].mxu0  ;;  %v7429_v22 = vpop.f32.mrb[40].mxu1 }
 0x232   : > { %v7390_v23 = vpop.f32.mrb[41].mxu0  ;;  %v7430_v4 = vpop.f32.mrb[41].mxu1 }
 0x233   : > { %v9415_v27 = vadd.f32 %v7390_v23, %v7389_v13  ;;  %v9417_v51 = vadd.f32 %v7430_v4, %v7429_v22  ;;  %v7392_v58 = vpop.f32.mrb[42].mxu0  ;;  %v7432_v1 = vpop.f32.mrb[42].mxu1  ;;  %v9558_v42 = vld [vmem:[#allocation3 + $0x90] sm:$0xff] }
 0x234   : > { %v7393_v55 = vpop.f32.mrb[43].mxu0  ;;  %v7433_v29 = vpop.f32.mrb[43].mxu1 }
 0x235   : > { %v2924_v30 = vmax.f32 %v9415_v27, %v9417_v51  ;;  %v9421_v35 = vadd.f32 %v7393_v55, %v7392_v58  ;;  %v9423_v59 = vadd.f32 %v7433_v29, %v7432_v1 }
 0x237   : > { %v2925_v60 = vmax.f32 %v9421_v35, %v9423_v59 }
 0x239   : > { %v7395_v3 = vpop.f32.mrb[44].mxu0  ;;  %v7435_v2 = vpop.f32.mrb[44].mxu1 }
 0x23a   : > { %v7396_v7 = vpop.f32.mrb[45].mxu0  ;;  %v7436_v36 = vpop.f32.mrb[45].mxu1 }
 0x23b   : > { %v9427_v37 = vadd.f32 %v7396_v7, %v7395_v3  ;;  %v9429_v8 = vadd.f32 %v7436_v36, %v7435_v2  ;;  %v7398_v28 = vpop.f32.mrb[46].mxu0  ;;  %v7438_v47 = vpop.f32.mrb[46].mxu1  ;;  %v2994_v2 = vld [vmem:[#allocation3 + $0x8] sm:$0x7] }
 0x23c   : > { %v7399_v48 = vpop.f32.mrb[47].mxu0  ;;  %v7439_v49 = vpop.f32.mrb[47].mxu1  ;;  %v3028_v36 = vld [vmem:[#allocation3 + $0x28] sm:$0x7] }
 0x23d   : > { %v2926_v39 = vmax.f32 %v9427_v37, %v9429_v8  ;;  %v9433_v31 = vadd.f32 %v7399_v48, %v7398_v28  ;;  %v9435_v45 = vadd.f32 %v7439_v49, %v7438_v47  ;;  %v3049_v28 = vld [vmem:[#allocation3 + $0x28] sm:$0x70] }
 0x23f   : > { %v2927_v20 = vmax.f32 %v9433_v31, %v9435_v45  ;;  %v3135_v31 = vld [vmem:[#allocation3 + $0x78] sm:$0x7]  ;;  %v3159_v45 = vld [vmem:[#allocation3 + $0x78] sm:$0x70] }
 0x241   : > { %v7457_v46 = vpop.f32.mrb[48].mxu0  ;;  %v7497_v50 = vpop.f32.mrb[48].mxu1 }
 0x242   : > { %v7458_v61 = vpop.f32.mrb[49].mxu0  ;;  %v7498_v62 = vpop.f32.mrb[49].mxu1 }
 0x243   : > { %v7459_v63 = vadd.f32 %v7458_v61, %v7457_v46  ;;  %v7499_v0 = vadd.f32 %v7498_v62, %v7497_v50  ;;  %v7460_v9 = vpop.f32.mrb[50].mxu0  ;;  %v7500_v32 = vpop.f32.mrb[50].mxu1 }
 0x244   : > { %v7461_v14 = vpop.f32.mrb[51].mxu0  ;;  %v7501_v24 = vpop.f32.mrb[51].mxu1 }
 0x245   : > { %v2928_v26 = vmax.f32 %v7459_v63, %v7499_v0  ;;  %v7462_v12 = vadd.f32 %v7461_v14, %v7460_v9  ;;  %v7502_v54 = vadd.f32 %v7501_v24, %v7500_v32 }
 0x247   : > { %v2936_v43 = vmax.f32 %v2920_v44, %v2928_v26  ;;  %v2929_v15 = vmax.f32 %v7462_v12, %v7502_v54  ;;  %v3016_v12 = vld [vmem:[#allocation3 + $0x18] sm:$0x7]  ;;  %v3043_v54 = vld [vmem:[#allocation3 + $0x18] sm:$0x70] }
 0x249   : > { %v2944_v16 = vadd.f32 %v9299_v21, %v2936_v43  ;;  %v2937_v17 = vmax.f32 %v2921_v38, %v2929_v15  ;;  %v7463_v18 = vpop.f32.mrb[52].mxu0  ;;  %v7503_v34 = vpop.f32.mrb[52].mxu1 }
 0x24a   : > { %v7464_v41 = vpop.f32.mrb[53].mxu0  ;;  %v7504_v57 = vpop.f32.mrb[53].mxu1 }
 0x24b   : > { %v2945_v13 = vadd.f32 %v9299_v21, %v2937_v17  ;;  %v7465_v22 = vadd.f32 %v7464_v41, %v7463_v18  ;;  %v7505_v23 = vadd.f32 %v7504_v57, %v7503_v34  ;;  %v7466_v4 = vpop.f32.mrb[54].mxu0  ;;  %v7506_v58 = vpop.f32.mrb[54].mxu1  ;;  %v2952_v1 = vmax.f32 %v2944_v16, 0.0 }
 0x24c   : > { %v7467_v5 = vpop.f32.mrb[55].mxu0  ;;  %v7507_v6 = vpop.f32.mrb[55].mxu1 }
 0x24d   : > { %v2953_v44 = vmax.f32 %v2945_v13, 0.0  ;;  %v2930_v55 = vmax.f32 %v7465_v22, %v7505_v23  ;;  %v7468_v29 = vadd.f32 %v7467_v5, %v7466_v4  ;;  %v7508_v3 = vadd.f32 %v7507_v6, %v7506_v58  ;;  %v3055_v22 = vld [vmem:[#allocation3 + $0x38] sm:$0x7]  ;;  %v3107_v6 = vld [vmem:[#allocation3 + $0x58] sm:$0x70] }
 0x24e   : > { %v3089_v58 = vld [vmem:[#allocation3 + $0x58] sm:$0x7] }
 0x24f   : > { %v2960_v52 = vpack.c.bf16 %v2953_v44, %v2952_v1  ;;  %v2938_v38 = vmax.f32 %v2922_v25, %v2930_v55  ;;  %v2931_v7 = vmax.f32 %v7468_v29, %v7508_v3  ;;  %v3095_v1 = vld [vmem:[#allocation3 + $0x38] sm:$0x70]  ;;  %v8389_v3 = vld [vmem:[#allocation7 + $0x100] sm:$0xff]  }
 0x251   : > { %v2995_v47 = vsel %vm9311_vm7, %v2960_v52, %v2994_v2  ;;  %v3011_v48 = vshll.u32 %v2960_v52, 16  ;;  %v3026_v49 = vrot.slane %v2960_v52, 1  ;;  %v7469_v46 = vpop.f32.mrb[56].mxu0  ;;  %v7509_v50 = vpop.f32.mrb[56].mxu1  ;;  %v3009_v61 = vshrl.u32 %v2960_v52, 16  ;;  %v8391_v2 = vld [vmem:[#allocation7 + $0x148] sm:$0xff]  }
 0x252   : > { %2996 = vst [vmem:[#allocation3 + $0x8] sm:$0x7] %v2995_v47  ;;  %v3038_v62 = vsel %vm9315_vm8, %v2960_v52, %v3037_v53  ;;  %v2946_v63 = vadd.f32 %v9299_v21, %v2938_v38  ;;  %v2939_v10 = vmax.f32 %v2923_v56, %v2931_v7  ;;  %v7470_v11 = vpop.f32.mrb[57].mxu0  ;;  %v7510_v25 = vpop.f32.mrb[57].mxu1 }
 0x253   : > { %v3013_v0 = vrot.slane %v3011_v48, 1  ;;  %v3029_v9 = vsel %vm9311_vm7, %v3026_v49, %v3028_v36  ;;  %3039 = vst [vmem:[#allocation3 + $0x8] sm:$0x70] %v3038_v62  ;;  %v3050_v32 = vsel %vm9315_vm8, %v3026_v49, %v3049_v28  ;;  %v7471_v14 = vadd.f32 %v7470_v11, %v7469_v46  ;;  %v7472_v24 = vpop.f32.mrb[58].mxu0  ;;  %v7512_v26 = vpop.f32.mrb[58].mxu1  ;;  %v9482_v48 = vld [vmem:[#allocation3] sm:$0xff] }
 0x254   : > { %3030 = vst [vmem:[#allocation3 + $0x28] sm:$0x7] %v3029_v9  ;;  %3051 = vst [vmem:[#allocation3 + $0x28] sm:$0x70] %v3050_v32  ;;  %v2947_v19 = vadd.f32 %v9299_v21, %v2939_v10  ;;  %v7511_v33 = vadd.f32 %v7510_v25, %v7509_v50  ;;  %v7473_v56 = vpop.f32.mrb[59].mxu0  ;;  %v7513_v43 = vpop.f32.mrb[59].mxu1 }
 0x255   : > { %v3014_v15 = vor.u32 %v3013_v0, %v3009_v61  ;;  %v7474_v16 = vadd.f32 %v7473_v56, %v7472_v24  ;;  %v7514_v17 = vadd.f32 %v7513_v43, %v7512_v26  ;;  %v2954_v18 = vmax.f32 %v2946_v63, 0.0  ;;  %v3077_v46 = vld [vmem:[#allocation3 + $0x48] sm:$0x7]  ;;  %v3101_v11 = vld [vmem:[#allocation3 + $0x48] sm:$0x70] }
 0x256   : > { %v2955_v34 = vmax.f32 %v2947_v19, 0.0  ;;  %v2932_v41 = vmax.f32 %v7471_v14, %v7511_v33  ;;  %v8392_v14 = vld [vmem:[#allocation7 + $0x108] sm:$0xff]   ;;  %v3113_v26 = vld [vmem:[#allocation3 + $0x68] sm:$0x7]  ;;  %v3153_v56 = vld [vmem:[#allocation3 + $0x68] sm:$0x70] }
 0x257   : > { %v3017_v57 = vsel %vm9311_vm7, %v3014_v15, %v3016_v12  ;;  %v3044_v13 = vsel %vm9315_vm8, %v3014_v15, %v3043_v54  ;;  %v2933_v23 = vmax.f32 %v7474_v16, %v7514_v17  ;;  %v8394_v54 = vld [vmem:[#allocation7 + $0x180] sm:$0xff]   ;;  %v8395_v19 = vld [vmem:[#allocation7 + $0x150] sm:$0xff]   ;;  %v8397_v16 = vld [vmem:[#allocation7 + $0x1c8] sm:$0xff]  }
 0x258   : > { %3018 = vst [vmem:[#allocation3 + $0x18] sm:$0x7] %v3017_v57  ;;  %3045 = vst [vmem:[#allocation3 + $0x18] sm:$0x70] %v3044_v13  ;;  %v2961_v4 = vpack.c.bf16 %v2955_v34, %v2954_v18  ;;  %v2940_v5 = vmax.f32 %v2924_v30, %v2932_v41  ;;  %v3147_v34 = vld [vmem:[#allocation3 + $0x88] sm:$0x7] }
 0x259   : > { %v2941_v44 = vmax.f32 %v2925_v60, %v2933_v23  ;;  %v7475_v55 = vpop.f32.mrb[60].mxu0  ;;  %v7515_v29 = vpop.f32.mrb[60].mxu1  ;;  %v3165_v41 = vld [vmem:[#allocation3 + $0x88] sm:$0x70]  ;;  %v9499_v13 = vld [vmem:[#allocation3 + $0x10] sm:$0xff] }
 0x25a   : > { %v3056_v52 = vsel %vm9311_vm7, %v2961_v4, %v3055_v22  ;;  %v3070_v53 = vshrl.u32 %v2961_v4, 16  ;;  %v3072_v38 = vshll.u32 %v2961_v4, 16  ;;  %v3087_v7 = vrot.slane %v2961_v4, 1  ;;  %v7476_v36 = vpop.f32.mrb[61].mxu0  ;;  %v7516_v28 = vpop.f32.mrb[61].mxu1  ;;  %v9475_v47 = vld [vmem:[#allocation3 + $0x8] sm:$0xff] }
 0x25b   : > { %3057 = vst [vmem:[#allocation3 + $0x38] sm:$0x7] %v3056_v52  ;;  %v3096_v27 = vsel %vm9315_vm8, %v2961_v4, %v3095_v1  ;;  %v2948_v51 = vadd.f32 %v9299_v21, %v2940_v5  ;;  %v2949_v30 = vadd.f32 %v9299_v21, %v2941_v44  ;;  %v7477_v35 = vadd.f32 %v7476_v36, %v7475_v55  ;;  %v7478_v59 = vpop.f32.mrb[62].mxu0  ;;  %v7518_v60 = vpop.f32.mrb[62].mxu1  ;;  %v8398_v1 = vld [vmem:[#allocation7 + $0x188] sm:$0xff]   ;;  %v9518_v52 = vld [vmem:[#allocation3 + $0x30] sm:$0xff] }
 0x25c   : > { %3666 = vmatprep.mubr.bf16.mxu0 %v9475_v47  ;;  %v3074_v49 = vrot.slane %v3072_v38, 1  ;;  %v3090_v50 = vsel %vm9311_vm7, %v3087_v7, %v3089_v58  ;;  %3097 = vst [vmem:[#allocation3 + $0x38] sm:$0x70] %v3096_v27  ;;  %v3108_v61 = vsel %vm9315_vm8, %v3087_v7, %v3107_v6  ;;  %v7517_v62 = vadd.f32 %v7516_v28, %v7515_v29  ;;  %v7479_v63 = vpop.f32.mrb[63].mxu0  ;;  %v7519_v10 = vpop.f32.mrb[63].mxu1  ;;  %v8400_v36 = vld [vmem:[#allocation7 + $0x118] sm:$0xff]  }
 0x25d   : > { %3667 = vmatmul.mubr.bf16.vlgmr.msra.gmra.mrb[64].mxu0 %v9482_v48  ;;  %3091 = vst [vmem:[#allocation3 + $0x58] sm:$0x7] %v3090_v50  ;;  %3109 = vst [vmem:[#allocation3 + $0x58] sm:$0x70] %v3108_v61  ;;  %v2956_v25 = vmax.f32 %v2948_v51, 0.0  ;;  %v2957_v0 = vmax.f32 %v2949_v30, 0.0  ;;  %v7480_v9 = vadd.f32 %v7479_v63, %v7478_v59  ;;  %v7520_v32 = vadd.f32 %v7519_v10, %v7518_v60 }
 0x25e   : > { %7602 = vmatpush3.bf16.msra.mxu0 %v8389_v3  ;;  %v3075_v24 = vor.u32 %v3074_v49, %v3070_v53  ;;  %v2934_v12 = vmax.f32 %v7477_v35, %v7517_v62  ;;  %v8399_v3 = vld [vmem:[#allocation7 + $0x158] sm:$0xff]   ;;  %v3171_v51 = vld [vmem:[#allocation3 + $0x98] sm:$0x7]  ;;  %v8402_v30 = vld [vmem:[#allocation7 + $0x190] sm:$0xff]  }
 0x25f   : > { %7603 = vmatprep.subr.bf16.mxu0 %v8391_v2  ;;  %v2962_v33 = vpack.c.bf16 %v2957_v0, %v2956_v25  ;;  %v2935_v43 = vmax.f32 %v7480_v9, %v7520_v32  ;;  %v9489_v15 = vld [vmem:[#allocation3 + $0x18] sm:$0xff]  ;;  %v8401_v2 = vld [vmem:[#allocation7 + $0x1d0] sm:$0xff]   ;;  %v8405_v49 = vld [vmem:[#allocation7 + $0x1d8] sm:$0xff]  }
 0x260   : > { %v3078_v17 = vsel %vm9311_vm7, %v3075_v24, %v3077_v46  ;;  %v3102_v18 = vsel %vm9315_vm8, %v3075_v24, %v3101_v11  ;;  %v2942_v57 = vmax.f32 %v2926_v39, %v2934_v12  ;;  %3731 = vmatprep.mubr.bf16.mxu1 %v9489_v15  ;;  %v8396_v39 = vld [vmem:[#allocation7 + $0x110] sm:$0xff]   ;;  %v8403_v60 = vld [vmem:[#allocation7 + $0x160] sm:$0xff]   ;;  %v3223_v50 = vld [vmem:[#allocation3 + $0xb8] sm:$0x70] }
 0x261   : > { %3079 = vst [vmem:[#allocation3 + $0x48] sm:$0x7] %v3078_v17  ;;  %3103 = vst [vmem:[#allocation3 + $0x48] sm:$0x70] %v3102_v18  ;;  %v3114_v22 = vsel %vm9311_vm7, %v2962_v33, %v3113_v26  ;;  %v3130_v23 = vshll.u32 %v2962_v33, 16  ;;  %v3145_v4 = vrot.slane %v2962_v33, 1  ;;  %3732 = vmatmul.mubr.bf16.vlgmr.msra.gmra.mrb[64].mxu1 %v9499_v13  ;;  %v3154_v58 = vsel %vm9315_vm8, %v2962_v33, %v3153_v56 }
 0x262   : > { %7604 = vmatpush3.bf16.msra.mxu0 %v8392_v14  ;;  %3115 = vst [vmem:[#allocation3 + $0x68] sm:$0x7] %v3114_v22  ;;  %v2950_v37 = vadd.f32 %v9299_v21, %v2942_v57  ;;  %v2943_v8 = vmax.f32 %v2927_v20, %v2935_v43  ;;  %7642 = vmatpush3.bf16.msra.mxu1 %v8394_v54  ;;  %v3128_v5 = vshrl.u32 %v2962_v33, 16  ;;  %3155 = vst [vmem:[#allocation3 + $0x68] sm:$0x70] %v3154_v58  ;;  %v9528_v61 = vld [vmem:[#allocation3 + $0x40] sm:$0xff] }
 0x263   : > { %7605 = vmatprep.subr.bf16.mxu0 %v8395_v19  ;;  %v3132_v6 = vrot.slane %v3130_v23, 1  ;;  %v3148_v44 = vsel %vm9311_vm7, %v3145_v4, %v3147_v34  ;;  %v3166_v55 = vsel %vm9315_vm8, %v3145_v4, %v3165_v41  ;;  %v9514_v29 = vld [vmem:[#allocation3 + $0x38] sm:$0xff]  ;;  %7643 = vmatprep.subr.bf16.mxu1 %v8397_v16  ;;  %v8406_v9 = vld [vmem:[#allocation7 + $0x198] sm:$0xff]   ;;  %v9542_v54 = vld [vmem:[#allocation3 + $0x60] sm:$0xff] }
 0x264   : > { %3149 = vst [vmem:[#allocation3 + $0x88] sm:$0x7] %v3148_v44  ;;  %3167 = vst [vmem:[#allocation3 + $0x88] sm:$0x70] %v3166_v55  ;;  %v2951_v20 = vadd.f32 %v9299_v21, %v2943_v8  ;;  %3674 = vmatprep.mubr.bf16.mxu0 %v9514_v29  ;;  %v2958_v38 = vmax.f32 %v2950_v37, 0.0  ;;  %v8404_v25 = vld [vmem:[#allocation7 + $0x120] sm:$0xff]  }
 0x265   : > { %v3133_v53 = vor.u32 %v3132_v6, %v3128_v5  ;;  %3675 = vmatmul.mubr.bf16.gmra.mrb[68].mxu0 %v9518_v52  ;;  %v3211_v21 = vld [vmem:[#allocation3 + $0x98] sm:$0x70]  ;;  %v3205_v46 = vld [vmem:[#allocation3 + $0xb8] sm:$0x7]  ;;  %v3193_v33 = vld [vmem:[#allocation3 + $0xa8] sm:$0x7] }
 0x266   : > { %v2959_v7 = vmax.f32 %v2951_v20, 0.0  ;;  %7606 = vmatpush3.bf16.msra.mxu0 %v8396_v39  ;;  %7644 = vmatpush3.bf16.msra.mxu1 %v8398_v1  ;;  %v8407_v32 = vld [vmem:[#allocation7 + $0x168] sm:$0xff]   ;;  %v8409_v19 = vld [vmem:[#allocation7 + $0x1e0] sm:$0xff]   ;;  %v3217_v56 = vld [vmem:[#allocation3 + $0xa8] sm:$0x70] }
 0x267   : > { %v3136_v28 = vsel %vm9311_vm7, %v3133_v53, %v3135_v31  ;;  %v3160_v27 = vsel %vm9315_vm8, %v3133_v53, %v3159_v45  ;;  %7607 = vmatprep.subr.bf16.mxu0 %v8399_v3  ;;  %7645 = vmatprep.subr.bf16.mxu1 %v8401_v2  ;;  %v8408_v16 = vld [vmem:[#allocation7 + $0x128] sm:$0xff]   ;;  %v8410_v18 = vld [vmem:[#allocation7 + $0x1a0] sm:$0xff]   ;;  %v8411_v34 = vld [vmem:[#allocation7 + $0x170] sm:$0xff]  }
 0x268   : > { %3137 = vst [vmem:[#allocation3 + $0x78] sm:$0x7] %v3136_v28  ;;  %3161 = vst [vmem:[#allocation3 + $0x78] sm:$0x70] %v3160_v27  ;;  %v2963_v35 = vpack.c.bf16 %v2959_v7, %v2958_v38  ;;  %v9525_v59 = vld [vmem:[#allocation3 + $0x48] sm:$0xff]  ;;  %v8413_v22 = vld [vmem:[#allocation7 + $0x1e8] sm:$0xff]  }
 0x269   : > { %3739 = vmatprep.mubr.bf16.mxu1 %v9525_v59  ;;  %v9533_v11 = vld [vmem:[#allocation3 + $0x68] sm:$0xff]  ;;  %v9552_v23 = vld [vmem:[#allocation3 + $0x70] sm:$0xff]  ;;  %v9567_v3 = vld [vmem:[#allocation3 + $0xa0] sm:$0xff] }
 0x26a   : > { %v3172_v62 = vsel %vm9311_vm7, %v2963_v35, %v3171_v51  ;;  %v3188_v63 = vshll.u32 %v2963_v35, 16  ;;  %v3203_v10 = vrot.slane %v2963_v35, 1  ;;  %7608 = vmatpush3.bf16.msra.mxu0 %v8400_v36  ;;  %3740 = vmatmul.mubr.bf16.gmra.mrb[68].mxu1 %v9528_v61  ;;  %v3212_v0 = vsel %vm9315_vm8, %v2963_v35, %v3211_v21  ;;  %v8412_v4 = vld [vmem:[#allocation7 + $0x130] sm:$0xff]   ;;  %v8415_v37 = vld [vmem:[#allocation7 + $0x178] sm:$0xff]   ;;  %v8419_v44 = vld [vmem:[#allocation7 + $0x240] sm:$0xff]  }
 0x26b   : > { %3173 = vst [vmem:[#allocation3 + $0x98] sm:$0x7] %v3172_v62  ;;  %7646 = vmatpush3.bf16.msra.mxu1 %v8402_v30  ;;  %3682 = vmatprep.mubr.bf16.mxu0 %v9533_v11  ;;  %v3186_v14 = vshrl.u32 %v2963_v35, 16  ;;  %3213 = vst [vmem:[#allocation3 + $0x98] sm:$0x70] %v3212_v0  ;;  %v8417_v8 = vld [vmem:[#allocation7 + $0x1f0] sm:$0xff]  }
 0x26c   : > { %v3190_v24 = vrot.slane %v3188_v63, 1  ;;  %v3206_v26 = vsel %vm9311_vm7, %v3203_v10, %v3205_v46  ;;  %v3224_v12 = vsel %vm9315_vm8, %v3203_v10, %v3223_v50  ;;  %7609 = vmatprep.subr.bf16.mxu0 %v8403_v60  ;;  %7647 = vmatprep.subr.bf16.mxu1 %v8405_v49  ;;  %v9561_v39 = vld [vmem:[#allocation3 + $0x28] sm:$0xff]  ;;  %v8421_v2 = vld [vmem:[#allocation7 + $0x200] sm:$0xff]   ;;  %v8423_v45 = vld [vmem:[#allocation7 + $0x248] sm:$0xff]  }
 0x26d   : > { %3207 = vst [vmem:[#allocation3 + $0xb8] sm:$0x7] %v3206_v26  ;;  %3225 = vst [vmem:[#allocation3 + $0xb8] sm:$0x70] %v3224_v12  ;;  %3683 = vmatmul.mubr.bf16.gmra.mrb[72].mxu0 %v9542_v54  ;;  %v8416_v1 = vld [vmem:[#allocation7 + $0x138] sm:$0xff]   ;;  %v8418_v5 = vld [vmem:[#allocation7 + $0x1b0] sm:$0xff]  }
 0x26e   : > { %v3191_v43 = vor.u32 %v3190_v24, %v3186_v14  ;;  %7610 = vmatpush3.bf16.msra.mxu0 %v8404_v25  ;;  %v8420_v55 = vld [vmem:[#allocation7 + $0x1f8] sm:$0xff]   ;;  %v9571_v20 = vld [vmem:[#allocation3 + $0x20] sm:$0xff]  ;;  %v8425_v53 = vld [vmem:[#allocation7 + $0x2c0] sm:$0xff]  }
 0x26f   : > { %7648 = vmatpush3.bf16.msra.mxu1 %v8406_v9  ;;  %7611 = vmatprep.subr.bf16.mxu0 %v8407_v32  ;;  %v9545_v17 = vld [vmem:[#allocation3 + $0x78] sm:$0xff]  ;;  %v8422_v31 = vld [vmem:[#allocation7 + $0x1b8] sm:$0xff]   ;;  %v8427_v28 = vld [vmem:[#allocation7 + $0x250] sm:$0xff]  }
 0x270   : > { %v3194_v41 = vsel %vm9311_vm7, %v3191_v43, %v3193_v33  ;;  %v3218_v57 = vsel %vm9315_vm8, %v3191_v43, %v3217_v56  ;;  %3747 = vmatprep.mubr.bf16.mxu1 %v9545_v17  ;;  %7649 = vmatprep.subr.bf16.mxu1 %v8409_v19  ;;  %v9574_v38 = vld [vmem:[#allocation3 + $0x58] sm:$0xff]  ;;  %v8428_v51 = vld [vmem:[#allocation7 + $0x210] sm:$0xff]   ;;  %v8431_v30 = vld [vmem:[#allocation7 + $0x258] sm:$0xff]   ;;  %vm5821_vm8 = vcmask 1043459  }
 0x271   : > { %3195 = vst [vmem:[#allocation3 + $0xa8] sm:$0x7] %v3194_v41  ;;  %3219 = vst [vmem:[#allocation3 + $0xa8] sm:$0x70] %v3218_v57  ;;  %v8424_v7 = vld [vmem:[#allocation7 + $0x208] sm:$0xff]   ;;  %v8426_v36 = vld [vmem:[#allocation7 + $0x280] sm:$0xff]  }
 0x272   : > { %7612 = vmatpush3.bf16.msra.mxu0 %v8408_v16  ;;  %3748 = vmatmul.mubr.bf16.gmra.mrb[72].mxu1 %v9552_v23  ;;  %v9555_v58 = vld [vmem:[#allocation3 + $0x98] sm:$0xff]  ;;  %v9579_v35 = vld [vmem:[#allocation3 + $0x50] sm:$0xff]  ;;  %v8433_v60 = vld [vmem:[#allocation7 + $0x2d0] sm:$0xff]  }
 0x273   : > { %7650 = vmatpush3.bf16.msra.mxu1 %v8410_v18  ;;  %7613 = vmatprep.subr.bf16.mxu0 %v8411_v34  ;;  %v8429_v27 = vld [vmem:[#allocation7 + $0x2c8] sm:$0xff]   ;;  %v9582_v49 = vld [vmem:[#allocation3 + $0x88] sm:$0xff]  ;;  %v8435_v62 = vld [vmem:[#allocation7 + $0x260] sm:$0xff]  }
 0x274   : > { %3690 = vmatprep.mubr.bf16.mxu0 %v9555_v58  ;;  %7651 = vmatprep.subr.bf16.mxu1 %v8413_v22  ;;  %v8430_v21 = vld [vmem:[#allocation7 + $0x288] sm:$0xff]   ;;  %v8432_v46 = vld [vmem:[#allocation7 + $0x218] sm:$0xff]   ;;  %v8434_v50 = vld [vmem:[#allocation7 + $0x290] sm:$0xff]  }
 0x275   : > { %3691 = vmatmul.mubr.bf16.gmra.mrb[76].mxu0 %v9558_v42  ;;  %v8437_v63 = vld [vmem:[#allocation7 + $0x2d8] sm:$0xff]   ;;  %v8436_v10 = vld [vmem:[#allocation7 + $0x220] sm:$0xff]   ;;  %v8439_v0 = vld [vmem:[#allocation7 + $0x268] sm:$0xff]  }
 0x276   : > { %7614 = vmatpush3.bf16.msra.mxu0 %v8412_v4  ;;  %3796 = vmatprep.mubr.bf16.mxu0 %v9561_v39  ;;  %v8438_v25 = vld [vmem:[#allocation7 + $0x298] sm:$0xff]   ;;  %v9587_v9 = vld [vmem:[#allocation3 + $0x80] sm:$0xff]  ;;  %v8441_v32 = vld [vmem:[#allocation7 + $0x2e0] sm:$0xff]  }
 0x277   : > { %7652 = vmatpush3.bf16.msra.mxu1 %v8414_v40  ;;  %7615 = vmatprep.subr.bf16.mxu0 %v8415_v37  ;;  %v9590_v14 = vld [vmem:[#allocation3 + $0xb8] sm:$0xff]  ;;  %v8443_v12 = vld [vmem:[#allocation7 + $0x270] sm:$0xff]   ;;  %v8447_v43 = vld [vmem:[#allocation7 + $0x278] sm:$0xff]  }
 0x278   : > { %v9564_v6 = vld [vmem:[#allocation3 + $0xa8] sm:$0xff]  ;;  %7653 = vmatprep.subr.bf16.mxu1 %v8417_v8  ;;  %v8440_v24 = vld [vmem:[#allocation7 + $0x228] sm:$0xff]   ;;  %v8442_v26 = vld [vmem:[#allocation7 + $0x2a0] sm:$0xff]  }
 0x279   : > { %3755 = vmatprep.mubr.bf16.mxu1 %v9564_v6  ;;  %v8445_v19 = vld [vmem:[#allocation7 + $0x2e8] sm:$0xff]   ;;  %v8444_v33 = vld [vmem:[#allocation7 + $0x230] sm:$0xff]   ;;  %v9595_v16 = vld [vmem:[#allocation3 + $0xb0] sm:$0xff] }
 0x27a   : > { %7616 = vmatpush3.bf16.msra.mxu0 %v8416_v1  ;;  %3756 = vmatmul.mubr.bf16.gmra.mrb[76].mxu1 %v9567_v3  ;;  %v8446_v56 = vld [vmem:[#allocation7 + $0x2a8] sm:$0xff]   ;;  %v8449_v18 = vld [vmem:[#allocation7 + $0x2f0] sm:$0xff]   ;;  %v8448_v34 = vld [vmem:[#allocation7 + $0x238] sm:$0xff]  }
 0x27b   : > { %7654 = vmatpush3.bf16.msra.mxu1 %v8418_v5  ;;  %4246 = vmatprep.mubr.bf16.mxu1 %v9475_v47  ;;  %v8450_v41 = vld [vmem:[#allocation7 + $0x2b0] sm:$0xff]   ;;  %v8451_v57 = vld [vmem:[#allocation7 + $0x340] sm:$0xff]   ;;  %v8452_v22 = vld [vmem:[#allocation7 + $0x2f8] sm:$0xff]  }
 0x27c   : > { %7681 = vmatprep.subr.bf16.mxu0 %v8419_v44  ;;  %7655 = vmatprep.subr.bf16.mxu1 %v8420_v55  ;;  %v8453_v4 = vld [vmem:[#allocation7 + $0x300] sm:$0xff]   ;;  %v8454_v40 = vld [vmem:[#allocation7 + $0x2b8] sm:$0xff]   ;;  %v8455_v37 = vld [vmem:[#allocation7 + $0x348] sm:$0xff]  }
 0x27d   : > { %3797 = vmatmul.mubr.bf16.vlgmr.msra.gmra.mrb[80].mxu0 %v9571_v20  ;;  %v8457_v8 = vld [vmem:[#allocation7 + $0x3c0] sm:$0xff]   ;;  %v8456_v1 = vld [vmem:[#allocation7 + $0x308] sm:$0xff]   ;;  %v8459_v44 = vld [vmem:[#allocation7 + $0x350] sm:$0xff]  }
 0x27e   : > { %3804 = vmatprep.mubr.bf16.mxu0 %v9574_v38  ;;  %7682 = vmatpush3.bf16.msra.mxu0 %v8421_v2  ;;  %v8458_v5 = vld [vmem:[#allocation7 + $0x380] sm:$0xff]   ;;  %v8461_v55 = vld [vmem:[#allocation7 + $0x3c8] sm:$0xff]   ;;  %v8460_v2 = vld [vmem:[#allocation7 + $0x310] sm:$0xff]  }
 0x27f   : > { %7656 = vmatpush3.bf16.msra.mxu1 %v8422_v31  ;;  %7683 = vmatprep.subr.bf16.mxu0 %v8423_v45  ;;  %v8462_v31 = vld [vmem:[#allocation7 + $0x388] sm:$0xff]   ;;  %v8463_v45 = vld [vmem:[#allocation7 + $0x358] sm:$0xff]   ;;  %vm9988_vm7 = vmand %vm5759_vm3, %vm5792_vm4 }
 0x280   : > { %7721 = vmatprep.subr.bf16.mxu1 %v8425_v53  ;;  %v8465_v53 = vld [vmem:[#allocation7 + $0x3d0] sm:$0xff]   ;;  %vm10000_vm9 = vmand %vm5821_vm8, %vm431_vm0  ;;  %vm5856_vm0 = vsmask.f32 7950 }
 0x281   : > { %vm10021_vm10 = vmand %vm5821_vm8, %vm5856_vm0 }
 0x282   : > { %7684 = vmatpush3.bf16.msra.mxu0 %v8424_v7  ;;  %4247 = vmatmul.mubr.bf16.vlgmr.msra.gmra.mrb[80].mxu1 %v9482_v48  ;;  %v8464_v7 = vld [vmem:[#allocation7 + $0x318] sm:$0xff]  }
 0x283   : > { %7722 = vmatpush3.bf16.msra.mxu1 %v8426_v36  ;;  %4254 = vmatprep.mubr.bf16.mxu1 %v9514_v29  ;;  %v8466_v36 = vld [vmem:[#allocation7 + $0x390] sm:$0xff]  }
 0x284   : > { %7685 = vmatprep.subr.bf16.mxu0 %v8427_v28  ;;  %7723 = vmatprep.subr.bf16.mxu1 %v8429_v27  ;;  %v8467_v28 = vld [vmem:[#allocation7 + $0x360] sm:$0xff]   ;;  %v8469_v27 = vld [vmem:[#allocation7 + $0x3d8] sm:$0xff]  }
 0x285   : > { %3805 = vmatmul.mubr.bf16.gmra.mrb[84].mxu0 %v9579_v35 }
 0x286   : > { %3812 = vmatprep.mubr.bf16.mxu0 %v9582_v49  ;;  %7686 = vmatpush3.bf16.msra.mxu0 %v8428_v51  ;;  %v8468_v51 = vld [vmem:[#allocation7 + $0x320] sm:$0xff]  }
 0x287   : > { %7724 = vmatpush3.bf16.msra.mxu1 %v8430_v21  ;;  %7687 = vmatprep.subr.bf16.mxu0 %v8431_v30  ;;  %v8470_v21 = vld [vmem:[#allocation7 + $0x398] sm:$0xff]   ;;  %v8471_v30 = vld [vmem:[#allocation7 + $0x368] sm:$0xff]  }
 0x288   : > { %7725 = vmatprep.subr.bf16.mxu1 %v8433_v60  ;;  %v8473_v60 = vld [vmem:[#allocation7 + $0x3e0] sm:$0xff]  }
 0x28a   : > { %7688 = vmatpush3.bf16.msra.mxu0 %v8432_v46  ;;  %4255 = vmatmul.mubr.bf16.gmra.mrb[84].mxu1 %v9518_v52  ;;  %v8472_v46 = vld [vmem:[#allocation7 + $0x328] sm:$0xff]  }
 0x28b   : > { %7726 = vmatpush3.bf16.msra.mxu1 %v8434_v50  ;;  %4262 = vmatprep.mubr.bf16.mxu1 %v9533_v11  ;;  %v8474_v50 = vld [vmem:[#allocation7 + $0x3a0] sm:$0xff]  }
 0x28c   : > { %7689 = vmatprep.subr.bf16.mxu0 %v8435_v62  ;;  %7727 = vmatprep.subr.bf16.mxu1 %v8437_v63  ;;  %v8475_v62 = vld [vmem:[#allocation7 + $0x370] sm:$0xff]   ;;  %v8477_v63 = vld [vmem:[#allocation7 + $0x3e8] sm:$0xff]  }
 0x28d   : > { %3813 = vmatmul.mubr.bf16.gmra.mrb[88].mxu0 %v9587_v9 }
 0x28e   : > { %3820 = vmatprep.mubr.bf16.mxu0 %v9590_v14  ;;  %7690 = vmatpush3.bf16.msra.mxu0 %v8436_v10  ;;  %v8476_v10 = vld [vmem:[#allocation7 + $0x330] sm:$0xff]  }
 0x28f   : > { %7728 = vmatpush3.bf16.msra.mxu1 %v8438_v25  ;;  %7691 = vmatprep.subr.bf16.mxu0 %v8439_v0  ;;  %v8478_v25 = vld [vmem:[#allocation7 + $0x3a8] sm:$0xff]   ;;  %v8479_v0 = vld [vmem:[#allocation7 + $0x378] sm:$0xff]  }
 0x290   : > { %7729 = vmatprep.subr.bf16.mxu1 %v8441_v32  ;;  %v8481_v32 = vld [vmem:[#allocation7 + $0x3f0] sm:$0xff]  }
 0x292   : > { %7692 = vmatpush3.bf16.msra.mxu0 %v8440_v24  ;;  %4263 = vmatmul.mubr.bf16.gmra.mrb[88].mxu1 %v9542_v54  ;;  %v8480_v24 = vld [vmem:[#allocation7 + $0x338] sm:$0xff]  }
 0x293   : > { %7730 = vmatpush3.bf16.msra.mxu1 %v8442_v26  ;;  %4270 = vmatprep.mubr.bf16.mxu1 %v9555_v58  ;;  %v8482_v26 = vld [vmem:[#allocation7 + $0x3b0] sm:$0xff]  }
 0x294   : > { %7693 = vmatprep.subr.bf16.mxu0 %v8443_v12  ;;  %7731 = vmatprep.subr.bf16.mxu1 %v8445_v19  ;;  %v8483_v12 = vld [vmem:[#allocation7 + $0x440] sm:$0xff]   ;;  %v8484_v19 = vld [vmem:[#allocation7 + $0x3f8] sm:$0xff]  }
 0x295   : > { %3821 = vmatmul.mubr.bf16.gmra.mrb[92].mxu0 %v9595_v16 }
 0x296   : > { %7694 = vmatpush3.bf16.msra.mxu0 %v8444_v33  ;;  %4311 = vmatprep.mubr.bf16.mxu0 %v9489_v15  ;;  %v8485_v33 = vld [vmem:[#allocation7 + $0x400] sm:$0xff]  }
 0x297   : > { %7732 = vmatpush3.bf16.msra.mxu1 %v8446_v56  ;;  %7695 = vmatprep.subr.bf16.mxu0 %v8447_v43  ;;  %v8486_v56 = vld [vmem:[#allocation7 + $0x3b8] sm:$0xff]   ;;  %v8487_v43 = vld [vmem:[#allocation7 + $0x448] sm:$0xff]  }
 0x298   : > { %7733 = vmatprep.subr.bf16.mxu1 %v8449_v18  ;;  %v8489_v18 = vld [vmem:[#allocation7 + $0x4c0] sm:$0xff]  }
 0x29a   : > { %7696 = vmatpush3.bf16.msra.mxu0 %v8448_v34  ;;  %4271 = vmatmul.mubr.bf16.gmra.mrb[92].mxu1 %v9558_v42  ;;  %v8488_v34 = vld [vmem:[#allocation7 + $0x408] sm:$0xff]  }
 0x29b   : > { %7734 = vmatpush3.bf16.msra.mxu1 %v8450_v41  ;;  %4376 = vmatprep.mubr.bf16.mxu1 %v9561_v39  ;;  %v8490_v41 = vld [vmem:[#allocation7 + $0x480] sm:$0xff]  }
 0x29c   : > { %7761 = vmatprep.subr.bf16.mxu0 %v8451_v57  ;;  %7735 = vmatprep.subr.bf16.mxu1 %v8452_v22  ;;  %v8491_v57 = vld [vmem:[#allocation7 + $0x450] sm:$0xff]   ;;  %v8493_v22 = vld [vmem:[#allocation7 + $0x4c8] sm:$0xff]  }
 0x29d   : > { %4312 = vmatmul.mubr.bf16.vlgmr.msra.gmra.mrb[96].mxu0 %v9499_v13 }
 0x29e   : > { %4319 = vmatprep.mubr.bf16.mxu0 %v9525_v59  ;;  %7762 = vmatpush3.bf16.msra.mxu0 %v8453_v4  ;;  %v8492_v4 = vld [vmem:[#allocation7 + $0x410] sm:$0xff]  }
 0x29f   : > { %7736 = vmatpush3.bf16.msra.mxu1 %v8454_v40  ;;  %7763 = vmatprep.subr.bf16.mxu0 %v8455_v37  ;;  %v8494_v40 = vld [vmem:[#allocation7 + $0x488] sm:$0xff]   ;;  %v8495_v37 = vld [vmem:[#allocation7 + $0x458] sm:$0xff]  }
 0x2a0   : > { %7801 = vmatprep.subr.bf16.mxu1 %v8457_v8  ;;  %v8497_v8 = vld [vmem:[#allocation7 + $0x4d0] sm:$0xff]  }
 0x2a2   : > { %7764 = vmatpush3.bf16.msra.mxu0 %v8456_v1  ;;  %4377 = vmatmul.mubr.bf16.vlgmr.msra.gmra.mrb[96].mxu1 %v9571_v20  ;;  %v8496_v1 = vld [vmem:[#allocation7 + $0x418] sm:$0xff]  }
 0x2a3   : > { %7802 = vmatpush3.bf16.msra.mxu1 %v8458_v5  ;;  %4384 = vmatprep.mubr.bf16.mxu1 %v9574_v38  ;;  %v8498_v5 = vld [vmem:[#allocation7 + $0x490] sm:$0xff]  }
 0x2a4   : > { %7765 = vmatprep.subr.bf16.mxu0 %v8459_v44  ;;  %7803 = vmatprep.subr.bf16.mxu1 %v8461_v55  ;;  %v8499_v44 = vld [vmem:[#allocation7 + $0x460] sm:$0xff]   ;;  %v8501_v55 = vld [vmem:[#allocation7 + $0x4d8] sm:$0xff]  }
 0x2a5   : > { %4320 = vmatmul.mubr.bf16.gmra.mrb[100].mxu0 %v9528_v61 }
 0x2a6   : > { %4327 = vmatprep.mubr.bf16.mxu0 %v9545_v17  ;;  %7766 = vmatpush3.bf16.msra.mxu0 %v8460_v2  ;;  %v8500_v2 = vld [vmem:[#allocation7 + $0x420] sm:$0xff]  }
 0x2a7   : > { %7804 = vmatpush3.bf16.msra.mxu1 %v8462_v31  ;;  %7767 = vmatprep.subr.bf16.mxu0 %v8463_v45  ;;  %v8502_v31 = vld [vmem:[#allocation7 + $0x498] sm:$0xff]   ;;  %v8503_v45 = vld [vmem:[#allocation7 + $0x468] sm:$0xff]  }
 0x2a8   : > { %7805 = vmatprep.subr.bf16.mxu1 %v8465_v53  ;;  %v8505_v53 = vld [vmem:[#allocation7 + $0x4e0] sm:$0xff]  }
 0x2aa   : > { %7768 = vmatpush3.bf16.msra.mxu0 %v8464_v7  ;;  %4385 = vmatmul.mubr.bf16.gmra.mrb[100].mxu1 %v9579_v35  ;;  %v8504_v7 = vld [vmem:[#allocation7 + $0x428] sm:$0xff]  }
 0x2ab   : > { %7806 = vmatpush3.bf16.msra.mxu1 %v8466_v36  ;;  %4392 = vmatprep.mubr.bf16.mxu1 %v9582_v49  ;;  %v8506_v36 = vld [vmem:[#allocation7 + $0x4a0] sm:$0xff]  }
 0x2ac   : > { %7769 = vmatprep.subr.bf16.mxu0 %v8467_v28  ;;  %7807 = vmatprep.subr.bf16.mxu1 %v8469_v27  ;;  %v8507_v28 = vld [vmem:[#allocation7 + $0x470] sm:$0xff]   ;;  %v8509_v27 = vld [vmem:[#allocation7 + $0x4e8] sm:$0xff]  }
 0x2ad   : > { %4328 = vmatmul.mubr.bf16.gmra.mrb[104].mxu0 %v9552_v23 }
 0x2ae   : > { %4335 = vmatprep.mubr.bf16.mxu0 %v9564_v6  ;;  %7770 = vmatpush3.bf16.msra.mxu0 %v8468_v51  ;;  %v8508_v51 = vld [vmem:[#allocation7 + $0x430] sm:$0xff]  }
 0x2af   : > { %7808 = vmatpush3.bf16.msra.mxu1 %v8470_v21  ;;  %7771 = vmatprep.subr.bf16.mxu0 %v8471_v30  ;;  %v8510_v21 = vld [vmem:[#allocation7 + $0x4a8] sm:$0xff]   ;;  %v8511_v30 = vld [vmem:[#allocation7 + $0x478] sm:$0xff]  }
 0x2b0   : > { %7809 = vmatprep.subr.bf16.mxu1 %v8473_v60  ;;  %v8513_v60 = vld [vmem:[#allocation7 + $0x4f0] sm:$0xff]  }
 0x2b2   : > { %7772 = vmatpush3.bf16.msra.mxu0 %v8472_v46  ;;  %4393 = vmatmul.mubr.bf16.gmra.mrb[104].mxu1 %v9587_v9  ;;  %v8512_v46 = vld [vmem:[#allocation7 + $0x438] sm:$0xff]  }
 0x2b3   : > { %7810 = vmatpush3.bf16.msra.mxu1 %v8474_v50  ;;  %4400 = vmatprep.mubr.bf16.mxu1 %v9590_v14  ;;  %v8514_v50 = vld [vmem:[#allocation7 + $0x4b0] sm:$0xff]  }
 0x2b4   : > { %7773 = vmatprep.subr.bf16.mxu0 %v8475_v62  ;;  %7811 = vmatprep.subr.bf16.mxu1 %v8477_v63  ;;  %v8515_v62 = vld [vmem:[#allocation7 + $0x540] sm:$0xff]   ;;  %v8516_v63 = vld [vmem:[#allocation7 + $0x4f8] sm:$0xff]  }
 0x2b5   : > { %4336 = vmatmul.mubr.bf16.gmra.mrb[108].mxu0 %v9567_v3 }
 0x2b6   : > { %7774 = vmatpush3.bf16.msra.mxu0 %v8476_v10  ;;  %4826 = vmatprep.mubr.bf16.mxu0 %v9475_v47  ;;  %v8517_v10 = vld [vmem:[#allocation7 + $0x500] sm:$0xff]  }
 0x2b7   : > { %7812 = vmatpush3.bf16.msra.mxu1 %v8478_v25  ;;  %7775 = vmatprep.subr.bf16.mxu0 %v8479_v0  ;;  %v8518_v25 = vld [vmem:[#allocation7 + $0x4b8] sm:$0xff]   ;;  %v8519_v0 = vld [vmem:[#allocation7 + $0x548] sm:$0xff]  }
 0x2b8   : > { %7813 = vmatprep.subr.bf16.mxu1 %v8481_v32  ;;  %v8521_v32 = vld [vmem:[#allocation7 + $0x5c0] sm:$0xff]  }
 0x2ba   : > { %7776 = vmatpush3.bf16.msra.mxu0 %v8480_v24  ;;  %4401 = vmatmul.mubr.bf16.gmra.mrb[108].mxu1 %v9595_v16  ;;  %v8520_v24 = vld [vmem:[#allocation7 + $0x508] sm:$0xff]  }
 0x2bb   : > { %7814 = vmatpush3.bf16.msra.mxu1 %v8482_v26  ;;  %4891 = vmatprep.mubr.bf16.mxu1 %v9489_v15  ;;  %v8522_v26 = vld [vmem:[#allocation7 + $0x580] sm:$0xff]  }
 0x2bc   : > { %7841 = vmatprep.subr.bf16.mxu0 %v8483_v12  ;;  %7815 = vmatprep.subr.bf16.mxu1 %v8484_v19  ;;  %v8523_v12 = vld [vmem:[#allocation7 + $0x550] sm:$0xff]   ;;  %v8525_v19 = vld [vmem:[#allocation7 + $0x5c8] sm:$0xff]  }
 0x2bd   : > { %4827 = vmatmul.mubr.bf16.vlgmr.msra.gmra.mrb[112].mxu0 %v9482_v48 }
 0x2be   : > { %4834 = vmatprep.mubr.bf16.mxu0 %v9514_v29  ;;  %7842 = vmatpush3.bf16.msra.mxu0 %v8485_v33  ;;  %v8526_v33 = vld [vmem:[#allocation7 + $0x588] sm:$0xff]  }
 0x2bf   : > { %7816 = vmatpush3.bf16.msra.mxu1 %v8486_v56  ;;  %7843 = vmatprep.subr.bf16.mxu0 %v8487_v43  ;;  %v8527_v56 = vld [vmem:[#allocation7 + $0x558] sm:$0xff]   ;;  %v8529_v43 = vld [vmem:[#allocation7 + $0x5d0] sm:$0xff]  }
 0x2c0   : > { %7881 = vmatprep.subr.bf16.mxu1 %v8489_v18  ;;  %v8528_v18 = vld [vmem:[#allocation7 + $0x518] sm:$0xff]  }
 0x2c2   : > { %7844 = vmatpush3.bf16.msra.mxu0 %v8488_v34  ;;  %4892 = vmatmul.mubr.bf16.vlgmr.msra.gmra.mrb[112].mxu1 %v9499_v13  ;;  %v8530_v34 = vld [vmem:[#allocation7 + $0x590] sm:$0xff]  }
 0x2c3   : > { %7882 = vmatpush3.bf16.msra.mxu1 %v8490_v41  ;;  %4899 = vmatprep.mubr.bf16.mxu1 %v9525_v59  ;;  %v8533_v41 = vld [vmem:[#allocation7 + $0x5d8] sm:$0xff]  }
 0x2c4   : > { %7845 = vmatprep.subr.bf16.mxu0 %v8491_v57  ;;  %7883 = vmatprep.subr.bf16.mxu1 %v8493_v22  ;;  %v8534_v57 = vld [vmem:[#allocation7 + $0x598] sm:$0xff]   ;;  %v8535_v22 = vld [vmem:[#allocation7 + $0x568] sm:$0xff]  }
 0x2c5   : > { %4835 = vmatmul.mubr.bf16.gmra.mrb[116].mxu0 %v9518_v52 }
 0x2c6   : > { %4842 = vmatprep.mubr.bf16.mxu0 %v9533_v11  ;;  %7846 = vmatpush3.bf16.msra.mxu0 %v8492_v4  ;;  %v8537_v4 = vld [vmem:[#allocation7 + $0x5e0] sm:$0xff]  }
 0x2c7   : > { %7884 = vmatpush3.bf16.msra.mxu1 %v8494_v40  ;;  %7847 = vmatprep.subr.bf16.mxu0 %v8495_v37  ;;  %v8536_v40 = vld [vmem:[#allocation7 + $0x528] sm:$0xff]   ;;  %v8538_v37 = vld [vmem:[#allocation7 + $0x5a0] sm:$0xff]  }
 0x2c8   : > { %7885 = vmatprep.subr.bf16.mxu1 %v8497_v8  ;;  %v8541_v8 = vld [vmem:[#allocation7 + $0x5e8] sm:$0xff]  }
 0x2ca   : > { %7848 = vmatpush3.bf16.msra.mxu0 %v8496_v1  ;;  %4900 = vmatmul.mubr.bf16.gmra.mrb[116].mxu1 %v9528_v61  ;;  %v8542_v1 = vld [vmem:[#allocation7 + $0x5a8] sm:$0xff]  }
 0x2cb   : > { %7886 = vmatpush3.bf16.msra.mxu1 %v8498_v5  ;;  %4907 = vmatprep.mubr.bf16.mxu1 %v9545_v17  ;;  %v8543_v5 = vld [vmem:[#allocation7 + $0x578] sm:$0xff]  }
 0x2cc   : > { %7849 = vmatprep.subr.bf16.mxu0 %v8499_v44  ;;  %7887 = vmatprep.subr.bf16.mxu1 %v8501_v55  ;;  %v8545_v44 = vld [vmem:[#allocation7 + $0x5f0] sm:$0xff]   ;;  %v8544_v55 = vld [vmem:[#allocation7 + $0x538] sm:$0xff]  }
 0x2cd   : > { %4843 = vmatmul.mubr.bf16.gmra.mrb[120].mxu0 %v9542_v54 }
 0x2ce   : > { %4850 = vmatprep.mubr.bf16.mxu0 %v9555_v58  ;;  %7850 = vmatpush3.bf16.msra.mxu0 %v8500_v2  ;;  %v8546_v2 = vld [vmem:[#allocation7 + $0x5b0] sm:$0xff]  }
 0x2cf   : > { %7888 = vmatpush3.bf16.msra.mxu1 %v8502_v31  ;;  %7851 = vmatprep.subr.bf16.mxu0 %v8503_v45 }
 0x2d0   : > { %7889 = vmatprep.subr.bf16.mxu1 %v8505_v53 }
 0x2d2   : > { %7852 = vmatpush3.bf16.msra.mxu0 %v8504_v7  ;;  %4908 = vmatmul.mubr.bf16.gmra.mrb[120].mxu1 %v9552_v23 }
 0x2d3   : > { %7890 = vmatpush3.bf16.msra.mxu1 %v8506_v36  ;;  %4915 = vmatprep.mubr.bf16.mxu1 %v9564_v6 }
 0x2d4   : > { %7853 = vmatprep.subr.bf16.mxu0 %v8507_v28  ;;  %7891 = vmatprep.subr.bf16.mxu1 %v8509_v27 }
 0x2d5   : > { %4851 = vmatmul.mubr.bf16.gmra.mrb[124].mxu0 %v9558_v42 }
 0x2d6   : > { %7854 = vmatpush3.bf16.msra.mxu0 %v8508_v51  ;;  %4956 = vmatprep.mubr.bf16.mxu0 %v9561_v39 }
 0x2d7   : > { %7892 = vmatpush3.bf16.msra.mxu1 %v8510_v21  ;;  %7855 = vmatprep.subr.bf16.mxu0 %v8511_v30 }
 0x2d8   : > { %7893 = vmatprep.subr.bf16.mxu1 %v8513_v60 }
 0x2da   : > { %7856 = vmatpush3.bf16.msra.mxu0 %v8512_v46  ;;  %4916 = vmatmul.mubr.bf16.gmra.mrb[124].mxu1 %v9567_v3 }
 0x2db   : > { %7894 = vmatpush3.bf16.msra.mxu1 %v8514_v50  ;;  %5406 = vmatprep.mubr.bf16.mxu1 %v9475_v47  ;;  %v8524_v47 = vld [vmem:[#allocation7 + $0x510] sm:$0xff]  }
 0x2dc   : > { %7921 = vmatprep.subr.bf16.mxu0 %v8515_v62  ;;  %7895 = vmatprep.subr.bf16.mxu1 %v8516_v63 }
 0x2dd   : > { %4957 = vmatmul.mubr.bf16.vlgmr.msra.gmra.mrb[128].mxu0 %v9571_v20 }
 0x2de   : > { %4964 = vmatprep.mubr.bf16.mxu0 %v9574_v38  ;;  %7922 = vmatpush3.bf16.msra.mxu0 %v8517_v10 }
 0x2df   : > { %7896 = vmatpush3.bf16.msra.mxu1 %v8518_v25  ;;  %7923 = vmatprep.subr.bf16.mxu0 %v8519_v0 }
 0x2e0   : > { %7961 = vmatprep.subr.bf16.mxu1 %v8521_v32 }
 0x2e2   : > { %7924 = vmatpush3.bf16.msra.mxu0 %v8520_v24  ;;  %5407 = vmatmul.mubr.bf16.vlgmr.msra.gmra.mrb[128].mxu1 %v9482_v48  ;;  %v8531_v48 = vld [vmem:[#allocation7 + $0x560] sm:$0xff]  }
 0x2e3   : > { %7962 = vmatpush3.bf16.msra.mxu1 %v8522_v26  ;;  %5414 = vmatprep.mubr.bf16.mxu1 %v9514_v29  ;;  %v8532_v29 = vld [vmem:[#allocation7 + $0x520] sm:$0xff]  }
 0x2e4   : > { %7925 = vmatprep.subr.bf16.mxu0 %v8523_v12  ;;  %7963 = vmatprep.subr.bf16.mxu1 %v8525_v19 }
 0x2e5   : > { %4965 = vmatmul.mubr.bf16.gmra.mrb[132].mxu0 %v9579_v35 }
 0x2e6   : > { %4972 = vmatprep.mubr.bf16.mxu0 %v9582_v49  ;;  %7926 = vmatpush3.bf16.msra.mxu0 %v8524_v47 }
 0x2e7   : > { %7964 = vmatpush3.bf16.msra.mxu1 %v8526_v33  ;;  %7927 = vmatprep.subr.bf16.mxu0 %v8527_v56 }
 0x2e8   : > { %7965 = vmatprep.subr.bf16.mxu1 %v8529_v43 }
 0x2ea   : > { %7928 = vmatpush3.bf16.msra.mxu0 %v8528_v18  ;;  %5415 = vmatmul.mubr.bf16.gmra.mrb[132].mxu1 %v9518_v52  ;;  %v8539_v52 = vld [vmem:[#allocation7 + $0x570] sm:$0xff]  }
 0x2eb   : > { %7966 = vmatpush3.bf16.msra.mxu1 %v8530_v34  ;;  %5422 = vmatprep.mubr.bf16.mxu1 %v9533_v11  ;;  %v8540_v11 = vld [vmem:[#allocation7 + $0x530] sm:$0xff]  }
 0x2ec   : > { %7929 = vmatprep.subr.bf16.mxu0 %v8531_v48  ;;  %7967 = vmatprep.subr.bf16.mxu1 %v8533_v41 }
 0x2ed   : > { %4973 = vmatmul.mubr.bf16.gmra.mrb[136].mxu0 %v9587_v9 }
 0x2ee   : > { %4980 = vmatprep.mubr.bf16.mxu0 %v9590_v14  ;;  %7930 = vmatpush3.bf16.msra.mxu0 %v8532_v29 }
 0x2ef   : > { %7968 = vmatpush3.bf16.msra.mxu1 %v8534_v57  ;;  %7931 = vmatprep.subr.bf16.mxu0 %v8535_v22 }
 0x2f0   : > { %7969 = vmatprep.subr.bf16.mxu1 %v8537_v4 }
 0x2f2   : > { %7932 = vmatpush3.bf16.msra.mxu0 %v8536_v40  ;;  %5423 = vmatmul.mubr.bf16.gmra.mrb[136].mxu1 %v9542_v54  ;;  %v8547_v54 = vld [vmem:[#allocation7 + $0x5f8] sm:$0xff]  }
 0x2f3   : > { %7970 = vmatpush3.bf16.msra.mxu1 %v8538_v37  ;;  %5430 = vmatprep.mubr.bf16.mxu1 %v9555_v58  ;;  %v8548_v58 = vld [vmem:[#allocation7 + $0x5b8] sm:$0xff]  }
 0x2f4   : > { %7933 = vmatprep.subr.bf16.mxu0 %v8539_v52  ;;  %7971 = vmatprep.subr.bf16.mxu1 %v8541_v8 }
 0x2f5   : > { %4981 = vmatmul.mubr.bf16.gmra.mrb[140].mxu0 %v9595_v16 }
 0x2f6   : > { %7934 = vmatpush3.bf16.msra.mxu0 %v8540_v11  ;;  %5471 = vmatprep.mubr.bf16.mxu0 %v9489_v15 }
 0x2f7   : > { %7972 = vmatpush3.bf16.msra.mxu1 %v8542_v1  ;;  %7935 = vmatprep.subr.bf16.mxu0 %v8543_v5 }
 0x2f8   : > { %7973 = vmatprep.subr.bf16.mxu1 %v8545_v44 }
 0x2fa   : > { %7936 = vmatpush3.bf16.msra.mxu0 %v8544_v55  ;;  %5431 = vmatmul.mubr.bf16.gmra.mrb[140].mxu1 %v9558_v42 }
 0x2fb   : > { %7974 = vmatpush3.bf16.msra.mxu1 %v8546_v2  ;;  %5536 = vmatprep.mubr.bf16.mxu1 %v9561_v39 }
 0x2fc   : > { %7975 = vmatprep.subr.bf16.mxu1 %v8547_v54 }
 0x2fd   : > { %5472 = vmatmul.mubr.bf16.vlgmr.msra.gmra.mrb[144].mxu0 %v9499_v13 }
 0x2fe   : > { %5479 = vmatprep.mubr.bf16.mxu0 %v9525_v59 }
 0x2ff   : > { %7976 = vmatpush3.bf16.msra.mxu1 %v8548_v58 }
 0x302   : > { %5537 = vmatmul.mubr.bf16.vlgmr.msra.gmra.mrb[144].mxu1 %v9571_v20 }
 0x303   : > { %5544 = vmatprep.mubr.bf16.mxu1 %v9574_v38 }
 0x305   : > { %5480 = vmatmul.mubr.bf16.gmra.mrb[148].mxu0 %v9528_v61 }
 0x306   : > { %5487 = vmatprep.mubr.bf16.mxu0 %v9545_v17 }
 0x30a   : > { %5545 = vmatmul.mubr.bf16.gmra.mrb[148].mxu1 %v9579_v35 }
 0x30b   : > { %5552 = vmatprep.mubr.bf16.mxu1 %v9582_v49 }
 0x30d   : > { %5488 = vmatmul.mubr.bf16.gmra.mrb[152].mxu0 %v9552_v23 }
 0x30e   : > { %5495 = vmatprep.mubr.bf16.mxu0 %v9564_v6 }
 0x312   : > { %5553 = vmatmul.mubr.bf16.gmra.mrb[152].mxu1 %v9587_v9 }
 0x313   : > { %5560 = vmatprep.mubr.bf16.mxu1 %v9590_v14 }
 0x315   : > { %5496 = vmatmul.mubr.bf16.gmra.mrb[156].mxu0 %v9567_v3 }
 0x31a   : > { %5561 = vmatmul.mubr.bf16.gmra.mrb[156].mxu1 %v9595_v16 }
 0x330   : > { %v7537_v15 = vpop.f32.mrb[64].mxu0 }
 0x331   : > { %v7538_v13 = vpop.f32.mrb[65].mxu0 }
 0x332   : > { %v7539_v59 = vadd.f32 %v7538_v13, %v7537_v15  ;;  %v7540_v61 = vpop.f32.mrb[66].mxu0 }
 0x333   : > { %v7541_v17 = vpop.f32.mrb[67].mxu0 }
 0x334   : > { %v7542_v42 = vadd.f32 %v7541_v17, %v7540_v61  ;;  %v7577_v39 = vpop.f32.mrb[64].mxu1 }
 0x335   : > { %v7578_v20 = vpop.f32.mrb[65].mxu1 }
 0x336   : > { %v7579_v38 = vadd.f32 %v7578_v20, %v7577_v39  ;;  %v7580_v23 = vpop.f32.mrb[66].mxu1 }
 0x337   : > { %v7581_v35 = vpop.f32.mrb[67].mxu1 }
 0x338   : > { %v3734_v6 = vadd.f32 %v7579_v38, %v7539_v59  ;;  %v7543_v49 = vpop.f32.mrb[68].mxu0  ;;  %v7582_v9 = vadd.f32 %v7581_v35, %v7580_v23 }
 0x339   : > { %v7544_v31 = vpop.f32.mrb[69].mxu0 }
 0x33a   : > { %v7545_v14 = vadd.f32 %v7544_v31, %v7543_v49  ;;  %v3737_v45 = vadd.f32 %v7582_v9, %v7542_v42  ;;  %v7546_v3 = vpop.f32.mrb[70].mxu0 }
 0x33b   : > { %v7547_v53 = vpop.f32.mrb[71].mxu0 }
 0x33c   : > { %v7548_v16 = vadd.f32 %v7547_v53, %v7546_v3 }
 0x33d   : > { %v7583_v7 = vpop.f32.mrb[68].mxu1 }
 0x33e   : > { %v7584_v36 = vpop.f32.mrb[69].mxu1 }
 0x33f   : > { %v7585_v28 = vadd.f32 %v7584_v36, %v7583_v7  ;;  %v7586_v27 = vpop.f32.mrb[70].mxu1 }
 0x340   : > { %v7549_v51 = vpop.f32.mrb[72].mxu0  ;;  %v7587_v21 = vpop.f32.mrb[71].mxu1 }
 0x341   : > { %v3742_v30 = vadd.f32 %v7585_v28, %v7545_v14  ;;  %v7550_v60 = vpop.f32.mrb[73].mxu0  ;;  %v7588_v46 = vadd.f32 %v7587_v21, %v7586_v27 }
 0x342   : > { %v7551_v50 = vadd.f32 %v7550_v60, %v7549_v51  ;;  %v7552_v62 = vpop.f32.mrb[74].mxu0 }
 0x343   : > { %v3745_v63 = vadd.f32 %v7588_v46, %v7548_v16  ;;  %v7553_v10 = vpop.f32.mrb[75].mxu0 }
 0x344   : > { %v7554_v25 = vadd.f32 %v7553_v10, %v7552_v62 }
 0x345   : > { %v7589_v0 = vpop.f32.mrb[72].mxu1 }
 0x346   : > { %v7590_v32 = vpop.f32.mrb[73].mxu1 }
 0x347   : > { %v7591_v24 = vadd.f32 %v7590_v32, %v7589_v0  ;;  %v7592_v26 = vpop.f32.mrb[74].mxu1 }
 0x348   : > { %v7555_v12 = vpop.f32.mrb[76].mxu0  ;;  %v7593_v19 = vpop.f32.mrb[75].mxu1 }
 0x349   : > { %v3750_v47 = vadd.f32 %v7591_v24, %v7551_v50  ;;  %v7556_v33 = vpop.f32.mrb[77].mxu0  ;;  %v7594_v56 = vadd.f32 %v7593_v19, %v7592_v26 }
 0x34a   : > { %v7557_v43 = vadd.f32 %v7556_v33, %v7555_v12  ;;  %v7558_v18 = vpop.f32.mrb[78].mxu0 }
 0x34b   : > { %v3753_v34 = vadd.f32 %v7594_v56, %v7554_v25  ;;  %v7559_v48 = vpop.f32.mrb[79].mxu0 }
 0x34c   : > { %v7560_v41 = vadd.f32 %v7559_v48, %v7558_v18 }
 0x34d   : > { %v7595_v29 = vpop.f32.mrb[76].mxu1 }
 0x34e   : > { %v7596_v57 = vpop.f32.mrb[77].mxu1 }
 0x34f   : > { %v7597_v22 = vadd.f32 %v7596_v57, %v7595_v29  ;;  %v7598_v4 = vpop.f32.mrb[78].mxu1 }
 0x350   : > { %v7617_v40 = vpop.f32.mrb[80].mxu0  ;;  %v7599_v37 = vpop.f32.mrb[79].mxu1 }
 0x351   : > { %v3758_v52 = vadd.f32 %v7597_v22, %v7557_v43  ;;  %v7600_v8 = vadd.f32 %v7599_v37, %v7598_v4  ;;  %v7618_v11 = vpop.f32.mrb[81].mxu0 }
 0x352   : > { %v7619_v1 = vadd.f32 %v7618_v11, %v7617_v40  ;;  %v7620_v5 = vpop.f32.mrb[82].mxu0 }
 0x353   : > { %v3761_v44 = vadd.f32 %v7600_v8, %v7560_v41  ;;  %v7621_v55 = vpop.f32.mrb[83].mxu0 }
 0x354   : > { %v9663_v2 = vadd.f32 %v7619_v1, %v3734_v6  ;;  %v7622_v54 = vadd.f32 %v7621_v55, %v7620_v5 }
 0x355   : > { %v7657_v58 = vpop.f32.mrb[80].mxu1 }
 0x356   : > { %v9665_v15 = vadd.f32 %v7622_v54, %v3737_v45  ;;  %v7658_v13 = vpop.f32.mrb[81].mxu1 }
 0x357   : > { %v7659_v59 = vadd.f32 %v7658_v13, %v7657_v58  ;;  %v7660_v61 = vpop.f32.mrb[82].mxu1 }
 0x358   : > { %v7623_v17 = vpop.f32.mrb[84].mxu0  ;;  %v7661_v42 = vpop.f32.mrb[83].mxu1 }
 0x359   : > { %v7624_v39 = vpop.f32.mrb[85].mxu0  ;;  %v7662_v20 = vadd.f32 %v7661_v42, %v7660_v61 }
 0x35a   : > { %v7625_v38 = vadd.f32 %v7624_v39, %v7623_v17  ;;  %v7626_v23 = vpop.f32.mrb[86].mxu0 }
 0x35b   : > { %v7627_v35 = vpop.f32.mrb[87].mxu0 }
 0x35c   : > { %v9667_v49 = vadd.f32 %v7625_v38, %v3742_v30  ;;  %v7628_v9 = vadd.f32 %v7627_v35, %v7626_v23 }
 0x35d   : > { %v7663_v31 = vpop.f32.mrb[84].mxu1 }
 0x35e   : > { %v9669_v6 = vadd.f32 %v7628_v9, %v3745_v63  ;;  %v7664_v14 = vpop.f32.mrb[85].mxu1 }
 0x35f   : > { %v7665_v3 = vadd.f32 %v7664_v14, %v7663_v31  ;;  %v7666_v45 = vpop.f32.mrb[86].mxu1  ;;  %v8549_v31 = vld [vmem:[%s10157_s5 + $0x40] sm:$0xff]  }
 0x360   : > { %v7629_v53 = vpop.f32.mrb[88].mxu0  ;;  %v7667_v16 = vpop.f32.mrb[87].mxu1  ;;  %8001 = vmatprep.subr.bf16.mxu0 %v8549_v31 }
 0x361   : > { %v7630_v7 = vpop.f32.mrb[89].mxu0  ;;  %v7668_v36 = vadd.f32 %v7667_v16, %v7666_v45  ;;  %v8551_v16 = vld [vmem:[%s10157_s5 + $0xc0] sm:$0xff]  }
 0x362   : > { %v7631_v28 = vadd.f32 %v7630_v7, %v7629_v53  ;;  %v7632_v27 = vpop.f32.mrb[90].mxu0  ;;  %v8550_v53 = vld [vmem:[%s10157_s5] sm:$0xff]   ;;  %8023 = vmatprep.subr.bf16.mxu1 %v8551_v16 }
 0x363   : > { %v7633_v51 = vpop.f32.mrb[91].mxu0  ;;  %8002 = vmatpush3.bf16.msra.mxu0 %v8550_v53 }
 0x364   : > { %v9671_v21 = vadd.f32 %v7631_v28, %v3750_v47  ;;  %v7634_v60 = vadd.f32 %v7633_v51, %v7632_v27  ;;  %v8552_v28 = vld [vmem:[%s10157_s5 + $0x80] sm:$0xff]  }
 0x365   : > { %v7669_v46 = vpop.f32.mrb[88].mxu1  ;;  %8024 = vmatpush3.bf16.msra.mxu1 %v8552_v28 }
 0x366   : > { %v9673_v30 = vadd.f32 %v7634_v60, %v3753_v34  ;;  %v7670_v50 = vpop.f32.mrb[89].mxu1 }
 0x367   : > { %v9675_v62 = vadd.f32 %v7670_v50, %v7669_v46  ;;  %v7672_v63 = vpop.f32.mrb[90].mxu1  ;;  %v8553_v50 = vld [vmem:[%s10157_s5 + $0x48] sm:$0xff]  }
 0x368   : > { %v7635_v10 = vpop.f32.mrb[92].mxu0  ;;  %v7673_v25 = vpop.f32.mrb[91].mxu1  ;;  %8003 = vmatprep.subr.bf16.mxu0 %v8553_v50 }
 0x369   : > { %v7636_v0 = vpop.f32.mrb[93].mxu0  ;;  %v9677_v32 = vadd.f32 %v7673_v25, %v7672_v63  ;;  %v8554_v25 = vld [vmem:[%s10157_s5 + $0x8] sm:$0xff]  }
 0x36a   : > { %v7637_v24 = vadd.f32 %v7636_v0, %v7635_v10  ;;  %v7638_v26 = vpop.f32.mrb[94].mxu0  ;;  %v8555_v0 = vld [vmem:[%s10157_s5 + $0xc8] sm:$0xff]   ;;  %8004 = vmatpush3.bf16.msra.mxu0 %v8554_v25 }
 0x36b   : > { %v7639_v12 = vpop.f32.mrb[95].mxu0  ;;  %8025 = vmatprep.subr.bf16.mxu1 %v8555_v0  ;;  %v8570_v0 = vld [vmem:[%s10157_s5 + $0x28] sm:$0xff]  }
 0x36c   : > { %v9679_v19 = vadd.f32 %v7637_v24, %v3758_v52  ;;  %v7640_v47 = vadd.f32 %v7639_v12, %v7638_v26 }
 0x36d   : > { %v7675_v33 = vpop.f32.mrb[92].mxu1 }
 0x36e   : > { %v9681_v56 = vadd.f32 %v7640_v47, %v3761_v44  ;;  %v7676_v43 = vpop.f32.mrb[93].mxu1  ;;  %v8556_v47 = vld [vmem:[%s10157_s5 + $0x88] sm:$0xff]  }
 0x36f   : > { %v9683_v18 = vadd.f32 %v7676_v43, %v7675_v33  ;;  %v7678_v34 = vpop.f32.mrb[94].mxu1  ;;  %8026 = vmatpush3.bf16.msra.mxu1 %v8556_v47 }
 0x370   : > { %v7697_v48 = vpop.f32.mrb[96].mxu0  ;;  %v7679_v41 = vpop.f32.mrb[95].mxu1 }
 0x371   : > { %v9685_v29 = vadd.f32 %v7679_v41, %v7678_v34  ;;  %v7698_v57 = vpop.f32.mrb[97].mxu0  ;;  %v8557_v41 = vld [vmem:[%s10157_s5 + $0x50] sm:$0xff]  }
 0x372   : > { %v7699_v22 = vadd.f32 %v7698_v57, %v7697_v48  ;;  %v7700_v4 = vpop.f32.mrb[98].mxu0  ;;  %8005 = vmatprep.subr.bf16.mxu0 %v8557_v41 }
 0x373   : > { %v7701_v40 = vpop.f32.mrb[99].mxu0 }
 0x374   : > { %v4314_v37 = vadd.f32 %v7699_v22, %v7659_v59  ;;  %v7702_v8 = vadd.f32 %v7701_v40, %v7700_v4  ;;  %v8558_v4 = vld [vmem:[%s10157_s5 + $0x10] sm:$0xff]  }
 0x375   : > { %v7737_v52 = vpop.f32.mrb[96].mxu1  ;;  %8006 = vmatpush3.bf16.msra.mxu0 %v8558_v4  ;;  %v8575_v4 = vld [vmem:[%s10157_s5 + $0xf0] sm:$0xff]  }
 0x376   : > { %v4317_v11 = vadd.f32 %v7702_v8, %v7662_v20  ;;  %v7738_v1 = vpop.f32.mrb[97].mxu1  ;;  %v8560_v8 = vld [vmem:[%s10157_s5 + $0x90] sm:$0xff]  }
 0x377   : > { %v7739_v5 = vadd.f32 %v7738_v1, %v7737_v52  ;;  %v7740_v44 = vpop.f32.mrb[98].mxu1 }
 0x378   : > { %v7703_v55 = vpop.f32.mrb[100].mxu0  ;;  %v7741_v54 = vpop.f32.mrb[99].mxu1 }
 0x379   : > { %v9687_v58 = vadd.f32 %v7739_v5, %v4314_v37  ;;  %v7704_v13 = vpop.f32.mrb[101].mxu0  ;;  %v7742_v61 = vadd.f32 %v7741_v54, %v7740_v44  ;;  %v8561_v44 = vld [vmem:[%s10157_s5 + $0x58] sm:$0xff]  }
 0x37a   : > { %v7705_v17 = vadd.f32 %v7704_v13, %v7703_v55  ;;  %v7706_v42 = vpop.f32.mrb[102].mxu0  ;;  %v8562_v13 = vld [vmem:[%s10157_s5 + $0x18] sm:$0xff]   ;;  %8007 = vmatprep.subr.bf16.mxu0 %v8561_v44 }
 0x37b   : > { %v5569_v39 = vmax.f32 %v9663_v2, %v9687_v58  ;;  %v9691_v38 = vadd.f32 %v7742_v61, %v4317_v11  ;;  %v7707_v59 = vpop.f32.mrb[103].mxu0  ;;  %v8563_v61 = vld [vmem:[%s10157_s5 + $0xd8] sm:$0xff]   ;;  %8008 = vmatpush3.bf16.msra.mxu0 %v8562_v13 }
 0x37c   : > { %v4322_v23 = vadd.f32 %v7705_v17, %v7665_v3  ;;  %v7708_v35 = vadd.f32 %v7707_v59, %v7706_v42 }
 0x37d   : > { %v5570_v20 = vmax.f32 %v9665_v15, %v9691_v38  ;;  %v7743_v9 = vpop.f32.mrb[100].mxu1 }
 0x37e   : > { %v4325_v14 = vadd.f32 %v7708_v35, %v7668_v36  ;;  %v7744_v45 = vpop.f32.mrb[101].mxu1 }
 0x37f   : > { %v7745_v3 = vadd.f32 %v7744_v45, %v7743_v9  ;;  %v7746_v7 = vpop.f32.mrb[102].mxu1  ;;  %v8565_v45 = vld [vmem:[%s10157_s5 + $0x60] sm:$0xff]  }
 0x380   : > { %v7709_v27 = vpop.f32.mrb[104].mxu0  ;;  %v7747_v51 = vpop.f32.mrb[103].mxu1  ;;  %8009 = vmatprep.subr.bf16.mxu0 %v8565_v45 }
 0x381   : > { %v9707_v36 = vadd.f32 %v7745_v3, %v4322_v23  ;;  %v7710_v60 = vpop.f32.mrb[105].mxu0  ;;  %v7748_v46 = vadd.f32 %v7747_v51, %v7746_v7  ;;  %v8564_v23 = vld [vmem:[%s10157_s5 + $0x98] sm:$0xff]   ;;  %v8566_v3 = vld [vmem:[%s10157_s5 + $0x20] sm:$0xff]  }
 0x382   : > { %v7711_v63 = vadd.f32 %v7710_v60, %v7709_v27  ;;  %v7712_v10 = vpop.f32.mrb[106].mxu0  ;;  %v8568_v27 = vld [vmem:[%s10157_s5 + $0xa0] sm:$0xff]   ;;  %8010 = vmatpush3.bf16.msra.mxu0 %v8566_v3 }
 0x383   : > { %v5571_v24 = vmax.f32 %v9667_v49, %v9707_v36  ;;  %v9720_v26 = vadd.f32 %v7748_v46, %v4325_v14  ;;  %v7713_v12 = vpop.f32.mrb[107].mxu0 }
 0x384   : > { %v4330_v33 = vadd.f32 %v7711_v63, %v9675_v62  ;;  %v7714_v43 = vadd.f32 %v7713_v12, %v7712_v10  ;;  %v8559_v62 = vld [vmem:[%s10157_s5 + $0xd0] sm:$0xff]   ;;  %v8569_v63 = vld [vmem:[%s10157_s5 + $0x68] sm:$0xff]  }
 0x385   : > { %v5572_v34 = vmax.f32 %v9669_v6, %v9720_v26  ;;  %v7749_v48 = vpop.f32.mrb[104].mxu1  ;;  %8027 = vmatprep.subr.bf16.mxu1 %v8559_v62  ;;  %v8571_v12 = vld [vmem:[%s10157_s5 + $0xe8] sm:$0xff]   ;;  %8011 = vmatprep.subr.bf16.mxu0 %v8569_v63 }
 0x386   : > { %v4333_v57 = vadd.f32 %v7714_v43, %v9677_v32  ;;  %v7750_v22 = vpop.f32.mrb[105].mxu1  ;;  %8028 = vmatpush3.bf16.msra.mxu1 %v8560_v8  ;;  %8012 = vmatpush3.bf16.msra.mxu0 %v8570_v0  ;;  %v8577_v8 = vld [vmem:[%s10157_s5 + $0x78] sm:$0xff]  }
 0x387   : > { %v7751_v40 = vadd.f32 %v7750_v22, %v7749_v48  ;;  %v7752_v37 = vpop.f32.mrb[106].mxu1  ;;  %8029 = vmatprep.subr.bf16.mxu1 %v8563_v61  ;;  %v8572_v48 = vld [vmem:[%s10157_s5 + $0xa8] sm:$0xff]   ;;  %v8574_v22 = vld [vmem:[%s10157_s5 + $0x30] sm:$0xff]  }
 0x388   : > { %v7715_v52 = vpop.f32.mrb[108].mxu0  ;;  %v7753_v11 = vpop.f32.mrb[107].mxu1 }
 0x389   : > { %v9741_v32 = vadd.f32 %v7751_v40, %v4330_v33  ;;  %v7716_v1 = vpop.f32.mrb[109].mxu0  ;;  %v7754_v5 = vadd.f32 %v7753_v11, %v7752_v37  ;;  %v8576_v37 = vld [vmem:[%s10157_s5 + $0xb0] sm:$0xff]   ;;  %v8579_v11 = vld [vmem:[%s10157_s5 + $0xf8] sm:$0xff]  }
 0x38a   : > { %v7717_v55 = vadd.f32 %v7716_v1, %v7715_v52  ;;  %v7718_v54 = vpop.f32.mrb[110].mxu0  ;;  %8030 = vmatpush3.bf16.msra.mxu1 %v8564_v23  ;;  %v8580_v23 = vld [vmem:[%s10157_s5 + $0xb8] sm:$0xff]  }
 0x38b   : > { %v5573_v17 = vmax.f32 %v9671_v21, %v9741_v32  ;;  %v9754_v42 = vadd.f32 %v7754_v5, %v4333_v57  ;;  %v7719_v59 = vpop.f32.mrb[111].mxu0  ;;  %v8573_v57 = vld [vmem:[%s10157_s5 + $0x70] sm:$0xff]   ;;  %v5705_v21 = vld [vmem:[#allocation4 + $0x4] sm:$0x2] }
 0x38c   : > { %v4338_v35 = vadd.f32 %v7717_v55, %v9683_v18  ;;  %v7720_v9 = vadd.f32 %v7719_v59, %v7718_v54  ;;  %v8567_v18 = vld [vmem:[%s10157_s5 + $0xe0] sm:$0xff]   ;;  %8013 = vmatprep.subr.bf16.mxu0 %v8573_v57  ;;  %v8578_v54 = vld [vmem:[%s10157_s5 + $0x38] sm:$0xff]  }
 0x38d   : > { %v5574_v31 = vmax.f32 %v9673_v30, %v9754_v42  ;;  %v7755_v14 = vpop.f32.mrb[108].mxu1  ;;  %8031 = vmatprep.subr.bf16.mxu1 %v8567_v18  ;;  %8014 = vmatpush3.bf16.msra.mxu0 %v8574_v22 }
 0x38e   : > { %v4341_v53 = vadd.f32 %v7720_v9, %v9685_v29  ;;  %v7756_v16 = vpop.f32.mrb[109].mxu1  ;;  %8032 = vmatpush3.bf16.msra.mxu1 %v8568_v27  ;;  %8015 = vmatprep.subr.bf16.mxu0 %v8577_v8 }
 0x38f   : > { %v7757_v7 = vadd.f32 %v7756_v16, %v7755_v14  ;;  %v7758_v28 = vpop.f32.mrb[110].mxu1  ;;  %8033 = vmatprep.subr.bf16.mxu1 %v8571_v12 }
 0x390   : > { %v7777_v51 = vpop.f32.mrb[112].mxu0  ;;  %v7759_v60 = vpop.f32.mrb[111].mxu1 }
 0x391   : > { %v9775_v29 = vadd.f32 %v7757_v7, %v4338_v35  ;;  %v7760_v46 = vadd.f32 %v7759_v60, %v7758_v28  ;;  %v7778_v50 = vpop.f32.mrb[113].mxu0  ;;  %8016 = vmatpush3.bf16.msra.mxu0 %v8578_v54  ;;  %v8694_v28 = vmov 0.0  }
 0x392   : > { %v7779_v10 = vadd.f32 %v7778_v50, %v7777_v51  ;;  %v7780_v25 = vpop.f32.mrb[114].mxu0  ;;  %8034 = vmatpush3.bf16.msra.mxu1 %v8572_v48  ;;  %8072 = vmatprep.subr.bf16.mxu0 %v8694_v28 }
 0x393   : > { %v5575_v47 = vmax.f32 %v9679_v19, %v9775_v29  ;;  %v9788_v33 = vadd.f32 %v7760_v46, %v4341_v53  ;;  %v7781_v43 = vpop.f32.mrb[115].mxu0  ;;  %8035 = vmatprep.subr.bf16.mxu1 %v8575_v4 }
 0x394   : > { %v7782_v41 = vadd.f32 %v7781_v43, %v7780_v25 }
 0x395   : > { %v5576_v62 = vmax.f32 %v9681_v56, %v9788_v33  ;;  %v7817_v40 = vpop.f32.mrb[112].mxu1 }
 0x396   : > { %v7818_v52 = vpop.f32.mrb[113].mxu1  ;;  %8036 = vmatpush3.bf16.msra.mxu1 %v8576_v37 }
 0x397   : > { %v7819_v1 = vadd.f32 %v7818_v52, %v7817_v40  ;;  %v7820_v5 = vpop.f32.mrb[114].mxu1  ;;  %8037 = vmatprep.subr.bf16.mxu1 %v8579_v11 }
 0x398   : > { %v7783_v44 = vpop.f32.mrb[116].mxu0  ;;  %v7821_v55 = vpop.f32.mrb[115].mxu1 }
 0x399   : > { %v4894_v13 = vadd.f32 %v7819_v1, %v7779_v10  ;;  %v7784_v61 = vpop.f32.mrb[117].mxu0  ;;  %v7822_v59 = vadd.f32 %v7821_v55, %v7820_v5 }
 0x39a   : > { %v7785_v35 = vadd.f32 %v7784_v61, %v7783_v44  ;;  %v7786_v9 = vpop.f32.mrb[118].mxu0  ;;  %8038 = vmatpush3.bf16.msra.mxu1 %v8580_v23 }
 0x39b   : > { %v4897_v14 = vadd.f32 %v7822_v59, %v7782_v41  ;;  %v7787_v45 = vpop.f32.mrb[119].mxu0  ;;  %8092 = vmatprep.subr.bf16.mxu1 %v8694_v28 }
 0x39c   : > { %v7788_v53 = vadd.f32 %v7787_v45, %v7786_v9 }
 0x39d   : > { %v7823_v16 = vpop.f32.mrb[116].mxu1 }
 0x39e   : > { %v7824_v3 = vpop.f32.mrb[117].mxu1 }
 0x39f   : > { %v7825_v18 = vadd.f32 %v7824_v3, %v7823_v16  ;;  %v7826_v7 = vpop.f32.mrb[118].mxu1 }
 0x3a0   : > { %v7789_v27 = vpop.f32.mrb[120].mxu0  ;;  %v7827_v51 = vpop.f32.mrb[119].mxu1 }
 0x3a1   : > { %v4902_v60 = vadd.f32 %v7825_v18, %v7785_v35  ;;  %v7790_v46 = vpop.f32.mrb[121].mxu0  ;;  %v7828_v50 = vadd.f32 %v7827_v51, %v7826_v7 }
 0x3a2   : > { %v7791_v63 = vadd.f32 %v7790_v46, %v7789_v27  ;;  %v7792_v10 = vpop.f32.mrb[122].mxu0 }
 0x3a3   : > { %v4905_v25 = vadd.f32 %v7828_v50, %v7788_v53  ;;  %v7793_v0 = vpop.f32.mrb[123].mxu0 }
 0x3a4   : > { %v7794_v12 = vadd.f32 %v7793_v0, %v7792_v10 }
 0x3a5   : > { %v7829_v43 = vpop.f32.mrb[120].mxu1 }
 0x3a6   : > { %v7830_v48 = vpop.f32.mrb[121].mxu1 }
 0x3a7   : > { %v7831_v41 = vadd.f32 %v7830_v48, %v7829_v43  ;;  %v7832_v57 = vpop.f32.mrb[122].mxu1 }
 0x3a8   : > { %v7795_v22 = vpop.f32.mrb[124].mxu0  ;;  %v7833_v4 = vpop.f32.mrb[123].mxu1 }
 0x3a9   : > { %v4910_v40 = vadd.f32 %v7831_v41, %v7791_v63  ;;  %v7796_v37 = vpop.f32.mrb[125].mxu0  ;;  %v7834_v8 = vadd.f32 %v7833_v4, %v7832_v57 }
 0x3aa   : > { %v7797_v52 = vadd.f32 %v7796_v37, %v7795_v22  ;;  %v7798_v11 = vpop.f32.mrb[126].mxu0 }
 0x3ab   : > { %v4913_v1 = vadd.f32 %v7834_v8, %v7794_v12  ;;  %v7799_v5 = vpop.f32.mrb[127].mxu0 }
 0x3ac   : > { %v7800_v44 = vadd.f32 %v7799_v5, %v7798_v11 }
 0x3ad   : > { %v7835_v55 = vpop.f32.mrb[124].mxu1 }
 0x3ae   : > { %v7836_v54 = vpop.f32.mrb[125].mxu1 }
 0x3af   : > { %v7837_v61 = vadd.f32 %v7836_v54, %v7835_v55  ;;  %v7838_v59 = vpop.f32.mrb[126].mxu1 }
 0x3b0   : > { %v7857_v23 = vpop.f32.mrb[128].mxu0  ;;  %v7839_v35 = vpop.f32.mrb[127].mxu1 }
 0x3b1   : > { %v4918_v9 = vadd.f32 %v7837_v61, %v7797_v52  ;;  %v7840_v45 = vadd.f32 %v7839_v35, %v7838_v59  ;;  %v7858_v53 = vpop.f32.mrb[129].mxu0 }
 0x3b2   : > { %v7859_v16 = vadd.f32 %v7858_v53, %v7857_v23  ;;  %v7860_v3 = vpop.f32.mrb[130].mxu0 }
 0x3b3   : > { %v4921_v18 = vadd.f32 %v7840_v45, %v7800_v44  ;;  %v7861_v7 = vpop.f32.mrb[131].mxu0 }
 0x3b4   : > { %v9821_v27 = vadd.f32 %v7859_v16, %v4894_v13  ;;  %v7862_v51 = vadd.f32 %v7861_v7, %v7860_v3 }
 0x3b5   : > { %v7897_v46 = vpop.f32.mrb[128].mxu1 }
 0x3b6   : > { %v9823_v50 = vadd.f32 %v7862_v51, %v4897_v14  ;;  %v7898_v63 = vpop.f32.mrb[129].mxu1 }
 0x3b7   : > { %v7899_v10 = vadd.f32 %v7898_v63, %v7897_v46  ;;  %v7900_v0 = vpop.f32.mrb[130].mxu1 }
 0x3b8   : > { %v7863_v12 = vpop.f32.mrb[132].mxu0  ;;  %v7901_v43 = vpop.f32.mrb[131].mxu1 }
 0x3b9   : > { %v7864_v48 = vpop.f32.mrb[133].mxu0  ;;  %v7902_v41 = vadd.f32 %v7901_v43, %v7900_v0 }
 0x3ba   : > { %v7865_v57 = vadd.f32 %v7864_v48, %v7863_v12  ;;  %v7866_v22 = vpop.f32.mrb[134].mxu0 }
 0x3bb   : > { %v7867_v4 = vpop.f32.mrb[135].mxu0 }
 0x3bc   : > { %v9825_v37 = vadd.f32 %v7865_v57, %v4902_v60  ;;  %v7868_v8 = vadd.f32 %v7867_v4, %v7866_v22 }
 0x3bd   : > { %v7903_v52 = vpop.f32.mrb[132].mxu1 }
 0x3be   : > { %v9827_v13 = vadd.f32 %v7868_v8, %v4905_v25  ;;  %v7904_v11 = vpop.f32.mrb[133].mxu1 }
 0x3bf   : > { %v7905_v5 = vadd.f32 %v7904_v11, %v7903_v52  ;;  %v7906_v14 = vpop.f32.mrb[134].mxu1 }
 0x3c0   : > { %v7869_v44 = vpop.f32.mrb[136].mxu0  ;;  %v7907_v55 = vpop.f32.mrb[135].mxu1 }
 0x3c1   : > { %v7870_v54 = vpop.f32.mrb[137].mxu0  ;;  %v7908_v61 = vadd.f32 %v7907_v55, %v7906_v14 }
 0x3c2   : > { %v7871_v59 = vadd.f32 %v7870_v54, %v7869_v44  ;;  %v7872_v23 = vpop.f32.mrb[138].mxu0 }
 0x3c3   : > { %v7873_v35 = vpop.f32.mrb[139].mxu0 }
 0x3c4   : > { %v9829_v45 = vadd.f32 %v7871_v59, %v4910_v40  ;;  %v7874_v53 = vadd.f32 %v7873_v35, %v7872_v23 }
 0x3c5   : > { %v7909_v16 = vpop.f32.mrb[136].mxu1 }
 0x3c6   : > { %v9831_v60 = vadd.f32 %v7874_v53, %v4913_v1  ;;  %v7910_v3 = vpop.f32.mrb[137].mxu1 }
 0x3c7   : > { %v9833_v7 = vadd.f32 %v7910_v3, %v7909_v16  ;;  %v7912_v25 = vpop.f32.mrb[138].mxu1 }
 0x3c8   : > { %v7875_v51 = vpop.f32.mrb[140].mxu0  ;;  %v7913_v46 = vpop.f32.mrb[139].mxu1 }
 0x3c9   : > { %v7876_v63 = vpop.f32.mrb[141].mxu0  ;;  %v9835_v0 = vadd.f32 %v7913_v46, %v7912_v25 }
 0x3ca   : > { %v7877_v12 = vadd.f32 %v7876_v63, %v7875_v51  ;;  %v7878_v43 = vpop.f32.mrb[142].mxu0 }
 0x3cb   : > { %v7879_v48 = vpop.f32.mrb[143].mxu0 }
 0x3cc   : > { %v9837_v57 = vadd.f32 %v7877_v12, %v4918_v9  ;;  %v7880_v40 = vadd.f32 %v7879_v48, %v7878_v43 }
 0x3cd   : > { %v7915_v22 = vpop.f32.mrb[140].mxu1 }
 0x3ce   : > { %v9839_v4 = vadd.f32 %v7880_v40, %v4921_v18  ;;  %v7916_v1 = vpop.f32.mrb[141].mxu1 }
 0x3cf   : > { %v9841_v8 = vadd.f32 %v7916_v1, %v7915_v22  ;;  %v7918_v52 = vpop.f32.mrb[142].mxu1 }
 0x3d0   : > { %v7937_v11 = vpop.f32.mrb[144].mxu0  ;;  %v7919_v14 = vpop.f32.mrb[143].mxu1 }
 0x3d1   : > { %v9843_v44 = vadd.f32 %v7919_v14, %v7918_v52  ;;  %v7938_v55 = vpop.f32.mrb[145].mxu0 }
 0x3d2   : > { %v7939_v54 = vadd.f32 %v7938_v55, %v7937_v11  ;;  %v7940_v59 = vpop.f32.mrb[146].mxu0 }
 0x3d3   : > { %v7941_v23 = vpop.f32.mrb[147].mxu0 }
 0x3d4   : > { %v5474_v35 = vadd.f32 %v7939_v54, %v7899_v10  ;;  %v7942_v53 = vadd.f32 %v7941_v23, %v7940_v59  ;;  %v9849_v10 = vld [vmem:[%s10156_s4] ss:$0 sm:$0xff] }
 0x3d5   : > { %v7977_v9 = vpop.f32.mrb[144].mxu1 }
 0x3d6   : > { %v5477_v16 = vadd.f32 %v7942_v53, %v7902_v41  ;;  %v7978_v3 = vpop.f32.mrb[145].mxu1 }
 0x3d7   : > { %v7979_v25 = vadd.f32 %v7978_v3, %v7977_v9  ;;  %v7980_v18 = vpop.f32.mrb[146].mxu1 }
 0x3d8   : > { %v7943_v51 = vpop.f32.mrb[148].mxu0  ;;  %v7981_v46 = vpop.f32.mrb[147].mxu1 }
 0x3d9   : > { %v5539_v63 = vadd.f32 %v7979_v25, %v5474_v35  ;;  %v7944_v12 = vpop.f32.mrb[149].mxu0  ;;  %v7982_v43 = vadd.f32 %v7981_v46, %v7980_v18 }
 0x3da   : > { %v7945_v48 = vadd.f32 %v7944_v12, %v7943_v51  ;;  %v7946_v40 = vpop.f32.mrb[150].mxu0  ;;  %v5635_v51 = vld [vmem:[#allocation4 + $0x4] sm:$0x1]  ;;  %v5641_v12 = vld [vmem:[#allocation4 + $0x8] sm:$0x1] }
 0x3db   : > { %v5577_v22 = vmax.f32 %v9821_v27, %v5539_v63  ;;  %v5542_v1 = vadd.f32 %v7982_v43, %v5477_v16  ;;  %v7947_v52 = vpop.f32.mrb[151].mxu0  ;;  %v5653_v43 = vld [vmem:[#allocation4 + $0x10] sm:$0x1]  ;;  %v5714_v63 = vld [vmem:[#allocation4 + $0xc] sm:$0x2] }
 0x3dc   : > { %v5482_v41 = vadd.f32 %v7945_v48, %v7905_v5  ;;  %v7948_v11 = vadd.f32 %v7947_v52, %v7946_v40 }
 0x3dd   : > { %v5585_v14 = vmax.f32 %v5569_v39, %v5577_v22  ;;  %v5578_v55 = vmax.f32 %v9823_v50, %v5542_v1  ;;  %v7983_v54 = vpop.f32.mrb[148].mxu1 }
 0x3de   : > { %v5485_v59 = vadd.f32 %v7948_v11, %v7908_v61  ;;  %v7984_v23 = vpop.f32.mrb[149].mxu1  ;;  %v5623_v11 = vld [vmem:[#allocation4] sm:$0x1] }
 0x3df   : > { %v5600_v27 = vadd.f32 %v9849_v10, %v5585_v14  ;;  %v5586_v35 = vmax.f32 %v5570_v20, %v5578_v55  ;;  %v7985_v53 = vadd.f32 %v7984_v23, %v7983_v54  ;;  %v7986_v9 = vpop.f32.mrb[150].mxu1  ;;  %v5647_v14 = vld [vmem:[#allocation4 + $0xc] sm:$0x1] }
 0x3e0   : > { %v7949_v5 = vpop.f32.mrb[152].mxu0  ;;  %v7987_v16 = vpop.f32.mrb[151].mxu1 }
 0x3e1   : > { %v5608_v3 = vmax.f32 %v5600_v27, 0.0  ;;  %v5601_v2 = vadd.f32 %v9849_v10, %v5586_v35  ;;  %v5547_v58 = vadd.f32 %v7985_v53, %v5482_v41  ;;  %v7950_v39 = vpop.f32.mrb[153].mxu0  ;;  %v7988_v50 = vadd.f32 %v7987_v16, %v7986_v9 }
 0x3e2   : > { %v7951_v61 = vadd.f32 %v7950_v39, %v7949_v5  ;;  %v7952_v25 = vpop.f32.mrb[154].mxu0 }
 0x3e3   : > { %v7193_v18 = vpack.c.bf16 %v5608_v3, %v5608_v3  ;;  %v5609_v46 = vmax.f32 %v5601_v2, 0.0  ;;  %v5579_v15 = vmax.f32 %v9825_v37, %v5547_v58  ;;  %v5550_v38 = vadd.f32 %v7988_v50, %v5485_v59  ;;  %v7953_v20 = vpop.f32.mrb[155].mxu0 }
 0x3e4   : > { %v5490_v48 = vadd.f32 %v7951_v61, %v9833_v7  ;;  %v7954_v40 = vadd.f32 %v7953_v20, %v7952_v25  ;;  %v5697_v20 = vld [vmem:[#allocation4] sm:$0x2] }
 0x3e5   : > { %v5630_v22 = vshrl.u32 %v7193_v18, 16  ;;  %v7110_v1 = vrot.slane %v7193_v18, 9  ;;  %v7112_v52 = vrot.slane %v7193_v18, 10  ;;  %v5616_v41 = vpack.c.bf16 %v5609_v46, %v5608_v3  ;;  %v7989_v37 = vpop.f32.mrb[152].mxu1 }
 0x3e6   : > { %v9868_v55 = vpack.c.bf16 %v5609_v46, %v5609_v46  ;;  %v5587_v54 = vmax.f32 %v5571_v24, %v5579_v15  ;;  %v5580_v59 = vmax.f32 %v9827_v13, %v5550_v38  ;;  %v5493_v23 = vadd.f32 %v7954_v40, %v9835_v0  ;;  %v7990_v27 = vpop.f32.mrb[153].mxu1 }
 0x3e7   : > { %v5636_v7 = vsel %vm9863_vm11, %v5630_v22, %v5635_v51  ;;  %v5642_v35 = vsel %vm9863_vm11, %v7110_v1, %v5641_v12  ;;  %v7111_v53 = vrot.slane %v5630_v22, 9  ;;  %v5654_v9 = vsel %vm9863_vm11, %v7112_v52, %v5653_v43  ;;  %v7992_v5 = vpop.f32.mrb[154].mxu1  ;;  %v5720_v22 = vld [vmem:[#allocation4 + $0x10] sm:$0x2] }
 0x3e8   : > { %5637 = vst [vmem:[#allocation4 + $0x4] sm:$0x1] %v5636_v7  ;;  %5643 = vst [vmem:[#allocation4 + $0x8] sm:$0x1] %v5642_v35  ;;  %v5624_v49 = vsel %vm9863_vm11, %v5616_v41, %v5623_v11  ;;  %v9884_v36 = vshll.u32 %v9868_v55, 16  ;;  %v5602_v24 = vadd.f32 %v9849_v10, %v5587_v54  ;;  %v7955_v13 = vpop.f32.mrb[156].mxu0  ;;  %v5588_v3 = vmax.f32 %v5572_v34, %v5580_v59 }
 0x3e9   : > { %5655 = vst [vmem:[#allocation4 + $0x10] sm:$0x1] %v5654_v9  ;;  %v7993_v0 = vpop.f32.mrb[155].mxu1  ;;  %v5648_v16 = vsel %vm9863_vm11, %v7111_v53, %v5647_v14  ;;  %5625 = vst [vmem:[#allocation4] sm:$0x1] %v5624_v49  ;;  %v7991_v2 = vadd.f32 %v7990_v27, %v7989_v37  ;;  %v7956_v58 = vpop.f32.mrb[157].mxu0 }
 0x3ea   : > { %v7994_v39 = vadd.f32 %v7993_v0, %v7992_v5  ;;  %5649 = vst [vmem:[#allocation4 + $0xc] sm:$0x1] %v5648_v16  ;;  %v5610_v50 = vmax.f32 %v5602_v24, 0.0  ;;  %v7957_v61 = vadd.f32 %v7956_v58, %v7955_v13  ;;  %v7958_v25 = vpop.f32.mrb[158].mxu0  ;;  %v7115_v18 = vrot.slane %v9868_v55, 9 }
 0x3eb   : > { %v5603_v51 = vadd.f32 %v9849_v10, %v5588_v3  ;;  %v5555_v46 = vadd.f32 %v7991_v2, %v5490_v48  ;;  %v7959_v38 = vpop.f32.mrb[159].mxu0  ;;  %v7114_v26 = vrot.slane %v9884_v36, 9  ;;  %v7116_v40 = vrot.slane %v9884_v36, 10 }
 0x3ec   : > { %v5558_v15 = vadd.f32 %v7994_v39, %v5493_v23  ;;  %v7195_v34 = vpack.c.bf16 %v5610_v50, %v5610_v50  ;;  %v5498_v12 = vadd.f32 %v7957_v61, %v9841_v8  ;;  %v7960_v43 = vadd.f32 %v7959_v38, %v7958_v25  ;;  %v5708_v8 = vld [vmem:[#allocation4 + $0x8] sm:$0x2]  ;;  %v5782_v38 = vld [vmem:[#allocation4 + $0x10] sm:$0x4] }
 0x3ed   : > { %v5611_v1 = vmax.f32 %v5603_v51, 0.0  ;;  %v5581_v52 = vmax.f32 %v9829_v45, %v5555_v46  ;;  %v7995_v11 = vpop.f32.mrb[156].mxu1  ;;  %vm8695_vm11 = vmmov 0  }
 0x3ee   : > { %v5582_v41 = vmax.f32 %v9831_v60, %v5558_v15  ;;  %v5692_v37 = vrot.slane %v7195_v34, 7  ;;  %v5701_v14 = vshrl.u32 %v7195_v34, 16  ;;  %v7119_v54 = vrot.slane %v7195_v34, 9  ;;  %v7996_v23 = vpop.f32.mrb[157].mxu1  ;;  %v5846_v15 = vld [vmem:[#allocation4 + $0x10] sm:$0x8] }
 0x3ef   : > { %v5501_v59 = vadd.f32 %v7960_v43, %v9843_v44  ;;  %v5668_v27 = vld [vmem:[#allocation4 + $0x4] sm:$0x1]  ;;  %v5674_v7 = vld [vmem:[#allocation4 + $0x8] sm:$0x1]  ;;  %v5617_v53 = vpack.c.bf16 %v5611_v1, %v5610_v50  ;;  %v9912_v9 = vpack.c.bf16 %v5611_v1, %v5611_v1  ;;  %v5589_v45 = vmax.f32 %v5573_v17, %v5581_v52  ;;  %v7998_v32 = vpop.f32.mrb[158].mxu1 }
 0x3f0   : > { %v5686_v35 = vld [vmem:[#allocation4 + $0x10] sm:$0x1]  ;;  %v5590_v60 = vmax.f32 %v5574_v31, %v5582_v41  ;;  %v5664_v5 = vld [vmem:[#allocation4] sm:$0x1]  ;;  %v5669_v44 = vsel %vm9896_vm1, %v9868_v55, %v5668_v27  ;;  %v5675_v49 = vsel %vm9896_vm1, %v7114_v26, %v5674_v7  ;;  %v5698_v13 = vsel %vm9905_vm2, %v5692_v37, %v5697_v20  ;;  %v7999_v0 = vpop.f32.mrb[159].mxu1 }
 0x3f1   : > { %v5687_v24 = vsel %vm9896_vm1, %v7116_v40, %v5686_v35  ;;  %v5665_v30 = vsel %vm9896_vm1, %v9884_v36, %v5664_v5  ;;  %5670 = vst [vmem:[#allocation4 + $0x4] sm:$0x1] %v5669_v44  ;;  %5676 = vst [vmem:[#allocation4 + $0x8] sm:$0x1] %v5675_v49  ;;  %v5680_v17 = vld [vmem:[#allocation4 + $0xc] sm:$0x1]  ;;  %v5715_v31 = vsel %vm9905_vm2, %v5701_v14, %v5714_v63 }
 0x3f2   : > { %5688 = vst [vmem:[#allocation4 + $0x10] sm:$0x1] %v5687_v24  ;;  %5699 = vst [vmem:[#allocation4] sm:$0x2] %v5698_v13  ;;  %v5703_v42 = vrot.slane %v5701_v14, 7  ;;  %v5721_v55 = vsel %vm9905_vm2, %v7119_v54, %v5720_v22  ;;  %v5681_v16 = vsel %vm9896_vm1, %v7115_v18, %v5680_v17  ;;  %v5709_v36 = vsel %vm9905_vm2, %v5617_v53, %v5708_v8 }
 0x3f3   : > { %5666 = vst [vmem:[#allocation4] sm:$0x1] %v5665_v30  ;;  %5716 = vst [vmem:[#allocation4 + $0xc] sm:$0x2] %v5715_v31  ;;  %v5726_v3 = vshll.u32 %v9912_v9, 16  ;;  %v5604_v58 = vadd.f32 %v9849_v10, %v5589_v45  ;;  %v5605_v39 = vadd.f32 %v9849_v10, %v5590_v60  ;;  %v7997_v50 = vadd.f32 %v7996_v23, %v7995_v11  ;;  %v8587_v30 = vld [vmem:[%s10157_s5 + $0x110] sm:$0xff]  }
 0x3f4   : > { %5722 = vst [vmem:[#allocation4 + $0x10] sm:$0x2] %v5721_v55  ;;  %5682 = vst [vmem:[#allocation4 + $0xc] sm:$0x1] %v5681_v16  ;;  %v5706_v2 = vsel %vm9905_vm2, %v5703_v42, %v5705_v21  ;;  %v8000_v61 = vadd.f32 %v7999_v0, %v7998_v32  ;;  %v5761_v20 = vld [vmem:[#allocation4] sm:$0x4] }
 0x3f5   : > { %5710 = vst [vmem:[#allocation4 + $0x8] sm:$0x2] %v5709_v36  ;;  %5707 = vst [vmem:[#allocation4 + $0x4] sm:$0x2] %v5706_v2  ;;  %v5612_v18 = vmax.f32 %v5604_v58, 0.0  ;;  %v5613_v51 = vmax.f32 %v5605_v39, 0.0  ;;  %v5563_v46 = vadd.f32 %v7997_v50, %v5498_v12 }
 0x3f6   : > { %v5566_v6 = vadd.f32 %v8000_v61, %v5501_v59  ;;  %v5728_v26 = vrot.slane %v5726_v3, 7  ;;  %v5774_v63 = vld [vmem:[#allocation4 + $0x8] sm:$0x4]  ;;  %v5735_v22 = vrot.slane %v9912_v9, 7  ;;  %v7121_v1 = vrot.slane %v5726_v3, 9 }
 0x3f7   : > { %v7197_v34 = vpack.c.bf16 %v5612_v18, %v5612_v18  ;;  %v5618_v43 = vpack.c.bf16 %v5613_v51, %v5612_v18  ;;  %v5583_v40 = vmax.f32 %v9837_v57, %v5563_v46  ;;  %v5769_v12 = vld [vmem:[#allocation4 + $0x4] sm:$0x4]  ;;  %v5779_v27 = vld [vmem:[#allocation4 + $0xc] sm:$0x4]  ;;  %v7198_v7 = vpack.c.bf16 %v5613_v51, %v5613_v51  ;;  %v5823_v50 = vld [vmem:[#allocation4] sm:$0x8] }
 0x3f8   : > { %v5584_v52 = vmax.f32 %v9839_v4, %v5566_v6  ;;  %v5836_v46 = vld [vmem:[#allocation4 + $0x8] sm:$0x8] }
 0x3f9   : > { %v5732_v48 = vld [vmem:[#allocation4] sm:$0x2]  ;;  %v5757_v14 = vrot.slane %v7197_v34, 6  ;;  %v5765_v54 = vshrl.u32 %v7197_v34, 16  ;;  %v5783_v8 = vsel %vm9953_vm6, %v5618_v43, %v5782_v38  ;;  %v5772_v4 = vrot.slane %v7197_v34, 7 }
 0x3fa   : > { %v5733_v41 = vsel %vm9947_vm5, %v5728_v26, %v5732_v48  ;;  %v5745_v11 = vld [vmem:[#allocation4 + $0xc] sm:$0x2]  ;;  %5784 = vst [vmem:[#allocation4 + $0x10] sm:$0x4] %v5783_v8  ;;  %v5788_v13 = vshll.u32 %v7198_v7, 16  ;;  %v5591_v21 = vmax.f32 %v5575_v47, %v5583_v40  ;;  %v5592_v32 = vmax.f32 %v5576_v62, %v5584_v52 }
 0x3fb   : > { %v5751_v37 = vld [vmem:[#allocation4 + $0x10] sm:$0x2]  ;;  %5734 = vst [vmem:[#allocation4] sm:$0x2] %v5733_v41  ;;  %v5746_v57 = vsel %vm9947_vm5, %v9912_v9, %v5745_v11  ;;  %v5762_v45 = vsel %vm9953_vm6, %v5757_v14, %v5761_v20  ;;  %v5767_v60 = vrot.slane %v5765_v54, 6  ;;  %v5777_v5 = vrot.slane %v5765_v54, 7 }
 0x3fc   : > { %v5741_v59 = vld [vmem:[#allocation4 + $0x8] sm:$0x2]  ;;  %v5752_v23 = vsel %vm9947_vm5, %v7121_v1, %v5751_v37  ;;  %v5737_v35 = vld [vmem:[#allocation4 + $0x4] sm:$0x2]  ;;  %5747 = vst [vmem:[#allocation4 + $0xc] sm:$0x2] %v5746_v57  ;;  %v5775_v44 = vsel %vm9953_vm6, %v5772_v4, %v5774_v63  ;;  %v5606_v17 = vadd.f32 %v9849_v10, %v5591_v21  ;;  %v5607_v42 = vadd.f32 %v9849_v10, %v5592_v32 }
 0x3fd   : > { %v5742_v53 = vsel %vm9947_vm5, %v5726_v3, %v5741_v59  ;;  %5753 = vst [vmem:[#allocation4 + $0x10] sm:$0x2] %v5752_v23  ;;  %v5738_v9 = vsel %vm9947_vm5, %v5735_v22, %v5737_v35  ;;  %5763 = vst [vmem:[#allocation4] sm:$0x4] %v5762_v45  ;;  %v5770_v49 = vsel %vm9953_vm6, %v5767_v60, %v5769_v12  ;;  %v5790_v55 = vrot.slane %v5788_v13, 6  ;;  %v8585_v21 = vld [vmem:[%s10157_s5 + $0x100] sm:$0xff]  }
 0x3fe   : > { %5743 = vst [vmem:[#allocation4 + $0x8] sm:$0x2] %v5742_v53  ;;  %5739 = vst [vmem:[#allocation4 + $0x4] sm:$0x2] %v5738_v9  ;;  %v5780_v24 = vsel %vm9953_vm6, %v5777_v5, %v5779_v27  ;;  %v5614_v29 = vmax.f32 %v5606_v17, 0.0  ;;  %v5802_v0 = vrot.slane %v5788_v13, 7 }
 0x3ff   : > { %5776 = vst [vmem:[#allocation4 + $0x8] sm:$0x4] %v5775_v44  ;;  %5771 = vst [vmem:[#allocation4 + $0x4] sm:$0x4] %v5770_v49  ;;  %v5615_v56 = vmax.f32 %v5607_v42, 0.0  ;;  %v5797_v62 = vrot.slane %v7198_v7, 6 }
 0x400   : > { %5781 = vst [vmem:[#allocation4 + $0xc] sm:$0x4] %v5780_v24  ;;  %v5807_v36 = vrot.slane %v7198_v7, 7  ;;  %v7199_v3 = vpack.c.bf16 %v5614_v29, %v5614_v29  ;;  %v5831_v38 = vld [vmem:[#allocation4 + $0x4] sm:$0x8]  ;;  %v8586_v32 = vld [vmem:[%s10157_s5 + $0x108] sm:$0xff]  }
 0x401   : > { %v5813_v31 = vld [vmem:[#allocation4 + $0x10] sm:$0x4]  ;;  %v5841_v26 = vld [vmem:[#allocation4 + $0xc] sm:$0x8]  ;;  %v7200_v20 = vpack.c.bf16 %v5615_v56, %v5615_v56  ;;  %v8588_v17 = vld [vmem:[%s10157_s5 + $0x118] sm:$0xff]  }
 0x402   : > { %v5814_v19 = vsel %vm9988_vm7, %v5788_v13, %v5813_v31  ;;  %v5819_v18 = vrot.slane %v7199_v3, 5  ;;  %v5827_v51 = vshrl.u32 %v7199_v3, 16  ;;  %v5834_v6 = vrot.slane %v7199_v3, 6  ;;  %v8589_v42 = vld [vmem:[%s10157_s5 + $0x120] sm:$0xff]   ;;  %v8590_v31 = vld [vmem:[%s10157_s5 + $0x128] sm:$0xff]   ;;  %v8596_v56 = vld [vmem:[%s10159_s7 + $0x10] sm:$0xff]  }
 0x403   : > { %5815 = vst [vmem:[#allocation4 + $0x10] sm:$0x4] %v5814_v19  ;;  %v5844_v34 = vrot.slane %v7199_v3, 7  ;;  %v5852_v52 = vshll.u32 %v7200_v20, 16  ;;  %v5861_v59 = vrot.slane %v7200_v20, 5  ;;  %v5871_v23 = vrot.slane %v7200_v20, 6 }
 0x404   : > { %v5794_v47 = vld [vmem:[#allocation4] sm:$0x4]  ;;  %v5824_v63 = vsel %vm10000_vm9, %v5819_v18, %v5823_v50  ;;  %v5829_v43 = vrot.slane %v5827_v51, 5  ;;  %v5839_v40 = vrot.slane %v5827_v51, 6  ;;  %v5837_v48 = vsel %vm10000_vm9, %v5834_v6, %v5836_v46  ;;  %v8592_v19 = vld [vmem:[%s10157_s5 + $0x138] sm:$0xff]  }
 0x405   : > { %v5795_v33 = vsel %vm9988_vm7, %v5790_v55, %v5794_v47  ;;  %5825 = vst [vmem:[#allocation4] sm:$0x8] %v5824_v63  ;;  %v5847_v22 = vsel %vm10000_vm9, %v5844_v34, %v5846_v15  ;;  %5838 = vst [vmem:[#allocation4 + $0x8] sm:$0x8] %v5837_v48  ;;  %v5854_v11 = vrot.slane %v5852_v52, 5  ;;  %v5866_v14 = vrot.slane %v5852_v52, 6 }
 0x406   : > { %v5804_v16 = vld [vmem:[#allocation4 + $0x8] sm:$0x4]  ;;  %5796 = vst [vmem:[#allocation4] sm:$0x4] %v5795_v33  ;;  %v5799_v2 = vld [vmem:[#allocation4 + $0x4] sm:$0x4]  ;;  %v5832_v1 = vsel %vm10000_vm9, %v5829_v43, %v5831_v38  ;;  %v5842_v12 = vsel %vm10000_vm9, %v5839_v40, %v5841_v26 }
 0x407   : > { %v5805_v58 = vsel %vm9988_vm7, %v5802_v0, %v5804_v16  ;;  %v5809_v39 = vld [vmem:[#allocation4 + $0xc] sm:$0x4]  ;;  %v5800_v61 = vsel %vm9988_vm7, %v5797_v62, %v5799_v2  ;;  %5848 = vst [vmem:[#allocation4 + $0x10] sm:$0x8] %v5847_v22  ;;  %5833 = vst [vmem:[#allocation4 + $0x4] sm:$0x8] %v5832_v1 }
 0x408   : > { %5806 = vst [vmem:[#allocation4 + $0x8] sm:$0x4] %v5805_v58  ;;  %v5810_v25 = vsel %vm9988_vm7, %v5807_v36, %v5809_v39  ;;  %5801 = vst [vmem:[#allocation4 + $0x4] sm:$0x4] %v5800_v61  ;;  %v5876_v54 = vrot.slane %v5852_v52, 7  ;;  %v8591_v55 = vld [vmem:[%s10157_s5 + $0x130] sm:$0xff]  }
 0x409   : > { %5811 = vst [vmem:[#allocation4 + $0xc] sm:$0x4] %v5810_v25  ;;  %5843 = vst [vmem:[#allocation4 + $0xc] sm:$0x8] %v5842_v12  ;;  %v8593_v29 = vld [vmem:[#allocation4 + $0x10] ss:$0 sps:$4 sm:$0xff]  }
 0x40a   : > { %v8594_v47 = vld [vmem:[%s10159_s7] sm:$0xff]   ;;  %v8595_v0 = vld [vmem:[%s10159_s7 + $0x8] sm:$0xff]   ;;  %v8597_v33 = vld [vmem:[%s10159_s7 + $0x18] sm:$0xff]  }
 0x40b   : > { %v8598_v62 = vld [vmem:[%s10159_s7 + $0x20] sm:$0xff]   ;;  %v8599_v16 = vld [vmem:[%s10159_s7 + $0x28] sm:$0xff]   ;;  %v8600_v36 = vld [vmem:[%s10159_s7 + $0x30] sm:$0xff]  }
 0x40c   : > { %v5858_v37 = vld [vmem:[#allocation4] sm:$0x8]  ;;  %v5868_v57 = vld [vmem:[#allocation4 + $0x8] sm:$0x8]  ;;  %v8601_v3 = vld [vmem:[%s10159_s7 + $0x38] sm:$0xff]  }
 0x40d   : > { %v5859_v8 = vsel %vm10021_vm10, %v5854_v11, %v5858_v37  ;;  %v5869_v7 = vsel %vm10021_vm10, %v5866_v14, %v5868_v57  ;;  %v8602_v10 = vld [vmem:[%s10161_s9] sm:$0xff]   ;;  %v8603_v2 = vld [vmem:[%s10161_s9 + $0x8] sm:$0xff]   ;;  %v8604_v58 = vld [vmem:[%s10161_s9 + $0x10] sm:$0xff]  }
 0x40e   : > { %v5878_v4 = vld [vmem:[#allocation4 + $0x10] sm:$0x8]  ;;  %5860 = vst [vmem:[#allocation4] sm:$0x8] %v5859_v8  ;;  %v5863_v27 = vld [vmem:[#allocation4 + $0x4] sm:$0x8] }
 0x40f   : > { %v5879_v53 = vsel %vm10021_vm10, %v5876_v54, %v5878_v4  ;;  %v5864_v45 = vsel %vm10021_vm10, %v5861_v59, %v5863_v27  ;;  %5870 = vst [vmem:[#allocation4 + $0x8] sm:$0x8] %v5869_v7  ;;  %v8605_v39 = vld [vmem:[%s10161_s9 + $0x18] sm:$0xff]   ;;  %v8606_v50 = vld [vmem:[%s10161_s9 + $0x20] sm:$0xff]   ;;  %v8607_v61 = vld [vmem:[%s10161_s9 + $0x28] sm:$0xff]  }
 0x410   : > { %v5873_v35 = vld [vmem:[#allocation4 + $0xc] sm:$0x8]  ;;  %5880 = vst [vmem:[#allocation4 + $0x10] sm:$0x8] %v5879_v53  ;;  %5865 = vst [vmem:[#allocation4 + $0x4] sm:$0x8] %v5864_v45 }
 0x411   : > { %v5874_v60 = vsel %vm10021_vm10, %v5871_v23, %v5873_v35  ;;  %v7126_v51 = vld [vmem:[%s10158_s6] ss:$0 sm:$0xff]  ;;  %v8608_v37 = vld [vmem:[%s10161_s9 + $0x30] sm:$0xff]   ;;  %v8609_v14 = vld [vmem:[%s10161_s9 + $0x38] sm:$0xff]  }
 0x412   : > { %5875 = vst [vmem:[#allocation4 + $0xc] sm:$0x8] %v5874_v60  ;;  %v7172_v54 = vld [vmem:[%s10160_s8] ss:$0 sm:$0xff] }
 0x417   : > { %v5881_v5 = vld [vmem:[#allocation4] sm:$0xff] }
 0x418   : > { %v7127_v44 = vcombine.low %v5881_v5, %v5881_v5  ;;  %v7128_v49 = vcombine.high %v5881_v5, %v5881_v5 }
 0x419   : > { %v5882_v9 = vld [vmem:[#allocation4 + $0x8] sm:$0xff] }
 0x41a   : > { %v7129_v24 = vcombine.low %v5882_v9, %v5882_v9  ;;  %v7130_v13 = vcombine.high %v5882_v9, %v5882_v9  ;;  %6261 = vmatprep.mubr.bf16.mxu0 %v7128_v49 }
 0x41b   : > { %6262 = vmatmul.mubr.bf16.vlgmr.msra.gmra.mrb[160].mxu0 %v7127_v44 }
 0x41c   : > { %6301 = vmatprep.mubr.bf16.mxu1 %v7130_v13  ;;  %8073 = vmatpush3.bf16.msra.mxu0 %v8585_v21 }
 0x41d   : > { %6302 = vmatmul.mubr.bf16.vlgmr.msra.gmra.mrb[160].mxu1 %v7129_v24  ;;  %8088 = vmatprep.mubr.msk.bf16.mxu0 %vm8695_vm11, %v8694_v28 }
 0x41e   : > { %8074 = vmatprep.subr.bf16.mxu0 %v8694_v28  ;;  %8108 = vmatprep.mubr.msk.bf16.mxu1 %vm8695_vm11, %v8694_v28 }
 0x41f   : > { %8093 = vmatpush3.bf16.msra.mxu1 %v8594_v47 }
 0x420   : > { %8075 = vmatpush3.bf16.msra.mxu0 %v8586_v32  ;;  %8094 = vmatprep.subr.bf16.mxu1 %v8694_v28 }
 0x421   : > { %8076 = vmatprep.subr.bf16.mxu0 %v8694_v28 }
 0x423   : > { %8095 = vmatpush3.bf16.msra.mxu1 %v8595_v0 }
 0x424   : > { %8077 = vmatpush3.bf16.msra.mxu0 %v8587_v30  ;;  %8096 = vmatprep.subr.bf16.mxu1 %v8694_v28 }
 0x425   : > { %8078 = vmatprep.subr.bf16.mxu0 %v8694_v28 }
 0x427   : > { %8097 = vmatpush3.bf16.msra.mxu1 %v8596_v56 }
 0x428   : > { %8079 = vmatpush3.bf16.msra.mxu0 %v8588_v17  ;;  %8098 = vmatprep.subr.bf16.mxu1 %v8694_v28 }
 0x429   : > { %8080 = vmatprep.subr.bf16.mxu0 %v8694_v28 }
 0x42b   : > { %8099 = vmatpush3.bf16.msra.mxu1 %v8597_v33 }
 0x42c   : > { %8081 = vmatpush3.bf16.msra.mxu0 %v8589_v42  ;;  %8100 = vmatprep.subr.bf16.mxu1 %v8694_v28 }
 0x42d   : > { %8082 = vmatprep.subr.bf16.mxu0 %v8694_v28 }
 0x42f   : > { %8101 = vmatpush3.bf16.msra.mxu1 %v8598_v62 }
 0x430   : > { %8083 = vmatpush3.bf16.msra.mxu0 %v8590_v31  ;;  %8102 = vmatprep.subr.bf16.mxu1 %v8694_v28 }
 0x431   : > { %8084 = vmatprep.subr.bf16.mxu0 %v8694_v28 }
 0x433   : > { %8103 = vmatpush3.bf16.msra.mxu1 %v8599_v16 }
 0x434   : > { %8085 = vmatpush3.bf16.msra.mxu0 %v8591_v55  ;;  %8104 = vmatprep.subr.bf16.mxu1 %v8694_v28 }
 0x435   : > { %8086 = vmatprep.subr.bf16.mxu0 %v8694_v28 }
 0x437   : > { %8105 = vmatpush3.bf16.msra.mxu1 %v8600_v36 }
 0x438   : > { %8087 = vmatpush3.bf16.msra.mxu0 %v8592_v19  ;;  %8106 = vmatprep.subr.bf16.mxu1 %v8694_v28 }
 0x439   : > { %8112 = vmatprep.subr.bf16.mxu0 %v8694_v28 }
 0x43b   : > { %8089 = vmatmul.mubr.bf16.vlgmr.msra.gmra.mrb[164].mxu0 %v8593_v29  ;;  %8107 = vmatpush3.bf16.msra.mxu1 %v8601_v3 }
 0x43c   : > { %8128 = vmatprep.mubr.msk.bf16.mxu0 %vm8695_vm11, %v8694_v28  ;;  %8113 = vmatpush3.bf16.msra.mxu0 %v8602_v10 }
 0x43d   : > { %8114 = vmatprep.subr.bf16.mxu0 %v8694_v28 }
 0x440   : > { %8115 = vmatpush3.bf16.msra.mxu0 %v8603_v2 }
 0x441   : > { %8116 = vmatprep.subr.bf16.mxu0 %v8694_v28 }
 0x444   : > { %8117 = vmatpush3.bf16.msra.mxu0 %v8604_v58 }
 0x445   : > { %8118 = vmatprep.subr.bf16.mxu0 %v8694_v28 }
 0x448   : > { %8119 = vmatpush3.bf16.msra.mxu0 %v8605_v39 }
 0x449   : > { %8120 = vmatprep.subr.bf16.mxu0 %v8694_v28 }
 0x44c   : > { %8121 = vmatpush3.bf16.msra.mxu0 %v8606_v50 }
 0x44d   : > { %8122 = vmatprep.subr.bf16.mxu0 %v8694_v28 }
 0x450   : > { %8123 = vmatpush3.bf16.msra.mxu0 %v8607_v61 }
 0x451   : > { %8124 = vmatprep.subr.bf16.mxu0 %v8694_v28 }
 0x454   : > { %8125 = vmatpush3.bf16.msra.mxu0 %v8608_v37 }
 0x455   : > { %8126 = vmatprep.subr.bf16.mxu0 %v8694_v28  ;;  %v7181_v28 = vld [vmem:[%s10162_s10] ss:$0 sm:$0xff] }
 0x458   : > { %8127 = vmatpush3.bf16.msra.mxu0 %v8609_v14 }
 0x4ee   : > { %v8017_v25 = vpop.f32.mrb[160].mxu0 }
 0x4ef   : > { %v8018_v46 = vpop.f32.mrb[161].mxu0 }
 0x4f0   : > { %v8039_v18 = vpop.f32.mrb[160].mxu1  ;;  %v8019_v38 = vadd.f32 %v8018_v46, %v8017_v25  ;;  %v8020_v26 = vpop.f32.mrb[162].mxu0 }
 0x4f1   : > { %v8040_v15 = vpop.f32.mrb[161].mxu1  ;;  %v8021_v20 = vpop.f32.mrb[163].mxu0 }
 0x4f2   : > { %v8041_v6 = vadd.f32 %v8040_v15, %v8039_v18  ;;  %v8042_v34 = vpop.f32.mrb[162].mxu1  ;;  %v6264_v43 = vadd.f32 %v8019_v38, %v7126_v51 }
 0x4f3   : > { %v8043_v63 = vpop.f32.mrb[163].mxu1 }
 0x4f4   : > { %v6304_v40 = vadd.f32 %v8041_v6, %v6264_v43 }
 0x50e   : > { %v6343_v48 = vpop.f32.mrb[164].mxu0 }
 0x50f   : > { %v6344_v22 = vadd.f32 %v6343_v48, %v6304_v40  ;;  %v8090_v1 = vpop.f32.mrb[165].mxu0 }
 0x510   : > { %v6346_v12 = vpop.f32.mrb[166].mxu0 }
 0x511   : > { %v6349_v52 = vmax.f32 %v6344_v22, 0.0  ;;  %v8091_v41 = vpop.f32.mrb[167].mxu0 }
 0x513   : > { %v6350_v11 = vpack.c.bf16 %v6349_v52, %v6349_v52 }
 0x515   : > { %8109 = vmatmul.mubr.bf16.vlgmr.msra.gmra.mrb[164].mxu1 %v6350_v11 }
 0x5e8   : > { %v6456_v8 = vpop.f32.mrb[164].mxu1 }
 0x5e9   : > { %v6457_v59 = vadd.f32 %v7172_v54, %v6456_v8  ;;  %v8110_v57 = vpop.f32.mrb[165].mxu1 }
 0x5ea   : > { %v6459_v23 = vpop.f32.mrb[166].mxu1 }
 0x5eb   : > { %v6462_v4 = vmax.f32 %v6457_v59, 0.0  ;;  %v8111_v27 = vpop.f32.mrb[167].mxu1 }
 0x5ed   : > { %v6463_v7 = vpack.c.bf16 %v6462_v4, %v6462_v4 }
 0x5ef   : > { %8129 = vmatmul.mubr.bf16.vlgmr.msra.gmra.mrb[168].mxu0 %v6463_v7 }
 0x6c2   : > { %v6569_v35 = vpop.f32.mrb[168].mxu0 }
 0x6c3   : > { %v6570_v53 = vadd.f32 %v7181_v28, %v6569_v35  ;;  %v8130_v45 = vpop.f32.mrb[169].mxu0 }
 0x6c4   : > { %v6572_v60 = vpop.f32.mrb[170].mxu0 }
 0x6c5   : > { %6575 = vst [vmem:[%s419_s12] sm:$0xff] %v6570_v53  ;;  %v8131_v5 = vpop.f32.mrb[171].mxu0 }
 0x6c6 PF: > { %s23_s17 = sadd.s32 1, %s8684_s17  }
 0x6c7   : > { %p20_p10 = scmp.ge.s32.totalorder %s23_s17, 4  }
 0x6c9   :  { %22 = sbr.rel (!%p20_p10) target bundleno = 2 (0x2), region = 144 }
 0x6d0   :  { %6595 = vsyncpa [#allocation6], 1 }
 0x6d1   :  { %6597 = vsyncpa [#allocation6 + $0x1], 1 }
 0x6d2   :  { %6598 = vsyncpa [#allocation8], 1 }

</bundles_post_ra>
